<compile_context>
chip_gen: v7x
topology: tpu7x:2x2x1
jax: 0.10.0
libtpu: 0.0.40
codegen_flags: <defaults>
</compile_context>

<pallas_src>
import math
from functools import partial

import jax
import jax.numpy as jnp
from jax import lax
from jax.experimental import pallas as pl
from jax.experimental.pallas import tpu as pltpu

_SUBLANE_BF16 = 16  # bf16 sublane granule -> pad batch so per-step bf16 stores are tile-aligned


# ------------------------------------------------------------------ kernels ---

def seq2seq_rnn_kernel(xes_enc_ref, mask_ref, xes_dec_ref,
                       e_wih0_ref, e_whh0_ref, e_b0_ref,
                       e_wih1_ref, e_whh1_ref, e_b1_ref,
                       d_wih0_ref, d_whh0_ref, d_b0_ref,
                       d_wih1_ref, d_whh1_ref, d_b1_ref,
                       hs_ref, h_out_ref, c_out_ref,
                       xw_enc_scr, xw_dec_scr):
    """Fused 2-layer LSTM encoder + teacher-forced decoder.

    Encoder replicates pack_padded_sequence: padded timesteps leave the state
    untouched (single blend with the (Bp,1) mask).  Encoder final states feed the
    decoder loop carry directly (never leave vregs/VMEM).  Decoder layer-1 hidden
    states are written per-step (bf16, tile-aligned rows) into hs_ref for the
    separate tiled vocab-projection kernel.
    """
    T_in, Bp, E = xes_enc_ref.shape
    T_out = xes_dec_ref.shape[0]
    H = h_out_ref.shape[-1]

    def cell(x_part, h, c, whh_ref, b_ref):
        # x_part already holds x @ W_ih (f32, precomputed off the serial path);
        # only the K=H h @ W_hh matmul remains on the recurrence.
        g = x_part + jnp.dot(h.astype(jnp.bfloat16), whh_ref[...],
                             preferred_element_type=jnp.float32) + b_ref[...]
        i = jax.nn.sigmoid(g[:, 0 * H:1 * H])
        f = jax.nn.sigmoid(g[:, 1 * H:2 * H])
        gg = jnp.tanh(g[:, 2 * H:3 * H])
        o = jax.nn.sigmoid(g[:, 3 * H:4 * H])
        c_new = f * c + i * gg
        h_new = o * jnp.tanh(c_new)
        return h_new, c_new

    # ---------------- encoder ----------------
    # Hoisted input-half of layer-0: one (T_in*Bp, E) @ (E, 4H) MXU matmul.
    xw_enc_scr[...] = jnp.dot(xes_enc_ref[...].reshape(T_in * Bp, E),
                              e_wih0_ref[...], preferred_element_type=jnp.float32)

    def enc_step(t, carry):
        h0, c0, h1, c1 = carry
        row = pl.multiple_of(t * Bp, Bp)
        xw0 = xw_enc_scr[pl.ds(row, Bp), :]                  # (Bp, 4H) f32
        m = mask_ref[t]                                      # (Bp, 1) f32, 1.0 = valid
        h0n, c0n = cell(xw0, h0, c0, e_whh0_ref, e_b0_ref)
        xw1 = jnp.dot(h0n.astype(jnp.bfloat16), e_wih1_ref[...],
                      preferred_element_type=jnp.float32)
        h1n, c1n = cell(xw1, h1, c1, e_whh1_ref, e_b1_ref)
        # pack_padded_sequence semantics: state frozen on padded steps.
        h0 = h0 + m * (h0n - h0)
        c0 = c0 + m * (c0n - c0)
        h1 = h1 + m * (h1n - h1)
        c1 = c1 + m * (c1n - c1)
        return h0, c0, h1, c1

    zero = jnp.zeros((Bp, H), jnp.float32)
    h0, c0, h1, c1 = lax.fori_loop(0, T_in, enc_step, (zero, zero, zero, zero),
                                   unroll=True)

    # ---------------- decoder (teacher forcing) ----------------
    xw_dec_scr[...] = jnp.dot(xes_dec_ref[...].reshape(T_out * Bp, E),
                              d_wih0_ref[...], preferred_element_type=jnp.float32)

    def dec_step(t, carry):
        h0, c0, h1, c1 = carry
        row = pl.multiple_of(t * Bp, Bp)
        xw0 = xw_dec_scr[pl.ds(row, Bp), :]
        h0, c0 = cell(xw0, h0, c0, d_whh0_ref, d_b0_ref)
        xw1 = jnp.dot(h0.astype(jnp.bfloat16), d_wih1_ref[...],
                      preferred_element_type=jnp.float32)
        h1, c1 = cell(xw1, h1, c1, d_whh1_ref, d_b1_ref)
        hs_ref[pl.ds(row, Bp), :] = h1.astype(jnp.bfloat16)  # Bp=16 -> bf16-tile-aligned
        return h0, c0, h1, c1

    h0, c0, h1, c1 = lax.fori_loop(0, T_out, dec_step, (h0, c0, h1, c1),
                                   unroll=True)

    h_out_ref[0] = h0
    h_out_ref[1] = h1
    c_out_ref[0] = c0
    c_out_ref[1] = c1


def proj_kernel(hs_ref, embT_ref, scores_ref):
    """One lane-dense output tile of the tied vocab projection (K = H, single pass)."""
    scores_ref[...] = jnp.dot(hs_ref[...], embT_ref[...],
                              preferred_element_type=jnp.float32
                              ).astype(scores_ref.dtype)


# ------------------------------------------------------------------ wrappers ---

_VMEM = pl.BlockSpec(memory_space=pltpu.MemorySpace.VMEM)


def run_rnn(xes_enc_t, mask_t, xes_dec_t, enc, dec):
    # TODO(synk): for long sequences, pipeline xes/xw over a (T,) grid (or pl.ANY +
    # manual double-buffered DMA) so the recurrence's VMEM footprint is O(1) in T.
    T_in, Bp, _ = xes_enc_t.shape
    T_out = xes_dec_t.shape[0]
    H = enc['whh0'].shape[0]
    return pl.pallas_call(
        seq2seq_rnn_kernel,
        out_shape=(jax.ShapeDtypeStruct((T_out * Bp, H), jnp.bfloat16),
                   jax.ShapeDtypeStruct((2, Bp, H), jnp.float32),
                   jax.ShapeDtypeStruct((2, Bp, H), jnp.float32)),
        in_specs=[_VMEM] * 15,
        out_specs=(_VMEM, _VMEM, _VMEM),
        scratch_shapes=[pltpu.VMEM((T_in * Bp, 4 * H), jnp.float32),
                        pltpu.VMEM((T_out * Bp, 4 * H), jnp.float32)],
        compiler_params=pltpu.CompilerParams(vmem_limit_bytes=32 * 1024 * 1024),
    )(xes_enc_t, mask_t, xes_dec_t,
      enc['wih0'], enc['whh0'], enc['b0'], enc['wih1'], enc['whh1'], enc['b1'],
      dec['wih0'], dec['whh0'], dec['b0'], dec['wih1'], dec['whh1'], dec['b1'])


def _pick_tile(n, candidates):
    for c in candidates:
        if n % c == 0:
            return c
    return n


def run_projection(hs, embT):
    """Tiled (rows x V) tied-embedding projection; both grid axes parallel so v7x
    can shard across its 2 TensorCores.  Scores emitted in bf16 (halves HBM
    writeback of the only T*B*V-scaling array)."""
    R, H = hs.shape
    V = embT.shape[1]
    tr = _pick_tile(R, (512, 256, 128))
    tv = _pick_tile(V, (2048, 1024, 512, 256, 128))
    return pl.pallas_call(
        proj_kernel,
        out_shape=jax.ShapeDtypeStruct((R, V), jnp.bfloat16),
        grid_spec=pltpu.PrefetchScalarGridSpec(
            num_scalar_prefetch=0,
            grid=(R // tr, V // tv),
            in_specs=[pl.BlockSpec((tr, H), lambda i, j: (i, 0)),
                      pl.BlockSpec((H, tv), lambda i, j: (0, j))],
            out_specs=pl.BlockSpec((tr, tv), lambda i, j: (i, j))),
        compiler_params=pltpu.CompilerParams(
            dimension_semantics=("parallel", "parallel"),
            vmem_limit_bytes=32 * 1024 * 1024),
    )(hs, embT)


def _round_up(n, m):
    return ((n + m - 1) // m) * m


def _pad_rows(x, rows):
    if x.shape[0] == rows:
        return x
    pad = [(0, rows - x.shape[0])] + [(0, 0)] * (x.ndim - 1)
    return jnp.pad(x, pad)   # pads with token 0 / zeros -> masked & sliced away later


@partial(jax.jit, static_argnames=('start_idx',))
def seq2seq_forward(xs, ys, params, start_idx=1):
    """Teacher-forced forward (ys is not None, attention='none').
    Returns (predictions, scores, text_cand_inds=None)."""
    B = xs.shape[0]
    Bp = _round_up(B, _SUBLANE_BF16)
    emb = params['emb']                                   # (V, E) f32 lookup table
    embT = params['embT']                                 # (E, V) bf16, pre-transposed

    # ---- embedding lookups + masks (XLA glue; dropout is a no-op in eval) ----
    xs_p = _pad_rows(xs, Bp)                              # padded rows are all token 0
    xes_enc = emb[xs_p].astype(jnp.bfloat16)              # (Bp, T_in, E)
    mask = (xs_p > 0).astype(jnp.float32)[..., None]      # (Bp, T_in, 1)

    starts = jnp.full((B, 1), start_idx, dtype=xs.dtype)
    xs_dec = jnp.concatenate([starts, ys[:, :-1]], axis=1)          # (B, T_out)
    T_out = xs_dec.shape[1]
    xes_dec = emb[_pad_rows(xs_dec, Bp)].astype(jnp.bfloat16)

    # ---- fused encoder + decoder recurrence (single pallas_call) ----
    hs, _h_new, _c_new = run_rnn(jnp.transpose(xes_enc, (1, 0, 2)),
                                 jnp.transpose(mask, (1, 0, 2)),
                                 jnp.transpose(xes_dec, (1, 0, 2)),
                                 params['enc'], params['dec'])

    # ---- tiled tied-embedding projection (e2s, bias=False; o2e identity) ----
    scores_bf16 = run_projection(hs, embT)                # (T_out*Bp, V) bf16
    V = scores_bf16.shape[-1]
    scores = jnp.transpose(scores_bf16.reshape(T_out, Bp, V), (1, 0, 2))[:B]
    scores = scores.astype(jnp.float32)                   # (B, T_out, V)
    # preds = argmax over scores[:, :, 1:] + 1  (column 0 = padding idx excluded).
    # TODO(synk): bf16 scores may tie-break argmax differently from an fp32 reference.
    preds = (jnp.argmax(scores[..., 1:], axis=-1) + 1).astype(jnp.int32)
    return preds, scores, None


# ------------------------------------------------------------------ params ---

def init_params(key, num_features, emb_size, hidden_size):
    """Raw parameters (PyTorch init, weights already transposed)."""
    V, E, H = num_features, emb_size, hidden_size
    ks = jax.random.split(key, 17)
    stdv = 1.0 / math.sqrt(H)

    def uni(k, shape):
        return jax.random.uniform(k, shape, jnp.float32, minval=-stdv, maxval=stdv)

    # nn.Embedding default init N(0,1), padding row zeroed.
    emb = jax.random.normal(ks[0], (V, E), jnp.float32).at[0].set(0.0)

    def lstm_params(keys, in0):
        return {
            'wih0': uni(keys[0], (in0, 4 * H)),           # W_ih_l0^T
            'whh0': uni(keys[1], (H, 4 * H)),             # W_hh_l0^T
            'b0':   uni(keys[2], (1, 4 * H)) + uni(keys[3], (1, 4 * H)),
            'wih1': uni(keys[4], (H, 4 * H)),             # W_ih_l1^T
            'whh1': uni(keys[5], (H, 4 * H)),             # W_hh_l1^T
            'b1':   uni(keys[6], (1, 4 * H)) + uni(keys[7], (1, 4 * H)),
        }

    return {'emb': emb,
            'enc': lstm_params(ks[1:9], E),
            'dec': lstm_params(ks[9:17], E)}


def prepare_params(raw):
    """One-time prep: cast MXU operands (LSTM weights, output embedding) to bf16,
    keep W_ih / W_hh separate so the x-half can be precomputed off the loop."""
    def prep(p):
        return {
            'wih0': p['wih0'].astype(jnp.bfloat16),
            'whh0': p['whh0'].astype(jnp.bfloat16),
            'b0':   p['b0'],
            'wih1': p['wih1'].astype(jnp.bfloat16),
            'whh1': p['whh1'].astype(jnp.bfloat16),
            'b1':   p['b1'],
        }
    return {'emb': raw['emb'],
            'embT': raw['emb'].T.astype(jnp.bfloat16),
            'enc': prep(raw['enc']),
            'dec': prep(raw['dec'])}


# ------------------------------------------------------------------ main ---

if __name__ == "__main__":
    # Module defaults: emb_size = hidden_size = 128, num_layers = 2.
    V, E, H = 256, 128, 128
    B, T_IN, T_OUT = 2, 8, 6
    START_IDX = 1

    key = jax.random.PRNGKey(0)
    kp, kx, ky = jax.random.split(key, 3)
    params = prepare_params(init_params(kp, V, E, H))

    # Encoder inputs: padded token ids, descending lengths (pack_padded_sequence).
    lens = [T_IN, 5]
    xs = jax.random.randint(kx, (B, T_IN), 3, V, dtype=jnp.int32)
    pos = jnp.arange(T_IN)[None, :]
    xs = jnp.where(pos < jnp.asarray(lens)[:, None], xs, 0)

    # Target tokens for teacher forcing.
    ys = jax.random.randint(ky, (B, T_OUT), 3, V, dtype=jnp.int32)

    preds, scores, text_cand_inds = seq2seq_forward(xs, ys, params, start_idx=START_IDX)
    preds, scores = jax.block_until_ready((preds, scores))

    assert preds.shape == (B, T_OUT)
    assert scores.shape == (B, T_OUT, V)
    assert bool(jnp.all(preds >= 1))
    assert bool(jnp.all(jnp.isfinite(scores)))
    # TODO(synk): rank_candidates / free-running greedy decode (ys=None) and non-'none'
    # attention are not exercised; this covers the teacher-forced forward path.
    print("KERNEL_OK")
</pallas_src>

<mosaic_0001>
module attributes {stable_mosaic.version = 11 : i64} {
  func.func @proj_kernel(%arg0: i32, %arg1: i32, %arg2: memref<96x128xbf16, #tpu.memory_space<vmem>>, %arg3: memref<128x256xbf16, #tpu.memory_space<vmem>>, %arg4: memref<96x256xbf16, #tpu.memory_space<vmem>>) attributes {dimension_semantics = [#tpu.dimension_semantics<parallel>, #tpu.dimension_semantics<parallel>], iteration_bounds = array<i64: 1, 1>, scalar_prefetch = 0 : i64, scratch_operands = 0 : i64, tpu.core_type = #tpu.core_type<tc>, window_params = [{transform_indices = @transform_0, window_bounds = array<i64: 96, 128>}, {transform_indices = @transform_1, window_bounds = array<i64: 128, 256>}, {transform_indices = @transform_2, window_bounds = array<i64: 96, 256>}]} {
    %c0 = arith.constant 0 : index
    %c0_0 = arith.constant 0 : index
    %0 = vector.load %arg2[%c0, %c0_0] : memref<96x128xbf16, #tpu.memory_space<vmem>>, vector<96x128xbf16>
    %c0_1 = arith.constant 0 : index
    %c0_2 = arith.constant 0 : index
    %1 = vector.load %arg3[%c0_1, %c0_2] : memref<128x256xbf16, #tpu.memory_space<vmem>>, vector<128x256xbf16>
    %cst = arith.constant dense<0.000000e+00> : vector<96x256xf32>
    %2 = tpu.matmul %0, %1, %cst {dimension_numbers = #tpu.dot_dimension_numbers<[1], [0], [0], [1], [0, 0, 1, 1], [], []>} : vector<96x128xbf16>, vector<128x256xbf16>, vector<96x256xf32> -> vector<96x256xf32>
    %3 = arith.truncf %2 : vector<96x256xf32> to vector<96x256xbf16>
    %c0_3 = arith.constant 0 : index
    %c0_4 = arith.constant 0 : index
    %4 = vector.load %arg4[%c0_3, %c0_4] : memref<96x256xbf16, #tpu.memory_space<vmem>>, vector<96x256xbf16>
    tpu.vector_store %arg4[%c0_3, %c0_4], %3 {strides = array<i32>} : memref<96x256xbf16, #tpu.memory_space<vmem>>, vector<96x256xbf16>,
    return
  }
  func.func @transform_0(%arg0: i32, %arg1: i32) -> (i32, i32) {
    %c0_i32 = arith.constant 0 : i32
    %c0_i32_0 = arith.constant 0 : i32
    return %arg0, %c0_i32 : i32, i32
  }
  func.func @transform_1(%arg0: i32, %arg1: i32) -> (i32, i32) {
    %c0_i32 = arith.constant 0 : i32
    %c0_i32_0 = arith.constant 0 : i32
    return %c0_i32, %arg1 : i32, i32
  }
  func.func @transform_2(%arg0: i32, %arg1: i32) -> (i32, i32) {
    %c0_i32 = arith.constant 0 : i32
    return %arg0, %arg1 : i32, i32
  }
}

module attributes {stable_mosaic.version = 11 : i64} {
  func.func @seq2seq_rnn_kernel(%arg0: memref<8x16x128xbf16, #tpu.memory_space<vmem>>, %arg1: memref<8x16x1xf32, #tpu.memory_space<vmem>>, %arg2: memref<6x16x128xbf16, #tpu.memory_space<vmem>>, %arg3: memref<128x512xbf16, #tpu.memory_space<vmem>>, %arg4: memref<128x512xbf16, #tpu.memory_space<vmem>>, %arg5: memref<1x512xf32, #tpu.memory_space<vmem>>, %arg6: memref<128x512xbf16, #tpu.memory_space<vmem>>, %arg7: memref<128x512xbf16, #tpu.memory_space<vmem>>, %arg8: memref<1x512xf32, #tpu.memory_space<vmem>>, %arg9: memref<128x512xbf16, #tpu.memory_space<vmem>>, %arg10: memref<128x512xbf16, #tpu.memory_space<vmem>>, %arg11: memref<1x512xf32, #tpu.memory_space<vmem>>, %arg12: memref<128x512xbf16, #tpu.memory_space<vmem>>, %arg13: memref<128x512xbf16, #tpu.memory_space<vmem>>, %arg14: memref<1x512xf32, #tpu.memory_space<vmem>>, %arg15: memref<96x128xbf16, #tpu.memory_space<vmem>>, %arg16: memref<2x16x128xf32, #tpu.memory_space<vmem>>, %arg17: memref<2x16x128xf32, #tpu.memory_space<vmem>>, %arg18: memref<128x512xf32, #tpu.memory_space<vmem>>, %arg19: memref<96x512xf32, #tpu.memory_space<vmem>>) attributes {dimension_semantics = [], scalar_prefetch = 0 : i64, scratch_operands = 2 : i64, tpu.core_type = #tpu.core_type<tc>} {
    %c0 = arith.constant 0 : index
    %c0_0 = arith.constant 0 : index
    %c0_1 = arith.constant 0 : index
    %0 = vector.load %arg0[%c0, %c0_0, %c0_1] : memref<8x16x128xbf16, #tpu.memory_space<vmem>>, vector<8x16x128xbf16>
    %1 = vector.shape_cast %0 : vector<8x16x128xbf16> to vector<128x128xbf16>
    %c0_2 = arith.constant 0 : index
    %c0_3 = arith.constant 0 : index
    %2 = vector.load %arg3[%c0_2, %c0_3] : memref<128x512xbf16, #tpu.memory_space<vmem>>, vector<128x512xbf16>
    %cst = arith.constant dense<0.000000e+00> : vector<128x512xf32>
    %3 = tpu.matmul %1, %2, %cst {dimension_numbers = #tpu.dot_dimension_numbers<[1], [0], [0], [1], [0, 0, 1, 1], [], []>} : vector<128x128xbf16>, vector<128x512xbf16>, vector<128x512xf32> -> vector<128x512xf32>
    %c0_4 = arith.constant 0 : index
    %c0_5 = arith.constant 0 : index
    %4 = vector.load %arg18[%c0_4, %c0_5] : memref<128x512xf32, #tpu.memory_space<vmem>>, vector<128x512xf32>
    tpu.vector_store %arg18[%c0_4, %c0_5], %3 {strides = array<i32>} : memref<128x512xf32, #tpu.memory_space<vmem>>, vector<128x512xf32>,
    %cst_6 = arith.constant 0.000000e+00 : f32
    %5 = vector.broadcast %cst_6 : f32 to vector<16x128xf32>
    %c0_i32 = arith.constant 0 : i32
    %c16_i32 = arith.constant 16 : i32
    %6 = arith.muli %c0_i32, %c16_i32 : i32
    %7 = tpu.assume_multiple %6, 16 : i32
    %8 = arith.index_cast %7 : i32 to index
    %c0_7 = arith.constant 0 : index
    %9 = vector.load %arg18[%8, %c0_7] : memref<128x512xf32, #tpu.memory_space<vmem>>, vector<16x512xf32>
    %10 = arith.index_cast %c0_i32 : i32 to index
    %c0_8 = arith.constant 0 : index
    %c0_9 = arith.constant 0 : index
    %11 = vector.load %arg1[%10, %c0_8, %c0_9] : memref<8x16x1xf32, #tpu.memory_space<vmem>>, vector<1x16x1xf32>
    %12 = vector.shape_cast %11 : vector<1x16x1xf32> to vector<16x1xf32>
    %13 = arith.truncf %5 : vector<16x128xf32> to vector<16x128xbf16>
    %c0_10 = arith.constant 0 : index
    %c0_11 = arith.constant 0 : index
    %14 = vector.load %arg4[%c0_10, %c0_11] : memref<128x512xbf16, #tpu.memory_space<vmem>>, vector<128x512xbf16>
    %cst_12 = arith.constant dense<0.000000e+00> : vector<16x512xf32>
    %15 = tpu.matmul %13, %14, %cst_12 {dimension_numbers = #tpu.dot_dimension_numbers<[1], [0], [0], [1], [0, 0, 1, 1], [], []>} : vector<16x128xbf16>, vector<128x512xbf16>, vector<16x512xf32> -> vector<16x512xf32>
    %16 = arith.addf %9, %15 : vector<16x512xf32>
    %c0_13 = arith.constant 0 : index
    %c0_14 = arith.constant 0 : index
    %17 = vector.load %arg5[%c0_13, %c0_14] : memref<1x512xf32, #tpu.memory_space<vmem>>, vector<1x512xf32>
    %18 = vector.broadcast %17 : vector<1x512xf32> to vector<16x512xf32>
    %19 = arith.addf %16, %18 : vector<16x512xf32>
    %20 = vector.extract_strided_slice %19 {offsets = [0, 0], sizes = [16, 128], strides = [1, 1]} : vector<16x512xf32> to vector<16x128xf32>
    %21 = arith.negf %20 : vector<16x128xf32>
    %22 = math.exp %21 : vector<16x128xf32>
    %cst_15 = arith.constant 1.000000e+00 : f32
    %23 = vector.broadcast %cst_15 : f32 to vector<16x128xf32>
    %24 = arith.addf %23, %22 : vector<16x128xf32>
    %25 = arith.divf %23, %24 : vector<16x128xf32>
    %26 = vector.extract_strided_slice %19 {offsets = [0, 128], sizes = [16, 128], strides = [1, 1]} : vector<16x512xf32> to vector<16x128xf32>
    %27 = arith.negf %26 : vector<16x128xf32>
    %28 = math.exp %27 : vector<16x128xf32>
    %cst_16 = arith.constant 1.000000e+00 : f32
    %29 = vector.broadcast %cst_16 : f32 to vector<16x128xf32>
    %30 = arith.addf %29, %28 : vector<16x128xf32>
    %31 = arith.divf %29, %30 : vector<16x128xf32>
    %32 = vector.extract_strided_slice %19 {offsets = [0, 256], sizes = [16, 128], strides = [1, 1]} : vector<16x512xf32> to vector<16x128xf32>
    %33 = math.tanh %32 : vector<16x128xf32>
    %34 = vector.extract_strided_slice %19 {offsets = [0, 384], sizes = [16, 128], strides = [1, 1]} : vector<16x512xf32> to vector<16x128xf32>
    %35 = arith.negf %34 : vector<16x128xf32>
    %36 = math.exp %35 : vector<16x128xf32>
    %cst_17 = arith.constant 1.000000e+00 : f32
    %37 = vector.broadcast %cst_17 : f32 to vector<16x128xf32>
    %38 = arith.addf %37, %36 : vector<16x128xf32>
    %39 = arith.divf %37, %38 : vector<16x128xf32>
    %40 = arith.mulf %31, %5 : vector<16x128xf32>
    %41 = arith.mulf %25, %33 : vector<16x128xf32>
    %42 = arith.addf %40, %41 : vector<16x128xf32>
    %43 = math.tanh %42 : vector<16x128xf32>
    %44 = arith.mulf %39, %43 : vector<16x128xf32>
    %45 = arith.truncf %44 : vector<16x128xf32> to vector<16x128xbf16>
    %c0_18 = arith.constant 0 : index
    %c0_19 = arith.constant 0 : index
    %46 = vector.load %arg6[%c0_18, %c0_19] : memref<128x512xbf16, #tpu.memory_space<vmem>>, vector<128x512xbf16>
    %cst_20 = arith.constant dense<0.000000e+00> : vector<16x512xf32>
    %47 = tpu.matmul %45, %46, %cst_20 {dimension_numbers = #tpu.dot_dimension_numbers<[1], [0], [0], [1], [0, 0, 1, 1], [], []>} : vector<16x128xbf16>, vector<128x512xbf16>, vector<16x512xf32> -> vector<16x512xf32>
    %48 = arith.truncf %5 : vector<16x128xf32> to vector<16x128xbf16>
    %c0_21 = arith.constant 0 : index
    %c0_22 = arith.constant 0 : index
    %49 = vector.load %arg7[%c0_21, %c0_22] : memref<128x512xbf16, #tpu.memory_space<vmem>>, vector<128x512xbf16>
    %cst_23 = arith.constant dense<0.000000e+00> : vector<16x512xf32>
    %50 = tpu.matmul %48, %49, %cst_23 {dimension_numbers = #tpu.dot_dimension_numbers<[1], [0], [0], [1], [0, 0, 1, 1], [], []>} : vector<16x128xbf16>, vector<128x512xbf16>, vector<16x512xf32> -> vector<16x512xf32>
    %51 = arith.addf %47, %50 : vector<16x512xf32>
    %c0_24 = arith.constant 0 : index
    %c0_25 = arith.constant 0 : index
    %52 = vector.load %arg8[%c0_24, %c0_25] : memref<1x512xf32, #tpu.memory_space<vmem>>, vector<1x512xf32>
    %53 = vector.broadcast %52 : vector<1x512xf32> to vector<16x512xf32>
    %54 = arith.addf %51, %53 : vector<16x512xf32>
    %55 = vector.extract_strided_slice %54 {offsets = [0, 0], sizes = [16, 128], strides = [1, 1]} : vector<16x512xf32> to vector<16x128xf32>
    %56 = arith.negf %55 : vector<16x128xf32>
    %57 = math.exp %56 : vector<16x128xf32>
    %cst_26 = arith.constant 1.000000e+00 : f32
    %58 = vector.broadcast %cst_26 : f32 to vector<16x128xf32>
    %59 = arith.addf %58, %57 : vector<16x128xf32>
    %60 = arith.divf %58, %59 : vector<16x128xf32>
    %61 = vector.extract_strided_slice %54 {offsets = [0, 128], sizes = [16, 128], strides = [1, 1]} : vector<16x512xf32> to vector<16x128xf32>
    %62 = arith.negf %61 : vector<16x128xf32>
    %63 = math.exp %62 : vector<16x128xf32>
    %cst_27 = arith.constant 1.000000e+00 : f32
    %64 = vector.broadcast %cst_27 : f32 to vector<16x128xf32>
    %65 = arith.addf %64, %63 : vector<16x128xf32>
    %66 = arith.divf %64, %65 : vector<16x128xf32>
    %67 = vector.extract_strided_slice %54 {offsets = [0, 256], sizes = [16, 128], strides = [1, 1]} : vector<16x512xf32> to vector<16x128xf32>
    %68 = math.tanh %67 : vector<16x128xf32>
    %69 = vector.extract_strided_slice %54 {offsets = [0, 384], sizes = [16, 128], strides = [1, 1]} : vector<16x512xf32> to vector<16x128xf32>
    %70 = arith.negf %69 : vector<16x128xf32>
    %71 = math.exp %70 : vector<16x128xf32>
    %cst_28 = arith.constant 1.000000e+00 : f32
    %72 = vector.broadcast %cst_28 : f32 to vector<16x128xf32>
    %73 = arith.addf %72, %71 : vector<16x128xf32>
    %74 = arith.divf %72, %73 : vector<16x128xf32>
    %75 = arith.mulf %66, %5 : vector<16x128xf32>
    %76 = arith.mulf %60, %68 : vector<16x128xf32>
    %77 = arith.addf %75, %76 : vector<16x128xf32>
    %78 = math.tanh %77 : vector<16x128xf32>
    %79 = arith.mulf %74, %78 : vector<16x128xf32>
    %80 = arith.subf %44, %5 : vector<16x128xf32>
    %81 = vector.broadcast %12 : vector<16x1xf32> to vector<16x128xf32>
    %82 = arith.mulf %81, %80 : vector<16x128xf32>
    %83 = arith.addf %5, %82 : vector<16x128xf32>
    %84 = arith.subf %42, %5 : vector<16x128xf32>
    %85 = vector.broadcast %12 : vector<16x1xf32> to vector<16x128xf32>
    %86 = arith.mulf %85, %84 : vector<16x128xf32>
    %87 = arith.addf %5, %86 : vector<16x128xf32>
    %88 = arith.subf %79, %5 : vector<16x128xf32>
    %89 = vector.broadcast %12 : vector<16x1xf32> to vector<16x128xf32>
    %90 = arith.mulf %89, %88 : vector<16x128xf32>
    %91 = arith.addf %5, %90 : vector<16x128xf32>
    %92 = arith.subf %77, %5 : vector<16x128xf32>
    %93 = vector.broadcast %12 : vector<16x1xf32> to vector<16x128xf32>
    %94 = arith.mulf %93, %92 : vector<16x128xf32>
    %95 = arith.addf %5, %94 : vector<16x128xf32>
    %c1_i32 = arith.constant 1 : i32
    %c16_i32_29 = arith.constant 16 : i32
    %96 = arith.muli %c1_i32, %c16_i32_29 : i32
    %97 = tpu.assume_multiple %96, 16 : i32
    %98 = arith.index_cast %97 : i32 to index
    %c0_30 = arith.constant 0 : index
    %99 = vector.load %arg18[%98, %c0_30] : memref<128x512xf32, #tpu.memory_space<vmem>>, vector<16x512xf32>
    %100 = arith.index_cast %c1_i32 : i32 to index
    %c0_31 = arith.constant 0 : index
    %c0_32 = arith.constant 0 : index
    %101 = vector.load %arg1[%100, %c0_31, %c0_32] : memref<8x16x1xf32, #tpu.memory_space<vmem>>, vector<1x16x1xf32>
    %102 = vector.shape_cast %101 : vector<1x16x1xf32> to vector<16x1xf32>
    %103 = arith.truncf %83 : vector<16x128xf32> to vector<16x128xbf16>
    %c0_33 = arith.constant 0 : index
    %c0_34 = arith.constant 0 : index
    %104 = vector.load %arg4[%c0_33, %c0_34] : memref<128x512xbf16, #tpu.memory_space<vmem>>, vector<128x512xbf16>
    %cst_35 = arith.constant dense<0.000000e+00> : vector<16x512xf32>
    %105 = tpu.matmul %103, %104, %cst_35 {dimension_numbers = #tpu.dot_dimension_numbers<[1], [0], [0], [1], [0, 0, 1, 1], [], []>} : vector<16x128xbf16>, vector<128x512xbf16>, vector<16x512xf32> -> vector<16x512xf32>
    %106 = arith.addf %99, %105 : vector<16x512xf32>
    %c0_36 = arith.constant 0 : index
    %c0_37 = arith.constant 0 : index
    %107 = vector.load %arg5[%c0_36, %c0_37] : memref<1x512xf32, #tpu.memory_space<vmem>>, vector<1x512xf32>
    %108 = vector.broadcast %107 : vector<1x512xf32> to vector<16x512xf32>
    %109 = arith.addf %106, %108 : vector<16x512xf32>
    %110 = vector.extract_strided_slice %109 {offsets = [0, 0], sizes = [16, 128], strides = [1, 1]} : vector<16x512xf32> to vector<16x128xf32>
    %111 = arith.negf %110 : vector<16x128xf32>
    %112 = math.exp %111 : vector<16x128xf32>
    %cst_38 = arith.constant 1.000000e+00 : f32
    %113 = vector.broadcast %cst_38 : f32 to vector<16x128xf32>
    %114 = arith.addf %113, %112 : vector<16x128xf32>
    %115 = arith.divf %113, %114 : vector<16x128xf32>
    %116 = vector.extract_strided_slice %109 {offsets = [0, 128], sizes = [16, 128], strides = [1, 1]} : vector<16x512xf32> to vector<16x128xf32>
    %117 = arith.negf %116 : vector<16x128xf32>
    %118 = math.exp %117 : vector<16x128xf32>
    %cst_39 = arith.constant 1.000000e+00 : f32
    %119 = vector.broadcast %cst_39 : f32 to vector<16x128xf32>
    %120 = arith.addf %119, %118 : vector<16x128xf32>
    %121 = arith.divf %119, %120 : vector<16x128xf32>
    %122 = vector.extract_strided_slice %109 {offsets = [0, 256], sizes = [16, 128], strides = [1, 1]} : vector<16x512xf32> to vector<16x128xf32>
    %123 = math.tanh %122 : vector<16x128xf32>
    %124 = vector.extract_strided_slice %109 {offsets = [0, 384], sizes = [16, 128], strides = [1, 1]} : vector<16x512xf32> to vector<16x128xf32>
    %125 = arith.negf %124 : vector<16x128xf32>
    %126 = math.exp %125 : vector<16x128xf32>
    %cst_40 = arith.constant 1.000000e+00 : f32
    %127 = vector.broadcast %cst_40 : f32 to vector<16x128xf32>
    %128 = arith.addf %127, %126 : vector<16x128xf32>
    %129 = arith.divf %127, %128 : vector<16x128xf32>
    %130 = arith.mulf %121, %87 : vector<16x128xf32>
    %131 = arith.mulf %115, %123 : vector<16x128xf32>
    %132 = arith.addf %130, %131 : vector<16x128xf32>
    %133 = math.tanh %132 : vector<16x128xf32>
    %134 = arith.mulf %129, %133 : vector<16x128xf32>
    %135 = arith.truncf %134 : vector<16x128xf32> to vector<16x128xbf16>
    %c0_41 = arith.constant 0 : index
    %c0_42 = arith.constant 0 : index
    %136 = vector.load %arg6[%c0_41, %c0_42] : memref<128x512xbf16, #tpu.memory_space<vmem>>, vector<128x512xbf16>
    %cst_43 = arith.constant dense<0.000000e+00> : vector<16x512xf32>
    %137 = tpu.matmul %135, %136, %cst_43 {dimension_numbers = #tpu.dot_dimension_numbers<[1], [0], [0], [1], [0, 0, 1, 1], [], []>} : vector<16x128xbf16>, vector<128x512xbf16>, vector<16x512xf32> -> vector<16x512xf32>
    %138 = arith.truncf %91 : vector<16x128xf32> to vector<16x128xbf16>
    %c0_44 = arith.constant 0 : index
    %c0_45 = arith.constant 0 : index
    %139 = vector.load %arg7[%c0_44, %c0_45] : memref<128x512xbf16, #tpu.memory_space<vmem>>, vector<128x512xbf16>
    %cst_46 = arith.constant dense<0.000000e+00> : vector<16x512xf32>
    %140 = tpu.matmul %138, %139, %cst_46 {dimension_numbers = #tpu.dot_dimension_numbers<[1], [0], [0], [1], [0, 0, 1, 1], [], []>} : vector<16x128xbf16>, vector<128x512xbf16>, vector<16x512xf32> -> vector<16x512xf32>
    %141 = arith.addf %137, %140 : vector<16x512xf32>
    %c0_47 = arith.constant 0 : index
    %c0_48 = arith.constant 0 : index
    %142 = vector.load %arg8[%c0_47, %c0_48] : memref<1x512xf32, #tpu.memory_space<vmem>>, vector<1x512xf32>
    %143 = vector.broadcast %142 : vector<1x512xf32> to vector<16x512xf32>
    %144 = arith.addf %141, %143 : vector<16x512xf32>
    %145 = vector.extract_strided_slice %144 {offsets = [0, 0], sizes = [16, 128], strides = [1, 1]} : vector<16x512xf32> to vector<16x128xf32>
    %146 = arith.negf %145 : vector<16x128xf32>
    %147 = math.exp %146 : vector<16x128xf32>
    %cst_49 = arith.constant 1.000000e+00 : f32
    %148 = vector.broadcast %cst_49 : f32 to vector<16x128xf32>
    %149 = arith.addf %148, %147 : vector<16x128xf32>
    %150 = arith.divf %148, %149 : vector<16x128xf32>
    %151 = vector.extract_strided_slice %144 {offsets = [0, 128], sizes = [16, 128], strides = [1, 1]} : vector<16x512xf32> to vector<16x128xf32>
    %152 = arith.negf %151 : vector<16x128xf32>
    %153 = math.exp %152 : vector<16x128xf32>
    %cst_50 = arith.constant 1.000000e+00 : f32
    %154 = vector.broadcast %cst_50 : f32 to vector<16x128xf32>
    %155 = arith.addf %154, %153 : vector<16x128xf32>
    %156 = arith.divf %154, %155 : vector<16x128xf32>
    %157 = vector.extract_strided_slice %144 {offsets = [0, 256], sizes = [16, 128], strides = [1, 1]} : vector<16x512xf32> to vector<16x128xf32>
    %158 = math.tanh %157 : vector<16x128xf32>
    %159 = vector.extract_strided_slice %144 {offsets = [0, 384], sizes = [16, 128], strides = [1, 1]} : vector<16x512xf32> to vector<16x128xf32>
    %160 = arith.negf %159 : vector<16x128xf32>
    %161 = math.exp %160 : vector<16x128xf32>
    %cst_51 = arith.constant 1.000000e+00 : f32
    %162 = vector.broadcast %cst_51 : f32 to vector<16x128xf32>
    %163 = arith.addf %162, %161 : vector<16x128xf32>
    %164 = arith.divf %162, %163 : vector<16x128xf32>
    %165 = arith.mulf %156, %95 : vector<16x128xf32>
    %166 = arith.mulf %150, %158 : vector<16x128xf32>
    %167 = arith.addf %165, %166 : vector<16x128xf32>
    %168 = math.tanh %167 : vector<16x128xf32>
    %169 = arith.mulf %164, %168 : vector<16x128xf32>
    %170 = arith.subf %134, %83 : vector<16x128xf32>
    %171 = vector.broadcast %102 : vector<16x1xf32> to vector<16x128xf32>
    %172 = arith.mulf %171, %170 : vector<16x128xf32>
    %173 = arith.addf %83, %172 : vector<16x128xf32>
    %174 = arith.subf %132, %87 : vector<16x128xf32>
    %175 = vector.broadcast %102 : vector<16x1xf32> to vector<16x128xf32>
    %176 = arith.mulf %175, %174 : vector<16x128xf32>
    %177 = arith.addf %87, %176 : vector<16x128xf32>
    %178 = arith.subf %169, %91 : vector<16x128xf32>
    %179 = vector.broadcast %102 : vector<16x1xf32> to vector<16x128xf32>
    %180 = arith.mulf %179, %178 : vector<16x128xf32>
    %181 = arith.addf %91, %180 : vector<16x128xf32>
    %182 = arith.subf %167, %95 : vector<16x128xf32>
    %183 = vector.broadcast %102 : vector<16x1xf32> to vector<16x128xf32>
    %184 = arith.mulf %183, %182 : vector<16x128xf32>
    %185 = arith.addf %95, %184 : vector<16x128xf32>
    %c2_i32 = arith.constant 2 : i32
    %c16_i32_52 = arith.constant 16 : i32
    %186 = arith.muli %c2_i32, %c16_i32_52 : i32
    %187 = tpu.assume_multiple %186, 16 : i32
    %188 = arith.index_cast %187 : i32 to index
    %c0_53 = arith.constant 0 : index
    %189 = vector.load %arg18[%188, %c0_53] : memref<128x512xf32, #tpu.memory_space<vmem>>, vector<16x512xf32>
    %190 = arith.index_cast %c2_i32 : i32 to index
    %c0_54 = arith.constant 0 : index
    %c0_55 = arith.constant 0 : index
    %191 = vector.load %arg1[%190, %c0_54, %c0_55] : memref<8x16x1xf32, #tpu.memory_space<vmem>>, vector<1x16x1xf32>
    %192 = vector.shape_cast %191 : vector<1x16x1xf32> to vector<16x1xf32>
    %193 = arith.truncf %173 : vector<16x128xf32> to vector<16x128xbf16>
    %c0_56 = arith.constant 0 : index
    %c0_57 = arith.constant 0 : index
    %194 = vector.load %arg4[%c0_56, %c0_57] : memref<128x512xbf16, #tpu.memory_space<vmem>>, vector<128x512xbf16>
    %cst_58 = arith.constant dense<0.000000e+00> : vector<16x512xf32>
    %195 = tpu.matmul %193, %194, %cst_58 {dimension_numbers = #tpu.dot_dimension_numbers<[1], [0], [0], [1], [0, 0, 1, 1], [], []>} : vector<16x128xbf16>, vector<128x512xbf16>, vector<16x512xf32> -> vector<16x512xf32>
    %196 = arith.addf %189, %195 : vector<16x512xf32>
    %c0_59 = arith.constant 0 : index
    %c0_60 = arith.constant 0 : index
    %197 = vector.load %arg5[%c0_59, %c0_60] : memref<1x512xf32, #tpu.memory_space<vmem>>, vector<1x512xf32>
    %198 = vector.broadcast %197 : vector<1x512xf32> to vector<16x512xf32>
    %199 = arith.addf %196, %198 : vector<16x512xf32>
    %200 = vector.extract_strided_slice %199 {offsets = [0, 0], sizes = [16, 128], strides = [1, 1]} : vector<16x512xf32> to vector<16x128xf32>
    %201 = arith.negf %200 : vector<16x128xf32>
    %202 = math.exp %201 : vector<16x128xf32>
    %cst_61 = arith.constant 1.000000e+00 : f32
    %203 = vector.broadcast %cst_61 : f32 to vector<16x128xf32>
    %204 = arith.addf %203, %202 : vector<16x128xf32>
    %205 = arith.divf %203, %204 : vector<16x128xf32>
    %206 = vector.extract_strided_slice %199 {offsets = [0, 128], sizes = [16, 128], strides = [1, 1]} : vector<16x512xf32> to vector<16x128xf32>
    %207 = arith.negf %206 : vector<16x128xf32>
    %208 = math.exp %207 : vector<16x128xf32>
    %cst_62 = arith.constant 1.000000e+00 : f32
    %209 = vector.broadcast %cst_62 : f32 to vector<16x128xf32>
    %210 = arith.addf %209, %208 : vector<16x128xf32>
    %211 = arith.divf %209, %210 : vector<16x128xf32>
    %212 = vector.extract_strided_slice %199 {offsets = [0, 256], sizes = [16, 128], strides = [1, 1]} : vector<16x512xf32> to vector<16x128xf32>
    %213 = math.tanh %212 : vector<16x128xf32>
    %214 = vector.extract_strided_slice %199 {offsets = [0, 384], sizes = [16, 128], strides = [1, 1]} : vector<16x512xf32> to vector<16x128xf32>
    %215 = arith.negf %214 : vector<16x128xf32>
    %216 = math.exp %215 : vector<16x128xf32>
    %cst_63 = arith.constant 1.000000e+00 : f32
    %217 = vector.broadcast %cst_63 : f32 to vector<16x128xf32>
    %218 = arith.addf %217, %216 : vector<16x128xf32>
    %219 = arith.divf %217, %218 : vector<16x128xf32>
    %220 = arith.mulf %211, %177 : vector<16x128xf32>
    %221 = arith.mulf %205, %213 : vector<16x128xf32>
    %222 = arith.addf %220, %221 : vector<16x128xf32>
    %223 = math.tanh %222 : vector<16x128xf32>
    %224 = arith.mulf %219, %223 : vector<16x128xf32>
    %225 = arith.truncf %224 : vector<16x128xf32> to vector<16x128xbf16>
    %c0_64 = arith.constant 0 : index
    %c0_65 = arith.constant 0 : index
    %226 = vector.load %arg6[%c0_64, %c0_65] : memref<128x512xbf16, #tpu.memory_space<vmem>>, vector<128x512xbf16>
    %cst_66 = arith.constant dense<0.000000e+00> : vector<16x512xf32>
    %227 = tpu.matmul %225, %226, %cst_66 {dimension_numbers = #tpu.dot_dimension_numbers<[1], [0], [0], [1], [0, 0, 1, 1], [], []>} : vector<16x128xbf16>, vector<128x512xbf16>, vector<16x512xf32> -> vector<16x512xf32>
    %228 = arith.truncf %181 : vector<16x128xf32> to vector<16x128xbf16>
    %c0_67 = arith.constant 0 : index
    %c0_68 = arith.constant 0 : index
    %229 = vector.load %arg7[%c0_67, %c0_68] : memref<128x512xbf16, #tpu.memory_space<vmem>>, vector<128x512xbf16>
    %cst_69 = arith.constant dense<0.000000e+00> : vector<16x512xf32>
    %230 = tpu.matmul %228, %229, %cst_69 {dimension_numbers = #tpu.dot_dimension_numbers<[1], [0], [0], [1], [0, 0, 1, 1], [], []>} : vector<16x128xbf16>, vector<128x512xbf16>, vector<16x512xf32> -> vector<16x512xf32>
    %231 = arith.addf %227, %230 : vector<16x512xf32>
    %c0_70 = arith.constant 0 : index
    %c0_71 = arith.constant 0 : index
    %232 = vector.load %arg8[%c0_70, %c0_71] : memref<1x512xf32, #tpu.memory_space<vmem>>, vector<1x512xf32>
    %233 = vector.broadcast %232 : vector<1x512xf32> to vector<16x512xf32>
    %234 = arith.addf %231, %233 : vector<16x512xf32>
    %235 = vector.extract_strided_slice %234 {offsets = [0, 0], sizes = [16, 128], strides = [1, 1]} : vector<16x512xf32> to vector<16x128xf32>
    %236 = arith.negf %235 : vector<16x128xf32>
    %237 = math.exp %236 : vector<16x128xf32>
    %cst_72 = arith.constant 1.000000e+00 : f32
    %238 = vector.broadcast %cst_72 : f32 to vector<16x128xf32>
    %239 = arith.addf %238, %237 : vector<16x128xf32>
    %240 = arith.divf %238, %239 : vector<16x128xf32>
    %241 = vector.extract_strided_slice %234 {offsets = [0, 128], sizes = [16, 128], strides = [1, 1]} : vector<16x512xf32> to vector<16x128xf32>
    %242 = arith.negf %241 : vector<16x128xf32>
    %243 = math.exp %242 : vector<16x128xf32>
    %cst_73 = arith.constant 1.000000e+00 : f32
    %244 = vector.broadcast %cst_73 : f32 to vector<16x128xf32>
    %245 = arith.addf %244, %243 : vector<16x128xf32>
    %246 = arith.divf %244, %245 : vector<16x128xf32>
    %247 = vector.extract_strided_slice %234 {offsets = [0, 256], sizes = [16, 128], strides = [1, 1]} : vector<16x512xf32> to vector<16x128xf32>
    %248 = math.tanh %247 : vector<16x128xf32>
    %249 = vector.extract_strided_slice %234 {offsets = [0, 384], sizes = [16, 128], strides = [1, 1]} : vector<16x512xf32> to vector<16x128xf32>
    %250 = arith.negf %249 : vector<16x128xf32>
    %251 = math.exp %250 : vector<16x128xf32>
    %cst_74 = arith.constant 1.000000e+00 : f32
    %252 = vector.broadcast %cst_74 : f32 to vector<16x128xf32>
    %253 = arith.addf %252, %251 : vector<16x128xf32>
    %254 = arith.divf %252, %253 : vector<16x128xf32>
    %255 = arith.mulf %246, %185 : vector<16x128xf32>
    %256 = arith.mulf %240, %248 : vector<16x128xf32>
    %257 = arith.addf %255, %256 : vector<16x128xf32>
    %258 = math.tanh %257 : vector<16x128xf32>
    %259 = arith.mulf %254, %258 : vector<16x128xf32>
    %260 = arith.subf %224, %173 : vector<16x128xf32>
    %261 = vector.broadcast %192 : vector<16x1xf32> to vector<16x128xf32>
    %262 = arith.mulf %261, %260 : vector<16x128xf32>
    %263 = arith.addf %173, %262 : vector<16x128xf32>
    %264 = arith.subf %222, %177 : vector<16x128xf32>
    %265 = vector.broadcast %192 : vector<16x1xf32> to vector<16x128xf32>
    %266 = arith.mulf %265, %264 : vector<16x128xf32>
    %267 = arith.addf %177, %266 : vector<16x128xf32>
    %268 = arith.subf %259, %181 : vector<16x128xf32>
    %269 = vector.broadcast %192 : vector<16x1xf32> to vector<16x128xf32>
    %270 = arith.mulf %269, %268 : vector<16x128xf32>
    %271 = arith.addf %181, %270 : vector<16x128xf32>
    %272 = arith.subf %257, %185 : vector<16x128xf32>
    %273 = vector.broadcast %192 : vector<16x1xf32> to vector<16x128xf32>
    %274 = arith.mulf %273, %272 : vector<16x128xf32>
    %275 = arith.addf %185, %274 : vector<16x128xf32>
    %c3_i32 = arith.constant 3 : i32
    %c16_i32_75 = arith.constant 16 : i32
    %276 = arith.muli %c3_i32, %c16_i32_75 : i32
    %277 = tpu.assume_multiple %276, 16 : i32
    %278 = arith.index_cast %277 : i32 to index
    %c0_76 = arith.constant 0 : index
    %279 = vector.load %arg18[%278, %c0_76] : memref<128x512xf32, #tpu.memory_space<vmem>>, vector<16x512xf32>
    %280 = arith.index_cast %c3_i32 : i32 to index
    %c0_77 = arith.constant 0 : index
    %c0_78 = arith.constant 0 : index
    %281 = vector.load %arg1[%280, %c0_77, %c0_78] : memref<8x16x1xf32, #tpu.memory_space<vmem>>, vector<1x16x1xf32>
    %282 = vector.shape_cast %281 : vector<1x16x1xf32> to vector<16x1xf32>
    %283 = arith.truncf %263 : vector<16x128xf32> to vector<16x128xbf16>
    %c0_79 = arith.constant 0 : index
    %c0_80 = arith.constant 0 : index
    %284 = vector.load %arg4[%c0_79, %c0_80] : memref<128x512xbf16, #tpu.memory_space<vmem>>, vector<128x512xbf16>
    %cst_81 = arith.constant dense<0.000000e+00> : vector<16x512xf32>
    %285 = tpu.matmul %283, %284, %cst_81 {dimension_numbers = #tpu.dot_dimension_numbers<[1], [0], [0], [1], [0, 0, 1, 1], [], []>} : vector<16x128xbf16>, vector<128x512xbf16>, vector<16x512xf32> -> vector<16x512xf32>
    %286 = arith.addf %279, %285 : vector<16x512xf32>
    %c0_82 = arith.constant 0 : index
    %c0_83 = arith.constant 0 : index
    %287 = vector.load %arg5[%c0_82, %c0_83] : memref<1x512xf32, #tpu.memory_space<vmem>>, vector<1x512xf32>
    %288 = vector.broadcast %287 : vector<1x512xf32> to vector<16x512xf32>
    %289 = arith.addf %286, %288 : vector<16x512xf32>
    %290 = vector.extract_strided_slice %289 {offsets = [0, 0], sizes = [16, 128], strides = [1, 1]} : vector<16x512xf32> to vector<16x128xf32>
    %291 = arith.negf %290 : vector<16x128xf32>
    %292 = math.exp %291 : vector<16x128xf32>
    %cst_84 = arith.constant 1.000000e+00 : f32
    %293 = vector.broadcast %cst_84 : f32 to vector<16x128xf32>
    %294 = arith.addf %293, %292 : vector<16x128xf32>
    %295 = arith.divf %293, %294 : vector<16x128xf32>
    %296 = vector.extract_strided_slice %289 {offsets = [0, 128], sizes = [16, 128], strides = [1, 1]} : vector<16x512xf32> to vector<16x128xf32>
    %297 = arith.negf %296 : vector<16x128xf32>
    %298 = math.exp %297 : vector<16x128xf32>
    %cst_85 = arith.constant 1.000000e+00 : f32
    %299 = vector.broadcast %cst_85 : f32 to vector<16x128xf32>
    %300 = arith.addf %299, %298 : vector<16x128xf32>
    %301 = arith.divf %299, %300 : vector<16x128xf32>
    %302 = vector.extract_strided_slice %289 {offsets = [0, 256], sizes = [16, 128], strides = [1, 1]} : vector<16x512xf32> to vector<16x128xf32>
    %303 = math.tanh %302 : vector<16x128xf32>
    %304 = vector.extract_strided_slice %289 {offsets = [0, 384], sizes = [16, 128], strides = [1, 1]} : vector<16x512xf32> to vector<16x128xf32>
    %305 = arith.negf %304 : vector<16x128xf32>
    %306 = math.exp %305 : vector<16x128xf32>
    %cst_86 = arith.constant 1.000000e+00 : f32
    %307 = vector.broadcast %cst_86 : f32 to vector<16x128xf32>
    %308 = arith.addf %307, %306 : vector<16x128xf32>
    %309 = arith.divf %307, %308 : vector<16x128xf32>
    %310 = arith.mulf %301, %267 : vector<16x128xf32>
    %311 = arith.mulf %295, %303 : vector<16x128xf32>
    %312 = arith.addf %310, %311 : vector<16x128xf32>
    %313 = math.tanh %312 : vector<16x128xf32>
    %314 = arith.mulf %309, %313 : vector<16x128xf32>
    %315 = arith.truncf %314 : vector<16x128xf32> to vector<16x128xbf16>
    %c0_87 = arith.constant 0 : index
    %c0_88 = arith.constant 0 : index
    %316 = vector.load %arg6[%c0_87, %c0_88] : memref<128x512xbf16, #tpu.memory_space<vmem>>, vector<128x512xbf16>
    %cst_89 = arith.constant dense<0.000000e+00> : vector<16x512xf32>
    %317 = tpu.matmul %315, %316, %cst_89 {dimension_numbers = #tpu.dot_dimension_numbers<[1], [0], [0], [1], [0, 0, 1, 1], [], []>} : vector<16x128xbf16>, vector<128x512xbf16>, vector<16x512xf32> -> vector<16x512xf32>
    %318 = arith.truncf %271 : vector<16x128xf32> to vector<16x128xbf16>
    %c0_90 = arith.constant 0 : index
    %c0_91 = arith.constant 0 : index
    %319 = vector.load %arg7[%c0_90, %c0_91] : memref<128x512xbf16, #tpu.memory_space<vmem>>, vector<128x512xbf16>
    %cst_92 = arith.constant dense<0.000000e+00> : vector<16x512xf32>
    %320 = tpu.matmul %318, %319, %cst_92 {dimension_numbers = #tpu.dot_dimension_numbers<[1], [0], [0], [1], [0, 0, 1, 1], [], []>} : vector<16x128xbf16>, vector<128x512xbf16>, vector<16x512xf32> -> vector<16x512xf32>
    %321 = arith.addf %317, %320 : vector<16x512xf32>
    %c0_93 = arith.constant 0 : index
    %c0_94 = arith.constant 0 : index
    %322 = vector.load %arg8[%c0_93, %c0_94] : memref<1x512xf32, #tpu.memory_space<vmem>>, vector<1x512xf32>
    %323 = vector.broadcast %322 : vector<1x512xf32> to vector<16x512xf32>
    %324 = arith.addf %321, %323 : vector<16x512xf32>
    %325 = vector.extract_strided_slice %324 {offsets = [0, 0], sizes = [16, 128], strides = [1, 1]} : vector<16x512xf32> to vector<16x128xf32>
    %326 = arith.negf %325 : vector<16x128xf32>
    %327 = math.exp %326 : vector<16x128xf32>
    %cst_95 = arith.constant 1.000000e+00 : f32
    %328 = vector.broadcast %cst_95 : f32 to vector<16x128xf32>
    %329 = arith.addf %328, %327 : vector<16x128xf32>
    %330 = arith.divf %328, %329 : vector<16x128xf32>
    %331 = vector.extract_strided_slice %324 {offsets = [0, 128], sizes = [16, 128], strides = [1, 1]} : vector<16x512xf32> to vector<16x128xf32>
    %332 = arith.negf %331 : vector<16x128xf32>
    %333 = math.exp %332 : vector<16x128xf32>
    %cst_96 = arith.constant 1.000000e+00 : f32
    %334 = vector.broadcast %cst_96 : f32 to vector<16x128xf32>
    %335 = arith.addf %334, %333 : vector<16x128xf32>
    %336 = arith.divf %334, %335 : vector<16x128xf32>
    %337 = vector.extract_strided_slice %324 {offsets = [0, 256], sizes = [16, 128], strides = [1, 1]} : vector<16x512xf32> to vector<16x128xf32>
    %338 = math.tanh %337 : vector<16x128xf32>
    %339 = vector.extract_strided_slice %324 {offsets = [0, 384], sizes = [16, 128], strides = [1, 1]} : vector<16x512xf32> to vector<16x128xf32>
    %340 = arith.negf %339 : vector<16x128xf32>
    %341 = math.exp %340 : vector<16x128xf32>
    %cst_97 = arith.constant 1.000000e+00 : f32
    %342 = vector.broadcast %cst_97 : f32 to vector<16x128xf32>
    %343 = arith.addf %342, %341 : vector<16x128xf32>
    %344 = arith.divf %342, %343 : vector<16x128xf32>
    %345 = arith.mulf %336, %275 : vector<16x128xf32>
    %346 = arith.mulf %330, %338 : vector<16x128xf32>
    %347 = arith.addf %345, %346 : vector<16x128xf32>
    %348 = math.tanh %347 : vector<16x128xf32>
    %349 = arith.mulf %344, %348 : vector<16x128xf32>
    %350 = arith.subf %314, %263 : vector<16x128xf32>
    %351 = vector.broadcast %282 : vector<16x1xf32> to vector<16x128xf32>
    %352 = arith.mulf %351, %350 : vector<16x128xf32>
    %353 = arith.addf %263, %352 : vector<16x128xf32>
    %354 = arith.subf %312, %267 : vector<16x128xf32>
    %355 = vector.broadcast %282 : vector<16x1xf32> to vector<16x128xf32>
    %356 = arith.mulf %355, %354 : vector<16x128xf32>
    %357 = arith.addf %267, %356 : vector<16x128xf32>
    %358 = arith.subf %349, %271 : vector<16x128xf32>
    %359 = vector.broadcast %282 : vector<16x1xf32> to vector<16x128xf32>
    %360 = arith.mulf %359, %358 : vector<16x128xf32>
    %361 = arith.addf %271, %360 : vector<16x128xf32>
    %362 = arith.subf %347, %275 : vector<16x128xf32>
    %363 = vector.broadcast %282 : vector<16x1xf32> to vector<16x128xf32>
    %364 = arith.mulf %363, %362 : vector<16x128xf32>
    %365 = arith.addf %275, %364 : vector<16x128xf32>
    %c4_i32 = arith.constant 4 : i32
    %c16_i32_98 = arith.constant 16 : i32
    %366 = arith.muli %c4_i32, %c16_i32_98 : i32
    %367 = tpu.assume_multiple %366, 16 : i32
    %368 = arith.index_cast %367 : i32 to index
    %c0_99 = arith.constant 0 : index
    %369 = vector.load %arg18[%368, %c0_99] : memref<128x512xf32, #tpu.memory_space<vmem>>, vector<16x512xf32>
    %370 = arith.index_cast %c4_i32 : i32 to index
    %c0_100 = arith.constant 0 : index
    %c0_101 = arith.constant 0 : index
    %371 = vector.load %arg1[%370, %c0_100, %c0_101] : memref<8x16x1xf32, #tpu.memory_space<vmem>>, vector<1x16x1xf32>
    %372 = vector.shape_cast %371 : vector<1x16x1xf32> to vector<16x1xf32>
    %373 = arith.truncf %353 : vector<16x128xf32> to vector<16x128xbf16>
    %c0_102 = arith.constant 0 : index
    %c0_103 = arith.constant 0 : index
    %374 = vector.load %arg4[%c0_102, %c0_103] : memref<128x512xbf16, #tpu.memory_space<vmem>>, vector<128x512xbf16>
    %cst_104 = arith.constant dense<0.000000e+00> : vector<16x512xf32>
    %375 = tpu.matmul %373, %374, %cst_104 {dimension_numbers = #tpu.dot_dimension_numbers<[1], [0], [0], [1], [0, 0, 1, 1], [], []>} : vector<16x128xbf16>, vector<128x512xbf16>, vector<16x512xf32> -> vector<16x512xf32>
    %376 = arith.addf %369, %375 : vector<16x512xf32>
    %c0_105 = arith.constant 0 : index
    %c0_106 = arith.constant 0 : index
    %377 = vector.load %arg5[%c0_105, %c0_106] : memref<1x512xf32, #tpu.memory_space<vmem>>, vector<1x512xf32>
    %378 = vector.broadcast %377 : vector<1x512xf32> to vector<16x512xf32>
    %379 = arith.addf %376, %378 : vector<16x512xf32>
    %380 = vector.extract_strided_slice %379 {offsets = [0, 0], sizes = [16, 128], strides = [1, 1]} : vector<16x512xf32> to vector<16x128xf32>
    %381 = arith.negf %380 : vector<16x128xf32>
    %382 = math.exp %381 : vector<16x128xf32>
    %cst_107 = arith.constant 1.000000e+00 : f32
    %383 = vector.broadcast %cst_107 : f32 to vector<16x128xf32>
    %384 = arith.addf %383, %382 : vector<16x128xf32>
    %385 = arith.divf %383, %384 : vector<16x128xf32>
    %386 = vector.extract_strided_slice %379 {offsets = [0, 128], sizes = [16, 128], strides = [1, 1]} : vector<16x512xf32> to vector<16x128xf32>
    %387 = arith.negf %386 : vector<16x128xf32>
    %388 = math.exp %387 : vector<16x128xf32>
    %cst_108 = arith.constant 1.000000e+00 : f32
    %389 = vector.broadcast %cst_108 : f32 to vector<16x128xf32>
    %390 = arith.addf %389, %388 : vector<16x128xf32>
    %391 = arith.divf %389, %390 : vector<16x128xf32>
    %392 = vector.extract_strided_slice %379 {offsets = [0, 256], sizes = [16, 128], strides = [1, 1]} : vector<16x512xf32> to vector<16x128xf32>
    %393 = math.tanh %392 : vector<16x128xf32>
    %394 = vector.extract_strided_slice %379 {offsets = [0, 384], sizes = [16, 128], strides = [1, 1]} : vector<16x512xf32> to vector<16x128xf32>
    %395 = arith.negf %394 : vector<16x128xf32>
    %396 = math.exp %395 : vector<16x128xf32>
    %cst_109 = arith.constant 1.000000e+00 : f32
    %397 = vector.broadcast %cst_109 : f32 to vector<16x128xf32>
    %398 = arith.addf %397, %396 : vector<16x128xf32>
    %399 = arith.divf %397, %398 : vector<16x128xf32>
    %400 = arith.mulf %391, %357 : vector<16x128xf32>
    %401 = arith.mulf %385, %393 : vector<16x128xf32>
    %402 = arith.addf %400, %401 : vector<16x128xf32>
    %403 = math.tanh %402 : vector<16x128xf32>
    %404 = arith.mulf %399, %403 : vector<16x128xf32>
    %405 = arith.truncf %404 : vector<16x128xf32> to vector<16x128xbf16>
    %c0_110 = arith.constant 0 : index
    %c0_111 = arith.constant 0 : index
    %406 = vector.load %arg6[%c0_110, %c0_111] : memref<128x512xbf16, #tpu.memory_space<vmem>>, vector<128x512xbf16>
    %cst_112 = arith.constant dense<0.000000e+00> : vector<16x512xf32>
    %407 = tpu.matmul %405, %406, %cst_112 {dimension_numbers = #tpu.dot_dimension_numbers<[1], [0], [0], [1], [0, 0, 1, 1], [], []>} : vector<16x128xbf16>, vector<128x512xbf16>, vector<16x512xf32> -> vector<16x512xf32>
    %408 = arith.truncf %361 : vector<16x128xf32> to vector<16x128xbf16>
    %c0_113 = arith.constant 0 : index
    %c0_114 = arith.constant 0 : index
    %409 = vector.load %arg7[%c0_113, %c0_114] : memref<128x512xbf16, #tpu.memory_space<vmem>>, vector<128x512xbf16>
    %cst_115 = arith.constant dense<0.000000e+00> : vector<16x512xf32>
    %410 = tpu.matmul %408, %409, %cst_115 {dimension_numbers = #tpu.dot_dimension_numbers<[1], [0], [0], [1], [0, 0, 1, 1], [], []>} : vector<16x128xbf16>, vector<128x512xbf16>, vector<16x512xf32> -> vector<16x512xf32>
    %411 = arith.addf %407, %410 : vector<16x512xf32>
    %c0_116 = arith.constant 0 : index
    %c0_117 = arith.constant 0 : index
    %412 = vector.load %arg8[%c0_116, %c0_117] : memref<1x512xf32, #tpu.memory_space<vmem>>, vector<1x512xf32>
    %413 = vector.broadcast %412 : vector<1x512xf32> to vector<16x512xf32>
    %414 = arith.addf %411, %413 : vector<16x512xf32>
    %415 = vector.extract_strided_slice %414 {offsets = [0, 0], sizes = [16, 128], strides = [1, 1]} : vector<16x512xf32> to vector<16x128xf32>
    %416 = arith.negf %415 : vector<16x128xf32>
    %417 = math.exp %416 : vector<16x128xf32>
    %cst_118 = arith.constant 1.000000e+00 : f32
    %418 = vector.broadcast %cst_118 : f32 to vector<16x128xf32>
    %419 = arith.addf %418, %417 : vector<16x128xf32>
    %420 = arith.divf %418, %419 : vector<16x128xf32>
    %421 = vector.extract_strided_slice %414 {offsets = [0, 128], sizes = [16, 128], strides = [1, 1]} : vector<16x512xf32> to vector<16x128xf32>
    %422 = arith.negf %421 : vector<16x128xf32>
    %423 = math.exp %422 : vector<16x128xf32>
    %cst_119 = arith.constant 1.000000e+00 : f32
    %424 = vector.broadcast %cst_119 : f32 to vector<16x128xf32>
    %425 = arith.addf %424, %423 : vector<16x128xf32>
    %426 = arith.divf %424, %425 : vector<16x128xf32>
    %427 = vector.extract_strided_slice %414 {offsets = [0, 256], sizes = [16, 128], strides = [1, 1]} : vector<16x512xf32> to vector<16x128xf32>
    %428 = math.tanh %427 : vector<16x128xf32>
    %429 = vector.extract_strided_slice %414 {offsets = [0, 384], sizes = [16, 128], strides = [1, 1]} : vector<16x512xf32> to vector<16x128xf32>
    %430 = arith.negf %429 : vector<16x128xf32>
    %431 = math.exp %430 : vector<16x128xf32>
    %cst_120 = arith.constant 1.000000e+00 : f32
    %432 = vector.broadcast %cst_120 : f32 to vector<16x128xf32>
    %433 = arith.addf %432, %431 : vector<16x128xf32>
    %434 = arith.divf %432, %433 : vector<16x128xf32>
    %435 = arith.mulf %426, %365 : vector<16x128xf32>
    %436 = arith.mulf %420, %428 : vector<16x128xf32>
    %437 = arith.addf %435, %436 : vector<16x128xf32>
    %438 = math.tanh %437 : vector<16x128xf32>
    %439 = arith.mulf %434, %438 : vector<16x128xf32>
    %440 = arith.subf %404, %353 : vector<16x128xf32>
    %441 = vector.broadcast %372 : vector<16x1xf32> to vector<16x128xf32>
    %442 = arith.mulf %441, %440 : vector<16x128xf32>
    %443 = arith.addf %353, %442 : vector<16x128xf32>
    %444 = arith.subf %402, %357 : vector<16x128xf32>
    %445 = vector.broadcast %372 : vector<16x1xf32> to vector<16x128xf32>
    %446 = arith.mulf %445, %444 : vector<16x128xf32>
    %447 = arith.addf %357, %446 : vector<16x128xf32>
    %448 = arith.subf %439, %361 : vector<16x128xf32>
    %449 = vector.broadcast %372 : vector<16x1xf32> to vector<16x128xf32>
    %450 = arith.mulf %449, %448 : vector<16x128xf32>
    %451 = arith.addf %361, %450 : vector<16x128xf32>
    %452 = arith.subf %437, %365 : vector<16x128xf32>
    %453 = vector.broadcast %372 : vector<16x1xf32> to vector<16x128xf32>
    %454 = arith.mulf %453, %452 : vector<16x128xf32>
    %455 = arith.addf %365, %454 : vector<16x128xf32>
    %c5_i32 = arith.constant 5 : i32
    %c16_i32_121 = arith.constant 16 : i32
    %456 = arith.muli %c5_i32, %c16_i32_121 : i32
    %457 = tpu.assume_multiple %456, 16 : i32
    %458 = arith.index_cast %457 : i32 to index
    %c0_122 = arith.constant 0 : index
    %459 = vector.load %arg18[%458, %c0_122] : memref<128x512xf32, #tpu.memory_space<vmem>>, vector<16x512xf32>
    %460 = arith.index_cast %c5_i32 : i32 to index
    %c0_123 = arith.constant 0 : index
    %c0_124 = arith.constant 0 : index
    %461 = vector.load %arg1[%460, %c0_123, %c0_124] : memref<8x16x1xf32, #tpu.memory_space<vmem>>, vector<1x16x1xf32>
    %462 = vector.shape_cast %461 : vector<1x16x1xf32> to vector<16x1xf32>
    %463 = arith.truncf %443 : vector<16x128xf32> to vector<16x128xbf16>
    %c0_125 = arith.constant 0 : index
    %c0_126 = arith.constant 0 : index
    %464 = vector.load %arg4[%c0_125, %c0_126] : memref<128x512xbf16, #tpu.memory_space<vmem>>, vector<128x512xbf16>
    %cst_127 = arith.constant dense<0.000000e+00> : vector<16x512xf32>
    %465 = tpu.matmul %463, %464, %cst_127 {dimension_numbers = #tpu.dot_dimension_numbers<[1], [0], [0], [1], [0, 0, 1, 1], [], []>} : vector<16x128xbf16>, vector<128x512xbf16>, vector<16x512xf32> -> vector<16x512xf32>
    %466 = arith.addf %459, %465 : vector<16x512xf32>
    %c0_128 = arith.constant 0 : index
    %c0_129 = arith.constant 0 : index
    %467 = vector.load %arg5[%c0_128, %c0_129] : memref<1x512xf32, #tpu.memory_space<vmem>>, vector<1x512xf32>
    %468 = vector.broadcast %467 : vector<1x512xf32> to vector<16x512xf32>
    %469 = arith.addf %466, %468 : vector<16x512xf32>
    %470 = vector.extract_strided_slice %469 {offsets = [0, 0], sizes = [16, 128], strides = [1, 1]} : vector<16x512xf32> to vector<16x128xf32>
    %471 = arith.negf %470 : vector<16x128xf32>
    %472 = math.exp %471 : vector<16x128xf32>
    %cst_130 = arith.constant 1.000000e+00 : f32
    %473 = vector.broadcast %cst_130 : f32 to vector<16x128xf32>
    %474 = arith.addf %473, %472 : vector<16x128xf32>
    %475 = arith.divf %473, %474 : vector<16x128xf32>
    %476 = vector.extract_strided_slice %469 {offsets = [0, 128], sizes = [16, 128], strides = [1, 1]} : vector<16x512xf32> to vector<16x128xf32>
    %477 = arith.negf %476 : vector<16x128xf32>
    %478 = math.exp %477 : vector<16x128xf32>
    %cst_131 = arith.constant 1.000000e+00 : f32
    %479 = vector.broadcast %cst_131 : f32 to vector<16x128xf32>
    %480 = arith.addf %479, %478 : vector<16x128xf32>
    %481 = arith.divf %479, %480 : vector<16x128xf32>
    %482 = vector.extract_strided_slice %469 {offsets = [0, 256], sizes = [16, 128], strides = [1, 1]} : vector<16x512xf32> to vector<16x128xf32>
    %483 = math.tanh %482 : vector<16x128xf32>
    %484 = vector.extract_strided_slice %469 {offsets = [0, 384], sizes = [16, 128], strides = [1, 1]} : vector<16x512xf32> to vector<16x128xf32>
    %485 = arith.negf %484 : vector<16x128xf32>
    %486 = math.exp %485 : vector<16x128xf32>
    %cst_132 = arith.constant 1.000000e+00 : f32
    %487 = vector.broadcast %cst_132 : f32 to vector<16x128xf32>
    %488 = arith.addf %487, %486 : vector<16x128xf32>
    %489 = arith.divf %487, %488 : vector<16x128xf32>
    %490 = arith.mulf %481, %447 : vector<16x128xf32>
    %491 = arith.mulf %475, %483 : vector<16x128xf32>
    %492 = arith.addf %490, %491 : vector<16x128xf32>
    %493 = math.tanh %492 : vector<16x128xf32>
    %494 = arith.mulf %489, %493 : vector<16x128xf32>
    %495 = arith.truncf %494 : vector<16x128xf32> to vector<16x128xbf16>
    %c0_133 = arith.constant 0 : index
    %c0_134 = arith.constant 0 : index
    %496 = vector.load %arg6[%c0_133, %c0_134] : memref<128x512xbf16, #tpu.memory_space<vmem>>, vector<128x512xbf16>
    %cst_135 = arith.constant dense<0.000000e+00> : vector<16x512xf32>
    %497 = tpu.matmul %495, %496, %cst_135 {dimension_numbers = #tpu.dot_dimension_numbers<[1], [0], [0], [1], [0, 0, 1, 1], [], []>} : vector<16x128xbf16>, vector<128x512xbf16>, vector<16x512xf32> -> vector<16x512xf32>
    %498 = arith.truncf %451 : vector<16x128xf32> to vector<16x128xbf16>
    %c0_136 = arith.constant 0 : index
    %c0_137 = arith.constant 0 : index
    %499 = vector.load %arg7[%c0_136, %c0_137] : memref<128x512xbf16, #tpu.memory_space<vmem>>, vector<128x512xbf16>
    %cst_138 = arith.constant dense<0.000000e+00> : vector<16x512xf32>
    %500 = tpu.matmul %498, %499, %cst_138 {dimension_numbers = #tpu.dot_dimension_numbers<[1], [0], [0], [1], [0, 0, 1, 1], [], []>} : vector<16x128xbf16>, vector<128x512xbf16>, vector<16x512xf32> -> vector<16x512xf32>
    %501 = arith.addf %497, %500 : vector<16x512xf32>
    %c0_139 = arith.constant 0 : index
    %c0_140 = arith.constant 0 : index
    %502 = vector.load %arg8[%c0_139, %c0_140] : memref<1x512xf32, #tpu.memory_space<vmem>>, vector<1x512xf32>
    %503 = vector.broadcast %502 : vector<1x512xf32> to vector<16x512xf32>
    %504 = arith.addf %501, %503 : vector<16x512xf32>
    %505 = vector.extract_strided_slice %504 {offsets = [0, 0], sizes = [16, 128], strides = [1, 1]} : vector<16x512xf32> to vector<16x128xf32>
    %506 = arith.negf %505 : vector<16x128xf32>
    %507 = math.exp %506 : vector<16x128xf32>
    %cst_141 = arith.constant 1.000000e+00 : f32
    %508 = vector.broadcast %cst_141 : f32 to vector<16x128xf32>
    %509 = arith.addf %508, %507 : vector<16x128xf32>
    %510 = arith.divf %508, %509 : vector<16x128xf32>
    %511 = vector.extract_strided_slice %504 {offsets = [0, 128], sizes = [16, 128], strides = [1, 1]} : vector<16x512xf32> to vector<16x128xf32>
    %512 = arith.negf %511 : vector<16x128xf32>
    %513 = math.exp %512 : vector<16x128xf32>
    %cst_142 = arith.constant 1.000000e+00 : f32
    %514 = vector.broadcast %cst_142 : f32 to vector<16x128xf32>
    %515 = arith.addf %514, %513 : vector<16x128xf32>
    %516 = arith.divf %514, %515 : vector<16x128xf32>
    %517 = vector.extract_strided_slice %504 {offsets = [0, 256], sizes = [16, 128], strides = [1, 1]} : vector<16x512xf32> to vector<16x128xf32>
    %518 = math.tanh %517 : vector<16x128xf32>
    %519 = vector.extract_strided_slice %504 {offsets = [0, 384], sizes = [16, 128], strides = [1, 1]} : vector<16x512xf32> to vector<16x128xf32>
    %520 = arith.negf %519 : vector<16x128xf32>
    %521 = math.exp %520 : vector<16x128xf32>
    %cst_143 = arith.constant 1.000000e+00 : f32
    %522 = vector.broadcast %cst_143 : f32 to vector<16x128xf32>
    %523 = arith.addf %522, %521 : vector<16x128xf32>
    %524 = arith.divf %522, %523 : vector<16x128xf32>
    %525 = arith.mulf %516, %455 : vector<16x128xf32>
    %526 = arith.mulf %510, %518 : vector<16x128xf32>
    %527 = arith.addf %525, %526 : vector<16x128xf32>
    %528 = math.tanh %527 : vector<16x128xf32>
    %529 = arith.mulf %524, %528 : vector<16x128xf32>
    %530 = arith.subf %494, %443 : vector<16x128xf32>
    %531 = vector.broadcast %462 : vector<16x1xf32> to vector<16x128xf32>
    %532 = arith.mulf %531, %530 : vector<16x128xf32>
    %533 = arith.addf %443, %532 : vector<16x128xf32>
    %534 = arith.subf %492, %447 : vector<16x128xf32>
    %535 = vector.broadcast %462 : vector<16x1xf32> to vector<16x128xf32>
    %536 = arith.mulf %535, %534 : vector<16x128xf32>
    %537 = arith.addf %447, %536 : vector<16x128xf32>
    %538 = arith.subf %529, %451 : vector<16x128xf32>
    %539 = vector.broadcast %462 : vector<16x1xf32> to vector<16x128xf32>
    %540 = arith.mulf %539, %538 : vector<16x128xf32>
    %541 = arith.addf %451, %540 : vector<16x128xf32>
    %542 = arith.subf %527, %455 : vector<16x128xf32>
    %543 = vector.broadcast %462 : vector<16x1xf32> to vector<16x128xf32>
    %544 = arith.mulf %543, %542 : vector<16x128xf32>
    %545 = arith.addf %455, %544 : vector<16x128xf32>
    %c6_i32 = arith.constant 6 : i32
    %c16_i32_144 = arith.constant 16 : i32
    %546 = arith.muli %c6_i32, %c16_i32_144 : i32
    %547 = tpu.assume_multiple %546, 16 : i32
    %548 = arith.index_cast %547 : i32 to index
    %c0_145 = arith.constant 0 : index
    %549 = vector.load %arg18[%548, %c0_145] : memref<128x512xf32, #tpu.memory_space<vmem>>, vector<16x512xf32>
    %550 = arith.index_cast %c6_i32 : i32 to index
    %c0_146 = arith.constant 0 : index
    %c0_147 = arith.constant 0 : index
    %551 = vector.load %arg1[%550, %c0_146, %c0_147] : memref<8x16x1xf32, #tpu.memory_space<vmem>>, vector<1x16x1xf32>
    %552 = vector.shape_cast %551 : vector<1x16x1xf32> to vector<16x1xf32>
    %553 = arith.truncf %533 : vector<16x128xf32> to vector<16x128xbf16>
    %c0_148 = arith.constant 0 : index
    %c0_149 = arith.constant 0 : index
    %554 = vector.load %arg4[%c0_148, %c0_149] : memref<128x512xbf16, #tpu.memory_space<vmem>>, vector<128x512xbf16>
    %cst_150 = arith.constant dense<0.000000e+00> : vector<16x512xf32>
    %555 = tpu.matmul %553, %554, %cst_150 {dimension_numbers = #tpu.dot_dimension_numbers<[1], [0], [0], [1], [0, 0, 1, 1], [], []>} : vector<16x128xbf16>, vector<128x512xbf16>, vector<16x512xf32> -> vector<16x512xf32>
    %556 = arith.addf %549, %555 : vector<16x512xf32>
    %c0_151 = arith.constant 0 : index
    %c0_152 = arith.constant 0 : index
    %557 = vector.load %arg5[%c0_151, %c0_152] : memref<1x512xf32, #tpu.memory_space<vmem>>, vector<1x512xf32>
    %558 = vector.broadcast %557 : vector<1x512xf32> to vector<16x512xf32>
    %559 = arith.addf %556, %558 : vector<16x512xf32>
    %560 = vector.extract_strided_slice %559 {offsets = [0, 0], sizes = [16, 128], strides = [1, 1]} : vector<16x512xf32> to vector<16x128xf32>
    %561 = arith.negf %560 : vector<16x128xf32>
    %562 = math.exp %561 : vector<16x128xf32>
    %cst_153 = arith.constant 1.000000e+00 : f32
    %563 = vector.broadcast %cst_153 : f32 to vector<16x128xf32>
    %564 = arith.addf %563, %562 : vector<16x128xf32>
    %565 = arith.divf %563, %564 : vector<16x128xf32>
    %566 = vector.extract_strided_slice %559 {offsets = [0, 128], sizes = [16, 128], strides = [1, 1]} : vector<16x512xf32> to vector<16x128xf32>
    %567 = arith.negf %566 : vector<16x128xf32>
    %568 = math.exp %567 : vector<16x128xf32>
    %cst_154 = arith.constant 1.000000e+00 : f32
    %569 = vector.broadcast %cst_154 : f32 to vector<16x128xf32>
    %570 = arith.addf %569, %568 : vector<16x128xf32>
    %571 = arith.divf %569, %570 : vector<16x128xf32>
    %572 = vector.extract_strided_slice %559 {offsets = [0, 256], sizes = [16, 128], strides = [1, 1]} : vector<16x512xf32> to vector<16x128xf32>
    %573 = math.tanh %572 : vector<16x128xf32>
    %574 = vector.extract_strided_slice %559 {offsets = [0, 384], sizes = [16, 128], strides = [1, 1]} : vector<16x512xf32> to vector<16x128xf32>
    %575 = arith.negf %574 : vector<16x128xf32>
    %576 = math.exp %575 : vector<16x128xf32>
    %cst_155 = arith.constant 1.000000e+00 : f32
    %577 = vector.broadcast %cst_155 : f32 to vector<16x128xf32>
    %578 = arith.addf %577, %576 : vector<16x128xf32>
    %579 = arith.divf %577, %578 : vector<16x128xf32>
    %580 = arith.mulf %571, %537 : vector<16x128xf32>
    %581 = arith.mulf %565, %573 : vector<16x128xf32>
    %582 = arith.addf %580, %581 : vector<16x128xf32>
    %583 = math.tanh %582 : vector<16x128xf32>
    %584 = arith.mulf %579, %583 : vector<16x128xf32>
    %585 = arith.truncf %584 : vector<16x128xf32> to vector<16x128xbf16>
    %c0_156 = arith.constant 0 : index
    %c0_157 = arith.constant 0 : index
    %586 = vector.load %arg6[%c0_156, %c0_157] : memref<128x512xbf16, #tpu.memory_space<vmem>>, vector<128x512xbf16>
    %cst_158 = arith.constant dense<0.000000e+00> : vector<16x512xf32>
    %587 = tpu.matmul %585, %586, %cst_158 {dimension_numbers = #tpu.dot_dimension_numbers<[1], [0], [0], [1], [0, 0, 1, 1], [], []>} : vector<16x128xbf16>, vector<128x512xbf16>, vector<16x512xf32> -> vector<16x512xf32>
    %588 = arith.truncf %541 : vector<16x128xf32> to vector<16x128xbf16>
    %c0_159 = arith.constant 0 : index
    %c0_160 = arith.constant 0 : index
    %589 = vector.load %arg7[%c0_159, %c0_160] : memref<128x512xbf16, #tpu.memory_space<vmem>>, vector<128x512xbf16>
    %cst_161 = arith.constant dense<0.000000e+00> : vector<16x512xf32>
    %590 = tpu.matmul %588, %589, %cst_161 {dimension_numbers = #tpu.dot_dimension_numbers<[1], [0], [0], [1], [0, 0, 1, 1], [], []>} : vector<16x128xbf16>, vector<128x512xbf16>, vector<16x512xf32> -> vector<16x512xf32>
    %591 = arith.addf %587, %590 : vector<16x512xf32>
    %c0_162 = arith.constant 0 : index
    %c0_163 = arith.constant 0 : index
    %592 = vector.load %arg8[%c0_162, %c0_163] : memref<1x512xf32, #tpu.memory_space<vmem>>, vector<1x512xf32>
    %593 = vector.broadcast %592 : vector<1x512xf32> to vector<16x512xf32>
    %594 = arith.addf %591, %593 : vector<16x512xf32>
    %595 = vector.extract_strided_slice %594 {offsets = [0, 0], sizes = [16, 128], strides = [1, 1]} : vector<16x512xf32> to vector<16x128xf32>
    %596 = arith.negf %595 : vector<16x128xf32>
    %597 = math.exp %596 : vector<16x128xf32>
    %cst_164 = arith.constant 1.000000e+00 : f32
    %598 = vector.broadcast %cst_164 : f32 to vector<16x128xf32>
    %599 = arith.addf %598, %597 : vector<16x128xf32>
    %600 = arith.divf %598, %599 : vector<16x128xf32>
    %601 = vector.extract_strided_slice %594 {offsets = [0, 128], sizes = [16, 128], strides = [1, 1]} : vector<16x512xf32> to vector<16x128xf32>
    %602 = arith.negf %601 : vector<16x128xf32>
    %603 = math.exp %602 : vector<16x128xf32>
    %cst_165 = arith.constant 1.000000e+00 : f32
    %604 = vector.broadcast %cst_165 : f32 to vector<16x128xf32>
    %605 = arith.addf %604, %603 : vector<16x128xf32>
    %606 = arith.divf %604, %605 : vector<16x128xf32>
    %607 = vector.extract_strided_slice %594 {offsets = [0, 256], sizes = [16, 128], strides = [1, 1]} : vector<16x512xf32> to vector<16x128xf32>
    %608 = math.tanh %607 : vector<16x128xf32>
    %609 = vector.extract_strided_slice %594 {offsets = [0, 384], sizes = [16, 128], strides = [1, 1]} : vector<16x512xf32> to vector<16x128xf32>
    %610 = arith.negf %609 : vector<16x128xf32>
    %611 = math.exp %610 : vector<16x128xf32>
    %cst_166 = arith.constant 1.000000e+00 : f32
    %612 = vector.broadcast %cst_166 : f32 to vector<16x128xf32>
    %613 = arith.addf %612, %611 : vector<16x128xf32>
    %614 = arith.divf %612, %613 : vector<16x128xf32>
    %615 = arith.mulf %606, %545 : vector<16x128xf32>
    %616 = arith.mulf %600, %608 : vector<16x128xf32>
    %617 = arith.addf %615, %616 : vector<16x128xf32>
    %618 = math.tanh %617 : vector<16x128xf32>
    %619 = arith.mulf %614, %618 : vector<16x128xf32>
    %620 = arith.subf %584, %533 : vector<16x128xf32>
    %621 = vector.broadcast %552 : vector<16x1xf32> to vector<16x128xf32>
    %622 = arith.mulf %621, %620 : vector<16x128xf32>
    %623 = arith.addf %533, %622 : vector<16x128xf32>
    %624 = arith.subf %582, %537 : vector<16x128xf32>
    %625 = vector.broadcast %552 : vector<16x1xf32> to vector<16x128xf32>
    %626 = arith.mulf %625, %624 : vector<16x128xf32>
    %627 = arith.addf %537, %626 : vector<16x128xf32>
    %628 = arith.subf %619, %541 : vector<16x128xf32>
    %629 = vector.broadcast %552 : vector<16x1xf32> to vector<16x128xf32>
    %630 = arith.mulf %629, %628 : vector<16x128xf32>
    %631 = arith.addf %541, %630 : vector<16x128xf32>
    %632 = arith.subf %617, %545 : vector<16x128xf32>
    %633 = vector.broadcast %552 : vector<16x1xf32> to vector<16x128xf32>
    %634 = arith.mulf %633, %632 : vector<16x128xf32>
    %635 = arith.addf %545, %634 : vector<16x128xf32>
    %c7_i32 = arith.constant 7 : i32
    %c16_i32_167 = arith.constant 16 : i32
    %636 = arith.muli %c7_i32, %c16_i32_167 : i32
    %637 = tpu.assume_multiple %636, 16 : i32
    %638 = arith.index_cast %637 : i32 to index
    %c0_168 = arith.constant 0 : index
    %639 = vector.load %arg18[%638, %c0_168] : memref<128x512xf32, #tpu.memory_space<vmem>>, vector<16x512xf32>
    %640 = arith.index_cast %c7_i32 : i32 to index
    %c0_169 = arith.constant 0 : index
    %c0_170 = arith.constant 0 : index
    %641 = vector.load %arg1[%640, %c0_169, %c0_170] : memref<8x16x1xf32, #tpu.memory_space<vmem>>, vector<1x16x1xf32>
    %642 = vector.shape_cast %641 : vector<1x16x1xf32> to vector<16x1xf32>
    %643 = arith.truncf %623 : vector<16x128xf32> to vector<16x128xbf16>
    %c0_171 = arith.constant 0 : index
    %c0_172 = arith.constant 0 : index
    %644 = vector.load %arg4[%c0_171, %c0_172] : memref<128x512xbf16, #tpu.memory_space<vmem>>, vector<128x512xbf16>
    %cst_173 = arith.constant dense<0.000000e+00> : vector<16x512xf32>
    %645 = tpu.matmul %643, %644, %cst_173 {dimension_numbers = #tpu.dot_dimension_numbers<[1], [0], [0], [1], [0, 0, 1, 1], [], []>} : vector<16x128xbf16>, vector<128x512xbf16>, vector<16x512xf32> -> vector<16x512xf32>
    %646 = arith.addf %639, %645 : vector<16x512xf32>
    %c0_174 = arith.constant 0 : index
    %c0_175 = arith.constant 0 : index
    %647 = vector.load %arg5[%c0_174, %c0_175] : memref<1x512xf32, #tpu.memory_space<vmem>>, vector<1x512xf32>
    %648 = vector.broadcast %647 : vector<1x512xf32> to vector<16x512xf32>
    %649 = arith.addf %646, %648 : vector<16x512xf32>
    %650 = vector.extract_strided_slice %649 {offsets = [0, 0], sizes = [16, 128], strides = [1, 1]} : vector<16x512xf32> to vector<16x128xf32>
    %651 = arith.negf %650 : vector<16x128xf32>
    %652 = math.exp %651 : vector<16x128xf32>
    %cst_176 = arith.constant 1.000000e+00 : f32
    %653 = vector.broadcast %cst_176 : f32 to vector<16x128xf32>
    %654 = arith.addf %653, %652 : vector<16x128xf32>
    %655 = arith.divf %653, %654 : vector<16x128xf32>
    %656 = vector.extract_strided_slice %649 {offsets = [0, 128], sizes = [16, 128], strides = [1, 1]} : vector<16x512xf32> to vector<16x128xf32>
    %657 = arith.negf %656 : vector<16x128xf32>
    %658 = math.exp %657 : vector<16x128xf32>
    %cst_177 = arith.constant 1.000000e+00 : f32
    %659 = vector.broadcast %cst_177 : f32 to vector<16x128xf32>
    %660 = arith.addf %659, %658 : vector<16x128xf32>
    %661 = arith.divf %659, %660 : vector<16x128xf32>
    %662 = vector.extract_strided_slice %649 {offsets = [0, 256], sizes = [16, 128], strides = [1, 1]} : vector<16x512xf32> to vector<16x128xf32>
    %663 = math.tanh %662 : vector<16x128xf32>
    %664 = vector.extract_strided_slice %649 {offsets = [0, 384], sizes = [16, 128], strides = [1, 1]} : vector<16x512xf32> to vector<16x128xf32>
    %665 = arith.negf %664 : vector<16x128xf32>
    %666 = math.exp %665 : vector<16x128xf32>
    %cst_178 = arith.constant 1.000000e+00 : f32
    %667 = vector.broadcast %cst_178 : f32 to vector<16x128xf32>
    %668 = arith.addf %667, %666 : vector<16x128xf32>
    %669 = arith.divf %667, %668 : vector<16x128xf32>
    %670 = arith.mulf %661, %627 : vector<16x128xf32>
    %671 = arith.mulf %655, %663 : vector<16x128xf32>
    %672 = arith.addf %670, %671 : vector<16x128xf32>
    %673 = math.tanh %672 : vector<16x128xf32>
    %674 = arith.mulf %669, %673 : vector<16x128xf32>
    %675 = arith.truncf %674 : vector<16x128xf32> to vector<16x128xbf16>
    %c0_179 = arith.constant 0 : index
    %c0_180 = arith.constant 0 : index
    %676 = vector.load %arg6[%c0_179, %c0_180] : memref<128x512xbf16, #tpu.memory_space<vmem>>, vector<128x512xbf16>
    %cst_181 = arith.constant dense<0.000000e+00> : vector<16x512xf32>
    %677 = tpu.matmul %675, %676, %cst_181 {dimension_numbers = #tpu.dot_dimension_numbers<[1], [0], [0], [1], [0, 0, 1, 1], [], []>} : vector<16x128xbf16>, vector<128x512xbf16>, vector<16x512xf32> -> vector<16x512xf32>
    %678 = arith.truncf %631 : vector<16x128xf32> to vector<16x128xbf16>
    %c0_182 = arith.constant 0 : index
    %c0_183 = arith.constant 0 : index
    %679 = vector.load %arg7[%c0_182, %c0_183] : memref<128x512xbf16, #tpu.memory_space<vmem>>, vector<128x512xbf16>
    %cst_184 = arith.constant dense<0.000000e+00> : vector<16x512xf32>
    %680 = tpu.matmul %678, %679, %cst_184 {dimension_numbers = #tpu.dot_dimension_numbers<[1], [0], [0], [1], [0, 0, 1, 1], [], []>} : vector<16x128xbf16>, vector<128x512xbf16>, vector<16x512xf32> -> vector<16x512xf32>
    %681 = arith.addf %677, %680 : vector<16x512xf32>
    %c0_185 = arith.constant 0 : index
    %c0_186 = arith.constant 0 : index
    %682 = vector.load %arg8[%c0_185, %c0_186] : memref<1x512xf32, #tpu.memory_space<vmem>>, vector<1x512xf32>
    %683 = vector.broadcast %682 : vector<1x512xf32> to vector<16x512xf32>
    %684 = arith.addf %681, %683 : vector<16x512xf32>
    %685 = vector.extract_strided_slice %684 {offsets = [0, 0], sizes = [16, 128], strides = [1, 1]} : vector<16x512xf32> to vector<16x128xf32>
    %686 = arith.negf %685 : vector<16x128xf32>
    %687 = math.exp %686 : vector<16x128xf32>
    %cst_187 = arith.constant 1.000000e+00 : f32
    %688 = vector.broadcast %cst_187 : f32 to vector<16x128xf32>
    %689 = arith.addf %688, %687 : vector<16x128xf32>
    %690 = arith.divf %688, %689 : vector<16x128xf32>
    %691 = vector.extract_strided_slice %684 {offsets = [0, 128], sizes = [16, 128], strides = [1, 1]} : vector<16x512xf32> to vector<16x128xf32>
    %692 = arith.negf %691 : vector<16x128xf32>
    %693 = math.exp %692 : vector<16x128xf32>
    %cst_188 = arith.constant 1.000000e+00 : f32
    %694 = vector.broadcast %cst_188 : f32 to vector<16x128xf32>
    %695 = arith.addf %694, %693 : vector<16x128xf32>
    %696 = arith.divf %694, %695 : vector<16x128xf32>
    %697 = vector.extract_strided_slice %684 {offsets = [0, 256], sizes = [16, 128], strides = [1, 1]} : vector<16x512xf32> to vector<16x128xf32>
    %698 = math.tanh %697 : vector<16x128xf32>
    %699 = vector.extract_strided_slice %684 {offsets = [0, 384], sizes = [16, 128], strides = [1, 1]} : vector<16x512xf32> to vector<16x128xf32>
    %700 = arith.negf %699 : vector<16x128xf32>
    %701 = math.exp %700 : vector<16x128xf32>
    %cst_189 = arith.constant 1.000000e+00 : f32
    %702 = vector.broadcast %cst_189 : f32 to vector<16x128xf32>
    %703 = arith.addf %702, %701 : vector<16x128xf32>
    %704 = arith.divf %702, %703 : vector<16x128xf32>
    %705 = arith.mulf %696, %635 : vector<16x128xf32>
    %706 = arith.mulf %690, %698 : vector<16x128xf32>
    %707 = arith.addf %705, %706 : vector<16x128xf32>
    %708 = math.tanh %707 : vector<16x128xf32>
    %709 = arith.mulf %704, %708 : vector<16x128xf32>
    %710 = arith.subf %674, %623 : vector<16x128xf32>
    %711 = vector.broadcast %642 : vector<16x1xf32> to vector<16x128xf32>
    %712 = arith.mulf %711, %710 : vector<16x128xf32>
    %713 = arith.addf %623, %712 : vector<16x128xf32>
    %714 = arith.subf %672, %627 : vector<16x128xf32>
    %715 = vector.broadcast %642 : vector<16x1xf32> to vector<16x128xf32>
    %716 = arith.mulf %715, %714 : vector<16x128xf32>
    %717 = arith.addf %627, %716 : vector<16x128xf32>
    %718 = arith.subf %709, %631 : vector<16x128xf32>
    %719 = vector.broadcast %642 : vector<16x1xf32> to vector<16x128xf32>
    %720 = arith.mulf %719, %718 : vector<16x128xf32>
    %721 = arith.addf %631, %720 : vector<16x128xf32>
    %722 = arith.subf %707, %635 : vector<16x128xf32>
    %723 = vector.broadcast %642 : vector<16x1xf32> to vector<16x128xf32>
    %724 = arith.mulf %723, %722 : vector<16x128xf32>
    %725 = arith.addf %635, %724 : vector<16x128xf32>
    %c8_i32 = arith.constant 8 : i32
    %c0_190 = arith.constant 0 : index
    %c0_191 = arith.constant 0 : index
    %c0_192 = arith.constant 0 : index
    %726 = vector.load %arg2[%c0_190, %c0_191, %c0_192] : memref<6x16x128xbf16, #tpu.memory_space<vmem>>, vector<6x16x128xbf16>
    %727 = vector.shape_cast %726 : vector<6x16x128xbf16> to vector<96x128xbf16>
    %c0_193 = arith.constant 0 : index
    %c0_194 = arith.constant 0 : index
    %728 = vector.load %arg9[%c0_193, %c0_194] : memref<128x512xbf16, #tpu.memory_space<vmem>>, vector<128x512xbf16>
    %cst_195 = arith.constant dense<0.000000e+00> : vector<96x512xf32>
    %729 = tpu.matmul %727, %728, %cst_195 {dimension_numbers = #tpu.dot_dimension_numbers<[1], [0], [0], [1], [0, 0, 1, 1], [], []>} : vector<96x128xbf16>, vector<128x512xbf16>, vector<96x512xf32> -> vector<96x512xf32>
    %c0_196 = arith.constant 0 : index
    %c0_197 = arith.constant 0 : index
    %730 = vector.load %arg19[%c0_196, %c0_197] : memref<96x512xf32, #tpu.memory_space<vmem>>, vector<96x512xf32>
    tpu.vector_store %arg19[%c0_196, %c0_197], %729 {strides = array<i32>} : memref<96x512xf32, #tpu.memory_space<vmem>>, vector<96x512xf32>,
    %c0_i32_198 = arith.constant 0 : i32
    %c16_i32_199 = arith.constant 16 : i32
    %731 = arith.muli %c0_i32_198, %c16_i32_199 : i32
    %732 = tpu.assume_multiple %731, 16 : i32
    %733 = arith.index_cast %732 : i32 to index
    %c0_200 = arith.constant 0 : index
    %734 = vector.load %arg19[%733, %c0_200] : memref<96x512xf32, #tpu.memory_space<vmem>>, vector<16x512xf32>
    %735 = arith.truncf %713 : vector<16x128xf32> to vector<16x128xbf16>
    %c0_201 = arith.constant 0 : index
    %c0_202 = arith.constant 0 : index
    %736 = vector.load %arg10[%c0_201, %c0_202] : memref<128x512xbf16, #tpu.memory_space<vmem>>, vector<128x512xbf16>
    %cst_203 = arith.constant dense<0.000000e+00> : vector<16x512xf32>
    %737 = tpu.matmul %735, %736, %cst_203 {dimension_numbers = #tpu.dot_dimension_numbers<[1], [0], [0], [1], [0, 0, 1, 1], [], []>} : vector<16x128xbf16>, vector<128x512xbf16>, vector<16x512xf32> -> vector<16x512xf32>
    %738 = arith.addf %734, %737 : vector<16x512xf32>
    %c0_204 = arith.constant 0 : index
    %c0_205 = arith.constant 0 : index
    %739 = vector.load %arg11[%c0_204, %c0_205] : memref<1x512xf32, #tpu.memory_space<vmem>>, vector<1x512xf32>
    %740 = vector.broadcast %739 : vector<1x512xf32> to vector<16x512xf32>
    %741 = arith.addf %738, %740 : vector<16x512xf32>
    %742 = vector.extract_strided_slice %741 {offsets = [0, 0], sizes = [16, 128], strides = [1, 1]} : vector<16x512xf32> to vector<16x128xf32>
    %743 = arith.negf %742 : vector<16x128xf32>
    %744 = math.exp %743 : vector<16x128xf32>
    %cst_206 = arith.constant 1.000000e+00 : f32
    %745 = vector.broadcast %cst_206 : f32 to vector<16x128xf32>
    %746 = arith.addf %745, %744 : vector<16x128xf32>
    %747 = arith.divf %745, %746 : vector<16x128xf32>
    %748 = vector.extract_strided_slice %741 {offsets = [0, 128], sizes = [16, 128], strides = [1, 1]} : vector<16x512xf32> to vector<16x128xf32>
    %749 = arith.negf %748 : vector<16x128xf32>
    %750 = math.exp %749 : vector<16x128xf32>
    %cst_207 = arith.constant 1.000000e+00 : f32
    %751 = vector.broadcast %cst_207 : f32 to vector<16x128xf32>
    %752 = arith.addf %751, %750 : vector<16x128xf32>
    %753 = arith.divf %751, %752 : vector<16x128xf32>
    %754 = vector.extract_strided_slice %741 {offsets = [0, 256], sizes = [16, 128], strides = [1, 1]} : vector<16x512xf32> to vector<16x128xf32>
    %755 = math.tanh %754 : vector<16x128xf32>
    %756 = vector.extract_strided_slice %741 {offsets = [0, 384], sizes = [16, 128], strides = [1, 1]} : vector<16x512xf32> to vector<16x128xf32>
    %757 = arith.negf %756 : vector<16x128xf32>
    %758 = math.exp %757 : vector<16x128xf32>
    %cst_208 = arith.constant 1.000000e+00 : f32
    %759 = vector.broadcast %cst_208 : f32 to vector<16x128xf32>
    %760 = arith.addf %759, %758 : vector<16x128xf32>
    %761 = arith.divf %759, %760 : vector<16x128xf32>
    %762 = arith.mulf %753, %717 : vector<16x128xf32>
    %763 = arith.mulf %747, %755 : vector<16x128xf32>
    %764 = arith.addf %762, %763 : vector<16x128xf32>
    %765 = math.tanh %764 : vector<16x128xf32>
    %766 = arith.mulf %761, %765 : vector<16x128xf32>
    %767 = arith.truncf %766 : vector<16x128xf32> to vector<16x128xbf16>
    %c0_209 = arith.constant 0 : index
    %c0_210 = arith.constant 0 : index
    %768 = vector.load %arg12[%c0_209, %c0_210] : memref<128x512xbf16, #tpu.memory_space<vmem>>, vector<128x512xbf16>
    %cst_211 = arith.constant dense<0.000000e+00> : vector<16x512xf32>
    %769 = tpu.matmul %767, %768, %cst_211 {dimension_numbers = #tpu.dot_dimension_numbers<[1], [0], [0], [1], [0, 0, 1, 1], [], []>} : vector<16x128xbf16>, vector<128x512xbf16>, vector<16x512xf32> -> vector<16x512xf32>
    %770 = arith.truncf %721 : vector<16x128xf32> to vector<16x128xbf16>
    %c0_212 = arith.constant 0 : index
    %c0_213 = arith.constant 0 : index
    %771 = vector.load %arg13[%c0_212, %c0_213] : memref<128x512xbf16, #tpu.memory_space<vmem>>, vector<128x512xbf16>
    %cst_214 = arith.constant dense<0.000000e+00> : vector<16x512xf32>
    %772 = tpu.matmul %770, %771, %cst_214 {dimension_numbers = #tpu.dot_dimension_numbers<[1], [0], [0], [1], [0, 0, 1, 1], [], []>} : vector<16x128xbf16>, vector<128x512xbf16>, vector<16x512xf32> -> vector<16x512xf32>
    %773 = arith.addf %769, %772 : vector<16x512xf32>
    %c0_215 = arith.constant 0 : index
    %c0_216 = arith.constant 0 : index
    %774 = vector.load %arg14[%c0_215, %c0_216] : memref<1x512xf32, #tpu.memory_space<vmem>>, vector<1x512xf32>
    %775 = vector.broadcast %774 : vector<1x512xf32> to vector<16x512xf32>
    %776 = arith.addf %773, %775 : vector<16x512xf32>
    %777 = vector.extract_strided_slice %776 {offsets = [0, 0], sizes = [16, 128], strides = [1, 1]} : vector<16x512xf32> to vector<16x128xf32>
    %778 = arith.negf %777 : vector<16x128xf32>
    %779 = math.exp %778 : vector<16x128xf32>
    %cst_217 = arith.constant 1.000000e+00 : f32
    %780 = vector.broadcast %cst_217 : f32 to vector<16x128xf32>
    %781 = arith.addf %780, %779 : vector<16x128xf32>
    %782 = arith.divf %780, %781 : vector<16x128xf32>
    %783 = vector.extract_strided_slice %776 {offsets = [0, 128], sizes = [16, 128], strides = [1, 1]} : vector<16x512xf32> to vector<16x128xf32>
    %784 = arith.negf %783 : vector<16x128xf32>
    %785 = math.exp %784 : vector<16x128xf32>
    %cst_218 = arith.constant 1.000000e+00 : f32
    %786 = vector.broadcast %cst_218 : f32 to vector<16x128xf32>
    %787 = arith.addf %786, %785 : vector<16x128xf32>
    %788 = arith.divf %786, %787 : vector<16x128xf32>
    %789 = vector.extract_strided_slice %776 {offsets = [0, 256], sizes = [16, 128], strides = [1, 1]} : vector<16x512xf32> to vector<16x128xf32>
    %790 = math.tanh %789 : vector<16x128xf32>
    %791 = vector.extract_strided_slice %776 {offsets = [0, 384], sizes = [16, 128], strides = [1, 1]} : vector<16x512xf32> to vector<16x128xf32>
    %792 = arith.negf %791 : vector<16x128xf32>
    %793 = math.exp %792 : vector<16x128xf32>
    %cst_219 = arith.constant 1.000000e+00 : f32
    %794 = vector.broadcast %cst_219 : f32 to vector<16x128xf32>
    %795 = arith.addf %794, %793 : vector<16x128xf32>
    %796 = arith.divf %794, %795 : vector<16x128xf32>
    %797 = arith.mulf %788, %725 : vector<16x128xf32>
    %798 = arith.mulf %782, %790 : vector<16x128xf32>
    %799 = arith.addf %797, %798 : vector<16x128xf32>
    %800 = math.tanh %799 : vector<16x128xf32>
    %801 = arith.mulf %796, %800 : vector<16x128xf32>
    %802 = arith.truncf %801 : vector<16x128xf32> to vector<16x128xbf16>
    %803 = arith.index_cast %732 : i32 to index
    %c0_220 = arith.constant 0 : index
    %804 = vector.load %arg15[%803, %c0_220] : memref<96x128xbf16, #tpu.memory_space<vmem>>, vector<16x128xbf16>
    tpu.vector_store %arg15[%803, %c0_220], %802 {strides = array<i32>} : memref<96x128xbf16, #tpu.memory_space<vmem>>, vector<16x128xbf16>,
    %c1_i32_221 = arith.constant 1 : i32
    %c16_i32_222 = arith.constant 16 : i32
    %805 = arith.muli %c1_i32_221, %c16_i32_222 : i32
    %806 = tpu.assume_multiple %805, 16 : i32
    %807 = arith.index_cast %806 : i32 to index
    %c0_223 = arith.constant 0 : index
    %808 = vector.load %arg19[%807, %c0_223] : memref<96x512xf32, #tpu.memory_space<vmem>>, vector<16x512xf32>
    %809 = arith.truncf %766 : vector<16x128xf32> to vector<16x128xbf16>
    %c0_224 = arith.constant 0 : index
    %c0_225 = arith.constant 0 : index
    %810 = vector.load %arg10[%c0_224, %c0_225] : memref<128x512xbf16, #tpu.memory_space<vmem>>, vector<128x512xbf16>
    %cst_226 = arith.constant dense<0.000000e+00> : vector<16x512xf32>
    %811 = tpu.matmul %809, %810, %cst_226 {dimension_numbers = #tpu.dot_dimension_numbers<[1], [0], [0], [1], [0, 0, 1, 1], [], []>} : vector<16x128xbf16>, vector<128x512xbf16>, vector<16x512xf32> -> vector<16x512xf32>
    %812 = arith.addf %808, %811 : vector<16x512xf32>
    %c0_227 = arith.constant 0 : index
    %c0_228 = arith.constant 0 : index
    %813 = vector.load %arg11[%c0_227, %c0_228] : memref<1x512xf32, #tpu.memory_space<vmem>>, vector<1x512xf32>
    %814 = vector.broadcast %813 : vector<1x512xf32> to vector<16x512xf32>
    %815 = arith.addf %812, %814 : vector<16x512xf32>
    %816 = vector.extract_strided_slice %815 {offsets = [0, 0], sizes = [16, 128], strides = [1, 1]} : vector<16x512xf32> to vector<16x128xf32>
    %817 = arith.negf %816 : vector<16x128xf32>
    %818 = math.exp %817 : vector<16x128xf32>
    %cst_229 = arith.constant 1.000000e+00 : f32
    %819 = vector.broadcast %cst_229 : f32 to vector<16x128xf32>
    %820 = arith.addf %819, %818 : vector<16x128xf32>
    %821 = arith.divf %819, %820 : vector<16x128xf32>
    %822 = vector.extract_strided_slice %815 {offsets = [0, 128], sizes = [16, 128], strides = [1, 1]} : vector<16x512xf32> to vector<16x128xf32>
    %823 = arith.negf %822 : vector<16x128xf32>
    %824 = math.exp %823 : vector<16x128xf32>
    %cst_230 = arith.constant 1.000000e+00 : f32
    %825 = vector.broadcast %cst_230 : f32 to vector<16x128xf32>
    %826 = arith.addf %825, %824 : vector<16x128xf32>
    %827 = arith.divf %825, %826 : vector<16x128xf32>
    %828 = vector.extract_strided_slice %815 {offsets = [0, 256], sizes = [16, 128], strides = [1, 1]} : vector<16x512xf32> to vector<16x128xf32>
    %829 = math.tanh %828 : vector<16x128xf32>
    %830 = vector.extract_strided_slice %815 {offsets = [0, 384], sizes = [16, 128], strides = [1, 1]} : vector<16x512xf32> to vector<16x128xf32>
    %831 = arith.negf %830 : vector<16x128xf32>
    %832 = math.exp %831 : vector<16x128xf32>
    %cst_231 = arith.constant 1.000000e+00 : f32
    %833 = vector.broadcast %cst_231 : f32 to vector<16x128xf32>
    %834 = arith.addf %833, %832 : vector<16x128xf32>
    %835 = arith.divf %833, %834 : vector<16x128xf32>
    %836 = arith.mulf %827, %764 : vector<16x128xf32>
    %837 = arith.mulf %821, %829 : vector<16x128xf32>
    %838 = arith.addf %836, %837 : vector<16x128xf32>
    %839 = math.tanh %838 : vector<16x128xf32>
    %840 = arith.mulf %835, %839 : vector<16x128xf32>
    %841 = arith.truncf %840 : vector<16x128xf32> to vector<16x128xbf16>
    %c0_232 = arith.constant 0 : index
    %c0_233 = arith.constant 0 : index
    %842 = vector.load %arg12[%c0_232, %c0_233] : memref<128x512xbf16, #tpu.memory_space<vmem>>, vector<128x512xbf16>
    %cst_234 = arith.constant dense<0.000000e+00> : vector<16x512xf32>
    %843 = tpu.matmul %841, %842, %cst_234 {dimension_numbers = #tpu.dot_dimension_numbers<[1], [0], [0], [1], [0, 0, 1, 1], [], []>} : vector<16x128xbf16>, vector<128x512xbf16>, vector<16x512xf32> -> vector<16x512xf32>
    %844 = arith.truncf %801 : vector<16x128xf32> to vector<16x128xbf16>
    %c0_235 = arith.constant 0 : index
    %c0_236 = arith.constant 0 : index
    %845 = vector.load %arg13[%c0_235, %c0_236] : memref<128x512xbf16, #tpu.memory_space<vmem>>, vector<128x512xbf16>
    %cst_237 = arith.constant dense<0.000000e+00> : vector<16x512xf32>
    %846 = tpu.matmul %844, %845, %cst_237 {dimension_numbers = #tpu.dot_dimension_numbers<[1], [0], [0], [1], [0, 0, 1, 1], [], []>} : vector<16x128xbf16>, vector<128x512xbf16>, vector<16x512xf32> -> vector<16x512xf32>
    %847 = arith.addf %843, %846 : vector<16x512xf32>
    %c0_238 = arith.constant 0 : index
    %c0_239 = arith.constant 0 : index
    %848 = vector.load %arg14[%c0_238, %c0_239] : memref<1x512xf32, #tpu.memory_space<vmem>>, vector<1x512xf32>
    %849 = vector.broadcast %848 : vector<1x512xf32> to vector<16x512xf32>
    %850 = arith.addf %847, %849 : vector<16x512xf32>
    %851 = vector.extract_strided_slice %850 {offsets = [0, 0], sizes = [16, 128], strides = [1, 1]} : vector<16x512xf32> to vector<16x128xf32>
    %852 = arith.negf %851 : vector<16x128xf32>
    %853 = math.exp %852 : vector<16x128xf32>
    %cst_240 = arith.constant 1.000000e+00 : f32
    %854 = vector.broadcast %cst_240 : f32 to vector<16x128xf32>
    %855 = arith.addf %854, %853 : vector<16x128xf32>
    %856 = arith.divf %854, %855 : vector<16x128xf32>
    %857 = vector.extract_strided_slice %850 {offsets = [0, 128], sizes = [16, 128], strides = [1, 1]} : vector<16x512xf32> to vector<16x128xf32>
    %858 = arith.negf %857 : vector<16x128xf32>
    %859 = math.exp %858 : vector<16x128xf32>
    %cst_241 = arith.constant 1.000000e+00 : f32
    %860 = vector.broadcast %cst_241 : f32 to vector<16x128xf32>
    %861 = arith.addf %860, %859 : vector<16x128xf32>
    %862 = arith.divf %860, %861 : vector<16x128xf32>
    %863 = vector.extract_strided_slice %850 {offsets = [0, 256], sizes = [16, 128], strides = [1, 1]} : vector<16x512xf32> to vector<16x128xf32>
    %864 = math.tanh %863 : vector<16x128xf32>
    %865 = vector.extract_strided_slice %850 {offsets = [0, 384], sizes = [16, 128], strides = [1, 1]} : vector<16x512xf32> to vector<16x128xf32>
    %866 = arith.negf %865 : vector<16x128xf32>
    %867 = math.exp %866 : vector<16x128xf32>
    %cst_242 = arith.constant 1.000000e+00 : f32
    %868 = vector.broadcast %cst_242 : f32 to vector<16x128xf32>
    %869 = arith.addf %868, %867 : vector<16x128xf32>
    %870 = arith.divf %868, %869 : vector<16x128xf32>
    %871 = arith.mulf %862, %799 : vector<16x128xf32>
    %872 = arith.mulf %856, %864 : vector<16x128xf32>
    %873 = arith.addf %871, %872 : vector<16x128xf32>
    %874 = math.tanh %873 : vector<16x128xf32>
    %875 = arith.mulf %870, %874 : vector<16x128xf32>
    %876 = arith.truncf %875 : vector<16x128xf32> to vector<16x128xbf16>
    %877 = arith.index_cast %806 : i32 to index
    %c0_243 = arith.constant 0 : index
    %878 = vector.load %arg15[%877, %c0_243] : memref<96x128xbf16, #tpu.memory_space<vmem>>, vector<16x128xbf16>
    tpu.vector_store %arg15[%877, %c0_243], %876 {strides = array<i32>} : memref<96x128xbf16, #tpu.memory_space<vmem>>, vector<16x128xbf16>,
    %c2_i32_244 = arith.constant 2 : i32
    %c16_i32_245 = arith.constant 16 : i32
    %879 = arith.muli %c2_i32_244, %c16_i32_245 : i32
    %880 = tpu.assume_multiple %879, 16 : i32
    %881 = arith.index_cast %880 : i32 to index
    %c0_246 = arith.constant 0 : index
    %882 = vector.load %arg19[%881, %c0_246] : memref<96x512xf32, #tpu.memory_space<vmem>>, vector<16x512xf32>
    %883 = arith.truncf %840 : vector<16x128xf32> to vector<16x128xbf16>
    %c0_247 = arith.constant 0 : index
    %c0_248 = arith.constant 0 : index
    %884 = vector.load %arg10[%c0_247, %c0_248] : memref<128x512xbf16, #tpu.memory_space<vmem>>, vector<128x512xbf16>
    %cst_249 = arith.constant dense<0.000000e+00> : vector<16x512xf32>
    %885 = tpu.matmul %883, %884, %cst_249 {dimension_numbers = #tpu.dot_dimension_numbers<[1], [0], [0], [1], [0, 0, 1, 1], [], []>} : vector<16x128xbf16>, vector<128x512xbf16>, vector<16x512xf32> -> vector<16x512xf32>
    %886 = arith.addf %882, %885 : vector<16x512xf32>
    %c0_250 = arith.constant 0 : index
    %c0_251 = arith.constant 0 : index
    %887 = vector.load %arg11[%c0_250, %c0_251] : memref<1x512xf32, #tpu.memory_space<vmem>>, vector<1x512xf32>
    %888 = vector.broadcast %887 : vector<1x512xf32> to vector<16x512xf32>
    %889 = arith.addf %886, %888 : vector<16x512xf32>
    %890 = vector.extract_strided_slice %889 {offsets = [0, 0], sizes = [16, 128], strides = [1, 1]} : vector<16x512xf32> to vector<16x128xf32>
    %891 = arith.negf %890 : vector<16x128xf32>
    %892 = math.exp %891 : vector<16x128xf32>
    %cst_252 = arith.constant 1.000000e+00 : f32
    %893 = vector.broadcast %cst_252 : f32 to vector<16x128xf32>
    %894 = arith.addf %893, %892 : vector<16x128xf32>
    %895 = arith.divf %893, %894 : vector<16x128xf32>
    %896 = vector.extract_strided_slice %889 {offsets = [0, 128], sizes = [16, 128], strides = [1, 1]} : vector<16x512xf32> to vector<16x128xf32>
    %897 = arith.negf %896 : vector<16x128xf32>
    %898 = math.exp %897 : vector<16x128xf32>
    %cst_253 = arith.constant 1.000000e+00 : f32
    %899 = vector.broadcast %cst_253 : f32 to vector<16x128xf32>
    %900 = arith.addf %899, %898 : vector<16x128xf32>
    %901 = arith.divf %899, %900 : vector<16x128xf32>
    %902 = vector.extract_strided_slice %889 {offsets = [0, 256], sizes = [16, 128], strides = [1, 1]} : vector<16x512xf32> to vector<16x128xf32>
    %903 = math.tanh %902 : vector<16x128xf32>
    %904 = vector.extract_strided_slice %889 {offsets = [0, 384], sizes = [16, 128], strides = [1, 1]} : vector<16x512xf32> to vector<16x128xf32>
    %905 = arith.negf %904 : vector<16x128xf32>
    %906 = math.exp %905 : vector<16x128xf32>
    %cst_254 = arith.constant 1.000000e+00 : f32
    %907 = vector.broadcast %cst_254 : f32 to vector<16x128xf32>
    %908 = arith.addf %907, %906 : vector<16x128xf32>
    %909 = arith.divf %907, %908 : vector<16x128xf32>
    %910 = arith.mulf %901, %838 : vector<16x128xf32>
    %911 = arith.mulf %895, %903 : vector<16x128xf32>
    %912 = arith.addf %910, %911 : vector<16x128xf32>
    %913 = math.tanh %912 : vector<16x128xf32>
    %914 = arith.mulf %909, %913 : vector<16x128xf32>
    %915 = arith.truncf %914 : vector<16x128xf32> to vector<16x128xbf16>
    %c0_255 = arith.constant 0 : index
    %c0_256 = arith.constant 0 : index
    %916 = vector.load %arg12[%c0_255, %c0_256] : memref<128x512xbf16, #tpu.memory_space<vmem>>, vector<128x512xbf16>
    %cst_257 = arith.constant dense<0.000000e+00> : vector<16x512xf32>
    %917 = tpu.matmul %915, %916, %cst_257 {dimension_numbers = #tpu.dot_dimension_numbers<[1], [0], [0], [1], [0, 0, 1, 1], [], []>} : vector<16x128xbf16>, vector<128x512xbf16>, vector<16x512xf32> -> vector<16x512xf32>
    %918 = arith.truncf %875 : vector<16x128xf32> to vector<16x128xbf16>
    %c0_258 = arith.constant 0 : index
    %c0_259 = arith.constant 0 : index
    %919 = vector.load %arg13[%c0_258, %c0_259] : memref<128x512xbf16, #tpu.memory_space<vmem>>, vector<128x512xbf16>
    %cst_260 = arith.constant dense<0.000000e+00> : vector<16x512xf32>
    %920 = tpu.matmul %918, %919, %cst_260 {dimension_numbers = #tpu.dot_dimension_numbers<[1], [0], [0], [1], [0, 0, 1, 1], [], []>} : vector<16x128xbf16>, vector<128x512xbf16>, vector<16x512xf32> -> vector<16x512xf32>
    %921 = arith.addf %917, %920 : vector<16x512xf32>
    %c0_261 = arith.constant 0 : index
    %c0_262 = arith.constant 0 : index
    %922 = vector.load %arg14[%c0_261, %c0_262] : memref<1x512xf32, #tpu.memory_space<vmem>>, vector<1x512xf32>
    %923 = vector.broadcast %922 : vector<1x512xf32> to vector<16x512xf32>
    %924 = arith.addf %921, %923 : vector<16x512xf32>
    %925 = vector.extract_strided_slice %924 {offsets = [0, 0], sizes = [16, 128], strides = [1, 1]} : vector<16x512xf32> to vector<16x128xf32>
    %926 = arith.negf %925 : vector<16x128xf32>
    %927 = math.exp %926 : vector<16x128xf32>
    %cst_263 = arith.constant 1.000000e+00 : f32
    %928 = vector.broadcast %cst_263 : f32 to vector<16x128xf32>
    %929 = arith.addf %928, %927 : vector<16x128xf32>
    %930 = arith.divf %928, %929 : vector<16x128xf32>
    %931 = vector.extract_strided_slice %924 {offsets = [0, 128], sizes = [16, 128], strides = [1, 1]} : vector<16x512xf32> to vector<16x128xf32>
    %932 = arith.negf %931 : vector<16x128xf32>
    %933 = math.exp %932 : vector<16x128xf32>
    %cst_264 = arith.constant 1.000000e+00 : f32
    %934 = vector.broadcast %cst_264 : f32 to vector<16x128xf32>
    %935 = arith.addf %934, %933 : vector<16x128xf32>
    %936 = arith.divf %934, %935 : vector<16x128xf32>
    %937 = vector.extract_strided_slice %924 {offsets = [0, 256], sizes = [16, 128], strides = [1, 1]} : vector<16x512xf32> to vector<16x128xf32>
    %938 = math.tanh %937 : vector<16x128xf32>
    %939 = vector.extract_strided_slice %924 {offsets = [0, 384], sizes = [16, 128], strides = [1, 1]} : vector<16x512xf32> to vector<16x128xf32>
    %940 = arith.negf %939 : vector<16x128xf32>
    %941 = math.exp %940 : vector<16x128xf32>
    %cst_265 = arith.constant 1.000000e+00 : f32
    %942 = vector.broadcast %cst_265 : f32 to vector<16x128xf32>
    %943 = arith.addf %942, %941 : vector<16x128xf32>
    %944 = arith.divf %942, %943 : vector<16x128xf32>
    %945 = arith.mulf %936, %873 : vector<16x128xf32>
    %946 = arith.mulf %930, %938 : vector<16x128xf32>
    %947 = arith.addf %945, %946 : vector<16x128xf32>
    %948 = math.tanh %947 : vector<16x128xf32>
    %949 = arith.mulf %944, %948 : vector<16x128xf32>
    %950 = arith.truncf %949 : vector<16x128xf32> to vector<16x128xbf16>
    %951 = arith.index_cast %880 : i32 to index
    %c0_266 = arith.constant 0 : index
    %952 = vector.load %arg15[%951, %c0_266] : memref<96x128xbf16, #tpu.memory_space<vmem>>, vector<16x128xbf16>
    tpu.vector_store %arg15[%951, %c0_266], %950 {strides = array<i32>} : memref<96x128xbf16, #tpu.memory_space<vmem>>, vector<16x128xbf16>,
    %c3_i32_267 = arith.constant 3 : i32
    %c16_i32_268 = arith.constant 16 : i32
    %953 = arith.muli %c3_i32_267, %c16_i32_268 : i32
    %954 = tpu.assume_multiple %953, 16 : i32
    %955 = arith.index_cast %954 : i32 to index
    %c0_269 = arith.constant 0 : index
    %956 = vector.load %arg19[%955, %c0_269] : memref<96x512xf32, #tpu.memory_space<vmem>>, vector<16x512xf32>
    %957 = arith.truncf %914 : vector<16x128xf32> to vector<16x128xbf16>
    %c0_270 = arith.constant 0 : index
    %c0_271 = arith.constant 0 : index
    %958 = vector.load %arg10[%c0_270, %c0_271] : memref<128x512xbf16, #tpu.memory_space<vmem>>, vector<128x512xbf16>
    %cst_272 = arith.constant dense<0.000000e+00> : vector<16x512xf32>
    %959 = tpu.matmul %957, %958, %cst_272 {dimension_numbers = #tpu.dot_dimension_numbers<[1], [0], [0], [1], [0, 0, 1, 1], [], []>} : vector<16x128xbf16>, vector<128x512xbf16>, vector<16x512xf32> -> vector<16x512xf32>
    %960 = arith.addf %956, %959 : vector<16x512xf32>
    %c0_273 = arith.constant 0 : index
    %c0_274 = arith.constant 0 : index
    %961 = vector.load %arg11[%c0_273, %c0_274] : memref<1x512xf32, #tpu.memory_space<vmem>>, vector<1x512xf32>
    %962 = vector.broadcast %961 : vector<1x512xf32> to vector<16x512xf32>
    %963 = arith.addf %960, %962 : vector<16x512xf32>
    %964 = vector.extract_strided_slice %963 {offsets = [0, 0], sizes = [16, 128], strides = [1, 1]} : vector<16x512xf32> to vector<16x128xf32>
    %965 = arith.negf %964 : vector<16x128xf32>
    %966 = math.exp %965 : vector<16x128xf32>
    %cst_275 = arith.constant 1.000000e+00 : f32
    %967 = vector.broadcast %cst_275 : f32 to vector<16x128xf32>
    %968 = arith.addf %967, %966 : vector<16x128xf32>
    %969 = arith.divf %967, %968 : vector<16x128xf32>
    %970 = vector.extract_strided_slice %963 {offsets = [0, 128], sizes = [16, 128], strides = [1, 1]} : vector<16x512xf32> to vector<16x128xf32>
    %971 = arith.negf %970 : vector<16x128xf32>
    %972 = math.exp %971 : vector<16x128xf32>
    %cst_276 = arith.constant 1.000000e+00 : f32
    %973 = vector.broadcast %cst_276 : f32 to vector<16x128xf32>
    %974 = arith.addf %973, %972 : vector<16x128xf32>
    %975 = arith.divf %973, %974 : vector<16x128xf32>
    %976 = vector.extract_strided_slice %963 {offsets = [0, 256], sizes = [16, 128], strides = [1, 1]} : vector<16x512xf32> to vector<16x128xf32>
    %977 = math.tanh %976 : vector<16x128xf32>
    %978 = vector.extract_strided_slice %963 {offsets = [0, 384], sizes = [16, 128], strides = [1, 1]} : vector<16x512xf32> to vector<16x128xf32>
    %979 = arith.negf %978 : vector<16x128xf32>
    %980 = math.exp %979 : vector<16x128xf32>
    %cst_277 = arith.constant 1.000000e+00 : f32
    %981 = vector.broadcast %cst_277 : f32 to vector<16x128xf32>
    %982 = arith.addf %981, %980 : vector<16x128xf32>
    %983 = arith.divf %981, %982 : vector<16x128xf32>
    %984 = arith.mulf %975, %912 : vector<16x128xf32>
    %985 = arith.mulf %969, %977 : vector<16x128xf32>
    %986 = arith.addf %984, %985 : vector<16x128xf32>
    %987 = math.tanh %986 : vector<16x128xf32>
    %988 = arith.mulf %983, %987 : vector<16x128xf32>
    %989 = arith.truncf %988 : vector<16x128xf32> to vector<16x128xbf16>
    %c0_278 = arith.constant 0 : index
    %c0_279 = arith.constant 0 : index
    %990 = vector.load %arg12[%c0_278, %c0_279] : memref<128x512xbf16, #tpu.memory_space<vmem>>, vector<128x512xbf16>
    %cst_280 = arith.constant dense<0.000000e+00> : vector<16x512xf32>
    %991 = tpu.matmul %989, %990, %cst_280 {dimension_numbers = #tpu.dot_dimension_numbers<[1], [0], [0], [1], [0, 0, 1, 1], [], []>} : vector<16x128xbf16>, vector<128x512xbf16>, vector<16x512xf32> -> vector<16x512xf32>
    %992 = arith.truncf %949 : vector<16x128xf32> to vector<16x128xbf16>
    %c0_281 = arith.constant 0 : index
    %c0_282 = arith.constant 0 : index
    %993 = vector.load %arg13[%c0_281, %c0_282] : memref<128x512xbf16, #tpu.memory_space<vmem>>, vector<128x512xbf16>
    %cst_283 = arith.constant dense<0.000000e+00> : vector<16x512xf32>
    %994 = tpu.matmul %992, %993, %cst_283 {dimension_numbers = #tpu.dot_dimension_numbers<[1], [0], [0], [1], [0, 0, 1, 1], [], []>} : vector<16x128xbf16>, vector<128x512xbf16>, vector<16x512xf32> -> vector<16x512xf32>
    %995 = arith.addf %991, %994 : vector<16x512xf32>
    %c0_284 = arith.constant 0 : index
    %c0_285 = arith.constant 0 : index
    %996 = vector.load %arg14[%c0_284, %c0_285] : memref<1x512xf32, #tpu.memory_space<vmem>>, vector<1x512xf32>
    %997 = vector.broadcast %996 : vector<1x512xf32> to vector<16x512xf32>
    %998 = arith.addf %995, %997 : vector<16x512xf32>
    %999 = vector.extract_strided_slice %998 {offsets = [0, 0], sizes = [16, 128], strides = [1, 1]} : vector<16x512xf32> to vector<16x128xf32>
    %1000 = arith.negf %999 : vector<16x128xf32>
    %1001 = math.exp %1000 : vector<16x128xf32>
    %cst_286 = arith.constant 1.000000e+00 : f32
    %1002 = vector.broadcast %cst_286 : f32 to vector<16x128xf32>
    %1003 = arith.addf %1002, %1001 : vector<16x128xf32>
    %1004 = arith.divf %1002, %1003 : vector<16x128xf32>
    %1005 = vector.extract_strided_slice %998 {offsets = [0, 128], sizes = [16, 128], strides = [1, 1]} : vector<16x512xf32> to vector<16x128xf32>
    %1006 = arith.negf %1005 : vector<16x128xf32>
    %1007 = math.exp %1006 : vector<16x128xf32>
    %cst_287 = arith.constant 1.000000e+00 : f32
    %1008 = vector.broadcast %cst_287 : f32 to vector<16x128xf32>
    %1009 = arith.addf %1008, %1007 : vector<16x128xf32>
    %1010 = arith.divf %1008, %1009 : vector<16x128xf32>
    %1011 = vector.extract_strided_slice %998 {offsets = [0, 256], sizes = [16, 128], strides = [1, 1]} : vector<16x512xf32> to vector<16x128xf32>
    %1012 = math.tanh %1011 : vector<16x128xf32>
    %1013 = vector.extract_strided_slice %998 {offsets = [0, 384], sizes = [16, 128], strides = [1, 1]} : vector<16x512xf32> to vector<16x128xf32>
    %1014 = arith.negf %1013 : vector<16x128xf32>
    %1015 = math.exp %1014 : vector<16x128xf32>
    %cst_288 = arith.constant 1.000000e+00 : f32
    %1016 = vector.broadcast %cst_288 : f32 to vector<16x128xf32>
    %1017 = arith.addf %1016, %1015 : vector<16x128xf32>
    %1018 = arith.divf %1016, %1017 : vector<16x128xf32>
    %1019 = arith.mulf %1010, %947 : vector<16x128xf32>
    %1020 = arith.mulf %1004, %1012 : vector<16x128xf32>
    %1021 = arith.addf %1019, %1020 : vector<16x128xf32>
    %1022 = math.tanh %1021 : vector<16x128xf32>
    %1023 = arith.mulf %1018, %1022 : vector<16x128xf32>
    %1024 = arith.truncf %1023 : vector<16x128xf32> to vector<16x128xbf16>
    %1025 = arith.index_cast %954 : i32 to index
    %c0_289 = arith.constant 0 : index
    %1026 = vector.load %arg15[%1025, %c0_289] : memref<96x128xbf16, #tpu.memory_space<vmem>>, vector<16x128xbf16>
    tpu.vector_store %arg15[%1025, %c0_289], %1024 {strides = array<i32>} : memref<96x128xbf16, #tpu.memory_space<vmem>>, vector<16x128xbf16>,
    %c4_i32_290 = arith.constant 4 : i32
    %c16_i32_291 = arith.constant 16 : i32
    %1027 = arith.muli %c4_i32_290, %c16_i32_291 : i32
    %1028 = tpu.assume_multiple %1027, 16 : i32
    %1029 = arith.index_cast %1028 : i32 to index
    %c0_292 = arith.constant 0 : index
    %1030 = vector.load %arg19[%1029, %c0_292] : memref<96x512xf32, #tpu.memory_space<vmem>>, vector<16x512xf32>
    %1031 = arith.truncf %988 : vector<16x128xf32> to vector<16x128xbf16>
    %c0_293 = arith.constant 0 : index
    %c0_294 = arith.constant 0 : index
    %1032 = vector.load %arg10[%c0_293, %c0_294] : memref<128x512xbf16, #tpu.memory_space<vmem>>, vector<128x512xbf16>
    %cst_295 = arith.constant dense<0.000000e+00> : vector<16x512xf32>
    %1033 = tpu.matmul %1031, %1032, %cst_295 {dimension_numbers = #tpu.dot_dimension_numbers<[1], [0], [0], [1], [0, 0, 1, 1], [], []>} : vector<16x128xbf16>, vector<128x512xbf16>, vector<16x512xf32> -> vector<16x512xf32>
    %1034 = arith.addf %1030, %1033 : vector<16x512xf32>
    %c0_296 = arith.constant 0 : index
    %c0_297 = arith.constant 0 : index
    %1035 = vector.load %arg11[%c0_296, %c0_297] : memref<1x512xf32, #tpu.memory_space<vmem>>, vector<1x512xf32>
    %1036 = vector.broadcast %1035 : vector<1x512xf32> to vector<16x512xf32>
    %1037 = arith.addf %1034, %1036 : vector<16x512xf32>
    %1038 = vector.extract_strided_slice %1037 {offsets = [0, 0], sizes = [16, 128], strides = [1, 1]} : vector<16x512xf32> to vector<16x128xf32>
    %1039 = arith.negf %1038 : vector<16x128xf32>
    %1040 = math.exp %1039 : vector<16x128xf32>
    %cst_298 = arith.constant 1.000000e+00 : f32
    %1041 = vector.broadcast %cst_298 : f32 to vector<16x128xf32>
    %1042 = arith.addf %1041, %1040 : vector<16x128xf32>
    %1043 = arith.divf %1041, %1042 : vector<16x128xf32>
    %1044 = vector.extract_strided_slice %1037 {offsets = [0, 128], sizes = [16, 128], strides = [1, 1]} : vector<16x512xf32> to vector<16x128xf32>
    %1045 = arith.negf %1044 : vector<16x128xf32>
    %1046 = math.exp %1045 : vector<16x128xf32>
    %cst_299 = arith.constant 1.000000e+00 : f32
    %1047 = vector.broadcast %cst_299 : f32 to vector<16x128xf32>
    %1048 = arith.addf %1047, %1046 : vector<16x128xf32>
    %1049 = arith.divf %1047, %1048 : vector<16x128xf32>
    %1050 = vector.extract_strided_slice %1037 {offsets = [0, 256], sizes = [16, 128], strides = [1, 1]} : vector<16x512xf32> to vector<16x128xf32>
    %1051 = math.tanh %1050 : vector<16x128xf32>
    %1052 = vector.extract_strided_slice %1037 {offsets = [0, 384], sizes = [16, 128], strides = [1, 1]} : vector<16x512xf32> to vector<16x128xf32>
    %1053 = arith.negf %1052 : vector<16x128xf32>
    %1054 = math.exp %1053 : vector<16x128xf32>
    %cst_300 = arith.constant 1.000000e+00 : f32
    %1055 = vector.broadcast %cst_300 : f32 to vector<16x128xf32>
    %1056 = arith.addf %1055, %1054 : vector<16x128xf32>
    %1057 = arith.divf %1055, %1056 : vector<16x128xf32>
    %1058 = arith.mulf %1049, %986 : vector<16x128xf32>
    %1059 = arith.mulf %1043, %1051 : vector<16x128xf32>
    %1060 = arith.addf %1058, %1059 : vector<16x128xf32>
    %1061 = math.tanh %1060 : vector<16x128xf32>
    %1062 = arith.mulf %1057, %1061 : vector<16x128xf32>
    %1063 = arith.truncf %1062 : vector<16x128xf32> to vector<16x128xbf16>
    %c0_301 = arith.constant 0 : index
    %c0_302 = arith.constant 0 : index
    %1064 = vector.load %arg12[%c0_301, %c0_302] : memref<128x512xbf16, #tpu.memory_space<vmem>>, vector<128x512xbf16>
    %cst_303 = arith.constant dense<0.000000e+00> : vector<16x512xf32>
    %1065 = tpu.matmul %1063, %1064, %cst_303 {dimension_numbers = #tpu.dot_dimension_numbers<[1], [0], [0], [1], [0, 0, 1, 1], [], []>} : vector<16x128xbf16>, vector<128x512xbf16>, vector<16x512xf32> -> vector<16x512xf32>
    %1066 = arith.truncf %1023 : vector<16x128xf32> to vector<16x128xbf16>
    %c0_304 = arith.constant 0 : index
    %c0_305 = arith.constant 0 : index
    %1067 = vector.load %arg13[%c0_304, %c0_305] : memref<128x512xbf16, #tpu.memory_space<vmem>>, vector<128x512xbf16>
    %cst_306 = arith.constant dense<0.000000e+00> : vector<16x512xf32>
    %1068 = tpu.matmul %1066, %1067, %cst_306 {dimension_numbers = #tpu.dot_dimension_numbers<[1], [0], [0], [1], [0, 0, 1, 1], [], []>} : vector<16x128xbf16>, vector<128x512xbf16>, vector<16x512xf32> -> vector<16x512xf32>
    %1069 = arith.addf %1065, %1068 : vector<16x512xf32>
    %c0_307 = arith.constant 0 : index
    %c0_308 = arith.constant 0 : index
    %1070 = vector.load %arg14[%c0_307, %c0_308] : memref<1x512xf32, #tpu.memory_space<vmem>>, vector<1x512xf32>
    %1071 = vector.broadcast %1070 : vector<1x512xf32> to vector<16x512xf32>
    %1072 = arith.addf %1069, %1071 : vector<16x512xf32>
    %1073 = vector.extract_strided_slice %1072 {offsets = [0, 0], sizes = [16, 128], strides = [1, 1]} : vector<16x512xf32> to vector<16x128xf32>
    %1074 = arith.negf %1073 : vector<16x128xf32>
    %1075 = math.exp %1074 : vector<16x128xf32>
    %cst_309 = arith.constant 1.000000e+00 : f32
    %1076 = vector.broadcast %cst_309 : f32 to vector<16x128xf32>
    %1077 = arith.addf %1076, %1075 : vector<16x128xf32>
    %1078 = arith.divf %1076, %1077 : vector<16x128xf32>
    %1079 = vector.extract_strided_slice %1072 {offsets = [0, 128], sizes = [16, 128], strides = [1, 1]} : vector<16x512xf32> to vector<16x128xf32>
    %1080 = arith.negf %1079 : vector<16x128xf32>
    %1081 = math.exp %1080 : vector<16x128xf32>
    %cst_310 = arith.constant 1.000000e+00 : f32
    %1082 = vector.broadcast %cst_310 : f32 to vector<16x128xf32>
    %1083 = arith.addf %1082, %1081 : vector<16x128xf32>
    %1084 = arith.divf %1082, %1083 : vector<16x128xf32>
    %1085 = vector.extract_strided_slice %1072 {offsets = [0, 256], sizes = [16, 128], strides = [1, 1]} : vector<16x512xf32> to vector<16x128xf32>
    %1086 = math.tanh %1085 : vector<16x128xf32>
    %1087 = vector.extract_strided_slice %1072 {offsets = [0, 384], sizes = [16, 128], strides = [1, 1]} : vector<16x512xf32> to vector<16x128xf32>
    %1088 = arith.negf %1087 : vector<16x128xf32>
    %1089 = math.exp %1088 : vector<16x128xf32>
    %cst_311 = arith.constant 1.000000e+00 : f32
    %1090 = vector.broadcast %cst_311 : f32 to vector<16x128xf32>
    %1091 = arith.addf %1090, %1089 : vector<16x128xf32>
    %1092 = arith.divf %1090, %1091 : vector<16x128xf32>
    %1093 = arith.mulf %1084, %1021 : vector<16x128xf32>
    %1094 = arith.mulf %1078, %1086 : vector<16x128xf32>
    %1095 = arith.addf %1093, %1094 : vector<16x128xf32>
    %1096 = math.tanh %1095 : vector<16x128xf32>
    %1097 = arith.mulf %1092, %1096 : vector<16x128xf32>
    %1098 = arith.truncf %1097 : vector<16x128xf32> to vector<16x128xbf16>
    %1099 = arith.index_cast %1028 : i32 to index
    %c0_312 = arith.constant 0 : index
    %1100 = vector.load %arg15[%1099, %c0_312] : memref<96x128xbf16, #tpu.memory_space<vmem>>, vector<16x128xbf16>
    tpu.vector_store %arg15[%1099, %c0_312], %1098 {strides = array<i32>} : memref<96x128xbf16, #tpu.memory_space<vmem>>, vector<16x128xbf16>,
    %c5_i32_313 = arith.constant 5 : i32
    %c16_i32_314 = arith.constant 16 : i32
    %1101 = arith.muli %c5_i32_313, %c16_i32_314 : i32
    %1102 = tpu.assume_multiple %1101, 16 : i32
    %1103 = arith.index_cast %1102 : i32 to index
    %c0_315 = arith.constant 0 : index
    %1104 = vector.load %arg19[%1103, %c0_315] : memref<96x512xf32, #tpu.memory_space<vmem>>, vector<16x512xf32>
    %1105 = arith.truncf %1062 : vector<16x128xf32> to vector<16x128xbf16>
    %c0_316 = arith.constant 0 : index
    %c0_317 = arith.constant 0 : index
    %1106 = vector.load %arg10[%c0_316, %c0_317] : memref<128x512xbf16, #tpu.memory_space<vmem>>, vector<128x512xbf16>
    %cst_318 = arith.constant dense<0.000000e+00> : vector<16x512xf32>
    %1107 = tpu.matmul %1105, %1106, %cst_318 {dimension_numbers = #tpu.dot_dimension_numbers<[1], [0], [0], [1], [0, 0, 1, 1], [], []>} : vector<16x128xbf16>, vector<128x512xbf16>, vector<16x512xf32> -> vector<16x512xf32>
    %1108 = arith.addf %1104, %1107 : vector<16x512xf32>
    %c0_319 = arith.constant 0 : index
    %c0_320 = arith.constant 0 : index
    %1109 = vector.load %arg11[%c0_319, %c0_320] : memref<1x512xf32, #tpu.memory_space<vmem>>, vector<1x512xf32>
    %1110 = vector.broadcast %1109 : vector<1x512xf32> to vector<16x512xf32>
    %1111 = arith.addf %1108, %1110 : vector<16x512xf32>
    %1112 = vector.extract_strided_slice %1111 {offsets = [0, 0], sizes = [16, 128], strides = [1, 1]} : vector<16x512xf32> to vector<16x128xf32>
    %1113 = arith.negf %1112 : vector<16x128xf32>
    %1114 = math.exp %1113 : vector<16x128xf32>
    %cst_321 = arith.constant 1.000000e+00 : f32
    %1115 = vector.broadcast %cst_321 : f32 to vector<16x128xf32>
    %1116 = arith.addf %1115, %1114 : vector<16x128xf32>
    %1117 = arith.divf %1115, %1116 : vector<16x128xf32>
    %1118 = vector.extract_strided_slice %1111 {offsets = [0, 128], sizes = [16, 128], strides = [1, 1]} : vector<16x512xf32> to vector<16x128xf32>
    %1119 = arith.negf %1118 : vector<16x128xf32>
    %1120 = math.exp %1119 : vector<16x128xf32>
    %cst_322 = arith.constant 1.000000e+00 : f32
    %1121 = vector.broadcast %cst_322 : f32 to vector<16x128xf32>
    %1122 = arith.addf %1121, %1120 : vector<16x128xf32>
    %1123 = arith.divf %1121, %1122 : vector<16x128xf32>
    %1124 = vector.extract_strided_slice %1111 {offsets = [0, 256], sizes = [16, 128], strides = [1, 1]} : vector<16x512xf32> to vector<16x128xf32>
    %1125 = math.tanh %1124 : vector<16x128xf32>
    %1126 = vector.extract_strided_slice %1111 {offsets = [0, 384], sizes = [16, 128], strides = [1, 1]} : vector<16x512xf32> to vector<16x128xf32>
    %1127 = arith.negf %1126 : vector<16x128xf32>
    %1128 = math.exp %1127 : vector<16x128xf32>
    %cst_323 = arith.constant 1.000000e+00 : f32
    %1129 = vector.broadcast %cst_323 : f32 to vector<16x128xf32>
    %1130 = arith.addf %1129, %1128 : vector<16x128xf32>
    %1131 = arith.divf %1129, %1130 : vector<16x128xf32>
    %1132 = arith.mulf %1123, %1060 : vector<16x128xf32>
    %1133 = arith.mulf %1117, %1125 : vector<16x128xf32>
    %1134 = arith.addf %1132, %1133 : vector<16x128xf32>
    %1135 = math.tanh %1134 : vector<16x128xf32>
    %1136 = arith.mulf %1131, %1135 : vector<16x128xf32>
    %1137 = arith.truncf %1136 : vector<16x128xf32> to vector<16x128xbf16>
    %c0_324 = arith.constant 0 : index
    %c0_325 = arith.constant 0 : index
    %1138 = vector.load %arg12[%c0_324, %c0_325] : memref<128x512xbf16, #tpu.memory_space<vmem>>, vector<128x512xbf16>
    %cst_326 = arith.constant dense<0.000000e+00> : vector<16x512xf32>
    %1139 = tpu.matmul %1137, %1138, %cst_326 {dimension_numbers = #tpu.dot_dimension_numbers<[1], [0], [0], [1], [0, 0, 1, 1], [], []>} : vector<16x128xbf16>, vector<128x512xbf16>, vector<16x512xf32> -> vector<16x512xf32>
    %1140 = arith.truncf %1097 : vector<16x128xf32> to vector<16x128xbf16>
    %c0_327 = arith.constant 0 : index
    %c0_328 = arith.constant 0 : index
    %1141 = vector.load %arg13[%c0_327, %c0_328] : memref<128x512xbf16, #tpu.memory_space<vmem>>, vector<128x512xbf16>
    %cst_329 = arith.constant dense<0.000000e+00> : vector<16x512xf32>
    %1142 = tpu.matmul %1140, %1141, %cst_329 {dimension_numbers = #tpu.dot_dimension_numbers<[1], [0], [0], [1], [0, 0, 1, 1], [], []>} : vector<16x128xbf16>, vector<128x512xbf16>, vector<16x512xf32> -> vector<16x512xf32>
    %1143 = arith.addf %1139, %1142 : vector<16x512xf32>
    %c0_330 = arith.constant 0 : index
    %c0_331 = arith.constant 0 : index
    %1144 = vector.load %arg14[%c0_330, %c0_331] : memref<1x512xf32, #tpu.memory_space<vmem>>, vector<1x512xf32>
    %1145 = vector.broadcast %1144 : vector<1x512xf32> to vector<16x512xf32>
    %1146 = arith.addf %1143, %1145 : vector<16x512xf32>
    %1147 = vector.extract_strided_slice %1146 {offsets = [0, 0], sizes = [16, 128], strides = [1, 1]} : vector<16x512xf32> to vector<16x128xf32>
    %1148 = arith.negf %1147 : vector<16x128xf32>
    %1149 = math.exp %1148 : vector<16x128xf32>
    %cst_332 = arith.constant 1.000000e+00 : f32
    %1150 = vector.broadcast %cst_332 : f32 to vector<16x128xf32>
    %1151 = arith.addf %1150, %1149 : vector<16x128xf32>
    %1152 = arith.divf %1150, %1151 : vector<16x128xf32>
    %1153 = vector.extract_strided_slice %1146 {offsets = [0, 128], sizes = [16, 128], strides = [1, 1]} : vector<16x512xf32> to vector<16x128xf32>
    %1154 = arith.negf %1153 : vector<16x128xf32>
    %1155 = math.exp %1154 : vector<16x128xf32>
    %cst_333 = arith.constant 1.000000e+00 : f32
    %1156 = vector.broadcast %cst_333 : f32 to vector<16x128xf32>
    %1157 = arith.addf %1156, %1155 : vector<16x128xf32>
    %1158 = arith.divf %1156, %1157 : vector<16x128xf32>
    %1159 = vector.extract_strided_slice %1146 {offsets = [0, 256], sizes = [16, 128], strides = [1, 1]} : vector<16x512xf32> to vector<16x128xf32>
    %1160 = math.tanh %1159 : vector<16x128xf32>
    %1161 = vector.extract_strided_slice %1146 {offsets = [0, 384], sizes = [16, 128], strides = [1, 1]} : vector<16x512xf32> to vector<16x128xf32>
    %1162 = arith.negf %1161 : vector<16x128xf32>
    %1163 = math.exp %1162 : vector<16x128xf32>
    %cst_334 = arith.constant 1.000000e+00 : f32
    %1164 = vector.broadcast %cst_334 : f32 to vector<16x128xf32>
    %1165 = arith.addf %1164, %1163 : vector<16x128xf32>
    %1166 = arith.divf %1164, %1165 : vector<16x128xf32>
    %1167 = arith.mulf %1158, %1095 : vector<16x128xf32>
    %1168 = arith.mulf %1152, %1160 : vector<16x128xf32>
    %1169 = arith.addf %1167, %1168 : vector<16x128xf32>
    %1170 = math.tanh %1169 : vector<16x128xf32>
    %1171 = arith.mulf %1166, %1170 : vector<16x128xf32>
    %1172 = arith.truncf %1171 : vector<16x128xf32> to vector<16x128xbf16>
    %1173 = arith.index_cast %1102 : i32 to index
    %c0_335 = arith.constant 0 : index
    %1174 = vector.load %arg15[%1173, %c0_335] : memref<96x128xbf16, #tpu.memory_space<vmem>>, vector<16x128xbf16>
    tpu.vector_store %arg15[%1173, %c0_335], %1172 {strides = array<i32>} : memref<96x128xbf16, #tpu.memory_space<vmem>>, vector<16x128xbf16>,
    %c6_i32_336 = arith.constant 6 : i32
    %c0_337 = arith.constant 0 : index
    %c0_338 = arith.constant 0 : index
    %c0_339 = arith.constant 0 : index
    %1175 = vector.load %arg16[%c0_337, %c0_338, %c0_339] : memref<2x16x128xf32, #tpu.memory_space<vmem>>, vector<1x16x128xf32>
    %1176 = vector.shape_cast %1175 : vector<1x16x128xf32> to vector<16x128xf32>
    %1177 = vector.shape_cast %1136 : vector<16x128xf32> to vector<1x16x128xf32>
    tpu.vector_store %arg16[%c0_337, %c0_338, %c0_339], %1177 {strides = array<i32>} : memref<2x16x128xf32, #tpu.memory_space<vmem>>, vector<1x16x128xf32>,
    %c1 = arith.constant 1 : index
    %c0_340 = arith.constant 0 : index
    %c0_341 = arith.constant 0 : index
    %1178 = vector.load %arg16[%c1, %c0_340, %c0_341] : memref<2x16x128xf32, #tpu.memory_space<vmem>>, vector<1x16x128xf32>
    %1179 = vector.shape_cast %1178 : vector<1x16x128xf32> to vector<16x128xf32>
    %1180 = vector.shape_cast %1171 : vector<16x128xf32> to vector<1x16x128xf32>
    tpu.vector_store %arg16[%c1, %c0_340, %c0_341], %1180 {strides = array<i32>} : memref<2x16x128xf32, #tpu.memory_space<vmem>>, vector<1x16x128xf32>,
    %c0_342 = arith.constant 0 : index
    %c0_343 = arith.constant 0 : index
    %c0_344 = arith.constant 0 : index
    %1181 = vector.load %arg17[%c0_342, %c0_343, %c0_344] : memref<2x16x128xf32, #tpu.memory_space<vmem>>, vector<1x16x128xf32>
    %1182 = vector.shape_cast %1181 : vector<1x16x128xf32> to vector<16x128xf32>
    %1183 = vector.shape_cast %1134 : vector<16x128xf32> to vector<1x16x128xf32>
    tpu.vector_store %arg17[%c0_342, %c0_343, %c0_344], %1183 {strides = array<i32>} : memref<2x16x128xf32, #tpu.memory_space<vmem>>, vector<1x16x128xf32>,
    %c1_345 = arith.constant 1 : index
    %c0_346 = arith.constant 0 : index
    %c0_347 = arith.constant 0 : index
    %1184 = vector.load %arg17[%c1_345, %c0_346, %c0_347] : memref<2x16x128xf32, #tpu.memory_space<vmem>>, vector<1x16x128xf32>
    %1185 = vector.shape_cast %1184 : vector<1x16x128xf32> to vector<16x128xf32>
    %1186 = vector.shape_cast %1169 : vector<16x128xf32> to vector<1x16x128xf32>
    tpu.vector_store %arg17[%c1_345, %c0_346, %c0_347], %1186 {strides = array<i32>} : memref<2x16x128xf32, #tpu.memory_space<vmem>>, vector<1x16x128xf32>,
    return
  }
}

</mosaic_0001>

<bundles_post_ra>
// kernel: seq2seq_forward.3
= control target key start
LH: loop header
LB: loop body
LE: loop exit
PB: predicated region body
PF: predicated region fallthrough
CT: control target
= control target key end

     0   :  { %v430_v1 = vmov 0   ;;  %s548_s1 = inlined_call_operand.vmem [shape: bf16[128,256], index: 1, kind: input, shape index: {}]   ;;  %s549_s0 = inlined_call_operand.vmem [shape: bf16[96,128], index: 0, kind: input, shape index: {}]   ;;  %s550_s2 = inlined_call_operand.vmem [shape: bf16[96,256], index: 2, kind: output, shape index: {}]  }
   0x1   :  { %v400_v0 = vld [vmem:[%s548_s1 + $0x4] ss:$8 sps:$4 sm:$0xff]   ;;  %188 = vmatprep.mubr.bf16.mxu0 %v430_v1  ;;  %218 = vmatprep.mubr.bf16.mxu1 %v430_v1  ;;  %v402_v2 = vld [vmem:[%s548_s1] ss:$8 sps:$4 sm:$0xff]   ;;  %v403_v3 = vld [vmem:[%s548_s1 + $0x14] ss:$8 sps:$4 sm:$0xff]  }
   0x2   :  { %156 = vmatprep.subr.bf16.mxu0 %v400_v0  ;;  %383 = vmatprep.subr.bf16.mxu1 %v400_v0  ;;  %v405_v4 = vld [vmem:[%s548_s1 + $0x10] ss:$8 sps:$4 sm:$0xff]   ;;  %v406_v5 = vld [vmem:[%s548_s1 + $0x24] ss:$8 sps:$4 sm:$0xff]   ;;  %v408_v6 = vld [vmem:[%s548_s1 + $0x20] ss:$8 sps:$4 sm:$0xff]  }
   0x3   :  { %157 = vmatpush1.bf16.msra.mxu0 %v402_v2  ;;  %391 = vmatpush1.bf16.msra.mxu1 %v402_v2  ;;  %v409_v7 = vld [vmem:[%s548_s1 + $0x34] ss:$8 sps:$4 sm:$0xff]   ;;  %v411_v8 = vld [vmem:[%s548_s1 + $0x30] ss:$8 sps:$4 sm:$0xff]   ;;  %v412_v9 = vld [vmem:[%s548_s1 + $0x44] ss:$8 sps:$4 sm:$0xff]  }
   0x4   :  { %158 = vmatprep.subr.bf16.mxu0 %v403_v3  ;;  %384 = vmatprep.subr.bf16.mxu1 %v403_v3  ;;  %v414_v10 = vld [vmem:[%s548_s1 + $0x40] ss:$8 sps:$4 sm:$0xff]   ;;  %v415_v11 = vld [vmem:[%s548_s1 + $0x54] ss:$8 sps:$4 sm:$0xff]   ;;  %v417_v12 = vld [vmem:[%s548_s1 + $0x50] ss:$8 sps:$4 sm:$0xff]  }
   0x5   :  { %v418_v13 = vld [vmem:[%s548_s1 + $0x64] ss:$8 sps:$4 sm:$0xff]   ;;  %v420_v14 = vld [vmem:[%s548_s1 + $0x60] ss:$8 sps:$4 sm:$0xff]   ;;  %v421_v15 = vld [vmem:[%s548_s1 + $0x74] ss:$8 sps:$4 sm:$0xff]  }
   0x6   :  { %v423_v16 = vld [vmem:[%s548_s1 + $0x70] ss:$8 sps:$4 sm:$0xff]   ;;  %v424_v17 = vld [vmem:[%s549_s0] sm:$0xff]   ;;  %v426_v19 = vld [vmem:[%s549_s0 + $0x8] sm:$0xff]  }
   0x7   :  { %159 = vmatpush1.bf16.msra.mxu0 %v405_v4  ;;  %392 = vmatpush1.bf16.msra.mxu1 %v405_v4  ;;  %v425_v18 = vld [vmem:[%s549_s0 + $0x18] sm:$0xff]   ;;  %v427_v20 = vld [vmem:[%s549_s0 + $0x20] sm:$0xff]   ;;  %v428_v21 = vld [vmem:[%s549_s0 + $0x10] sm:$0xff]  }
   0x8   :  { %160 = vmatprep.subr.bf16.mxu0 %v406_v5  ;;  %385 = vmatprep.subr.bf16.mxu1 %v406_v5  ;;  %v429_v22 = vld [vmem:[%s549_s0 + $0x28] sm:$0xff]  }
   0xb   :  { %161 = vmatpush1.bf16.msra.mxu0 %v408_v6  ;;  %393 = vmatpush1.bf16.msra.mxu1 %v408_v6 }
   0xc   :  { %162 = vmatprep.subr.bf16.mxu0 %v409_v7  ;;  %386 = vmatprep.subr.bf16.mxu1 %v409_v7 }
   0xf   :  { %163 = vmatpush1.bf16.msra.mxu0 %v411_v8  ;;  %394 = vmatpush1.bf16.msra.mxu1 %v411_v8 }
  0x10   :  { %164 = vmatprep.subr.bf16.mxu0 %v412_v9  ;;  %387 = vmatprep.subr.bf16.mxu1 %v412_v9 }
  0x13   :  { %165 = vmatpush1.bf16.msra.mxu0 %v414_v10  ;;  %395 = vmatpush1.bf16.msra.mxu1 %v414_v10 }
  0x14   :  { %166 = vmatprep.subr.bf16.mxu0 %v415_v11  ;;  %388 = vmatprep.subr.bf16.mxu1 %v415_v11 }
  0x17   :  { %167 = vmatpush1.bf16.msra.mxu0 %v417_v12  ;;  %396 = vmatpush1.bf16.msra.mxu1 %v417_v12 }
  0x18   :  { %168 = vmatprep.subr.bf16.mxu0 %v418_v13  ;;  %389 = vmatprep.subr.bf16.mxu1 %v418_v13 }
  0x1b   :  { %169 = vmatpush1.bf16.msra.mxu0 %v420_v14  ;;  %397 = vmatpush1.bf16.msra.mxu1 %v420_v14 }
  0x1c   :  { %170 = vmatprep.subr.bf16.mxu0 %v421_v15  ;;  %390 = vmatprep.subr.bf16.mxu1 %v421_v15 }
  0x1f   :  { %171 = vmatpush1.bf16.msra.mxu0 %v423_v16  ;;  %398 = vmatpush1.bf16.msra.mxu1 %v423_v16 }
  0x22   :  { %189 = vmatmul.mubr.bf16.vlgmr.msra.gmra.mrb[0].mxu0 %v424_v17  ;;  %219 = vmatmul.mubr.bf16.vlgmr.msra.gmra.mrb[0].mxu1 %v425_v18 }
  0x23   :  { %198 = vmatprep.mubr.bf16.mxu0 %v430_v1  ;;  %228 = vmatprep.mubr.bf16.mxu1 %v430_v1 }
  0x2a   :  { %199 = vmatmul.mubr.bf16.gmra.mrb[4].mxu0 %v426_v19  ;;  %229 = vmatmul.mubr.bf16.gmra.mrb[4].mxu1 %v427_v20 }
  0x2b   :  { %208 = vmatprep.mubr.bf16.mxu0 %v430_v1  ;;  %238 = vmatprep.mubr.bf16.mxu1 %v430_v1 }
  0x32   :  { %209 = vmatmul.mubr.bf16.gmra.mrb[8].mxu0 %v428_v21  ;;  %239 = vmatmul.mubr.bf16.gmra.mrb[8].mxu1 %v429_v22 }
  0xf5   :  { %v190_v23 = vpop.f32.mrb[0].mxu0  ;;  %v220_v24 = vpop.f32.mrb[0].mxu1 }
  0xf6   :  { %v192_v25 = vpop.f32.mrb[1].mxu0  ;;  %v222_v26 = vpop.f32.mrb[1].mxu1 }
  0xf7   :  { %v371_v27 = vpack.c.bf16 %v192_v25, %v190_v23  ;;  %v377_v28 = vpack.c.bf16 %v222_v26, %v220_v24  ;;  %v194_v29 = vpop.f32.mrb[2].mxu0  ;;  %v224_v30 = vpop.f32.mrb[2].mxu1 }
  0xf8   :  { %v196_v31 = vpop.f32.mrb[3].mxu0  ;;  %v226_v32 = vpop.f32.mrb[3].mxu1 }
  0xf9   :  { %321 = vst [vmem:[%s550_s2] sm:$0xff] %v371_v27  ;;  %327 = vst [vmem:[%s550_s2 + $0x30] sm:$0xff] %v377_v28  ;;  %v372_v33 = vpack.c.bf16 %v196_v31, %v194_v29  ;;  %v378_v34 = vpack.c.bf16 %v226_v32, %v224_v30 }
  0xfb   :  { %322 = vst [vmem:[%s550_s2 + $0x8] sm:$0xff] %v372_v33  ;;  %328 = vst [vmem:[%s550_s2 + $0x38] sm:$0xff] %v378_v34 }
  0xfd   :  { %v200_v35 = vpop.f32.mrb[4].mxu0  ;;  %v230_v36 = vpop.f32.mrb[4].mxu1 }
  0xfe   :  { %v202_v37 = vpop.f32.mrb[5].mxu0  ;;  %v232_v38 = vpop.f32.mrb[5].mxu1 }
  0xff   :  { %v373_v39 = vpack.c.bf16 %v202_v37, %v200_v35  ;;  %v379_v40 = vpack.c.bf16 %v232_v38, %v230_v36  ;;  %v204_v41 = vpop.f32.mrb[6].mxu0  ;;  %v234_v42 = vpop.f32.mrb[6].mxu1 }
 0x100   :  { %v206_v43 = vpop.f32.mrb[7].mxu0  ;;  %v236_v44 = vpop.f32.mrb[7].mxu1 }
 0x101   :  { %323 = vst [vmem:[%s550_s2 + $0x10] sm:$0xff] %v373_v39  ;;  %329 = vst [vmem:[%s550_s2 + $0x40] sm:$0xff] %v379_v40  ;;  %v374_v45 = vpack.c.bf16 %v206_v43, %v204_v41  ;;  %v380_v46 = vpack.c.bf16 %v236_v44, %v234_v42 }
 0x103   :  { %324 = vst [vmem:[%s550_s2 + $0x18] sm:$0xff] %v374_v45  ;;  %330 = vst [vmem:[%s550_s2 + $0x48] sm:$0xff] %v380_v46 }
 0x105   :  { %v210_v47 = vpop.f32.mrb[8].mxu0  ;;  %v240_v48 = vpop.f32.mrb[8].mxu1 }
 0x106   :  { %v212_v49 = vpop.f32.mrb[9].mxu0  ;;  %v242_v50 = vpop.f32.mrb[9].mxu1 }
 0x107   :  { %v375_v51 = vpack.c.bf16 %v212_v49, %v210_v47  ;;  %v381_v52 = vpack.c.bf16 %v242_v50, %v240_v48  ;;  %v214_v53 = vpop.f32.mrb[10].mxu0  ;;  %v244_v54 = vpop.f32.mrb[10].mxu1 }
 0x108   :  { %v216_v55 = vpop.f32.mrb[11].mxu0  ;;  %v246_v56 = vpop.f32.mrb[11].mxu1 }
 0x109   :  { %325 = vst [vmem:[%s550_s2 + $0x20] sm:$0xff] %v375_v51  ;;  %331 = vst [vmem:[%s550_s2 + $0x50] sm:$0xff] %v381_v52  ;;  %v376_v57 = vpack.c.bf16 %v216_v55, %v214_v53  ;;  %v382_v58 = vpack.c.bf16 %v246_v56, %v244_v54 }
 0x10b   :  { %326 = vst [vmem:[%s550_s2 + $0x28] sm:$0xff] %v376_v57  ;;  %332 = vst [vmem:[%s550_s2 + $0x58] sm:$0xff] %v382_v58 }

// kernel: seq2seq_forward.2
= control target key start
LH: loop header
LB: loop body
LE: loop exit
PB: predicated region body
PF: predicated region fallthrough
CT: control target
= control target key end

     0   :  { %s20214_s0 = inlined_call_operand.vmem [shape: bf16[8,16,128], index: 0, kind: input, shape index: {}]   ;;  %s20215_s1 = inlined_call_operand.vmem [shape: f32[8,16,1], index: 1, kind: input, shape index: {}]   ;;  %s20216_s2 = inlined_call_operand.vmem [shape: bf16[6,16,128], index: 2, kind: input, shape index: {}]   ;;  %s20217_s3 = inlined_call_operand.vmem [shape: bf16[128,512], index: 3, kind: input, shape index: {}]   ;;  %s20218_s4 = inlined_call_operand.vmem [shape: bf16[128,512], index: 4, kind: input, shape index: {}]   ;;  %s20219_s5 = inlined_call_operand.vmem [shape: f32[1,512], index: 5, kind: input, shape index: {}]   ;;  %s20220_s6 = inlined_call_operand.vmem [shape: bf16[128,512], index: 6, kind: input, shape index: {}]   ;;  %s20221_s7 = inlined_call_operand.vmem [shape: bf16[128,512], index: 7, kind: input, shape index: {}]   ;;  %s20222_s8 = inlined_call_operand.vmem [shape: f32[1,512], index: 8, kind: input, shape index: {}]   ;;  %s20223_s9 = inlined_call_operand.vmem [shape: bf16[128,512], index: 9, kind: input, shape index: {}]   ;;  %s20224_s10 = inlined_call_operand.vmem [shape: bf16[128,512], index: 10, kind: input, shape index: {}]   ;;  %s20225_s11 = inlined_call_operand.vmem [shape: f32[1,512], index: 11, kind: input, shape index: {}]   ;;  %s20226_s12 = inlined_call_operand.vmem [shape: bf16[128,512], index: 12, kind: input, shape index: {}]   ;;  %s20227_s13 = inlined_call_operand.hbm [shape: bf16[128,512], index: 13, kind: input, shape index: {}]   ;;  %s20228_s14 = inlined_call_operand.vmem [shape: f32[1,512], index: 14, kind: input, shape index: {}]   ;;  %s20229_s15 = inlined_call_operand.vmem [shape: bf16[96,128], index: 15, kind: output, shape index: {0}]   ;;  %s20230_s16 = inlined_call_operand.hbm [shape: f32[2,16,128], index: 16, kind: output, shape index: {1}]   ;;  %s20231_s17 = inlined_call_operand.hbm [shape: f32[2,16,128], index: 17, kind: output, shape index: {2}]  }
   0x1   :  { %20580 = sst [smem:[#allocation74_spill]] %s20214_s0 }
   0x2   :  { %20581 = sst [smem:[#allocation75_spill]] %s20215_s1 }
   0x3   :  { %23 = vsyncpa [#allocation5], 0 }
   0x4   :  { %24 = vsyncpa [#allocation6], 0 }
   0x5   :  { %25 = vsyncpa [#allocation9], 0  ;;  %s14536_s24 = smov [#allocation4]   ;;  %s14464_s28 = scalar_lea.hbm %s20227_s13, 4096 }
   0x6   :  { %s57_s25 = sshll.u32 %s14536_s24, 4  ;;  %p14465_p0 = scmp.ne.s32.totalorder %s20227_s13, %s14464_s28  ;;  %s58_s25 = int_to_ptr.vmem [resolvable:$true] %s57_s25 }
   0x7   :  { %p14468_p1 = scmp.lt.u32.totalorder %s14464_s28, %s20227_s13 }
   0x9   :  { %p14470_p2 = pnand %p14468_p1, %p14465_p0 }
   0xb   :  { %14473 = shalt.err (!%p14470_p2)
}
   0xc   :  { %s14474_s19 = scalar_lea.vmem %s58_s25, 4096  ;;  %p14479_p4 = scmp.lt.s32.totalorder %s58_s25, %s58_s25 }
   0xd   :  { %p14475_p3 = scmp.ne.s32.totalorder %s58_s25, %s14474_s19  ;;  %p14480_p5 = scmp.lt.s32.totalorder %s14474_s19, %s14474_s19 }
   0xf   :  { %p14481_p6 = por %p14480_p5, %p14479_p4 }
  0x11   :  { %p14482_p7 = pnand %p14481_p6, %p14475_p3 }
  0x13   :  { %14485 = shalt.err (!%p14482_p7)
}
  0x14   :  { %s14537_s1 = smov 256   ;;  %s14538_s20 = smov 16  }
  0x15   :  { %63 = dma.hbm_to_vmem [thread:$0]  %s20227_s13, 4096, %s58_s25, [#allocation5], %s14537_s1, %s14537_s1, %s14538_s20  }
  0x16   :  { %14530 = dma.done.wait [#allocation5], 4096  }
  0x17   :  { %14531 = vsyncadd [#allocation5], 4294963200  ;;  %v20234_v0 = vmov 0   ;;  %v12546_v1 = vld [vmem:[%s20217_s3 + $0x4] ss:$16 sps:$4 sm:$0xff]   ;;  %s20582_s28 = sld [smem:[#allocation74_spill]] }
  0x18   :  { %358 = vmatprep.mubr.bf16.mxu0 %v20234_v0  ;;  %471 = vmatprep.mubr.bf16.mxu1 %v20234_v0  ;;  %v12548_v2 = vld [vmem:[%s20217_s3 + $0xc] ss:$16 sps:$4 sm:$0xff]   ;;  %v12550_v3 = vld [vmem:[%s20217_s3] ss:$16 sps:$4 sm:$0xff]   ;;  %v12551_v4 = vld [vmem:[%s20217_s3 + $0x8] ss:$16 sps:$4 sm:$0xff]  }
  0x19   :  { %12544 = vset.pattern.permute.xlu0 %v20234_v0  ;;  %12545 = vset.pattern.permute.xlu1 %v20234_v0  ;;  %v12552_v5 = vld [vmem:[%s20217_s3 + $0x24] ss:$16 sps:$4 sm:$0xff]   ;;  %v12554_v6 = vld [vmem:[%s20217_s3 + $0x2c] ss:$16 sps:$4 sm:$0xff]   ;;  %v12556_v7 = vld [vmem:[%s20217_s3 + $0x20] ss:$16 sps:$4 sm:$0xff]  }
  0x1a   :  { %326 = vmatprep.subr.bf16.mxu0 %v12546_v1  ;;  %439 = vmatprep.subr.bf16.mxu1 %v12548_v2  ;;  %v12557_v8 = vld [vmem:[%s20217_s3 + $0x28] ss:$16 sps:$4 sm:$0xff]   ;;  %v12558_v9 = vld [vmem:[%s20217_s3 + $0x44] ss:$16 sps:$4 sm:$0xff]   ;;  %v12560_v10 = vld [vmem:[%s20217_s3 + $0x4c] ss:$16 sps:$4 sm:$0xff]  }
  0x1b   :  { %327 = vmatpush1.bf16.msra.mxu0 %v12550_v3  ;;  %440 = vmatpush1.bf16.msra.mxu1 %v12551_v4  ;;  %v12562_v11 = vld [vmem:[%s20217_s3 + $0x40] ss:$16 sps:$4 sm:$0xff]   ;;  %v12563_v12 = vld [vmem:[%s20217_s3 + $0x48] ss:$16 sps:$4 sm:$0xff]   ;;  %v12564_v13 = vld [vmem:[%s20217_s3 + $0x64] ss:$16 sps:$4 sm:$0xff]  }
  0x1c   :  { %328 = vmatprep.subr.bf16.mxu0 %v12552_v5  ;;  %441 = vmatprep.subr.bf16.mxu1 %v12554_v6  ;;  %v12566_v14 = vld [vmem:[%s20217_s3 + $0x6c] ss:$16 sps:$4 sm:$0xff]   ;;  %v12568_v15 = vld [vmem:[%s20217_s3 + $0x60] ss:$16 sps:$4 sm:$0xff]   ;;  %v12569_v16 = vld [vmem:[%s20217_s3 + $0x68] ss:$16 sps:$4 sm:$0xff]  }
  0x1d   :  { %v12570_v17 = vld [vmem:[%s20217_s3 + $0x84] ss:$16 sps:$4 sm:$0xff]   ;;  %v12572_v18 = vld [vmem:[%s20217_s3 + $0x8c] ss:$16 sps:$4 sm:$0xff]   ;;  %v12574_v19 = vld [vmem:[%s20217_s3 + $0x80] ss:$16 sps:$4 sm:$0xff]  }
  0x1e   :  { %v12575_v20 = vld [vmem:[%s20217_s3 + $0x88] ss:$16 sps:$4 sm:$0xff]   ;;  %v12576_v21 = vld [vmem:[%s20217_s3 + $0xa4] ss:$16 sps:$4 sm:$0xff]   ;;  %v12578_v22 = vld [vmem:[%s20217_s3 + $0xac] ss:$16 sps:$4 sm:$0xff]  }
  0x1f   :  { %329 = vmatpush1.bf16.msra.mxu0 %v12556_v7  ;;  %442 = vmatpush1.bf16.msra.mxu1 %v12557_v8  ;;  %v12580_v23 = vld [vmem:[%s20217_s3 + $0xa0] ss:$16 sps:$4 sm:$0xff]   ;;  %v12581_v24 = vld [vmem:[%s20217_s3 + $0xa8] ss:$16 sps:$4 sm:$0xff]   ;;  %v12582_v25 = vld [vmem:[%s20217_s3 + $0xc4] ss:$16 sps:$4 sm:$0xff]  }
  0x20   :  { %330 = vmatprep.subr.bf16.mxu0 %v12558_v9  ;;  %443 = vmatprep.subr.bf16.mxu1 %v12560_v10  ;;  %v12584_v26 = vld [vmem:[%s20217_s3 + $0xcc] ss:$16 sps:$4 sm:$0xff]   ;;  %v12586_v27 = vld [vmem:[%s20217_s3 + $0xc0] ss:$16 sps:$4 sm:$0xff]   ;;  %v12587_v28 = vld [vmem:[%s20217_s3 + $0xc8] ss:$16 sps:$4 sm:$0xff]  }
  0x21   :  { %v12588_v29 = vld [vmem:[%s20217_s3 + $0xe4] ss:$16 sps:$4 sm:$0xff]   ;;  %v12590_v30 = vld [vmem:[%s20217_s3 + $0xec] ss:$16 sps:$4 sm:$0xff]   ;;  %v12592_v31 = vld [vmem:[%s20217_s3 + $0xe0] ss:$16 sps:$4 sm:$0xff]  }
  0x22   :  { %v12593_v32 = vld [vmem:[%s20217_s3 + $0xe8] ss:$16 sps:$4 sm:$0xff]   ;;  %v12595_v33 = vld [vmem:[%s20218_s4 + $0x4] ss:$16 sps:$4 sm:$0xff]   ;;  %v12602_v34 = vld [vmem:[%s20218_s4 + $0xc] ss:$16 sps:$4 sm:$0xff]  }
  0x23   :  { %331 = vmatpush1.bf16.msra.mxu0 %v12562_v11  ;;  %444 = vmatpush1.bf16.msra.mxu1 %v12563_v12  ;;  %v12594_v35 = vld [vmem:[%s20582_s28] sm:$0xff]   ;;  %v12607_v38 = vld [vmem:[%s20218_s4 + $0x8] ss:$16 sps:$4 sm:$0xff]   ;;  %v12609_v39 = vld [vmem:[%s20218_s4 + $0x2c] ss:$16 sps:$4 sm:$0xff]   ;;  %s20583_s29 = sld [smem:[#allocation75_spill]] }
  0x24   :  { %332 = vmatprep.subr.bf16.mxu0 %v12564_v13  ;;  %445 = vmatprep.subr.bf16.mxu1 %v12566_v14  ;;  %v12597_v36 = vld [vmem:[%s20218_s4] ss:$16 sps:$4 sm:$0xff]   ;;  %v12599_v37 = vld [vmem:[%s20218_s4 + $0x24] ss:$16 sps:$4 sm:$0xff]   ;;  %v12614_v42 = vld [vmem:[%s20218_s4 + $0x28] ss:$16 sps:$4 sm:$0xff]  }
  0x25   :  { %v12601_v40 = vld [vmem:[%s20218_s4 + $0x20] ss:$16 sps:$4 sm:$0xff]   ;;  %v12605_v41 = vld [vmem:[%s20218_s4 + $0x44] ss:$16 sps:$4 sm:$0xff]   ;;  %v12598_v43 = vld [vmem:[%s20582_s28 + $0x8] sm:$0xff]  }
  0x26   :  { %v12608_v44 = vld [vmem:[%s20218_s4 + $0x40] ss:$16 sps:$4 sm:$0xff]   ;;  %v12612_v45 = vld [vmem:[%s20218_s4 + $0x64] ss:$16 sps:$4 sm:$0xff]   ;;  %v12616_v46 = vld [vmem:[%s20218_s4 + $0x4c] ss:$16 sps:$4 sm:$0xff]  }
  0x27   :  { %333 = vmatpush1.bf16.msra.mxu0 %v12568_v15  ;;  %446 = vmatpush1.bf16.msra.mxu1 %v12569_v16  ;;  %v12621_v47 = vld [vmem:[%s20218_s4 + $0x48] ss:$16 sps:$4 sm:$0xff]   ;;  %v12623_v48 = vld [vmem:[%s20218_s4 + $0x6c] ss:$16 sps:$4 sm:$0xff]   ;;  %v12615_v49 = vld [vmem:[%s20218_s4 + $0x60] ss:$16 sps:$4 sm:$0xff]  }
  0x28   :  { %334 = vmatprep.subr.bf16.mxu0 %v12570_v17  ;;  %447 = vmatprep.subr.bf16.mxu1 %v12572_v18  ;;  %v12619_v50 = vld [vmem:[%s20218_s4 + $0x84] ss:$16 sps:$4 sm:$0xff]   ;;  %v12628_v51 = vld [vmem:[%s20218_s4 + $0x68] ss:$16 sps:$4 sm:$0xff]   ;;  %v12622_v53 = vld [vmem:[%s20218_s4 + $0x80] ss:$16 sps:$4 sm:$0xff]  }
  0x29   :  { %v12604_v52 = vld [vmem:[%s20582_s28 + $0x10] sm:$0xff]   ;;  %v12630_v54 = vld [vmem:[%s20218_s4 + $0x8c] ss:$16 sps:$4 sm:$0xff]   ;;  %v12635_v56 = vld [vmem:[%s20218_s4 + $0x88] ss:$16 sps:$4 sm:$0xff]  }
  0x2a   :  { %v12626_v55 = vld [vmem:[%s20218_s4 + $0xa4] ss:$16 sps:$4 sm:$0xff]   ;;  %v12637_v57 = vld [vmem:[%s20218_s4 + $0xac] ss:$16 sps:$4 sm:$0xff]   ;;  %v12629_v58 = vld [vmem:[%s20218_s4 + $0xa0] ss:$16 sps:$4 sm:$0xff]  }
  0x2b   :  { %335 = vmatpush1.bf16.msra.mxu0 %v12574_v19  ;;  %448 = vmatpush1.bf16.msra.mxu1 %v12575_v20  ;;  %v627_v59 = vld [vmem:[%s20583_s29] sm:$0xff]  ;;  %v12639_v61 = vld [vmem:[%s20218_s4 + $0xa8] ss:$16 sps:$4 sm:$0xff]   ;;  %v12643_v1 = vld [vmem:[%s20218_s4 + $0xcc] ss:$16 sps:$4 sm:$0xff]  }
  0x2c   :  { %336 = vmatprep.subr.bf16.mxu0 %v12576_v21  ;;  %449 = vmatprep.subr.bf16.mxu1 %v12578_v22  ;;  %v12633_v60 = vld [vmem:[%s20218_s4 + $0xc4] ss:$16 sps:$4 sm:$0xff]   ;;  %v12611_v62 = vld [vmem:[%s20582_s28 + $0x18] sm:$0xff]   ;;  %v12636_v63 = vld [vmem:[%s20218_s4 + $0xc0] ss:$16 sps:$4 sm:$0xff]  }
  0x2d   :  { %1630 = vperm.xlu0 %12544, %v627_v59   ;;  %v12641_v2 = vld [vmem:[%s20218_s4 + $0xe4] ss:$16 sps:$4 sm:$0xff]   ;;  %v12646_v3 = vld [vmem:[%s20218_s4 + $0xc8] ss:$16 sps:$4 sm:$0xff]   ;;  %v12647_v4 = vld [vmem:[%s20218_s4 + $0xec] ss:$16 sps:$4 sm:$0xff]  }
  0x2e   :  { %v12645_v5 = vld [vmem:[%s20218_s4 + $0xe0] ss:$16 sps:$4 sm:$0xff]   ;;  %v628_v6 = vld [vmem:[%s20583_s29 + $0x8] sm:$0xff]  ;;  %v12650_v8 = vld [vmem:[%s20221_s7 + $0x4] ss:$16 sps:$4 sm:$0xff]  }
  0x2f   :  { %337 = vmatpush1.bf16.msra.mxu0 %v12580_v23  ;;  %450 = vmatpush1.bf16.msra.mxu1 %v12581_v24  ;;  %v12649_v7 = vld [vmem:[%s20218_s4 + $0xe8] ss:$16 sps:$4 sm:$0xff]   ;;  %v12618_v9 = vld [vmem:[%s20582_s28 + $0x20] sm:$0xff]   ;;  %v12652_v10 = vld [vmem:[%s20221_s7 + $0xc] ss:$16 sps:$4 sm:$0xff]  }
  0x30   :  { %338 = vmatprep.subr.bf16.mxu0 %v12582_v25  ;;  %451 = vmatprep.subr.bf16.mxu1 %v12584_v26  ;;  %v11473_v11 = vld [vmem:[%s20583_s29 + $0x20] sm:$0xff]  ;;  %v11487_v12 = vld [vmem:[%s20583_s29 + $0x30] sm:$0xff]  ;;  %v12625_v13 = vld [vmem:[%s20582_s28 + $0x28] sm:$0xff]  }
  0x31   :  { %1635 = vperm.xlu0 %12544, %v628_v6   ;;  %v11501_v14 = vld [vmem:[%s20583_s29 + $0x40] sm:$0xff]  ;;  %v11515_v15 = vld [vmem:[%s20583_s29 + $0x50] sm:$0xff]  ;;  %v12640_v19 = vld [vmem:[%s20582_s28 + $0x38] sm:$0xff]  }
  0x32   :  { %v12632_v16 = vld [vmem:[%s20582_s28 + $0x30] sm:$0xff]   ;;  %v11529_v17 = vld [vmem:[%s20583_s29 + $0x60] sm:$0xff]  ;;  %v12655_v21 = vld [vmem:[%s20221_s7 + $0x8] ss:$16 sps:$4 sm:$0xff]  }
  0x33   :  { %339 = vmatpush1.bf16.msra.mxu0 %v12586_v27  ;;  %452 = vmatpush1.bf16.msra.mxu1 %v12587_v28  ;;  %v11543_v18 = vld [vmem:[%s20583_s29 + $0x70] sm:$0xff]  ;;  %v12658_v23 = vld [vmem:[%s20221_s7 + $0x2c] ss:$16 sps:$4 sm:$0xff]   ;;  %v12661_v25 = vld [vmem:[%s20221_s7 + $0x28] ss:$16 sps:$4 sm:$0xff]  }
  0x34   :  { %340 = vmatprep.subr.bf16.mxu0 %v12588_v29  ;;  %453 = vmatprep.subr.bf16.mxu1 %v12590_v30  ;;  %v12654_v20 = vld [vmem:[%s20221_s7] ss:$16 sps:$4 sm:$0xff]   ;;  %v12656_v22 = vld [vmem:[%s20221_s7 + $0x24] ss:$16 sps:$4 sm:$0xff]   ;;  %v12664_v27 = vld [vmem:[%s20221_s7 + $0x4c] ss:$16 sps:$4 sm:$0xff]  }
  0x35   :  { %2482 = vperm.xlu0 %12544, %v11473_v11   ;;  %v12660_v24 = vld [vmem:[%s20221_s7 + $0x20] ss:$16 sps:$4 sm:$0xff]   ;;  %v12662_v26 = vld [vmem:[%s20221_s7 + $0x44] ss:$16 sps:$4 sm:$0xff]   ;;  %v12667_v29 = vld [vmem:[%s20221_s7 + $0x48] ss:$16 sps:$4 sm:$0xff]  }
  0x36   :  { %v12666_v28 = vld [vmem:[%s20221_s7 + $0x40] ss:$16 sps:$4 sm:$0xff]   ;;  %v12668_v30 = vld [vmem:[%s20221_s7 + $0x64] ss:$16 sps:$4 sm:$0xff]   ;;  %v15114_v59 = vld [vmem:[%s20220_s6 + $0x4c] ss:$16 sps:$4 sm:$0xff]  }
  0x37   :  { %341 = vmatpush1.bf16.msra.mxu0 %v12592_v31  ;;  %454 = vmatpush1.bf16.msra.mxu1 %v12593_v32  ;;  %v12670_v31 = vld [vmem:[%s20221_s7 + $0x6c] ss:$16 sps:$4 sm:$0xff]   ;;  %v12672_v32 = vld [vmem:[%s20221_s7 + $0x60] ss:$16 sps:$4 sm:$0xff]   ;;  %v15172_v6 = vld [vmem:[%s20220_s6 + $0x88] ss:$16 sps:$4 sm:$0xff]  }
  0x38   :  { %821 = vmatprep.subr.bf16.mxu0 %v12595_v33  ;;  %864 = vmatprep.subr.bf16.mxu1 %v12602_v34  ;;  %v12673_v33 = vld [vmem:[%s20221_s7 + $0x68] ss:$16 sps:$4 sm:$0xff]   ;;  %v14961_v34 = vld [vmem:[%s20221_s7 + $0x84] ss:$16 sps:$4 sm:$0xff]  }
  0x39   :  { %2911 = vperm.xlu0 %12544, %v11487_v12   ;;  %v15205_v11 = vld [vmem:[%s20220_s6 + $0xc4] ss:$16 sps:$4 sm:$0xff]   ;;  %v15210_v12 = vld [vmem:[%s20220_s6 + $0xcc] ss:$16 sps:$4 sm:$0xff]  }
  0x3a   :  { %359 = vmatmul.mubr.bf16.vlgmr.msra.gmra.mrb[0].mxu0 %v12594_v35  ;;  %472 = vmatmul.mubr.bf16.vlgmr.msra.gmra.mrb[0].mxu1 %v12594_v35  ;;  %v14966_v35 = vld [vmem:[%s20221_s7 + $0x8c] ss:$16 sps:$4 sm:$0xff]   ;;  %20588 = vst [vmem:[#allocation17_spill] sm:$0xff] %v15205_v11  ;;  %20589 = vst [vmem:[#allocation18_spill] sm:$0xff] %v15210_v12 }
  0x3b   :  { %822 = vmatpush1.bf16.msra.mxu0 %v12597_v36  ;;  %368 = vmatprep.mubr.bf16.mxu0 %v20234_v0  ;;  %v14971_v36 = vld [vmem:[%s20221_s7 + $0x80] ss:$16 sps:$4 sm:$0xff]  }
  0x3c   :  { %481 = vmatprep.mubr.bf16.mxu1 %v20234_v0  ;;  %823 = vmatprep.subr.bf16.mxu0 %v12599_v37  ;;  %v14976_v37 = vld [vmem:[%s20221_s7 + $0x88] ss:$16 sps:$4 sm:$0xff]  }
  0x3d   :  { %865 = vmatpush1.bf16.msra.mxu1 %v12607_v38  ;;  %3340 = vperm.xlu0 %12544, %v11501_v14   ;;  %v14985_v38 = vld [vmem:[%s20221_s7 + $0xa4] ss:$16 sps:$4 sm:$0xff]   ;;  %v15220_v14 = vld [vmem:[%s20220_s6 + $0xc8] ss:$16 sps:$4 sm:$0xff]  }
  0x3e   :  { %866 = vmatprep.subr.bf16.mxu1 %v12609_v39  ;;  %v14990_v39 = vld [vmem:[%s20221_s7 + $0xac] ss:$16 sps:$4 sm:$0xff]   ;;  %20591 = vst [vmem:[#allocation20_spill] sm:$0xff] %v15220_v14 }
  0x3f   :  { %824 = vmatpush1.bf16.msra.mxu0 %v12601_v40  ;;  %v14995_v40 = vld [vmem:[%s20221_s7 + $0xa0] ss:$16 sps:$4 sm:$0xff]  }
  0x40   :  { %825 = vmatprep.subr.bf16.mxu0 %v12605_v41  ;;  %v15000_v41 = vld [vmem:[%s20221_s7 + $0xa8] ss:$16 sps:$4 sm:$0xff]  }
  0x41   :  { %867 = vmatpush1.bf16.msra.mxu1 %v12614_v42  ;;  %3769 = vperm.xlu0 %12544, %v11515_v15   ;;  %v15009_v42 = vld [vmem:[%s20221_s7 + $0xc4] ss:$16 sps:$4 sm:$0xff]  }
  0x42   :  { %369 = vmatmul.mubr.bf16.gmra.mrb[4].mxu0 %v12598_v43  ;;  %482 = vmatmul.mubr.bf16.gmra.mrb[4].mxu1 %v12598_v43  ;;  %v15014_v43 = vld [vmem:[%s20221_s7 + $0xcc] ss:$16 sps:$4 sm:$0xff]   ;;  %v15229_v15 = vld [vmem:[%s20220_s6 + $0xe4] ss:$16 sps:$4 sm:$0xff]  }
  0x43   :  { %378 = vmatprep.mubr.bf16.mxu0 %v20234_v0  ;;  %491 = vmatprep.mubr.bf16.mxu1 %v20234_v0  ;;  %20592 = vst [vmem:[#allocation21_spill] sm:$0xff] %v15229_v15 }
  0x44   :  { %826 = vmatpush1.bf16.msra.mxu0 %v12608_v44  ;;  %868 = vmatprep.subr.bf16.mxu1 %v12616_v46  ;;  %v15019_v44 = vld [vmem:[%s20221_s7 + $0xc0] ss:$16 sps:$4 sm:$0xff]   ;;  %v15033_v46 = vld [vmem:[%s20221_s7 + $0xe4] ss:$16 sps:$4 sm:$0xff]  }
  0x45   :  { %827 = vmatprep.subr.bf16.mxu0 %v12612_v45  ;;  %869 = vmatpush1.bf16.msra.mxu1 %v12621_v47  ;;  %v15024_v45 = vld [vmem:[%s20221_s7 + $0xc8] ss:$16 sps:$4 sm:$0xff]   ;;  %v15038_v47 = vld [vmem:[%s20221_s7 + $0xec] ss:$16 sps:$4 sm:$0xff]  }
  0x46   :  { %870 = vmatprep.subr.bf16.mxu1 %v12623_v48  ;;  %4198 = vperm.xlu0 %12544, %v11529_v17   ;;  %v15043_v48 = vld [vmem:[%s20221_s7 + $0xe0] ss:$16 sps:$4 sm:$0xff]  }
  0x47   :  { %v15239_v17 = vld [vmem:[%s20220_s6 + $0xe0] ss:$16 sps:$4 sm:$0xff]  }
  0x48   :  { %828 = vmatpush1.bf16.msra.mxu0 %v12615_v49  ;;  %v15048_v49 = vld [vmem:[%s20221_s7 + $0xe8] ss:$16 sps:$4 sm:$0xff]   ;;  %20594 = vst [vmem:[#allocation23_spill] sm:$0xff] %v15239_v17 }
  0x49   :  { %829 = vmatprep.subr.bf16.mxu0 %v12619_v50  ;;  %871 = vmatpush1.bf16.msra.mxu1 %v12628_v51  ;;  %v15057_v50 = vld [vmem:[%s20220_s6 + $0x4] ss:$16 sps:$4 sm:$0xff]   ;;  %v15062_v51 = vld [vmem:[%s20220_s6 + $0xc] ss:$16 sps:$4 sm:$0xff]  }
  0x4a   :  { %379 = vmatmul.mubr.bf16.gmra.mrb[8].mxu0 %v12604_v52  ;;  %492 = vmatmul.mubr.bf16.gmra.mrb[8].mxu1 %v12604_v52  ;;  %20584 = vst [vmem:[#allocation13_spill] sm:$0xff] %v15057_v50  ;;  %20585 = vst [vmem:[#allocation14_spill] sm:$0xff] %v15062_v51  ;;  %v15067_v52 = vld [vmem:[%s20220_s6] ss:$16 sps:$4 sm:$0xff]  }
  0x4b   :  { %388 = vmatprep.mubr.bf16.mxu0 %v20234_v0  ;;  %501 = vmatprep.mubr.bf16.mxu1 %v20234_v0 }
  0x4c   :  { %830 = vmatpush1.bf16.msra.mxu0 %v12622_v53  ;;  %872 = vmatprep.subr.bf16.mxu1 %v12630_v54  ;;  %v15072_v53 = vld [vmem:[%s20220_s6 + $0x8] ss:$16 sps:$4 sm:$0xff]   ;;  %v15083_v54 = vld [vmem:[%s20220_s6 + $0x24] ss:$16 sps:$4 sm:$0xff]  }
  0x4d   :  { %831 = vmatprep.subr.bf16.mxu0 %v12626_v55  ;;  %873 = vmatpush1.bf16.msra.mxu1 %v12635_v56  ;;  %v15088_v55 = vld [vmem:[%s20220_s6 + $0x2c] ss:$16 sps:$4 sm:$0xff]   ;;  %v15093_v56 = vld [vmem:[%s20220_s6 + $0x20] ss:$16 sps:$4 sm:$0xff]  }
  0x4e   :  { %874 = vmatprep.subr.bf16.mxu1 %v12637_v57  ;;  %4627 = vperm.xlu0 %12544, %v11543_v18   ;;  %v15098_v57 = vld [vmem:[%s20220_s6 + $0x28] ss:$16 sps:$4 sm:$0xff]  }
  0x4f   :  { %v15244_v18 = vld [vmem:[%s20220_s6 + $0xe8] ss:$16 sps:$4 sm:$0xff]  }
  0x50   :  { %832 = vmatpush1.bf16.msra.mxu0 %v12629_v58  ;;  %v15109_v58 = vld [vmem:[%s20220_s6 + $0x44] ss:$16 sps:$4 sm:$0xff]   ;;  %20595 = vst [vmem:[#allocation24_spill] sm:$0xff] %v15244_v18 }
  0x51   :  { %833 = vmatprep.subr.bf16.mxu0 %v12633_v60  ;;  %875 = vmatpush1.bf16.msra.mxu1 %v12639_v61  ;;  %v15119_v60 = vld [vmem:[%s20220_s6 + $0x40] ss:$16 sps:$4 sm:$0xff]   ;;  %v15124_v61 = vld [vmem:[%s20220_s6 + $0x48] ss:$16 sps:$4 sm:$0xff]  }
  0x52   :  { %389 = vmatmul.mubr.bf16.gmra.mrb[12].mxu0 %v12611_v62  ;;  %502 = vmatmul.mubr.bf16.gmra.mrb[12].mxu1 %v12611_v62  ;;  %v15133_v62 = vld [vmem:[%s20220_s6 + $0x64] ss:$16 sps:$4 sm:$0xff]  }
  0x53   :  { %398 = vmatprep.mubr.bf16.mxu0 %v20234_v0  ;;  %511 = vmatprep.mubr.bf16.mxu1 %v20234_v0 }
  0x54   :  { %834 = vmatpush1.bf16.msra.mxu0 %v12636_v63  ;;  %876 = vmatprep.subr.bf16.mxu1 %v12643_v1  ;;  %v15138_v63 = vld [vmem:[%s20220_s6 + $0x6c] ss:$16 sps:$4 sm:$0xff]   ;;  %v15143_v1 = vld [vmem:[%s20220_s6 + $0x60] ss:$16 sps:$4 sm:$0xff]  }
  0x55   :  { %835 = vmatprep.subr.bf16.mxu0 %v12641_v2  ;;  %877 = vmatpush1.bf16.msra.mxu1 %v12646_v3  ;;  %v15148_v2 = vld [vmem:[%s20220_s6 + $0x68] ss:$16 sps:$4 sm:$0xff]   ;;  %v15157_v3 = vld [vmem:[%s20220_s6 + $0x84] ss:$16 sps:$4 sm:$0xff]  }
  0x56   :  { %878 = vmatprep.subr.bf16.mxu1 %v12647_v4  ;;  %v15162_v4 = vld [vmem:[%s20220_s6 + $0x8c] ss:$16 sps:$4 sm:$0xff]  }
  0x58   :  { %836 = vmatpush1.bf16.msra.mxu0 %v12645_v5  ;;  %v15167_v5 = vld [vmem:[%s20220_s6 + $0x80] ss:$16 sps:$4 sm:$0xff]  }
  0x59   :  { %879 = vmatpush1.bf16.msra.mxu1 %v12649_v7  ;;  %1218 = vmatprep.subr.bf16.mxu0 %v12650_v8  ;;  %v15181_v7 = vld [vmem:[%s20220_s6 + $0xa4] ss:$16 sps:$4 sm:$0xff]   ;;  %v15186_v8 = vld [vmem:[%s20220_s6 + $0xac] ss:$16 sps:$4 sm:$0xff]  }
  0x5a   :  { %399 = vmatmul.mubr.bf16.gmra.mrb[16].mxu0 %v12618_v9  ;;  %512 = vmatmul.mubr.bf16.gmra.mrb[16].mxu1 %v12618_v9  ;;  %v15191_v9 = vld [vmem:[%s20220_s6 + $0xa0] ss:$16 sps:$4 sm:$0xff]  }
  0x5b   :  { %408 = vmatprep.mubr.bf16.mxu0 %v20234_v0  ;;  %521 = vmatprep.mubr.bf16.mxu1 %v20234_v0  ;;  %20586 = vst [vmem:[#allocation15_spill] sm:$0xff] %v15191_v9 }
  0x5c   :  { %1261 = vmatprep.subr.bf16.mxu1 %v12652_v10  ;;  %v15196_v10 = vld [vmem:[%s20220_s6 + $0xa8] ss:$16 sps:$4 sm:$0xff]  }
  0x5d   :  { %20587 = vst [vmem:[#allocation16_spill] sm:$0xff] %v15196_v10 }
  0x62   :  { %409 = vmatmul.mubr.bf16.gmra.mrb[20].mxu0 %v12625_v13  ;;  %522 = vmatmul.mubr.bf16.gmra.mrb[20].mxu1 %v12625_v13  ;;  %v15215_v13 = vld [vmem:[%s20220_s6 + $0xc0] ss:$16 sps:$4 sm:$0xff]  }
  0x63   :  { %418 = vmatprep.mubr.bf16.mxu0 %v20234_v0  ;;  %531 = vmatprep.mubr.bf16.mxu1 %v20234_v0  ;;  %20590 = vst [vmem:[#allocation19_spill] sm:$0xff] %v15215_v13 }
  0x6a   :  { %419 = vmatmul.mubr.bf16.gmra.mrb[24].mxu0 %v12632_v16  ;;  %532 = vmatmul.mubr.bf16.gmra.mrb[24].mxu1 %v12632_v16  ;;  %v15234_v16 = vld [vmem:[%s20220_s6 + $0xec] ss:$16 sps:$4 sm:$0xff]  }
  0x6b   :  { %428 = vmatprep.mubr.bf16.mxu0 %v20234_v0  ;;  %541 = vmatprep.mubr.bf16.mxu1 %v20234_v0  ;;  %20593 = vst [vmem:[#allocation22_spill] sm:$0xff] %v15234_v16 }
  0x72   :  { %429 = vmatmul.mubr.bf16.gmra.mrb[28].mxu0 %v12640_v19  ;;  %542 = vmatmul.mubr.bf16.gmra.mrb[28].mxu1 %v12640_v19  ;;  %v15253_v19 = vld [vmem:[%s20218_s4 + $0x4] ss:$16 sps:$4 sm:$0xff]  }
  0x73   :  { %853 = vmatprep.mubr.bf16.mxu0 %v20234_v0  ;;  %896 = vmatprep.mubr.bf16.mxu1 %v20234_v0  ;;  %20596 = vst [vmem:[#allocation25_spill] sm:$0xff] %v15253_v19 }
  0x7a   :  { %854 = vmatmul.mubr.bf16.vlgmr.msra.gmra.mrb[0].mxu0 %v20234_v0  ;;  %897 = vmatmul.mubr.bf16.vlgmr.msra.gmra.mrb[0].mxu1 %v20234_v0 }
  0x7b   :  { %1219 = vmatpush1.bf16.msra.mxu0 %v12654_v20  ;;  %1262 = vmatpush1.bf16.msra.mxu1 %v12655_v21  ;;  %v15259_v20 = vld [vmem:[%s20218_s4 + $0xc] ss:$16 sps:$4 sm:$0xff]   ;;  %v11459_v21 = vld [vmem:[%s20583_s29 + $0x10] sm:$0xff] }
  0x7c   :  { %1220 = vmatprep.subr.bf16.mxu0 %v12656_v22  ;;  %1263 = vmatprep.subr.bf16.mxu1 %v12658_v23  ;;  %20597 = vst [vmem:[#allocation26_spill] sm:$0xff] %v15259_v20  ;;  %v11460_v22 = vld [vmem:[%s20583_s29 + $0x18] sm:$0xff]  ;;  %v11474_v23 = vld [vmem:[%s20583_s29 + $0x28] sm:$0xff] }
  0x7d   :  { %1250 = vmatprep.mubr.bf16.mxu0 %v20234_v0  ;;  %1293 = vmatprep.mubr.bf16.mxu1 %v20234_v0 }
  0x7e   :  { %2053 = vperm.xlu1 %12545, %v11459_v21  }
  0x7f   :  { %1221 = vmatpush1.bf16.msra.mxu0 %v12660_v24  ;;  %1264 = vmatpush1.bf16.msra.mxu1 %v12661_v25  ;;  %v11488_v24 = vld [vmem:[%s20583_s29 + $0x38] sm:$0xff]  ;;  %v11502_v25 = vld [vmem:[%s20583_s29 + $0x48] sm:$0xff] }
  0x80   :  { %1222 = vmatprep.subr.bf16.mxu0 %v12662_v26  ;;  %1265 = vmatprep.subr.bf16.mxu1 %v12664_v27  ;;  %v11516_v26 = vld [vmem:[%s20583_s29 + $0x58] sm:$0xff]  ;;  %v11530_v27 = vld [vmem:[%s20583_s29 + $0x68] sm:$0xff] }
  0x82   :  { %2058 = vperm.xlu1 %12545, %v11460_v22  }
  0x83   :  { %1223 = vmatpush1.bf16.msra.mxu0 %v12666_v28  ;;  %1266 = vmatpush1.bf16.msra.mxu1 %v12667_v29  ;;  %v11544_v28 = vld [vmem:[%s20583_s29 + $0x78] sm:$0xff]  ;;  %v917_v29 = vlaneseq }
  0x84   :  { %1224 = vmatprep.subr.bf16.mxu0 %v12668_v30  ;;  %1267 = vmatprep.subr.bf16.mxu1 %v12670_v31 }
  0x85   :  { %v918_v30 = vshrl.u32 %v917_v29, 7 }
  0x86   :  { %2487 = vperm.xlu1 %12545, %v11474_v23  }
  0x87   :  { %1225 = vmatpush1.bf16.msra.mxu0 %v12672_v32  ;;  %1268 = vmatpush1.bf16.msra.mxu1 %v12673_v33  ;;  %v15286_v31 = vsub.s32 0, %v918_v30  ;;  %v915_v32 = vld [vmem:[%s20219_s5] sm:$0xf]  ;;  %v15291_v33 = vsub.s32 1, %v918_v30 }
  0x88   :  { %1226 = vmatprep.subr.bf16.mxu0 %v14961_v34  ;;  %1269 = vmatprep.subr.bf16.mxu1 %v14966_v35 }
  0x89   :  { %20598 = vst [vmem:[#allocation27_spill] sm:$0xff] %v15286_v31  ;;  %20599 = vst [vmem:[#allocation28_spill] sm:$0xff] %v15291_v33  ;;  %v15294_v21 = vrot.slane %v915_v32, %v15286_v31  ;;  %v15297_v22 = vrot.slane %v915_v32, %v15291_v33 }
  0x8a   :  { %2916 = vperm.xlu1 %12545, %v11488_v24  }
  0x8b   :  { %1227 = vmatpush1.bf16.msra.mxu0 %v14971_v36  ;;  %1270 = vmatpush1.bf16.msra.mxu1 %v14976_v37  ;;  %20600 = vst [vmem:[#allocation29_spill] sm:$0xff] %v15294_v21  ;;  %20601 = vst [vmem:[#allocation30_spill] sm:$0xff] %v15297_v22 }
  0x8c   :  { %1228 = vmatprep.subr.bf16.mxu0 %v14985_v38  ;;  %1271 = vmatprep.subr.bf16.mxu1 %v14990_v39 }
  0x8e   :  { %3345 = vperm.xlu1 %12545, %v11502_v25   ;;  %v15299_v25 = vsub.s32 3, %v918_v30 }
  0x8f   :  { %1229 = vmatpush1.bf16.msra.mxu0 %v14995_v40  ;;  %1272 = vmatpush1.bf16.msra.mxu1 %v15000_v41 }
  0x90   :  { %1230 = vmatprep.subr.bf16.mxu0 %v15009_v42  ;;  %1273 = vmatprep.subr.bf16.mxu1 %v15014_v43  ;;  %20602 = vst [vmem:[#allocation31_spill] sm:$0xff] %v15299_v25 }
  0x92   :  { %3774 = vperm.xlu1 %12545, %v11516_v26  }
  0x93   :  { %1231 = vmatpush1.bf16.msra.mxu0 %v15019_v44  ;;  %1274 = vmatpush1.bf16.msra.mxu1 %v15024_v45 }
  0x94   :  { %1232 = vmatprep.subr.bf16.mxu0 %v15033_v46  ;;  %1275 = vmatprep.subr.bf16.mxu1 %v15038_v47 }
  0x96   :  { %4203 = vperm.xlu1 %12545, %v11530_v27  }
  0x97   :  { %1233 = vmatpush1.bf16.msra.mxu0 %v15043_v48  ;;  %1276 = vmatpush1.bf16.msra.mxu1 %v15048_v49 }
  0x98   :  { %1464 = vmatprep.subr.bf16.mxu0 %v15057_v50  ;;  %1507 = vmatprep.subr.bf16.mxu1 %v15062_v51 }
  0x9a   :  { %1251 = vmatmul.mubr.bf16.vlgmr.msra.gmra.mrb[32].mxu0 %v20234_v0  ;;  %1294 = vmatmul.mubr.bf16.vlgmr.msra.gmra.mrb[32].mxu1 %v20234_v0 }
  0x9b   :  { %1465 = vmatpush1.bf16.msra.mxu0 %v15067_v52  ;;  %1508 = vmatpush1.bf16.msra.mxu1 %v15072_v53 }
  0x9c   :  { %1496 = vmatprep.mubr.bf16.mxu0 %v20234_v0  ;;  %1539 = vmatprep.mubr.bf16.mxu1 %v20234_v0 }
  0x9d   :  { %1466 = vmatprep.subr.bf16.mxu0 %v15083_v54  ;;  %1509 = vmatprep.subr.bf16.mxu1 %v15088_v55 }
  0x9e   :  { %4632 = vperm.xlu1 %12545, %v11544_v28  }
  0x9f   :  { %1467 = vmatpush1.bf16.msra.mxu0 %v15093_v56  ;;  %1510 = vmatpush1.bf16.msra.mxu1 %v15098_v57 }
  0xa0   :  { %1468 = vmatprep.subr.bf16.mxu0 %v15109_v58  ;;  %1511 = vmatprep.subr.bf16.mxu1 %v15114_v59 }
  0xa3   :  { %1469 = vmatpush1.bf16.msra.mxu0 %v15119_v60  ;;  %1512 = vmatpush1.bf16.msra.mxu1 %v15124_v61 }
  0xa4   :  { %1470 = vmatprep.subr.bf16.mxu0 %v15133_v62  ;;  %1513 = vmatprep.subr.bf16.mxu1 %v15138_v63 }
  0xa7   :  { %1471 = vmatpush1.bf16.msra.mxu0 %v15143_v1  ;;  %1514 = vmatpush1.bf16.msra.mxu1 %v15148_v2 }
  0xa8   :  { %1472 = vmatprep.subr.bf16.mxu0 %v15157_v3  ;;  %1515 = vmatprep.subr.bf16.mxu1 %v15162_v4 }
  0xab   :  { %1473 = vmatpush1.bf16.msra.mxu0 %v15167_v5  ;;  %1516 = vmatpush1.bf16.msra.mxu1 %v15172_v6 }
  0xac   :  { %1474 = vmatprep.subr.bf16.mxu0 %v15181_v7  ;;  %1517 = vmatprep.subr.bf16.mxu1 %v15186_v8 }
  0xaf   :  { %1475 = vmatpush1.bf16.msra.mxu0 %v15191_v9  ;;  %1518 = vmatpush1.bf16.msra.mxu1 %v15196_v10 }
  0xb0   :  { %1476 = vmatprep.subr.bf16.mxu0 %v15205_v11  ;;  %1519 = vmatprep.subr.bf16.mxu1 %v15210_v12 }
  0xb3   :  { %1477 = vmatpush1.bf16.msra.mxu0 %v15215_v13  ;;  %1520 = vmatpush1.bf16.msra.mxu1 %v15220_v14  ;;  %v15307_v13 = vrot.slane %v915_v32, %v15299_v25 }
  0xb4   :  { %1478 = vmatprep.subr.bf16.mxu0 %v15229_v15  ;;  %1521 = vmatprep.subr.bf16.mxu1 %v15234_v16 }
  0xb7   :  { %1479 = vmatpush1.bf16.msra.mxu0 %v15239_v17  ;;  %1522 = vmatpush1.bf16.msra.mxu1 %v15244_v18  ;;  %v15303_v18 = vsub.s32 2, %v918_v30 }
  0xb8   :  { %1669 = vmatprep.subr.bf16.mxu0 %v15253_v19  ;;  %1712 = vmatprep.subr.bf16.mxu1 %v15259_v20 }
  0xb9   :  { %20603 = vst [vmem:[#allocation32_spill] sm:$0xff] %v15303_v18 }
 0x14d   :  { %v855_v23 = vpop.f32.mrb[0].mxu0  ;;  %v898_v24 = vpop.f32.mrb[0].mxu1 }
 0x14e   :  { %v937_v26 = vadd.f32 %v15294_v21, %v855_v23  ;;  %v857_v27 = vpop.f32.mrb[1].mxu0  ;;  %v900_v28 = vpop.f32.mrb[1].mxu1 }
 0x14f   :  { %v938_v29 = vadd.f32 %v15297_v22, %v857_v27  ;;  %v859_v0 = vpop.f32.mrb[2].mxu0  ;;  %v902_v20 = vpop.f32.mrb[2].mxu1  ;;  %v15311_v27 = vrot.slane %v915_v32, %v15303_v18  ;;  %v940_v30 = vadd.f32 %v15307_v13, %v900_v28 }
 0x150   :  { %v11383_v19 = vmul.f32 -1.442695, %v937_v26  ;;  %v941_v17 = vadd.f32 %v15294_v21, %v859_v0  ;;  %v861_v16 = vpop.f32.mrb[3].mxu0  ;;  %v904_v15 = vpop.f32.mrb[3].mxu1 }
 0x151   :  { %v11385_v14 = vmul.f32 -1.442695, %v938_v29  ;;  %v942_v12 = vadd.f32 %v15297_v22, %v861_v16  ;;  %v939_v0 = vadd.f32 %v15311_v27, %v898_v24  ;;  %v11387_v26 = vmul.f32 -1.442695, %v940_v30 }
 0x152   :  { %13232 = vpow2.f32 %v11383_v19  ;;  %v11384_v23 = vmul.f32 -1.442695, %v941_v17  ;;  %v944_v29 = vadd.f32 %v15307_v13, %v904_v15  ;;  %v943_v10 = vadd.f32 %v15311_v27, %v902_v20 }
 0x153   :  { %13234 = vpow2.f32 %v11385_v14  ;;  %v11386_v11 = vmul.f32 -1.442695, %v942_v12 }
 0x154   :  { %13236 = vpow2.f32 %v11384_v23  ;;  %v11388_v12 = vmul.f32 -1.442695, %v944_v29 }
 0x155   :  { %13238 = vpow2.f32 %v11386_v11 }
 0x156   :  { %13240 = vtanh.f32 %v939_v0 }
 0x157   :  { %13242 = vpow2.f32 %v11387_v26 }
 0x158   :  { %13244 = vtanh.f32 %v943_v10 }
 0x15c   :  { %v13233_v9 = vpop.eup %13232 }
 0x15d   :  { %v13235_v16 = vpop.eup %13234  ;;  %v951_v17 = vadd.f32 1.0, %v13233_v9 }
 0x15e   :  { %v963_v14 = vadd.f32 1.0, %v13235_v16  ;;  %v13237_v19 = vpop.eup %13236 }
 0x15f   :  { %13246 = vrcp.f32 %v951_v17  ;;  %v952_v32 = vadd.f32 1.0, %v13237_v19  ;;  %v13239_v11 = vpop.eup %13238 }
 0x160   :  { %13248 = vrcp.f32 %v963_v14  ;;  %v964_v24 = vadd.f32 1.0, %v13239_v11  ;;  %v13241_v15 = vpop.eup %13240 }
 0x161   :  { %13250 = vpow2.f32 %v11388_v12  ;;  %v13243_v28 = vpop.eup %13242 }
 0x162   :  { %13252 = vrcp.f32 %v952_v32  ;;  %v13245_v20 = vpop.eup %13244  ;;  %v977_v0 = vadd.f32 1.0, %v13243_v28 }
 0x163   :  { %13254 = vrcp.f32 %v964_v24 }
 0x164   :  { %13256 = vrcp.f32 %v977_v0  ;;  %v15329_v0 = vld [vmem:[%s20218_s4] ss:$16 sps:$4 sm:$0xff]  }
 0x169   :  { %v13247_v23 = vpop.eup %13246 }
 0x16a   :  { %v13249_v30 = vpop.eup %13248  ;;  %v985_v9 = vmul.f32 %v13247_v23, %v13241_v15 }
 0x16b   :  { %v13251_v26 = vpop.eup %13250  ;;  %v983_v29 = vmul.f32 0.0, %v13249_v30 }
 0x16c   :  { %v13253_v16 = vpop.eup %13252  ;;  %v978_v19 = vadd.f32 1.0, %v13251_v26  ;;  %v15341_v26 = vld [vmem:[%s20218_s4 + $0x24] ss:$16 sps:$4 sm:$0xff]  }
 0x16d   :  { %v15317_v10 = vadd.f32 %v985_v9, %v983_v29  ;;  %v986_v17 = vmul.f32 %v13253_v16, %v13245_v20  ;;  %v13255_v14 = vpop.eup %13254  ;;  %v15335_v9 = vld [vmem:[%s20218_s4 + $0x8] ss:$16 sps:$4 sm:$0xff]   ;;  %v15347_v29 = vld [vmem:[%s20218_s4 + $0x2c] ss:$16 sps:$4 sm:$0xff]   ;;  %v20604_v16 = vmov 0  }
 0x16e   :  { %v984_v12 = vmul.f32 0.0, %v13255_v14  ;;  %v13257_v11 = vpop.eup %13256  ;;  %v15361_v14 = vld [vmem:[%s20218_s4 + $0x28] ss:$16 sps:$4 sm:$0xff]  }
 0x16f   :  { %13258 = vtanh.f32 %v15317_v10 }
 0x170   :  { %v15320_v32 = vadd.f32 %v986_v17, %v984_v12  ;;  %13260 = vrcp.f32 %v978_v19  ;;  %v15355_v17 = vld [vmem:[%s20218_s4 + $0x20] ss:$16 sps:$4 sm:$0xff]   ;;  %v15367_v19 = vld [vmem:[%s20218_s4 + $0x44] ss:$16 sps:$4 sm:$0xff]   ;;  %v15373_v12 = vld [vmem:[%s20218_s4 + $0x4c] ss:$16 sps:$4 sm:$0xff]  }
 0x171   :  { %20605 = vst [vmem:[#allocation33_spill] sm:$0xff] %v15373_v12 }
 0x172   :  { %13262 = vtanh.f32 %v15320_v32 }
 0x179   :  { %v13259_v24 = vpop.eup %13258 }
 0x17a   :  { %v15323_v15 = vmul.f32 %v13259_v24, %v13257_v11  ;;  %v13261_v28 = vpop.eup %13260  ;;  %v15379_v11 = vld [vmem:[%s20218_s4 + $0x40] ss:$16 sps:$4 sm:$0xff]   ;;  %v15385_v24 = vld [vmem:[%s20218_s4 + $0x48] ss:$16 sps:$4 sm:$0xff]  }
 0x17b   :  { %20606 = vst [vmem:[#allocation34_spill] sm:$0xff] %v15379_v11  ;;  %20607 = vst [vmem:[#allocation35_spill] sm:$0xff] %v15385_v24 }
 0x17c   :  { %v13263_v23 = vpop.eup %13262 }
 0x17d   :  { %v992_v30 = vmul.f32 %v13263_v23, %v13261_v28  ;;  %v15391_v28 = vld [vmem:[%s20218_s4 + $0x64] ss:$16 sps:$4 sm:$0xff]   ;;  %v15397_v23 = vld [vmem:[%s20218_s4 + $0x6c] ss:$16 sps:$4 sm:$0xff]  }
 0x17e   :  { %20608 = vst [vmem:[#allocation36_spill] sm:$0xff] %v15391_v28  ;;  %20609 = vst [vmem:[#allocation37_spill] sm:$0xff] %v15397_v23 }
 0x17f   :  { %v993_v20 = vpack.c.bf16 %v992_v30, %v15323_v15 }
 0x181   :  { %1497 = vmatmul.mubr.bf16.vlgmr.msra.gmra.mrb[32].mxu0 %v993_v20  ;;  %1540 = vmatmul.mubr.bf16.vlgmr.msra.gmra.mrb[32].mxu1 %v993_v20  ;;  %v15403_v20 = vld [vmem:[%s20218_s4 + $0x60] ss:$16 sps:$4 sm:$0xff]  }
 0x182   :  { %1670 = vmatpush1.bf16.msra.mxu0 %v15329_v0  ;;  %1713 = vmatpush1.bf16.msra.mxu1 %v15335_v9  ;;  %20610 = vst [vmem:[#allocation38_spill] sm:$0xff] %v15403_v20 }
 0x183   :  { %1671 = vmatprep.subr.bf16.mxu0 %v15341_v26  ;;  %1714 = vmatprep.subr.bf16.mxu1 %v15347_v29 }
 0x184   :  { %1701 = vmatprep.mubr.bf16.mxu0 %v20604_v16  ;;  %1744 = vmatprep.mubr.bf16.mxu1 %v20604_v16 }
 0x186   :  { %1672 = vmatpush1.bf16.msra.mxu0 %v15355_v17  ;;  %1715 = vmatpush1.bf16.msra.mxu1 %v15361_v14 }
 0x187   :  { %1673 = vmatprep.subr.bf16.mxu0 %v15367_v19  ;;  %1716 = vmatprep.subr.bf16.mxu1 %v15373_v12 }
 0x18a   :  { %1674 = vmatpush1.bf16.msra.mxu0 %v15379_v11  ;;  %1717 = vmatpush1.bf16.msra.mxu1 %v15385_v24  ;;  %v15409_v24 = vld [vmem:[%s20218_s4 + $0x68] ss:$16 sps:$4 sm:$0xff]   ;;  %v15471_v11 = vld [vmem:[%s20218_s4 + $0xcc] ss:$16 sps:$4 sm:$0xff]  }
 0x18b   :  { %1675 = vmatprep.subr.bf16.mxu0 %v15391_v28  ;;  %1718 = vmatprep.subr.bf16.mxu1 %v15397_v23  ;;  %20611 = vst [vmem:[#allocation39_spill] sm:$0xff] %v15409_v24  ;;  %v15415_v28 = vld [vmem:[%s20218_s4 + $0x84] ss:$16 sps:$4 sm:$0xff]   ;;  %v15421_v23 = vld [vmem:[%s20218_s4 + $0x8c] ss:$16 sps:$4 sm:$0xff]   ;;  %20621 = vst [vmem:[#allocation49_spill] sm:$0xff] %v15471_v11 }
 0x18c   :  { %20612 = vst [vmem:[#allocation40_spill] sm:$0xff] %v15415_v28  ;;  %20613 = vst [vmem:[#allocation41_spill] sm:$0xff] %v15421_v23 }
 0x18e   :  { %1676 = vmatpush1.bf16.msra.mxu0 %v15403_v20  ;;  %1719 = vmatpush1.bf16.msra.mxu1 %v15409_v24  ;;  %v15427_v20 = vld [vmem:[%s20218_s4 + $0x80] ss:$16 sps:$4 sm:$0xff]   ;;  %v15433_v24 = vld [vmem:[%s20218_s4 + $0x88] ss:$16 sps:$4 sm:$0xff]  }
 0x18f   :  { %1677 = vmatprep.subr.bf16.mxu0 %v15415_v28  ;;  %1720 = vmatprep.subr.bf16.mxu1 %v15421_v23  ;;  %20614 = vst [vmem:[#allocation42_spill] sm:$0xff] %v15427_v20  ;;  %20615 = vst [vmem:[#allocation43_spill] sm:$0xff] %v15433_v24  ;;  %v15439_v28 = vld [vmem:[%s20218_s4 + $0xa4] ss:$16 sps:$4 sm:$0xff]   ;;  %v15445_v23 = vld [vmem:[%s20218_s4 + $0xac] ss:$16 sps:$4 sm:$0xff]  }
 0x190   :  { %20616 = vst [vmem:[#allocation44_spill] sm:$0xff] %v15439_v28  ;;  %20617 = vst [vmem:[#allocation45_spill] sm:$0xff] %v15445_v23 }
 0x192   :  { %1678 = vmatpush1.bf16.msra.mxu0 %v15427_v20  ;;  %1721 = vmatpush1.bf16.msra.mxu1 %v15433_v24  ;;  %v15448_v20 = vpop.permute.xlu0 %1630  ;;  %v15453_v24 = vld [vmem:[%s20218_s4 + $0xa0] ss:$16 sps:$4 sm:$0xff]  }
 0x193   :  { %1679 = vmatprep.subr.bf16.mxu0 %v15439_v28  ;;  %1722 = vmatprep.subr.bf16.mxu1 %v15445_v23  ;;  %20618 = vst [vmem:[#allocation46_spill] sm:$0xff] %v15453_v24  ;;  %v15459_v28 = vld [vmem:[%s20218_s4 + $0xa8] ss:$16 sps:$4 sm:$0xff]   ;;  %v15465_v23 = vld [vmem:[%s20218_s4 + $0xc4] ss:$16 sps:$4 sm:$0xff]  }
 0x194   :  { %20619 = vst [vmem:[#allocation47_spill] sm:$0xff] %v15459_v28  ;;  %20620 = vst [vmem:[#allocation48_spill] sm:$0xff] %v15465_v23 }
 0x196   :  { %1680 = vmatpush1.bf16.msra.mxu0 %v15453_v24  ;;  %1723 = vmatpush1.bf16.msra.mxu1 %v15459_v28  ;;  %v15474_v24 = vpop.permute.xlu0 %1635  ;;  %v15479_v28 = vld [vmem:[%s20218_s4 + $0xc0] ss:$16 sps:$4 sm:$0xff]  }
 0x197   :  { %1681 = vmatprep.subr.bf16.mxu0 %v15465_v23  ;;  %1724 = vmatprep.subr.bf16.mxu1 %v15471_v11  ;;  %20622 = vst [vmem:[#allocation50_spill] sm:$0xff] %v15479_v28  ;;  %v15485_v23 = vld [vmem:[%s20218_s4 + $0xc8] ss:$16 sps:$4 sm:$0xff]   ;;  %v15489_v12 = vmul.f32 %v15474_v24, %v992_v30  ;;  %v15494_v11 = vld [vmem:[%s20218_s4 + $0xe4] ss:$16 sps:$4 sm:$0xff]  }
 0x198   :  { %20623 = vst [vmem:[#allocation51_spill] sm:$0xff] %v15485_v23  ;;  %20624 = vst [vmem:[#allocation52_spill] sm:$0xff] %v15494_v11  ;;  %v15510_v30 = vld [vmem:[%s20218_s4 + $0xe0] ss:$16 sps:$4 sm:$0xff]  }
 0x199   :  { %20626 = vst [vmem:[#allocation54_spill] sm:$0xff] %v15510_v30 }
 0x19a   :  { %1682 = vmatpush1.bf16.msra.mxu0 %v15479_v28  ;;  %1725 = vmatpush1.bf16.msra.mxu1 %v15485_v23  ;;  %v15500_v28 = vld [vmem:[%s20218_s4 + $0xec] ss:$16 sps:$4 sm:$0xff]   ;;  %v15505_v23 = vmul.f32 %v15448_v20, %v15323_v15  ;;  %v15524_v15 = vld [vmem:[%s20221_s7 + $0x4] ss:$16 sps:$4 sm:$0xff]  }
 0x19b   :  { %1683 = vmatprep.subr.bf16.mxu0 %v15494_v11  ;;  %20625 = vst [vmem:[#allocation53_spill] sm:$0xff] %v15500_v28  ;;  %1726 = vmatprep.subr.bf16.mxu1 %v15500_v28  ;;  %v15516_v11 = vld [vmem:[%s20218_s4 + $0xe8] ss:$16 sps:$4 sm:$0xff]   ;;  %20628 = vst [vmem:[#allocation56_spill] sm:$0xff] %v15524_v15 }
 0x19c   :  { %20627 = vst [vmem:[#allocation55_spill] sm:$0xff] %v15516_v11  ;;  %v1668_v28 = vpack.c.bf16 %v15489_v12, %v15505_v23 }
 0x19e   :  { %1684 = vmatpush1.bf16.msra.mxu0 %v15510_v30  ;;  %1727 = vmatpush1.bf16.msra.mxu1 %v15516_v11  ;;  %v15530_v30 = vld [vmem:[%s20221_s7 + $0xc] ss:$16 sps:$4 sm:$0xff]   ;;  %v15536_v11 = vld [vmem:[%s20221_s7] ss:$16 sps:$4 sm:$0xff]  }
 0x19f   :  { %1821 = vmatprep.subr.bf16.mxu0 %v15524_v15  ;;  %20629 = vst [vmem:[#allocation57_spill] sm:$0xff] %v15530_v30  ;;  %1864 = vmatprep.subr.bf16.mxu1 %v15530_v30  ;;  %20630 = vst [vmem:[#allocation58_spill] sm:$0xff] %v15536_v11  ;;  %v15542_v15 = vld [vmem:[%s20221_s7 + $0x8] ss:$16 sps:$4 sm:$0xff]   ;;  %v15548_v30 = vld [vmem:[%s20221_s7 + $0x24] ss:$16 sps:$4 sm:$0xff]  }
 0x1a0   :  { %20631 = vst [vmem:[#allocation59_spill] sm:$0xff] %v15542_v15  ;;  %20632 = vst [vmem:[#allocation60_spill] sm:$0xff] %v15548_v30 }
 0x1a1   :  { %1702 = vmatmul.mubr.bf16.vlgmr.msra.gmra.mrb[4].mxu0 %v1668_v28  ;;  %1745 = vmatmul.mubr.bf16.vlgmr.msra.gmra.mrb[4].mxu1 %v1668_v28  ;;  %v15554_v28 = vld [vmem:[%s20221_s7 + $0x2c] ss:$16 sps:$4 sm:$0xff]  }
 0x1a2   :  { %1822 = vmatpush1.bf16.msra.mxu0 %v15536_v11  ;;  %1865 = vmatpush1.bf16.msra.mxu1 %v15542_v15  ;;  %20633 = vst [vmem:[#allocation61_spill] sm:$0xff] %v15554_v28  ;;  %v15562_v15 = vld [vmem:[%s20221_s7 + $0x20] ss:$16 sps:$4 sm:$0xff]   ;;  %v15580_v11 = vld [vmem:[%s20221_s7 + $0x4c] ss:$16 sps:$4 sm:$0xff]  }
 0x1a3   :  { %1823 = vmatprep.subr.bf16.mxu0 %v15548_v30  ;;  %1866 = vmatprep.subr.bf16.mxu1 %v15554_v28  ;;  %20634 = vst [vmem:[#allocation62_spill] sm:$0xff] %v15562_v15  ;;  %v15568_v30 = vld [vmem:[%s20221_s7 + $0x28] ss:$16 sps:$4 sm:$0xff]   ;;  %v15574_v28 = vld [vmem:[%s20221_s7 + $0x44] ss:$16 sps:$4 sm:$0xff]   ;;  %20637 = vst [vmem:[#allocation65_spill] sm:$0xff] %v15580_v11 }
 0x1a4   :  { %1853 = vmatprep.mubr.bf16.mxu0 %v20604_v16  ;;  %1896 = vmatprep.mubr.bf16.mxu1 %v20604_v16  ;;  %20635 = vst [vmem:[#allocation63_spill] sm:$0xff] %v15568_v30  ;;  %20636 = vst [vmem:[#allocation64_spill] sm:$0xff] %v15574_v28 }
 0x1a6   :  { %1824 = vmatpush1.bf16.msra.mxu0 %v15562_v15  ;;  %1867 = vmatpush1.bf16.msra.mxu1 %v15568_v30  ;;  %v15586_v15 = vld [vmem:[%s20221_s7 + $0x40] ss:$16 sps:$4 sm:$0xff]   ;;  %v15592_v30 = vld [vmem:[%s20221_s7 + $0x48] ss:$16 sps:$4 sm:$0xff]  }
 0x1a7   :  { %1825 = vmatprep.subr.bf16.mxu0 %v15574_v28  ;;  %1868 = vmatprep.subr.bf16.mxu1 %v15580_v11  ;;  %20638 = vst [vmem:[#allocation66_spill] sm:$0xff] %v15586_v15  ;;  %20639 = vst [vmem:[#allocation67_spill] sm:$0xff] %v15592_v30  ;;  %v15598_v28 = vld [vmem:[%s20221_s7 + $0x64] ss:$16 sps:$4 sm:$0xff]   ;;  %v15604_v11 = vld [vmem:[%s20221_s7 + $0x6c] ss:$16 sps:$4 sm:$0xff]  }
 0x1aa   :  { %1826 = vmatpush1.bf16.msra.mxu0 %v15586_v15  ;;  %1869 = vmatpush1.bf16.msra.mxu1 %v15592_v30  ;;  %v15610_v15 = vld [vmem:[%s20221_s7 + $0x60] ss:$16 sps:$4 sm:$0xff]   ;;  %v15616_v30 = vld [vmem:[%s20221_s7 + $0x68] ss:$16 sps:$4 sm:$0xff]  }
 0x1ab   :  { %1827 = vmatprep.subr.bf16.mxu0 %v15598_v28  ;;  %1870 = vmatprep.subr.bf16.mxu1 %v15604_v11 }
 0x1ae   :  { %1828 = vmatpush1.bf16.msra.mxu0 %v15610_v15  ;;  %1871 = vmatpush1.bf16.msra.mxu1 %v15616_v30 }
 0x1af   :  { %1829 = vmatprep.subr.bf16.mxu0 %v14961_v34  ;;  %1872 = vmatprep.subr.bf16.mxu1 %v14966_v35  ;;  %v1550_v34 = vld [vmem:[%s20222_s8] sm:$0xf] }
 0x1b0   :  { %v15641_v35 = vrot.slane %v1550_v34, %v15286_v31  ;;  %v15650_v31 = vrot.slane %v1550_v34, %v15299_v25 }
 0x1b2   :  { %1830 = vmatpush1.bf16.msra.mxu0 %v14971_v36  ;;  %1873 = vmatpush1.bf16.msra.mxu1 %v14976_v37  ;;  %20640 = vst [vmem:[#allocation68_spill] sm:$0xff] %v15641_v35  ;;  %v15644_v36 = vrot.slane %v1550_v34, %v15291_v33  ;;  %20641 = vst [vmem:[#allocation69_spill] sm:$0xff] %v15650_v31 }
 0x1b3   :  { %1831 = vmatprep.subr.bf16.mxu0 %v14985_v38  ;;  %1874 = vmatprep.subr.bf16.mxu1 %v14990_v39 }
 0x1b6   :  { %1832 = vmatpush1.bf16.msra.mxu0 %v14995_v40  ;;  %1875 = vmatpush1.bf16.msra.mxu1 %v15000_v41 }
 0x1b7   :  { %1833 = vmatprep.subr.bf16.mxu0 %v15009_v42  ;;  %1876 = vmatprep.subr.bf16.mxu1 %v15014_v43 }
 0x1ba   :  { %1834 = vmatpush1.bf16.msra.mxu0 %v15019_v44  ;;  %1877 = vmatpush1.bf16.msra.mxu1 %v15024_v45 }
 0x1bb   :  { %1835 = vmatprep.subr.bf16.mxu0 %v15033_v46  ;;  %1878 = vmatprep.subr.bf16.mxu1 %v15038_v47 }
 0x1be   :  { %1836 = vmatpush1.bf16.msra.mxu0 %v15043_v48  ;;  %1879 = vmatpush1.bf16.msra.mxu1 %v15048_v49 }
 0x1bf   :  { %1907 = vmatprep.subr.bf16.mxu0 %v15057_v50  ;;  %1950 = vmatprep.subr.bf16.mxu1 %v15062_v51  ;;  %v15654_v50 = vrot.slane %v1550_v34, %v15303_v18 }
 0x1c1   :  { %20642 = vst [vmem:[#allocation70_spill] sm:$0xff] %v15654_v50 }
 0x254   :  { %v1498_v37 = vpop.f32.mrb[32].mxu0  ;;  %v1541_v38 = vpop.f32.mrb[32].mxu1 }
 0x255   :  { %v1572_v39 = vadd.f32 %v15641_v35, %v1498_v37  ;;  %v1500_v40 = vpop.f32.mrb[33].mxu0  ;;  %v1543_v41 = vpop.f32.mrb[33].mxu1 }
 0x256   :  { %v1573_v42 = vadd.f32 %v15644_v36, %v1500_v40  ;;  %v1502_v43 = vpop.f32.mrb[34].mxu0  ;;  %v1545_v44 = vpop.f32.mrb[34].mxu1  ;;  %v1575_v40 = vadd.f32 %v15650_v31, %v1543_v41 }
 0x257   :  { %v11453_v45 = vmul.f32 -1.442695, %v1572_v39  ;;  %v1576_v46 = vadd.f32 %v15641_v35, %v1502_v43  ;;  %v1504_v47 = vpop.f32.mrb[35].mxu0  ;;  %v1547_v48 = vpop.f32.mrb[35].mxu1 }
 0x258   :  { %v11455_v49 = vmul.f32 -1.442695, %v1573_v42  ;;  %v1577_v33 = vadd.f32 %v15644_v36, %v1504_v47  ;;  %v1579_v39 = vadd.f32 %v15650_v31, %v1547_v48  ;;  %v1574_v42 = vadd.f32 %v15654_v50, %v1541_v38 }
 0x259   :  { %13264 = vpow2.f32 %v11453_v45  ;;  %v11454_v51 = vmul.f32 -1.442695, %v1576_v46  ;;  %v11457_v43 = vmul.f32 -1.442695, %v1575_v40 }
 0x25a   :  { %13266 = vpow2.f32 %v11455_v49  ;;  %v11456_v37 = vmul.f32 -1.442695, %v1577_v33  ;;  %v11458_v25 = vmul.f32 -1.442695, %v1579_v39  ;;  %v1578_v33 = vadd.f32 %v15654_v50, %v1545_v44 }
 0x25b   :  { %13268 = vpow2.f32 %v11454_v51 }
 0x25c   :  { %13270 = vpow2.f32 %v11456_v37 }
 0x25d   :  { %13272 = vtanh.f32 %v1574_v42 }
 0x25e   :  { %13274 = vpow2.f32 %v11457_v43 }
 0x25f   :  { %13276 = vpow2.f32 %v11458_v25 }
 0x263   :  { %v13265_v35 = vpop.eup %13264 }
 0x264   :  { %v13267_v47 = vpop.eup %13266  ;;  %v1586_v45 = vadd.f32 1.0, %v13265_v35 }
 0x265   :  { %v1598_v46 = vadd.f32 1.0, %v13267_v47  ;;  %v13269_v34 = vpop.eup %13268 }
 0x266   :  { %13278 = vrcp.f32 %v1586_v45  ;;  %v1587_v51 = vadd.f32 1.0, %v13269_v34  ;;  %v13271_v41 = vpop.eup %13270 }
 0x267   :  { %13280 = vrcp.f32 %v1598_v46  ;;  %v1599_v48 = vadd.f32 1.0, %v13271_v41  ;;  %v13273_v38 = vpop.eup %13272 }
 0x268   :  { %13282 = vtanh.f32 %v1578_v33  ;;  %v13275_v49 = vpop.eup %13274 }
 0x269   :  { %13284 = vrcp.f32 %v1587_v51  ;;  %v13277_v37 = vpop.eup %13276  ;;  %v1612_v42 = vadd.f32 1.0, %v13275_v49 }
 0x26a   :  { %13286 = vrcp.f32 %v1599_v48  ;;  %v1613_v46 = vadd.f32 1.0, %v13277_v37 }
 0x26b   :  { %13288 = vrcp.f32 %v1612_v42 }
 0x270   :  { %v13279_v40 = vpop.eup %13278 }
 0x271   :  { %v13281_v39 = vpop.eup %13280  ;;  %v1620_v35 = vmul.f32 %v13279_v40, %v13273_v38 }
 0x272   :  { %v13283_v43 = vpop.eup %13282  ;;  %v1618_v44 = vmul.f32 0.0, %v13281_v39 }
 0x273   :  { %v13285_v47 = vpop.eup %13284 }
 0x274   :  { %v15660_v25 = vadd.f32 %v1620_v35, %v1618_v44  ;;  %v1621_v45 = vmul.f32 %v13285_v47, %v13283_v43  ;;  %v1703_v34 = vpop.f32.mrb[4].mxu0  ;;  %v1746_v18 = vpop.f32.mrb[4].mxu1 }
 0x275   :  { %v13287_v33 = vpop.eup %13286  ;;  %v1763_v51 = vadd.f32 %v1703_v34, %v15294_v21  ;;  %v1705_v41 = vpop.f32.mrb[5].mxu0 }
 0x276   :  { %v1748_v48 = vpop.f32.mrb[5].mxu1  ;;  %13290 = vtanh.f32 %v15660_v25  ;;  %v1619_v50 = vmul.f32 0.0, %v13287_v33  ;;  %v1764_v38 = vadd.f32 %v1705_v41, %v15297_v22  ;;  %v1707_v49 = vpop.f32.mrb[6].mxu0 }
 0x277   :  { %v1750_v40 = vpop.f32.mrb[6].mxu1  ;;  %v11461_v39 = vmul.f32 -1.442695, %v1763_v51  ;;  %v1767_v35 = vadd.f32 %v1707_v49, %v15294_v21  ;;  %v1709_v43 = vpop.f32.mrb[7].mxu0  ;;  %13292 = vrcp.f32 %v1613_v46  ;;  %v1766_v41 = vadd.f32 %v1748_v48, %v15307_v13 }
 0x278   :  { %v1752_v37 = vpop.f32.mrb[7].mxu1  ;;  %v15666_v44 = vadd.f32 %v1621_v45, %v1619_v50  ;;  %v11463_v42 = vmul.f32 -1.442695, %v1764_v38  ;;  %v1768_v47 = vadd.f32 %v1709_v43, %v15297_v22  ;;  %v13289_v51 = vpop.eup %13288  ;;  %v1765_v21 = vadd.f32 %v1746_v18, %v15311_v27 }
 0x279   :  { %13294 = vpow2.f32 %v11461_v39  ;;  %v11462_v34 = vmul.f32 -1.442695, %v1767_v35  ;;  %v11465_v50 = vmul.f32 -1.442695, %v1766_v41  ;;  %v1770_v45 = vadd.f32 %v1752_v37, %v15307_v13 }
 0x27a   :  { %13296 = vtanh.f32 %v15666_v44  ;;  %v11464_v33 = vmul.f32 -1.442695, %v1768_v47  ;;  %v1769_v39 = vadd.f32 %v1750_v40, %v15311_v27 }
 0x27b   :  { %13298 = vpow2.f32 %v11463_v42  ;;  %v11466_v48 = vmul.f32 -1.442695, %v1770_v45 }
 0x27c   :  { %13300 = vpow2.f32 %v11462_v34 }
 0x27d   :  { %13302 = vpow2.f32 %v11464_v33 }
 0x27e   :  { %13304 = vtanh.f32 %v1765_v21 }
 0x27f   :  { %13306 = vpow2.f32 %v11465_v50 }
 0x280   :  { %v13291_v49 = vpop.eup %13290 }
 0x281   :  { %v1626_v46 = vmul.f32 %v13291_v49, %v13289_v51  ;;  %v13293_v38 = vpop.eup %13292 }
 0x283   :  { %v13295_v43 = vpop.eup %13294  ;;  %v15675_v18 = vmul.f32 %v15448_v20, %v1626_v46 }
 0x284   :  { %v13297_v35 = vpop.eup %13296  ;;  %v1777_v22 = vadd.f32 1.0, %v13295_v43 }
 0x285   :  { %v13299_v42 = vpop.eup %13298  ;;  %v1627_v47 = vmul.f32 %v13297_v35, %v13293_v38 }
 0x286   :  { %13308 = vrcp.f32 %v1777_v22  ;;  %v1789_v34 = vadd.f32 1.0, %v13299_v42  ;;  %v13301_v33 = vpop.eup %13300 }
 0x287   :  { %13310 = vtanh.f32 %v1769_v39  ;;  %v15678_v37 = vmul.f32 %v15474_v24, %v1627_v47  ;;  %v1778_v41 = vadd.f32 1.0, %v13301_v33  ;;  %v13303_v40 = vpop.eup %13302  ;;  %v20646_v33 = vld [vmem:[#allocation18_spill] sm:$0xff] }
 0x288   :  { %13312 = vrcp.f32 %v1789_v34  ;;  %v1790_v51 = vadd.f32 1.0, %v13303_v40  ;;  %v13305_v22 = vpop.eup %13304  ;;  %v20645_v34 = vld [vmem:[#allocation17_spill] sm:$0xff]  ;;  %v20648_v40 = vld [vmem:[#allocation20_spill] sm:$0xff] }
 0x289   :  { %13314 = vpow2.f32 %v11466_v48  ;;  %v1820_v21 = vpack.c.bf16 %v15678_v37, %v15675_v18  ;;  %v13307_v49 = vpop.eup %13306  ;;  %v20644_v48 = vld [vmem:[#allocation16_spill] sm:$0xff] }
 0x28a   :  { %13316 = vrcp.f32 %v1778_v41  ;;  %v20647_v41 = vld [vmem:[#allocation19_spill] sm:$0xff] }
 0x28b   :  { %1854 = vmatmul.mubr.bf16.vlgmr.msra.gmra.mrb[36].mxu0 %v1820_v21  ;;  %1897 = vmatmul.mubr.bf16.vlgmr.msra.gmra.mrb[36].mxu1 %v1820_v21  ;;  %13318 = vrcp.f32 %v1790_v51  ;;  %v20650_v21 = vld [vmem:[#allocation22_spill] sm:$0xff] }
 0x28c   :  { %1908 = vmatpush1.bf16.msra.mxu0 %v15067_v52  ;;  %1951 = vmatpush1.bf16.msra.mxu1 %v15072_v53  ;;  %v1642_v52 = vmul.f32 %v15448_v20, %v15317_v10 }
 0x28d   :  { %1909 = vmatprep.subr.bf16.mxu0 %v15083_v54  ;;  %1952 = vmatprep.subr.bf16.mxu1 %v15088_v55  ;;  %v1803_v55 = vadd.f32 1.0, %v13307_v49  ;;  %v20652_v49 = vld [vmem:[#allocation24_spill] sm:$0xff] }
 0x28e   :  { %1939 = vmatprep.mubr.bf16.mxu0 %v20604_v16  ;;  %1982 = vmatprep.mubr.bf16.mxu1 %v20604_v16 }
 0x28f   :  { %13320 = vrcp.f32 %v1803_v55  ;;  %v20661_v55 = vld [vmem:[#allocation39_spill] sm:$0xff] }
 0x290   :  { %v13309_v50 = vpop.eup %13308  ;;  %1910 = vmatpush1.bf16.msra.mxu0 %v15093_v56  ;;  %1953 = vmatpush1.bf16.msra.mxu1 %v15098_v57  ;;  %v15696_v56 = vpop.permute.xlu1 %2053  ;;  %v1643_v57 = vmul.f32 %v15474_v24, %v15320_v32 }
 0x291   :  { %v13311_v45 = vpop.eup %13310  ;;  %1911 = vmatprep.subr.bf16.mxu0 %v15109_v58  ;;  %1954 = vmatprep.subr.bf16.mxu1 %v15114_v59  ;;  %v1811_v53 = vmul.f32 %v13309_v50, %v13305_v22  ;;  %v20651_v22 = vld [vmem:[#allocation23_spill] sm:$0xff] }
 0x292   :  { %v13313_v54 = vpop.eup %13312 }
 0x293   :  { %v13315_v46 = vpop.eup %13314  ;;  %v1809_v38 = vmul.f32 %v13313_v54, %v1642_v52  ;;  %v20656_v54 = vld [vmem:[#allocation34_spill] sm:$0xff] }
 0x294   :  { %v13317_v43 = vpop.eup %13316  ;;  %1912 = vmatpush1.bf16.msra.mxu0 %v15119_v60  ;;  %1955 = vmatpush1.bf16.msra.mxu1 %v15124_v61  ;;  %v1804_v39 = vadd.f32 1.0, %v13315_v46  ;;  %v20662_v46 = vld [vmem:[#allocation40_spill] sm:$0xff] }
 0x295   :  { %v1813_v10 = vadd.f32 %v1811_v53, %v1809_v38  ;;  %1913 = vmatprep.subr.bf16.mxu0 %v15133_v62  ;;  %1956 = vmatprep.subr.bf16.mxu1 %v15138_v63  ;;  %v1812_v58 = vmul.f32 %v13317_v43, %v13311_v45  ;;  %v13319_v59 = vpop.eup %13318  ;;  %v15707_v62 = vpop.permute.xlu1 %2058  ;;  %v20653_v45 = vld [vmem:[#allocation25_spill] sm:$0xff]  ;;  %v20666_v43 = vld [vmem:[#allocation44_spill] sm:$0xff] }
 0x296   :  { %v1810_v42 = vmul.f32 %v13319_v59, %v1643_v57  ;;  %v20655_v53 = vld [vmem:[#allocation33_spill] sm:$0xff]  ;;  %v20669_v59 = vld [vmem:[#allocation47_spill] sm:$0xff] }
 0x297   :  { %13322 = vtanh.f32 %v1813_v10  ;;  %v2065_v35 = vsub.f32 %v1813_v10, %v1642_v52 }
 0x298   :  { %1914 = vmatpush1.bf16.msra.mxu0 %v15143_v1  ;;  %1957 = vmatpush1.bf16.msra.mxu1 %v15148_v2  ;;  %v1814_v61 = vadd.f32 %v1812_v58, %v1810_v42  ;;  %13324 = vrcp.f32 %v1804_v39  ;;  %v20668_v58 = vld [vmem:[#allocation46_spill] sm:$0xff]  ;;  %v20671_v42 = vld [vmem:[#allocation49_spill] sm:$0xff] }
 0x299   :  { %v2067_v60 = vmul.f32 %v2065_v35, %v15696_v56  ;;  %1915 = vmatprep.subr.bf16.mxu0 %v15157_v3  ;;  %1958 = vmatprep.subr.bf16.mxu1 %v15162_v4  ;;  %v13321_v3 = vpop.eup %13320  ;;  %v20643_v4 = vld [vmem:[#allocation15_spill] sm:$0xff]  ;;  %v20670_v35 = vld [vmem:[#allocation48_spill] sm:$0xff] }
 0x29a   :  { %13326 = vtanh.f32 %v1814_v61  ;;  %v2066_v32 = vsub.f32 %v1814_v61, %v1643_v57  ;;  %v20672_v61 = vld [vmem:[#allocation50_spill] sm:$0xff] }
 0x29b   :  { %v15709_v63 = vadd.f32 %v2067_v60, %v1642_v52  ;;  %v20654_v52 = vld [vmem:[#allocation26_spill] sm:$0xff] }
 0x29c   :  { %1916 = vmatpush1.bf16.msra.mxu0 %v15167_v5  ;;  %1959 = vmatpush1.bf16.msra.mxu1 %v15172_v6  ;;  %v2068_v1 = vmul.f32 %v2066_v32, %v15707_v62  ;;  %v20673_v32 = vld [vmem:[#allocation51_spill] sm:$0xff] }
 0x29d   :  { %1917 = vmatprep.subr.bf16.mxu0 %v15181_v7  ;;  %1960 = vmatprep.subr.bf16.mxu1 %v15186_v8  ;;  %v20649_v8 = vld [vmem:[#allocation21_spill] sm:$0xff] }
 0x29e   :  { %v15716_v2 = vadd.f32 %v2068_v1, %v1643_v57  ;;  %v20667_v57 = vld [vmem:[#allocation45_spill] sm:$0xff] }
 0x2a0   :  { %1918 = vmatpush1.bf16.msra.mxu0 %v20643_v4  ;;  %1961 = vmatpush1.bf16.msra.mxu1 %v20644_v48  ;;  %v20675_v4 = vld [vmem:[#allocation53_spill] sm:$0xff] }
 0x2a1   :  { %v13323_v47 = vpop.eup %13322  ;;  %1919 = vmatprep.subr.bf16.mxu0 %v20645_v34  ;;  %1962 = vmatprep.subr.bf16.mxu1 %v20646_v33  ;;  %v20677_v34 = vld [vmem:[#allocation55_spill] sm:$0xff] }
 0x2a2   :  { %v1817_v5 = vmul.f32 %v13323_v47, %v13321_v3  ;;  %v13325_v6 = vpop.eup %13324  ;;  %v20674_v3 = vld [vmem:[#allocation52_spill] sm:$0xff]  ;;  %v20676_v47 = vld [vmem:[#allocation54_spill] sm:$0xff] }
 0x2a4   :  { %1920 = vmatpush1.bf16.msra.mxu0 %v20647_v41  ;;  %1963 = vmatpush1.bf16.msra.mxu1 %v20648_v40  ;;  %v13327_v7 = vpop.eup %13326  ;;  %v2049_v10 = vsub.f32 %v1817_v5, %v15505_v23  ;;  %v20681_v41 = vld [vmem:[#allocation59_spill] sm:$0xff]  ;;  %v20682_v40 = vld [vmem:[#allocation60_spill] sm:$0xff] }
 0x2a5   :  { %1921 = vmatprep.subr.bf16.mxu0 %v20649_v8  ;;  %1964 = vmatprep.subr.bf16.mxu1 %v20650_v21  ;;  %v1818_v51 = vmul.f32 %v13327_v7, %v13325_v6  ;;  %v20679_v6 = vld [vmem:[#allocation57_spill] sm:$0xff]  ;;  %v20684_v7 = vld [vmem:[#allocation62_spill] sm:$0xff]  ;;  %v20685_v8 = vld [vmem:[#allocation63_spill] sm:$0xff] }
 0x2a6   :  { %v2061_v60 = vmul.f32 %v15696_v56, %v2049_v10  ;;  %v20686_v21 = vld [vmem:[#allocation64_spill] sm:$0xff] }
 0x2a7   :  { %v1819_v50 = vpack.c.bf16 %v1818_v51, %v1817_v5  ;;  %v2050_v38 = vsub.f32 %v1818_v51, %v15489_v12  ;;  %v20678_v5 = vld [vmem:[#allocation56_spill] sm:$0xff]  ;;  %v20687_v51 = vld [vmem:[#allocation65_spill] sm:$0xff] }
 0x2a8   :  { %1922 = vmatpush1.bf16.msra.mxu0 %v20651_v22  ;;  %1965 = vmatpush1.bf16.msra.mxu1 %v20652_v49  ;;  %v15768_v48 = vadd.f32 %v2061_v60, %v15505_v23  ;;  %v20683_v23 = vld [vmem:[#allocation61_spill] sm:$0xff]  ;;  %v20688_v22 = vld [vmem:[#allocation66_spill] sm:$0xff]  ;;  %v20689_v49 = vld [vmem:[#allocation67_spill] sm:$0xff] }
 0x2a9   :  { %2098 = vmatprep.subr.bf16.mxu0 %v20653_v45  ;;  %2141 = vmatprep.subr.bf16.mxu1 %v20654_v52  ;;  %v2062_v39 = vmul.f32 %v15707_v62, %v2050_v38  ;;  %v15801_v45 = vld [vmem:[%s20221_s7 + $0x8c] ss:$16 sps:$4 sm:$0xff]   ;;  %v15831_v52 = vld [vmem:[%s20221_s7 + $0xa0] ss:$16 sps:$4 sm:$0xff]  }
 0x2ab   :  { %1940 = vmatmul.mubr.bf16.vlgmr.msra.gmra.mrb[36].mxu0 %v1819_v50  ;;  %1983 = vmatmul.mubr.bf16.vlgmr.msra.gmra.mrb[36].mxu1 %v1819_v50  ;;  %v15763_v1 = vadd.f32 %v2062_v39, %v15489_v12  ;;  %v20680_v12 = vld [vmem:[#allocation58_spill] sm:$0xff]  ;;  %v15795_v50 = vld [vmem:[%s20221_s7 + $0x84] ss:$16 sps:$4 sm:$0xff]  }
 0x2ac   :  { %2099 = vmatpush1.bf16.msra.mxu0 %v15329_v0  ;;  %2142 = vmatpush1.bf16.msra.mxu1 %v15335_v9  ;;  %v20657_v0 = vld [vmem:[#allocation35_spill] sm:$0xff]  ;;  %v20658_v9 = vld [vmem:[#allocation36_spill] sm:$0xff] }
 0x2ad   :  { %2100 = vmatprep.subr.bf16.mxu0 %v15341_v26  ;;  %2143 = vmatprep.subr.bf16.mxu1 %v15347_v29  ;;  %v20659_v26 = vld [vmem:[#allocation37_spill] sm:$0xff]  ;;  %v20660_v29 = vld [vmem:[#allocation38_spill] sm:$0xff]  ;;  %v2097_v33 = vpack.c.bf16 %v15763_v1, %v15768_v48 }
 0x2ae   :  { %2130 = vmatprep.mubr.bf16.mxu0 %v20604_v16  ;;  %2173 = vmatprep.mubr.bf16.mxu1 %v20604_v16 }
 0x2b0   :  { %2101 = vmatpush1.bf16.msra.mxu0 %v15355_v17  ;;  %2144 = vmatpush1.bf16.msra.mxu1 %v15361_v14  ;;  %v20663_v17 = vld [vmem:[#allocation41_spill] sm:$0xff]  ;;  %v20664_v14 = vld [vmem:[#allocation42_spill] sm:$0xff] }
 0x2b1   :  { %2102 = vmatprep.subr.bf16.mxu0 %v15367_v19  ;;  %2145 = vmatprep.subr.bf16.mxu1 %v20655_v53  ;;  %v20665_v19 = vld [vmem:[#allocation43_spill] sm:$0xff]  ;;  %v15837_v53 = vld [vmem:[%s20221_s7 + $0xa8] ss:$16 sps:$4 sm:$0xff]  }
 0x2b4   :  { %2103 = vmatpush1.bf16.msra.mxu0 %v20656_v54  ;;  %2146 = vmatpush1.bf16.msra.mxu1 %v20657_v0  ;;  %v15843_v54 = vld [vmem:[%s20221_s7 + $0xc4] ss:$16 sps:$4 sm:$0xff]   ;;  %v15849_v0 = vld [vmem:[%s20221_s7 + $0xcc] ss:$16 sps:$4 sm:$0xff]  }
 0x2b5   :  { %2104 = vmatprep.subr.bf16.mxu0 %v20658_v9  ;;  %2147 = vmatprep.subr.bf16.mxu1 %v20659_v26  ;;  %v15855_v9 = vld [vmem:[%s20221_s7 + $0xc0] ss:$16 sps:$4 sm:$0xff]   ;;  %v15861_v26 = vld [vmem:[%s20221_s7 + $0xc8] ss:$16 sps:$4 sm:$0xff]  }
 0x2b8   :  { %2105 = vmatpush1.bf16.msra.mxu0 %v20660_v29  ;;  %2148 = vmatpush1.bf16.msra.mxu1 %v20661_v55  ;;  %v15867_v29 = vld [vmem:[%s20221_s7 + $0xe4] ss:$16 sps:$4 sm:$0xff]   ;;  %v15873_v55 = vld [vmem:[%s20221_s7 + $0xec] ss:$16 sps:$4 sm:$0xff]  }
 0x2b9   :  { %2106 = vmatprep.subr.bf16.mxu0 %v20662_v46  ;;  %2149 = vmatprep.subr.bf16.mxu1 %v20663_v17  ;;  %v15879_v46 = vld [vmem:[%s20221_s7 + $0xe0] ss:$16 sps:$4 sm:$0xff]   ;;  %v15885_v17 = vld [vmem:[%s20221_s7 + $0xe8] ss:$16 sps:$4 sm:$0xff]  }
 0x2bc   :  { %2107 = vmatpush1.bf16.msra.mxu0 %v20664_v14  ;;  %2150 = vmatpush1.bf16.msra.mxu1 %v20665_v19  ;;  %v20690_v14 = vld [vmem:[#allocation13_spill] sm:$0xff]  ;;  %v20691_v19 = vld [vmem:[#allocation14_spill] sm:$0xff] }
 0x2bd   :  { %2108 = vmatprep.subr.bf16.mxu0 %v20666_v43  ;;  %2151 = vmatprep.subr.bf16.mxu1 %v20667_v57  ;;  %v20692_v57 = vld [vmem:[#allocation68_spill] sm:$0xff] }
 0x2c0   :  { %2109 = vmatpush1.bf16.msra.mxu0 %v20668_v58  ;;  %2152 = vmatpush1.bf16.msra.mxu1 %v20669_v59 }
 0x2c1   :  { %2110 = vmatprep.subr.bf16.mxu0 %v20670_v35  ;;  %2153 = vmatprep.subr.bf16.mxu1 %v20671_v42 }
 0x2c4   :  { %2111 = vmatpush1.bf16.msra.mxu0 %v20672_v61  ;;  %2154 = vmatpush1.bf16.msra.mxu1 %v20673_v32 }
 0x2c5   :  { %2112 = vmatprep.subr.bf16.mxu0 %v20674_v3  ;;  %2155 = vmatprep.subr.bf16.mxu1 %v20675_v4 }
 0x2c8   :  { %2113 = vmatpush1.bf16.msra.mxu0 %v20676_v47  ;;  %2156 = vmatpush1.bf16.msra.mxu1 %v20677_v34 }
 0x2c9   :  { %2250 = vmatprep.subr.bf16.mxu0 %v20678_v5  ;;  %2293 = vmatprep.subr.bf16.mxu1 %v20679_v6 }
 0x2cb   :  { %2131 = vmatmul.mubr.bf16.vlgmr.msra.gmra.mrb[8].mxu0 %v2097_v33  ;;  %2174 = vmatmul.mubr.bf16.vlgmr.msra.gmra.mrb[8].mxu1 %v2097_v33 }
 0x2cc   :  { %2251 = vmatpush1.bf16.msra.mxu0 %v20680_v12  ;;  %2294 = vmatpush1.bf16.msra.mxu1 %v20681_v41  ;;  %v20693_v12 = vld [vmem:[#allocation70_spill] sm:$0xff] }
 0x2cd   :  { %2252 = vmatprep.subr.bf16.mxu0 %v20682_v40  ;;  %2295 = vmatprep.subr.bf16.mxu1 %v20683_v23 }
 0x2ce   :  { %2282 = vmatprep.mubr.bf16.mxu0 %v20604_v16  ;;  %2325 = vmatprep.mubr.bf16.mxu1 %v20604_v16 }
 0x2d0   :  { %2253 = vmatpush1.bf16.msra.mxu0 %v20684_v7  ;;  %2296 = vmatpush1.bf16.msra.mxu1 %v20685_v8 }
 0x2d1   :  { %2254 = vmatprep.subr.bf16.mxu0 %v20686_v21  ;;  %2297 = vmatprep.subr.bf16.mxu1 %v20687_v51 }
 0x2d4   :  { %2255 = vmatpush1.bf16.msra.mxu0 %v20688_v22  ;;  %2298 = vmatpush1.bf16.msra.mxu1 %v20689_v49 }
 0x2d5   :  { %2256 = vmatprep.subr.bf16.mxu0 %v15598_v28  ;;  %2299 = vmatprep.subr.bf16.mxu1 %v15604_v11  ;;  %v15807_v11 = vld [vmem:[%s20221_s7 + $0x80] ss:$16 sps:$4 sm:$0xff]   ;;  %v15825_v28 = vld [vmem:[%s20221_s7 + $0xac] ss:$16 sps:$4 sm:$0xff]  }
 0x2d8   :  { %2257 = vmatpush1.bf16.msra.mxu0 %v15610_v15  ;;  %2300 = vmatpush1.bf16.msra.mxu1 %v15616_v30  ;;  %v15813_v30 = vld [vmem:[%s20221_s7 + $0x88] ss:$16 sps:$4 sm:$0xff]   ;;  %v15819_v15 = vld [vmem:[%s20221_s7 + $0xa4] ss:$16 sps:$4 sm:$0xff]  }
 0x2d9   :  { %2258 = vmatprep.subr.bf16.mxu0 %v15795_v50  ;;  %2301 = vmatprep.subr.bf16.mxu1 %v15801_v45 }
 0x2dc   :  { %2259 = vmatpush1.bf16.msra.mxu0 %v15807_v11  ;;  %2302 = vmatpush1.bf16.msra.mxu1 %v15813_v30 }
 0x2dd   :  { %2260 = vmatprep.subr.bf16.mxu0 %v15819_v15  ;;  %2303 = vmatprep.subr.bf16.mxu1 %v15825_v28 }
 0x2e0   :  { %2261 = vmatpush1.bf16.msra.mxu0 %v15831_v52  ;;  %2304 = vmatpush1.bf16.msra.mxu1 %v15837_v53 }
 0x2e1   :  { %2262 = vmatprep.subr.bf16.mxu0 %v15843_v54  ;;  %2305 = vmatprep.subr.bf16.mxu1 %v15849_v0 }
 0x2e4   :  { %2263 = vmatpush1.bf16.msra.mxu0 %v15855_v9  ;;  %2306 = vmatpush1.bf16.msra.mxu1 %v15861_v26 }
 0x2e5   :  { %2264 = vmatprep.subr.bf16.mxu0 %v15867_v29  ;;  %2307 = vmatprep.subr.bf16.mxu1 %v15873_v55 }
 0x2e8   :  { %2265 = vmatpush1.bf16.msra.mxu0 %v15879_v46  ;;  %2308 = vmatpush1.bf16.msra.mxu1 %v15885_v17 }
 0x2e9   :  { %2336 = vmatprep.subr.bf16.mxu0 %v20690_v14  ;;  %2379 = vmatprep.subr.bf16.mxu1 %v20691_v19 }
 0x37e   :  { %v1941_v38 = vpop.f32.mrb[36].mxu0  ;;  %v1984_v43 = vpop.f32.mrb[36].mxu1 }
 0x37f   :  { %v1993_v10 = vadd.f32 %v1941_v38, %v20692_v57  ;;  %v1943_v58 = vpop.f32.mrb[37].mxu0  ;;  %v1986_v59 = vpop.f32.mrb[37].mxu1  ;;  %v1995_v41 = vadd.f32 %v1984_v43, %v20693_v12 }
 0x380   :  { %v1994_v39 = vadd.f32 %v1943_v58, %v15644_v36  ;;  %v1945_v35 = vpop.f32.mrb[38].mxu0  ;;  %v1988_v42 = vpop.f32.mrb[38].mxu1  ;;  %v1996_v5 = vadd.f32 %v1986_v59, %v15650_v31 }
 0x381   :  { %v11467_v60 = vmul.f32 -1.442695, %v1993_v10  ;;  %v1997_v61 = vadd.f32 %v1945_v35, %v20692_v57  ;;  %v1947_v32 = vpop.f32.mrb[39].mxu0  ;;  %v1990_v3 = vpop.f32.mrb[39].mxu1  ;;  %v1999_v51 = vadd.f32 %v1988_v42, %v20693_v12 }
 0x382   :  { %v11469_v4 = vmul.f32 -1.442695, %v1994_v39  ;;  %v1998_v47 = vadd.f32 %v1947_v32, %v15644_v36  ;;  %v2000_v6 = vadd.f32 %v1990_v3, %v15650_v31  ;;  %v11471_v40 = vmul.f32 -1.442695, %v1996_v5 }
 0x383   :  { %13328 = vpow2.f32 %v11467_v60  ;;  %v11468_v34 = vmul.f32 -1.442695, %v1997_v61  ;;  %v1650_v39 = vmul.f32 %v15448_v20, %v15660_v25 }
 0x384   :  { %13330 = vpow2.f32 %v11469_v4  ;;  %v11470_v33 = vmul.f32 -1.442695, %v1998_v47  ;;  %v11472_v23 = vmul.f32 -1.442695, %v2000_v6  ;;  %v1651_v4 = vmul.f32 %v15474_v24, %v15666_v44 }
 0x385   :  { %13332 = vpow2.f32 %v11468_v34 }
 0x386   :  { %13334 = vpow2.f32 %v11470_v33 }
 0x387   :  { %13336 = vtanh.f32 %v1995_v41 }
 0x388   :  { %13338 = vpow2.f32 %v11471_v40  ;;  %v20694_v40 = vld [vmem:[#allocation29_spill] sm:$0xff] }
 0x389   :  { %13340 = vpow2.f32 %v11472_v23 }
 0x38d   :  { %v13329_v7 = vpop.eup %13328 }
 0x38e   :  { %v13331_v8 = vpop.eup %13330  ;;  %v2007_v21 = vadd.f32 1.0, %v13329_v7 }
 0x38f   :  { %v2019_v22 = vadd.f32 1.0, %v13331_v8  ;;  %v13333_v49 = vpop.eup %13332 }
 0x390   :  { %13342 = vrcp.f32 %v2007_v21  ;;  %v2008_v14 = vadd.f32 1.0, %v13333_v49  ;;  %v13335_v19 = vpop.eup %13334  ;;  %v20695_v21 = vld [vmem:[#allocation30_spill] sm:$0xff] }
 0x391   :  { %13344 = vrcp.f32 %v2019_v22  ;;  %v2020_v38 = vadd.f32 1.0, %v13335_v19  ;;  %v13337_v43 = vpop.eup %13336 }
 0x392   :  { %13346 = vtanh.f32 %v1999_v51  ;;  %v13339_v10 = vpop.eup %13338 }
 0x393   :  { %13348 = vrcp.f32 %v2008_v14  ;;  %v13341_v58 = vpop.eup %13340  ;;  %v2033_v60 = vadd.f32 1.0, %v13339_v10 }
 0x394   :  { %13350 = vrcp.f32 %v2020_v38  ;;  %v2034_v33 = vadd.f32 1.0, %v13341_v58 }
 0x395   :  { %13352 = vrcp.f32 %v2033_v60 }
 0x39a   :  { %v13343_v59 = vpop.eup %13342 }
 0x39b   :  { %v13345_v35 = vpop.eup %13344  ;;  %v2041_v42 = vmul.f32 %v13343_v59, %v13337_v43 }
 0x39c   :  { %v13347_v61 = vpop.eup %13346  ;;  %v2039_v32 = vmul.f32 %v13345_v35, %v1650_v39 }
 0x39d   :  { %v13349_v3 = vpop.eup %13348 }
 0x39e   :  { %v2043_v47 = vadd.f32 %v2041_v42, %v2039_v32  ;;  %v2042_v34 = vmul.f32 %v13349_v3, %v13347_v61  ;;  %v2132_v5 = vpop.f32.mrb[8].mxu0  ;;  %v2175_v6 = vpop.f32.mrb[8].mxu1 }
 0x39f   :  { %v13351_v41 = vpop.eup %13350  ;;  %v2192_v23 = vadd.f32 %v2132_v5, %v20694_v40  ;;  %v2134_v7 = vpop.f32.mrb[9].mxu0 }
 0x3a0   :  { %v2177_v20 = vpop.f32.mrb[9].mxu1  ;;  %13354 = vtanh.f32 %v2043_v47  ;;  %v2077_v25 = vsub.f32 %v2043_v47, %v1650_v39  ;;  %v2040_v8 = vmul.f32 %v13351_v41, %v1651_v4  ;;  %v2193_v51 = vadd.f32 %v2134_v7, %v20695_v21  ;;  %v2136_v22 = vpop.f32.mrb[10].mxu0 }
 0x3a1   :  { %v2179_v49 = vpop.f32.mrb[10].mxu1  ;;  %v11475_v14 = vmul.f32 -1.442695, %v2192_v23  ;;  %v2196_v24 = vadd.f32 %v2136_v22, %v20694_v40  ;;  %v2138_v44 = vpop.f32.mrb[11].mxu0  ;;  %13356 = vrcp.f32 %v2034_v33  ;;  %v2195_v32 = vadd.f32 %v2177_v20, %v15307_v13 }
 0x3a2   :  { %v2181_v19 = vpop.f32.mrb[11].mxu1  ;;  %v2079_v38 = vmul.f32 %v2077_v25, %v15696_v56  ;;  %v2044_v43 = vadd.f32 %v2042_v34, %v2040_v8  ;;  %v11477_v10 = vmul.f32 -1.442695, %v2193_v51  ;;  %v2197_v59 = vadd.f32 %v2138_v44, %v20695_v21  ;;  %v13353_v47 = vpop.eup %13352 }
 0x3a3   :  { %13358 = vpow2.f32 %v11475_v14  ;;  %v11476_v58 = vmul.f32 -1.442695, %v2196_v24  ;;  %v2194_v33 = vadd.f32 %v2175_v6, %v15311_v27  ;;  %v11479_v41 = vmul.f32 -1.442695, %v2195_v32 }
 0x3a4   :  { %13360 = vtanh.f32 %v2044_v43  ;;  %v2078_v35 = vsub.f32 %v2044_v43, %v1651_v4  ;;  %v15907_v42 = vadd.f32 %v2079_v38, %v1650_v39  ;;  %v11478_v60 = vmul.f32 -1.442695, %v2197_v59 }
 0x3a5   :  { %13362 = vpow2.f32 %v11477_v10  ;;  %v2199_v23 = vadd.f32 %v2181_v19, %v15307_v13  ;;  %v2198_v25 = vadd.f32 %v2179_v49, %v15311_v27 }
 0x3a6   :  { %v2080_v61 = vmul.f32 %v2078_v35, %v15707_v62  ;;  %13364 = vpow2.f32 %v11476_v58 }
 0x3a7   :  { %13366 = vpow2.f32 %v11478_v60  ;;  %v11480_v14 = vmul.f32 -1.442695, %v2199_v23 }
 0x3a8   :  { %v15911_v3 = vadd.f32 %v2080_v61, %v1651_v4  ;;  %13368 = vtanh.f32 %v2194_v33 }
 0x3a9   :  { %13370 = vpow2.f32 %v11479_v41 }
 0x3aa   :  { %v13355_v34 = vpop.eup %13354 }
 0x3ab   :  { %v2047_v5 = vmul.f32 %v13355_v34, %v13353_v47  ;;  %v13357_v39 = vpop.eup %13356  ;;  %v15943_v47 = vld [vmem:[%s20220_s6 + $0x24] ss:$16 sps:$4 sm:$0xff]   ;;  %v15949_v34 = vld [vmem:[%s20220_s6 + $0x2c] ss:$16 sps:$4 sm:$0xff]  }
 0x3ad   :  { %v13359_v7 = vpop.eup %13358  ;;  %v2071_v8 = vsub.f32 %v2047_v5, %v15675_v18 }
 0x3ae   :  { %v13361_v51 = vpop.eup %13360  ;;  %v2206_v20 = vadd.f32 1.0, %v13359_v7  ;;  %v15958_v7 = vld [vmem:[%s20220_s6 + $0x20] ss:$16 sps:$4 sm:$0xff]  }
 0x3af   :  { %v13363_v4 = vpop.eup %13362  ;;  %v2048_v22 = vmul.f32 %v13361_v51, %v13357_v39  ;;  %v2073_v19 = vmul.f32 %v2071_v8, %v15696_v56 }
 0x3b0   :  { %13372 = vrcp.f32 %v2206_v20  ;;  %v2218_v24 = vadd.f32 1.0, %v13363_v4  ;;  %v13365_v6 = vpop.eup %13364  ;;  %v15970_v20 = vld [vmem:[%s20220_s6 + $0x44] ss:$16 sps:$4 sm:$0xff]   ;;  %v15976_v4 = vld [vmem:[%s20220_s6 + $0x4c] ss:$16 sps:$4 sm:$0xff]  }
 0x3b1   :  { %13374 = vtanh.f32 %v2198_v25  ;;  %v2072_v44 = vsub.f32 %v2048_v22, %v15678_v37  ;;  %v2207_v38 = vadd.f32 1.0, %v13365_v6  ;;  %v13367_v49 = vpop.eup %13366  ;;  %v15921_v58 = vadd.f32 %v2073_v19, %v15675_v18  ;;  %v15937_v18 = vld [vmem:[%s20220_s6 + $0x8] ss:$16 sps:$4 sm:$0xff]   ;;  %v15986_v19 = vld [vmem:[%s20220_s6 + $0x40] ss:$16 sps:$4 sm:$0xff]  }
 0x3b2   :  { %13376 = vrcp.f32 %v2218_v24  ;;  %v2219_v10 = vadd.f32 1.0, %v13367_v49  ;;  %v13369_v60 = vpop.eup %13368  ;;  %v15964_v25 = vld [vmem:[%s20220_s6 + $0x28] ss:$16 sps:$4 sm:$0xff]  }
 0x3b3   :  { %13378 = vpow2.f32 %v11480_v14  ;;  %v2074_v43 = vmul.f32 %v2072_v44, %v15707_v62  ;;  %v13371_v56 = vpop.eup %13370  ;;  %v15931_v62 = vld [vmem:[%s20220_s6] ss:$16 sps:$4 sm:$0xff]   ;;  %v15981_v44 = vpop.permute.xlu0 %2482 }
 0x3b4   :  { %13380 = vrcp.f32 %v2207_v38  ;;  %v2232_v5 = vadd.f32 1.0, %v13371_v56  ;;  %v15992_v38 = vld [vmem:[%s20220_s6 + $0x48] ss:$16 sps:$4 sm:$0xff]  }
 0x3b5   :  { %v15924_v59 = vadd.f32 %v2074_v43, %v15678_v37  ;;  %13382 = vrcp.f32 %v2219_v10  ;;  %v15999_v10 = vld [vmem:[%s20220_s6 + $0x64] ss:$16 sps:$4 sm:$0xff]  }
 0x3b6   :  { %13384 = vrcp.f32 %v2232_v5  ;;  %v16036_v5 = vld [vmem:[%s20220_s6 + $0x8c] ss:$16 sps:$4 sm:$0xff]  }
 0x3b7   :  { %v2249_v35 = vpack.c.bf16 %v15924_v59, %v15921_v58 }
 0x3b9   :  { %2283 = vmatmul.mubr.bf16.vlgmr.msra.gmra.mrb[40].mxu0 %v2249_v35  ;;  %2326 = vmatmul.mubr.bf16.vlgmr.msra.gmra.mrb[40].mxu1 %v2249_v35  ;;  %v16005_v35 = vld [vmem:[%s20220_s6 + $0x6c] ss:$16 sps:$4 sm:$0xff]  }
 0x3ba   :  { %v13373_v61 = vpop.eup %13372  ;;  %2337 = vmatpush1.bf16.msra.mxu0 %v15931_v62  ;;  %2380 = vmatpush1.bf16.msra.mxu1 %v15937_v18 }
 0x3bb   :  { %v13375_v37 = vpop.eup %13374  ;;  %v2240_v32 = vmul.f32 %v13373_v61, %v13369_v60  ;;  %2338 = vmatprep.subr.bf16.mxu0 %v15943_v47  ;;  %2381 = vmatprep.subr.bf16.mxu1 %v15949_v34  ;;  %v16012_v61 = vpop.permute.xlu1 %2487 }
 0x3bc   :  { %v13377_v33 = vpop.eup %13376  ;;  %2368 = vmatprep.mubr.bf16.mxu0 %v20604_v16  ;;  %2411 = vmatprep.mubr.bf16.mxu1 %v20604_v16 }
 0x3bd   :  { %v13379_v41 = vpop.eup %13378  ;;  %v2238_v23 = vmul.f32 %v13377_v33, %v15709_v63 }
 0x3be   :  { %v13381_v39 = vpop.eup %13380  ;;  %2339 = vmatpush1.bf16.msra.mxu0 %v15958_v7  ;;  %2382 = vmatpush1.bf16.msra.mxu1 %v15964_v25  ;;  %v2233_v14 = vadd.f32 1.0, %v13379_v41 }
 0x3bf   :  { %v2242_v8 = vadd.f32 %v2240_v32, %v2238_v23  ;;  %v2241_v51 = vmul.f32 %v13381_v39, %v13375_v37  ;;  %2340 = vmatprep.subr.bf16.mxu0 %v15970_v20  ;;  %2383 = vmatprep.subr.bf16.mxu1 %v15976_v4  ;;  %v13383_v22 = vpop.eup %13382  ;;  %v16017_v37 = vld [vmem:[%s20220_s6 + $0x60] ss:$16 sps:$4 sm:$0xff]   ;;  %v16023_v32 = vld [vmem:[%s20220_s6 + $0x68] ss:$16 sps:$4 sm:$0xff]  }
 0x3c0   :  { %v2239_v6 = vmul.f32 %v13383_v22, %v15716_v2  ;;  %v13385_v23 = vpop.eup %13384  ;;  %v16045_v39 = vld [vmem:[%s20220_s6 + $0x80] ss:$16 sps:$4 sm:$0xff]   ;;  %v16063_v22 = vld [vmem:[%s20220_s6 + $0xac] ss:$16 sps:$4 sm:$0xff]  }
 0x3c1   :  { %13386 = vtanh.f32 %v2242_v8  ;;  %v2494_v24 = vsub.f32 %v2242_v8, %v15709_v63  ;;  %v16051_v8 = vld [vmem:[%s20220_s6 + $0x88] ss:$16 sps:$4 sm:$0xff]  }
 0x3c2   :  { %2341 = vmatpush1.bf16.msra.mxu0 %v15986_v19  ;;  %2384 = vmatpush1.bf16.msra.mxu1 %v15992_v38  ;;  %v2243_v43 = vadd.f32 %v2241_v51, %v2239_v6  ;;  %13388 = vrcp.f32 %v2233_v14  ;;  %v16071_v6 = vld [vmem:[%s20220_s6 + $0xa0] ss:$16 sps:$4 sm:$0xff]  }
 0x3c3   :  { %v2496_v49 = vmul.f32 %v2494_v24, %v15981_v44  ;;  %2342 = vmatprep.subr.bf16.mxu0 %v15999_v10  ;;  %2385 = vmatprep.subr.bf16.mxu1 %v16005_v35 }
 0x3c4   :  { %13390 = vtanh.f32 %v2243_v43  ;;  %v2495_v60 = vsub.f32 %v2243_v43, %v15716_v2 }
 0x3c5   :  { %v16010_v56 = vadd.f32 %v2496_v49, %v15709_v63  ;;  %v16030_v63 = vld [vmem:[%s20220_s6 + $0x84] ss:$16 sps:$4 sm:$0xff]   ;;  %v16077_v49 = vld [vmem:[%s20220_s6 + $0xa8] ss:$16 sps:$4 sm:$0xff]  }
 0x3c6   :  { %2343 = vmatpush1.bf16.msra.mxu0 %v16017_v37  ;;  %2386 = vmatpush1.bf16.msra.mxu1 %v16023_v32  ;;  %v2497_v33 = vmul.f32 %v2495_v60, %v16012_v61  ;;  %20696 = vst [vmem:[#allocation15_spill] sm:$0xff] %v16077_v49  ;;  %v16083_v60 = vld [vmem:[%s20220_s6 + $0xc4] ss:$16 sps:$4 sm:$0xff]  }
 0x3c7   :  { %2344 = vmatprep.subr.bf16.mxu0 %v16030_v63  ;;  %2387 = vmatprep.subr.bf16.mxu1 %v16036_v5  ;;  %20697 = vst [vmem:[#allocation16_spill] sm:$0xff] %v16083_v60 }
 0x3c8   :  { %v16040_v41 = vadd.f32 %v2497_v33, %v15716_v2  ;;  %v16057_v2 = vld [vmem:[%s20220_s6 + $0xa4] ss:$16 sps:$4 sm:$0xff]   ;;  %v16089_v33 = vld [vmem:[%s20220_s6 + $0xcc] ss:$16 sps:$4 sm:$0xff]  }
 0x3ca   :  { %2345 = vmatpush1.bf16.msra.mxu0 %v16045_v39  ;;  %2388 = vmatpush1.bf16.msra.mxu1 %v16051_v8 }
 0x3cb   :  { %v13387_v51 = vpop.eup %13386  ;;  %2346 = vmatprep.subr.bf16.mxu0 %v16057_v2  ;;  %2389 = vmatprep.subr.bf16.mxu1 %v16063_v22 }
 0x3cc   :  { %v16066_v14 = vmul.f32 %v13387_v51, %v13385_v23  ;;  %v13389_v24 = vpop.eup %13388  ;;  %v16097_v51 = vld [vmem:[%s20220_s6 + $0xc0] ss:$16 sps:$4 sm:$0xff]  }
 0x3cd   :  { %20698 = vst [vmem:[#allocation17_spill] sm:$0xff] %v16097_v51 }
 0x3ce   :  { %2347 = vmatpush1.bf16.msra.mxu0 %v16071_v6  ;;  %2390 = vmatpush1.bf16.msra.mxu1 %v16077_v49  ;;  %v13391_v43 = vpop.eup %13390 }
 0x3cf   :  { %2348 = vmatprep.subr.bf16.mxu0 %v16083_v60  ;;  %2391 = vmatprep.subr.bf16.mxu1 %v16089_v33  ;;  %v16092_v23 = vmul.f32 %v13391_v43, %v13389_v24  ;;  %v16103_v60 = vld [vmem:[%s20220_s6 + $0xc8] ss:$16 sps:$4 sm:$0xff]   ;;  %v16111_v24 = vld [vmem:[%s20220_s6 + $0xe4] ss:$16 sps:$4 sm:$0xff]   ;;  %v16117_v43 = vld [vmem:[%s20220_s6 + $0xec] ss:$16 sps:$4 sm:$0xff]  }
 0x3d0   :  { %20699 = vst [vmem:[#allocation18_spill] sm:$0xff] %v16103_v60  ;;  %20700 = vst [vmem:[#allocation19_spill] sm:$0xff] %v16111_v24 }
 0x3d1   :  { %v2248_v49 = vpack.c.bf16 %v16092_v23, %v16066_v14  ;;  %20701 = vst [vmem:[#allocation20_spill] sm:$0xff] %v16117_v43 }
 0x3d2   :  { %2349 = vmatpush1.bf16.msra.mxu0 %v16097_v51  ;;  %2392 = vmatpush1.bf16.msra.mxu1 %v16103_v60  ;;  %v16123_v60 = vld [vmem:[%s20220_s6 + $0xe0] ss:$16 sps:$4 sm:$0xff]   ;;  %v16129_v51 = vld [vmem:[%s20220_s6 + $0xe8] ss:$16 sps:$4 sm:$0xff]  }
 0x3d3   :  { %2350 = vmatprep.subr.bf16.mxu0 %v16111_v24  ;;  %2393 = vmatprep.subr.bf16.mxu1 %v16117_v43  ;;  %20702 = vst [vmem:[#allocation21_spill] sm:$0xff] %v16123_v60  ;;  %20703 = vst [vmem:[#allocation22_spill] sm:$0xff] %v16129_v51  ;;  %v16135_v24 = vld [vmem:[%s20218_s4 + $0x4] ss:$16 sps:$4 sm:$0xff]   ;;  %v16141_v43 = vld [vmem:[%s20218_s4 + $0xc] ss:$16 sps:$4 sm:$0xff]  }
 0x3d4   :  { %20704 = vst [vmem:[#allocation23_spill] sm:$0xff] %v16135_v24  ;;  %20705 = vst [vmem:[#allocation24_spill] sm:$0xff] %v16141_v43 }
 0x3d6   :  { %2351 = vmatpush1.bf16.msra.mxu0 %v16123_v60  ;;  %2394 = vmatpush1.bf16.msra.mxu1 %v16129_v51  ;;  %v16147_v51 = vld [vmem:[%s20218_s4] ss:$16 sps:$4 sm:$0xff]  }
 0x3d7   :  { %2527 = vmatprep.subr.bf16.mxu0 %v16135_v24  ;;  %2570 = vmatprep.subr.bf16.mxu1 %v16141_v43  ;;  %20706 = vst [vmem:[#allocation25_spill] sm:$0xff] %v16147_v51  ;;  %v16153_v24 = vld [vmem:[%s20218_s4 + $0x8] ss:$16 sps:$4 sm:$0xff]   ;;  %v16159_v43 = vld [vmem:[%s20218_s4 + $0x24] ss:$16 sps:$4 sm:$0xff]  }
 0x3d8   :  { %20707 = vst [vmem:[#allocation26_spill] sm:$0xff] %v16153_v24  ;;  %20708 = vst [vmem:[#allocation33_spill] sm:$0xff] %v16159_v43 }
 0x3d9   :  { %2369 = vmatmul.mubr.bf16.vlgmr.msra.gmra.mrb[40].mxu0 %v2248_v49  ;;  %2412 = vmatmul.mubr.bf16.vlgmr.msra.gmra.mrb[40].mxu1 %v2248_v49  ;;  %v16165_v49 = vld [vmem:[%s20218_s4 + $0x2c] ss:$16 sps:$4 sm:$0xff]  }
 0x3da   :  { %2528 = vmatpush1.bf16.msra.mxu0 %v16147_v51  ;;  %2571 = vmatpush1.bf16.msra.mxu1 %v16153_v24  ;;  %20709 = vst [vmem:[#allocation34_spill] sm:$0xff] %v16165_v49  ;;  %v16173_v24 = vld [vmem:[%s20218_s4 + $0x20] ss:$16 sps:$4 sm:$0xff]   ;;  %v16191_v51 = vld [vmem:[%s20218_s4 + $0x4c] ss:$16 sps:$4 sm:$0xff]  }
 0x3db   :  { %2529 = vmatprep.subr.bf16.mxu0 %v16159_v43  ;;  %2572 = vmatprep.subr.bf16.mxu1 %v16165_v49  ;;  %20710 = vst [vmem:[#allocation35_spill] sm:$0xff] %v16173_v24  ;;  %v16179_v43 = vld [vmem:[%s20218_s4 + $0x28] ss:$16 sps:$4 sm:$0xff]   ;;  %v16185_v49 = vld [vmem:[%s20218_s4 + $0x44] ss:$16 sps:$4 sm:$0xff]   ;;  %20713 = vst [vmem:[#allocation38_spill] sm:$0xff] %v16191_v51 }
 0x3dc   :  { %2559 = vmatprep.mubr.bf16.mxu0 %v20604_v16  ;;  %2602 = vmatprep.mubr.bf16.mxu1 %v20604_v16  ;;  %20711 = vst [vmem:[#allocation36_spill] sm:$0xff] %v16179_v43  ;;  %20712 = vst [vmem:[#allocation37_spill] sm:$0xff] %v16185_v49 }
 0x3de   :  { %2530 = vmatpush1.bf16.msra.mxu0 %v16173_v24  ;;  %2573 = vmatpush1.bf16.msra.mxu1 %v16179_v43  ;;  %v16197_v24 = vld [vmem:[%s20218_s4 + $0x40] ss:$16 sps:$4 sm:$0xff]   ;;  %v16203_v43 = vld [vmem:[%s20218_s4 + $0x48] ss:$16 sps:$4 sm:$0xff]  }
 0x3df   :  { %2531 = vmatprep.subr.bf16.mxu0 %v16185_v49  ;;  %2574 = vmatprep.subr.bf16.mxu1 %v16191_v51  ;;  %20714 = vst [vmem:[#allocation39_spill] sm:$0xff] %v16197_v24  ;;  %20715 = vst [vmem:[#allocation40_spill] sm:$0xff] %v16203_v43  ;;  %v16209_v49 = vld [vmem:[%s20218_s4 + $0x64] ss:$16 sps:$4 sm:$0xff]   ;;  %v16215_v51 = vld [vmem:[%s20218_s4 + $0x6c] ss:$16 sps:$4 sm:$0xff]  }
 0x3e0   :  { %20716 = vst [vmem:[#allocation41_spill] sm:$0xff] %v16209_v49  ;;  %20717 = vst [vmem:[#allocation42_spill] sm:$0xff] %v16215_v51 }
 0x3e2   :  { %2532 = vmatpush1.bf16.msra.mxu0 %v16197_v24  ;;  %2575 = vmatpush1.bf16.msra.mxu1 %v16203_v43  ;;  %v16221_v24 = vld [vmem:[%s20218_s4 + $0x60] ss:$16 sps:$4 sm:$0xff]   ;;  %v16227_v43 = vld [vmem:[%s20218_s4 + $0x68] ss:$16 sps:$4 sm:$0xff]  }
 0x3e3   :  { %2533 = vmatprep.subr.bf16.mxu0 %v16209_v49  ;;  %2576 = vmatprep.subr.bf16.mxu1 %v16215_v51  ;;  %20718 = vst [vmem:[#allocation43_spill] sm:$0xff] %v16221_v24  ;;  %20719 = vst [vmem:[#allocation44_spill] sm:$0xff] %v16227_v43  ;;  %v16233_v49 = vld [vmem:[%s20218_s4 + $0x84] ss:$16 sps:$4 sm:$0xff]   ;;  %v16239_v51 = vld [vmem:[%s20218_s4 + $0x8c] ss:$16 sps:$4 sm:$0xff]  }
 0x3e4   :  { %20720 = vst [vmem:[#allocation45_spill] sm:$0xff] %v16233_v49  ;;  %20721 = vst [vmem:[#allocation46_spill] sm:$0xff] %v16239_v51 }
 0x3e6   :  { %2534 = vmatpush1.bf16.msra.mxu0 %v16221_v24  ;;  %2577 = vmatpush1.bf16.msra.mxu1 %v16227_v43  ;;  %v16245_v24 = vld [vmem:[%s20218_s4 + $0x80] ss:$16 sps:$4 sm:$0xff]   ;;  %v16251_v43 = vld [vmem:[%s20218_s4 + $0x88] ss:$16 sps:$4 sm:$0xff]  }
 0x3e7   :  { %2535 = vmatprep.subr.bf16.mxu0 %v16233_v49  ;;  %2578 = vmatprep.subr.bf16.mxu1 %v16239_v51  ;;  %20722 = vst [vmem:[#allocation47_spill] sm:$0xff] %v16245_v24  ;;  %20723 = vst [vmem:[#allocation48_spill] sm:$0xff] %v16251_v43  ;;  %v2479_v49 = vsub.f32 %v16092_v23, %v15763_v1  ;;  %v16259_v51 = vld [vmem:[%s20218_s4 + $0xa4] ss:$16 sps:$4 sm:$0xff]   ;;  %v16273_v23 = vld [vmem:[%s20218_s4 + $0xa0] ss:$16 sps:$4 sm:$0xff]  }
 0x3e8   :  { %20724 = vst [vmem:[#allocation49_spill] sm:$0xff] %v16259_v51  ;;  %20726 = vst [vmem:[#allocation51_spill] sm:$0xff] %v16273_v23 }
 0x3e9   :  { %v2491_v60 = vmul.f32 %v16012_v61, %v2479_v49  ;;  %v16299_v49 = vld [vmem:[%s20218_s4 + $0xc0] ss:$16 sps:$4 sm:$0xff]  }
 0x3ea   :  { %2536 = vmatpush1.bf16.msra.mxu0 %v16245_v24  ;;  %2579 = vmatpush1.bf16.msra.mxu1 %v16251_v43  ;;  %v16265_v24 = vld [vmem:[%s20218_s4 + $0xac] ss:$16 sps:$4 sm:$0xff]   ;;  %v2478_v43 = vsub.f32 %v16066_v14, %v15768_v48  ;;  %v16286_v14 = vld [vmem:[%s20218_s4 + $0xc4] ss:$16 sps:$4 sm:$0xff]   ;;  %20730 = vst [vmem:[#allocation55_spill] sm:$0xff] %v16299_v49 }
 0x3eb   :  { %2537 = vmatprep.subr.bf16.mxu0 %v16259_v51  ;;  %20725 = vst [vmem:[#allocation50_spill] sm:$0xff] %v16265_v24  ;;  %2580 = vmatprep.subr.bf16.mxu1 %v16265_v24  ;;  %v16279_v51 = vld [vmem:[%s20218_s4 + $0xa8] ss:$16 sps:$4 sm:$0xff]   ;;  %20728 = vst [vmem:[#allocation53_spill] sm:$0xff] %v16286_v14 }
 0x3ec   :  { %20727 = vst [vmem:[#allocation52_spill] sm:$0xff] %v16279_v51  ;;  %v2490_v24 = vmul.f32 %v15981_v44, %v2478_v43  ;;  %v16317_v43 = vld [vmem:[%s20218_s4 + $0xec] ss:$16 sps:$4 sm:$0xff]  }
 0x3ee   :  { %2538 = vmatpush1.bf16.msra.mxu0 %v16273_v23  ;;  %2581 = vmatpush1.bf16.msra.mxu1 %v16279_v51  ;;  %v16292_v23 = vld [vmem:[%s20218_s4 + $0xcc] ss:$16 sps:$4 sm:$0xff]   ;;  %v16324_v51 = vadd.f32 %v2490_v24, %v15768_v48  ;;  %v16343_v48 = vld [vmem:[%s20221_s7 + $0x4] ss:$16 sps:$4 sm:$0xff]   ;;  %v16355_v24 = vld [vmem:[%s20221_s7] ss:$16 sps:$4 sm:$0xff]  }
 0x3ef   :  { %2539 = vmatprep.subr.bf16.mxu0 %v16286_v14  ;;  %20729 = vst [vmem:[#allocation54_spill] sm:$0xff] %v16292_v23  ;;  %2582 = vmatprep.subr.bf16.mxu1 %v16292_v23  ;;  %v16305_v14 = vld [vmem:[%s20218_s4 + $0xc8] ss:$16 sps:$4 sm:$0xff]   ;;  %v16311_v23 = vld [vmem:[%s20218_s4 + $0xe4] ss:$16 sps:$4 sm:$0xff]   ;;  %20733 = vst [vmem:[#allocation58_spill] sm:$0xff] %v16343_v48 }
 0x3f0   :  { %20731 = vst [vmem:[#allocation56_spill] sm:$0xff] %v16305_v14  ;;  %20732 = vst [vmem:[#allocation57_spill] sm:$0xff] %v16311_v23 }
 0x3f1   :  { %20735 = vst [vmem:[#allocation60_spill] sm:$0xff] %v16355_v24 }
 0x3f2   :  { %2540 = vmatpush1.bf16.msra.mxu0 %v16299_v49  ;;  %2583 = vmatpush1.bf16.msra.mxu1 %v16305_v14  ;;  %v16321_v49 = vadd.f32 %v2491_v60, %v15763_v1  ;;  %v16329_v14 = vld [vmem:[%s20218_s4 + $0xe0] ss:$16 sps:$4 sm:$0xff]   ;;  %v16349_v60 = vld [vmem:[%s20221_s7 + $0xc] ss:$16 sps:$4 sm:$0xff]  }
 0x3f3   :  { %2541 = vmatprep.subr.bf16.mxu0 %v16311_v23  ;;  %2584 = vmatprep.subr.bf16.mxu1 %v16317_v43  ;;  %v16335_v23 = vld [vmem:[%s20218_s4 + $0xe8] ss:$16 sps:$4 sm:$0xff]   ;;  %20734 = vst [vmem:[#allocation59_spill] sm:$0xff] %v16349_v60 }
 0x3f4   :  { %v2526_v1 = vpack.c.bf16 %v16321_v49, %v16324_v51 }
 0x3f6   :  { %2542 = vmatpush1.bf16.msra.mxu0 %v16329_v14  ;;  %2585 = vmatpush1.bf16.msra.mxu1 %v16335_v23 }
 0x3f7   :  { %2679 = vmatprep.subr.bf16.mxu0 %v16343_v48  ;;  %2722 = vmatprep.subr.bf16.mxu1 %v16349_v60  ;;  %v16361_v48 = vld [vmem:[%s20221_s7 + $0x8] ss:$16 sps:$4 sm:$0xff]   ;;  %v16367_v60 = vld [vmem:[%s20221_s7 + $0x24] ss:$16 sps:$4 sm:$0xff]  }
 0x3f8   :  { %20736 = vst [vmem:[#allocation61_spill] sm:$0xff] %v16361_v48  ;;  %20737 = vst [vmem:[#allocation62_spill] sm:$0xff] %v16367_v60 }
 0x3f9   :  { %2560 = vmatmul.mubr.bf16.vlgmr.msra.gmra.mrb[12].mxu0 %v2526_v1  ;;  %2603 = vmatmul.mubr.bf16.vlgmr.msra.gmra.mrb[12].mxu1 %v2526_v1  ;;  %v16373_v1 = vld [vmem:[%s20221_s7 + $0x2c] ss:$16 sps:$4 sm:$0xff]  }
 0x3fa   :  { %2680 = vmatpush1.bf16.msra.mxu0 %v16355_v24  ;;  %2723 = vmatpush1.bf16.msra.mxu1 %v16361_v48  ;;  %20738 = vst [vmem:[#allocation63_spill] sm:$0xff] %v16373_v1  ;;  %v16381_v48 = vld [vmem:[%s20221_s7 + $0x20] ss:$16 sps:$4 sm:$0xff]   ;;  %v16399_v24 = vld [vmem:[%s20221_s7 + $0x4c] ss:$16 sps:$4 sm:$0xff]  }
 0x3fb   :  { %2681 = vmatprep.subr.bf16.mxu0 %v16367_v60  ;;  %2724 = vmatprep.subr.bf16.mxu1 %v16373_v1  ;;  %20739 = vst [vmem:[#allocation64_spill] sm:$0xff] %v16381_v48  ;;  %v16387_v60 = vld [vmem:[%s20221_s7 + $0x28] ss:$16 sps:$4 sm:$0xff]   ;;  %v16393_v1 = vld [vmem:[%s20221_s7 + $0x44] ss:$16 sps:$4 sm:$0xff]   ;;  %20742 = vst [vmem:[#allocation67_spill] sm:$0xff] %v16399_v24 }
 0x3fc   :  { %2711 = vmatprep.mubr.bf16.mxu0 %v20604_v16  ;;  %2754 = vmatprep.mubr.bf16.mxu1 %v20604_v16  ;;  %20740 = vst [vmem:[#allocation65_spill] sm:$0xff] %v16387_v60  ;;  %20741 = vst [vmem:[#allocation66_spill] sm:$0xff] %v16393_v1 }
 0x3fe   :  { %2682 = vmatpush1.bf16.msra.mxu0 %v16381_v48  ;;  %2725 = vmatpush1.bf16.msra.mxu1 %v16387_v60  ;;  %v16405_v48 = vld [vmem:[%s20221_s7 + $0x40] ss:$16 sps:$4 sm:$0xff]   ;;  %v16411_v60 = vld [vmem:[%s20221_s7 + $0x48] ss:$16 sps:$4 sm:$0xff]  }
 0x3ff   :  { %2683 = vmatprep.subr.bf16.mxu0 %v16393_v1  ;;  %2726 = vmatprep.subr.bf16.mxu1 %v16399_v24  ;;  %20743 = vst [vmem:[#allocation13_spill] sm:$0xff] %v16405_v48  ;;  %20744 = vst [vmem:[#allocation14_spill] sm:$0xff] %v16411_v60  ;;  %v16417_v1 = vld [vmem:[%s20221_s7 + $0x64] ss:$16 sps:$4 sm:$0xff]   ;;  %v16423_v24 = vld [vmem:[%s20221_s7 + $0x6c] ss:$16 sps:$4 sm:$0xff]  }
 0x402   :  { %2684 = vmatpush1.bf16.msra.mxu0 %v16405_v48  ;;  %2727 = vmatpush1.bf16.msra.mxu1 %v16411_v60  ;;  %v16429_v48 = vld [vmem:[%s20221_s7 + $0x60] ss:$16 sps:$4 sm:$0xff]   ;;  %v16435_v60 = vld [vmem:[%s20221_s7 + $0x68] ss:$16 sps:$4 sm:$0xff]  }
 0x403   :  { %2685 = vmatprep.subr.bf16.mxu0 %v16417_v1  ;;  %2728 = vmatprep.subr.bf16.mxu1 %v16423_v24  ;;  %20745 = vst [vmem:[#allocation30_spill] sm:$0xff] %v16429_v48  ;;  %20746 = vst [vmem:[#allocation71_spill] sm:$0xff] %v16435_v60 }
 0x406   :  { %2686 = vmatpush1.bf16.msra.mxu0 %v16429_v48  ;;  %2729 = vmatpush1.bf16.msra.mxu1 %v16435_v60 }
 0x407   :  { %2687 = vmatprep.subr.bf16.mxu0 %v15795_v50  ;;  %2730 = vmatprep.subr.bf16.mxu1 %v15801_v45  ;;  %v16457_v50 = vld [vmem:[%s20220_s6 + $0x4] ss:$16 sps:$4 sm:$0xff]   ;;  %v16463_v45 = vld [vmem:[%s20220_s6 + $0xc] ss:$16 sps:$4 sm:$0xff]  }
 0x408   :  { %20747 = vst [vmem:[#allocation72_spill] sm:$0xff] %v16457_v50  ;;  %20748 = vst [vmem:[#allocation73_spill] sm:$0xff] %v16463_v45 }
 0x40a   :  { %2688 = vmatpush1.bf16.msra.mxu0 %v15807_v11  ;;  %2731 = vmatpush1.bf16.msra.mxu1 %v15813_v30 }
 0x40b   :  { %2689 = vmatprep.subr.bf16.mxu0 %v15819_v15  ;;  %2732 = vmatprep.subr.bf16.mxu1 %v15825_v28 }
 0x40e   :  { %2690 = vmatpush1.bf16.msra.mxu0 %v15831_v52  ;;  %2733 = vmatpush1.bf16.msra.mxu1 %v15837_v53 }
 0x40f   :  { %2691 = vmatprep.subr.bf16.mxu0 %v15843_v54  ;;  %2734 = vmatprep.subr.bf16.mxu1 %v15849_v0 }
 0x412   :  { %2692 = vmatpush1.bf16.msra.mxu0 %v15855_v9  ;;  %2735 = vmatpush1.bf16.msra.mxu1 %v15861_v26 }
 0x413   :  { %2693 = vmatprep.subr.bf16.mxu0 %v15867_v29  ;;  %2736 = vmatprep.subr.bf16.mxu1 %v15873_v55 }
 0x416   :  { %2694 = vmatpush1.bf16.msra.mxu0 %v15879_v46  ;;  %2737 = vmatpush1.bf16.msra.mxu1 %v15885_v17 }
 0x417   :  { %2765 = vmatprep.subr.bf16.mxu0 %v16457_v50  ;;  %2808 = vmatprep.subr.bf16.mxu1 %v16463_v45 }
 0x4ac   :  { %v2370_v11 = vpop.f32.mrb[40].mxu0  ;;  %v2413_v30 = vpop.f32.mrb[40].mxu1 }
 0x4ad   :  { %v2422_v15 = vadd.f32 %v2370_v11, %v20692_v57  ;;  %v2372_v28 = vpop.f32.mrb[41].mxu0  ;;  %v2415_v52 = vpop.f32.mrb[41].mxu1 }
 0x4ae   :  { %v2423_v53 = vadd.f32 %v2372_v28, %v15644_v36  ;;  %v2374_v54 = vpop.f32.mrb[42].mxu0  ;;  %v2417_v0 = vpop.f32.mrb[42].mxu1  ;;  %v2425_v11 = vadd.f32 %v2415_v52, %v15650_v31  ;;  %v2424_v28 = vadd.f32 %v2413_v30, %v20693_v12 }
 0x4af   :  { %v11481_v9 = vmul.f32 -1.442695, %v2422_v15  ;;  %v2426_v26 = vadd.f32 %v2374_v54, %v20692_v57  ;;  %v2376_v29 = vpop.f32.mrb[43].mxu0  ;;  %v2419_v55 = vpop.f32.mrb[43].mxu1 }
 0x4b0   :  { %v11483_v46 = vmul.f32 -1.442695, %v2423_v53  ;;  %v2427_v17 = vadd.f32 %v2376_v29, %v15644_v36  ;;  %v2429_v60 = vadd.f32 %v2419_v55, %v15650_v31  ;;  %v11485_v15 = vmul.f32 -1.442695, %v2425_v11 }
 0x4b1   :  { %13392 = vpow2.f32 %v11481_v9  ;;  %v11482_v45 = vmul.f32 -1.442695, %v2426_v26  ;;  %v2428_v9 = vadd.f32 %v2417_v0, %v20693_v12 }
 0x4b2   :  { %13394 = vpow2.f32 %v11483_v46  ;;  %v11484_v50 = vmul.f32 -1.442695, %v2427_v17  ;;  %v11486_v48 = vmul.f32 -1.442695, %v2429_v60 }
 0x4b3   :  { %13396 = vpow2.f32 %v11482_v45 }
 0x4b4   :  { %13398 = vpow2.f32 %v11484_v50 }
 0x4b5   :  { %13400 = vtanh.f32 %v2424_v28 }
 0x4b6   :  { %13402 = vpow2.f32 %v11485_v15 }
 0x4b7   :  { %13404 = vpow2.f32 %v11486_v48 }
 0x4bb   :  { %v13393_v54 = vpop.eup %13392 }
 0x4bc   :  { %v13395_v57 = vpop.eup %13394  ;;  %v2436_v53 = vadd.f32 1.0, %v13393_v54 }
 0x4bd   :  { %v2448_v26 = vadd.f32 1.0, %v13395_v57  ;;  %v13397_v29 = vpop.eup %13396 }
 0x4be   :  { %13406 = vrcp.f32 %v2436_v53  ;;  %v2437_v45 = vadd.f32 1.0, %v13397_v29  ;;  %v13399_v52 = vpop.eup %13398 }
 0x4bf   :  { %13408 = vrcp.f32 %v2448_v26  ;;  %v2449_v50 = vadd.f32 1.0, %v13399_v52  ;;  %v13401_v30 = vpop.eup %13400 }
 0x4c0   :  { %13410 = vtanh.f32 %v2428_v9  ;;  %v13403_v60 = vpop.eup %13402 }
 0x4c1   :  { %13412 = vrcp.f32 %v2437_v45  ;;  %v13405_v55 = vpop.eup %13404  ;;  %v2462_v28 = vadd.f32 1.0, %v13403_v60 }
 0x4c2   :  { %13414 = vrcp.f32 %v2449_v50  ;;  %v2463_v53 = vadd.f32 1.0, %v13405_v55 }
 0x4c3   :  { %13416 = vrcp.f32 %v2462_v28 }
 0x4c8   :  { %v13407_v46 = vpop.eup %13406 }
 0x4c9   :  { %v13409_v17 = vpop.eup %13408  ;;  %v2470_v11 = vmul.f32 %v13407_v46, %v13401_v30 }
 0x4ca   :  { %v13411_v15 = vpop.eup %13410  ;;  %v2468_v57 = vmul.f32 %v13409_v17, %v15907_v42 }
 0x4cb   :  { %v13413_v48 = vpop.eup %13412 }
 0x4cc   :  { %v2472_v0 = vadd.f32 %v2470_v11, %v2468_v57  ;;  %v2471_v54 = vmul.f32 %v13413_v48, %v13411_v15  ;;  %v2561_v26 = vpop.f32.mrb[12].mxu0  ;;  %v2604_v29 = vpop.f32.mrb[12].mxu1 }
 0x4cd   :  { %v13415_v9 = vpop.eup %13414  ;;  %v2621_v45 = vadd.f32 %v2561_v26, %v20694_v40  ;;  %v2563_v52 = vpop.f32.mrb[13].mxu0 }
 0x4ce   :  { %v2606_v50 = vpop.f32.mrb[13].mxu1  ;;  %13418 = vtanh.f32 %v2472_v0  ;;  %v2506_v12 = vsub.f32 %v2472_v0, %v15907_v42  ;;  %v2469_v30 = vmul.f32 %v13415_v9, %v15911_v3  ;;  %v2622_v60 = vadd.f32 %v2563_v52, %v20695_v21  ;;  %v2565_v46 = vpop.f32.mrb[14].mxu0 }
 0x4cf   :  { %v2608_v17 = vpop.f32.mrb[14].mxu1  ;;  %v11489_v11 = vmul.f32 -1.442695, %v2621_v45  ;;  %v2625_v55 = vadd.f32 %v2565_v46, %v20694_v40  ;;  %v2567_v15 = vpop.f32.mrb[15].mxu0  ;;  %13420 = vrcp.f32 %v2463_v53  ;;  %v2624_v40 = vadd.f32 %v2606_v50, %v15307_v13 }
 0x4d0   :  { %v2610_v57 = vpop.f32.mrb[15].mxu1  ;;  %v2508_v28 = vmul.f32 %v2506_v12, %v15981_v44  ;;  %v2473_v48 = vadd.f32 %v2471_v54, %v2469_v30  ;;  %v11491_v26 = vmul.f32 -1.442695, %v2622_v60  ;;  %v2626_v0 = vadd.f32 %v2567_v15, %v20695_v21  ;;  %v13417_v54 = vpop.eup %13416 }
 0x4d1   :  { %13422 = vpow2.f32 %v11489_v11  ;;  %v11490_v31 = vmul.f32 -1.442695, %v2625_v55  ;;  %v2623_v30 = vadd.f32 %v2604_v29, %v15311_v27  ;;  %v11493_v11 = vmul.f32 -1.442695, %v2624_v40 }
 0x4d2   :  { %13424 = vtanh.f32 %v2473_v48  ;;  %v2507_v9 = vsub.f32 %v2473_v48, %v15911_v3  ;;  %v16484_v52 = vadd.f32 %v2508_v28, %v15907_v42  ;;  %v11492_v45 = vmul.f32 -1.442695, %v2626_v0 }
 0x4d3   :  { %13426 = vpow2.f32 %v11491_v26  ;;  %v2628_v42 = vadd.f32 %v2610_v57, %v15307_v13  ;;  %v2627_v28 = vadd.f32 %v2608_v17, %v15311_v27 }
 0x4d4   :  { %v2509_v46 = vmul.f32 %v2507_v9, %v16012_v61  ;;  %13428 = vpow2.f32 %v11490_v31 }
 0x4d5   :  { %13430 = vpow2.f32 %v11492_v45  ;;  %v11494_v0 = vmul.f32 -1.442695, %v2628_v42 }
 0x4d6   :  { %v16489_v12 = vadd.f32 %v2509_v46, %v15911_v3  ;;  %13432 = vtanh.f32 %v2623_v30 }
 0x4d7   :  { %13434 = vpow2.f32 %v11493_v11 }
 0x4d8   :  { %v13419_v53 = vpop.eup %13418 }
 0x4d9   :  { %v2476_v60 = vmul.f32 %v13419_v53, %v13417_v54  ;;  %v13421_v55 = vpop.eup %13420 }
 0x4db   :  { %v13423_v15 = vpop.eup %13422  ;;  %v2500_v48 = vsub.f32 %v2476_v60, %v15921_v58 }
 0x4dc   :  { %v13425_v50 = vpop.eup %13424  ;;  %v2635_v31 = vadd.f32 1.0, %v13423_v15 }
 0x4dd   :  { %v13427_v3 = vpop.eup %13426  ;;  %v2477_v26 = vmul.f32 %v13425_v50, %v13421_v55  ;;  %v2502_v57 = vmul.f32 %v2500_v48, %v15981_v44 }
 0x4de   :  { %13436 = vrcp.f32 %v2635_v31  ;;  %v2647_v9 = vadd.f32 1.0, %v13427_v3  ;;  %v13429_v29 = vpop.eup %13428  ;;  %v16519_v3 = vpop.permute.xlu0 %2911 }
 0x4df   :  { %13438 = vtanh.f32 %v2627_v28  ;;  %v2501_v40 = vsub.f32 %v2477_v26, %v15924_v59  ;;  %v2636_v45 = vadd.f32 1.0, %v13429_v29  ;;  %v13431_v17 = vpop.eup %13430  ;;  %v16499_v53 = vadd.f32 %v2502_v57, %v15921_v58  ;;  %v16530_v26 = vpop.permute.xlu1 %2916  ;;  %v20757_v29 = vld [vmem:[#allocation23_spill] sm:$0xff]  ;;  %v20760_v57 = vld [vmem:[#allocation26_spill] sm:$0xff] }
 0x4e0   :  { %13440 = vrcp.f32 %v2647_v9  ;;  %v2648_v54 = vadd.f32 1.0, %v13431_v17  ;;  %v13433_v11 = vpop.eup %13432  ;;  %v20755_v9 = vld [vmem:[#allocation21_spill] sm:$0xff]  ;;  %v20762_v17 = vld [vmem:[#allocation34_spill] sm:$0xff] }
 0x4e1   :  { %13442 = vpow2.f32 %v11494_v0  ;;  %v2503_v46 = vmul.f32 %v2501_v40, %v16012_v61  ;;  %v13435_v44 = vpop.eup %13434  ;;  %v20758_v40 = vld [vmem:[#allocation24_spill] sm:$0xff] }
 0x4e2   :  { %13444 = vrcp.f32 %v2636_v45  ;;  %v20761_v45 = vld [vmem:[#allocation33_spill] sm:$0xff] }
 0x4e3   :  { %v16502_v30 = vadd.f32 %v2503_v46, %v15924_v59  ;;  %13446 = vrcp.f32 %v2648_v54  ;;  %v2661_v59 = vadd.f32 1.0, %v13435_v44  ;;  %v20763_v46 = vld [vmem:[#allocation35_spill] sm:$0xff]  ;;  %v20764_v54 = vld [vmem:[#allocation36_spill] sm:$0xff] }
 0x4e4   :  { %v20767_v44 = vld [vmem:[#allocation39_spill] sm:$0xff] }
 0x4e5   :  { %v2678_v60 = vpack.c.bf16 %v16502_v30, %v16499_v53  ;;  %13448 = vrcp.f32 %v2661_v59  ;;  %v20772_v59 = vld [vmem:[#allocation44_spill] sm:$0xff] }
 0x4e7   :  { %2712 = vmatmul.mubr.bf16.vlgmr.msra.gmra.mrb[44].mxu0 %v2678_v60  ;;  %2755 = vmatmul.mubr.bf16.vlgmr.msra.gmra.mrb[44].mxu1 %v2678_v60  ;;  %v20765_v60 = vld [vmem:[#allocation37_spill] sm:$0xff] }
 0x4e8   :  { %v13437_v42 = vpop.eup %13436  ;;  %2766 = vmatpush1.bf16.msra.mxu0 %v15931_v62  ;;  %2809 = vmatpush1.bf16.msra.mxu1 %v15937_v18 }
 0x4e9   :  { %v13439_v61 = vpop.eup %13438  ;;  %v2669_v55 = vmul.f32 %v13437_v42, %v13433_v11  ;;  %2767 = vmatprep.subr.bf16.mxu0 %v15943_v47  ;;  %2810 = vmatprep.subr.bf16.mxu1 %v15949_v34  ;;  %v20766_v11 = vld [vmem:[#allocation38_spill] sm:$0xff]  ;;  %v20768_v42 = vld [vmem:[#allocation40_spill] sm:$0xff] }
 0x4ea   :  { %v13441_v58 = vpop.eup %13440  ;;  %2797 = vmatprep.mubr.bf16.mxu0 %v20604_v16  ;;  %2840 = vmatprep.mubr.bf16.mxu1 %v20604_v16 }
 0x4eb   :  { %v13443_v15 = vpop.eup %13442  ;;  %v2667_v28 = vmul.f32 %v13441_v58, %v16010_v56  ;;  %v20771_v58 = vld [vmem:[#allocation43_spill] sm:$0xff] }
 0x4ec   :  { %v13445_v48 = vpop.eup %13444  ;;  %2768 = vmatpush1.bf16.msra.mxu0 %v15958_v7  ;;  %2811 = vmatpush1.bf16.msra.mxu1 %v15964_v25  ;;  %v2662_v34 = vadd.f32 1.0, %v13443_v15  ;;  %v20773_v15 = vld [vmem:[#allocation45_spill] sm:$0xff] }
 0x4ed   :  { %v2671_v62 = vadd.f32 %v2669_v55, %v2667_v28  ;;  %v2670_v18 = vmul.f32 %v13445_v48, %v13439_v61  ;;  %2769 = vmatprep.subr.bf16.mxu0 %v15970_v20  ;;  %2812 = vmatprep.subr.bf16.mxu1 %v15976_v4  ;;  %v13447_v47 = vpop.eup %13446  ;;  %v20769_v61 = vld [vmem:[#allocation41_spill] sm:$0xff]  ;;  %v20770_v55 = vld [vmem:[#allocation42_spill] sm:$0xff]  ;;  %v20775_v48 = vld [vmem:[#allocation47_spill] sm:$0xff] }
 0x4ee   :  { %v2668_v31 = vmul.f32 %v13447_v47, %v16040_v41  ;;  %v20774_v28 = vld [vmem:[#allocation46_spill] sm:$0xff]  ;;  %v20777_v47 = vld [vmem:[#allocation49_spill] sm:$0xff] }
 0x4ef   :  { %13450 = vtanh.f32 %v2671_v62  ;;  %v2923_v50 = vsub.f32 %v2671_v62, %v16010_v56  ;;  %v20776_v62 = vld [vmem:[#allocation48_spill] sm:$0xff] }
 0x4f0   :  { %2770 = vmatpush1.bf16.msra.mxu0 %v15986_v19  ;;  %2813 = vmatpush1.bf16.msra.mxu1 %v15992_v38  ;;  %v2672_v25 = vadd.f32 %v2670_v18, %v2668_v31  ;;  %13452 = vrcp.f32 %v2662_v34  ;;  %v20778_v34 = vld [vmem:[#allocation50_spill] sm:$0xff]  ;;  %v20779_v31 = vld [vmem:[#allocation51_spill] sm:$0xff] }
 0x4f1   :  { %v2925_v7 = vmul.f32 %v2923_v50, %v16519_v3  ;;  %2771 = vmatprep.subr.bf16.mxu0 %v15999_v10  ;;  %2814 = vmatprep.subr.bf16.mxu1 %v16005_v35  ;;  %v13449_v10 = vpop.eup %13448 }
 0x4f2   :  { %13454 = vtanh.f32 %v2672_v25  ;;  %v2924_v20 = vsub.f32 %v2672_v25, %v16040_v41 }
 0x4f3   :  { %v16528_v4 = vadd.f32 %v2925_v7, %v16010_v56  ;;  %v20780_v7 = vld [vmem:[#allocation52_spill] sm:$0xff] }
 0x4f4   :  { %2772 = vmatpush1.bf16.msra.mxu0 %v16017_v37  ;;  %2815 = vmatpush1.bf16.msra.mxu1 %v16023_v32  ;;  %v2926_v19 = vmul.f32 %v2924_v20, %v16530_v26  ;;  %v20749_v32 = vld [vmem:[#allocation15_spill] sm:$0xff]  ;;  %v20781_v20 = vld [vmem:[#allocation53_spill] sm:$0xff] }
 0x4f5   :  { %2773 = vmatprep.subr.bf16.mxu0 %v16030_v63  ;;  %2816 = vmatprep.subr.bf16.mxu1 %v16036_v5  ;;  %v20750_v5 = vld [vmem:[#allocation16_spill] sm:$0xff] }
 0x4f6   :  { %v16538_v38 = vadd.f32 %v2926_v19, %v16040_v41  ;;  %v20782_v19 = vld [vmem:[#allocation54_spill] sm:$0xff] }
 0x4f8   :  { %2774 = vmatpush1.bf16.msra.mxu0 %v16045_v39  ;;  %2817 = vmatpush1.bf16.msra.mxu1 %v16051_v8  ;;  %v20751_v39 = vld [vmem:[#allocation17_spill] sm:$0xff]  ;;  %v20752_v8 = vld [vmem:[#allocation18_spill] sm:$0xff] }
 0x4f9   :  { %v13451_v35 = vpop.eup %13450  ;;  %2775 = vmatprep.subr.bf16.mxu0 %v16057_v2  ;;  %2818 = vmatprep.subr.bf16.mxu1 %v16063_v22  ;;  %v20753_v2 = vld [vmem:[#allocation19_spill] sm:$0xff]  ;;  %v20754_v22 = vld [vmem:[#allocation20_spill] sm:$0xff] }
 0x4fa   :  { %v2675_v56 = vmul.f32 %v13451_v35, %v13449_v10  ;;  %v13453_v37 = vpop.eup %13452  ;;  %v20783_v35 = vld [vmem:[#allocation55_spill] sm:$0xff] }
 0x4fc   :  { %2776 = vmatpush1.bf16.msra.mxu0 %v16071_v6  ;;  %2819 = vmatpush1.bf16.msra.mxu1 %v20749_v32  ;;  %v13455_v63 = vpop.eup %13454  ;;  %v20756_v6 = vld [vmem:[#allocation22_spill] sm:$0xff]  ;;  %v2907_v50 = vsub.f32 %v2675_v56, %v16324_v51  ;;  %v20785_v32 = vld [vmem:[#allocation57_spill] sm:$0xff] }
 0x4fd   :  { %2777 = vmatprep.subr.bf16.mxu0 %v20750_v5  ;;  %2820 = vmatprep.subr.bf16.mxu1 %v16089_v33  ;;  %v2676_v41 = vmul.f32 %v13455_v63, %v13453_v37  ;;  %v20759_v33 = vld [vmem:[#allocation25_spill] sm:$0xff]  ;;  %v20784_v37 = vld [vmem:[#allocation56_spill] sm:$0xff] }
 0x4fe   :  { %v2919_v10 = vmul.f32 %v16519_v3, %v2907_v50 }
 0x4ff   :  { %v2677_v0 = vpack.c.bf16 %v2676_v41, %v2675_v56  ;;  %v2908_v18 = vsub.f32 %v2676_v41, %v16321_v49  ;;  %v20786_v41 = vld [vmem:[#allocation58_spill] sm:$0xff] }
 0x500   :  { %2778 = vmatpush1.bf16.msra.mxu0 %v20751_v39  ;;  %2821 = vmatpush1.bf16.msra.mxu1 %v20752_v8  ;;  %v16594_v63 = vadd.f32 %v2919_v10, %v16324_v51  ;;  %v20787_v39 = vld [vmem:[#allocation59_spill] sm:$0xff]  ;;  %v20790_v8 = vld [vmem:[#allocation62_spill] sm:$0xff] }
 0x501   :  { %2779 = vmatprep.subr.bf16.mxu0 %v20753_v2  ;;  %2822 = vmatprep.subr.bf16.mxu1 %v20754_v22  ;;  %v2920_v25 = vmul.f32 %v16530_v26, %v2908_v18  ;;  %v20791_v51 = vld [vmem:[#allocation63_spill] sm:$0xff]  ;;  %v20796_v22 = vld [vmem:[#allocation13_spill] sm:$0xff] }
 0x502   :  { %v20795_v2 = vld [vmem:[#allocation67_spill] sm:$0xff] }
 0x503   :  { %v16591_v56 = vadd.f32 %v2920_v25, %v16321_v49  ;;  %v20789_v49 = vld [vmem:[#allocation61_spill] sm:$0xff] }
 0x504   :  { %2780 = vmatpush1.bf16.msra.mxu0 %v20755_v9  ;;  %2823 = vmatpush1.bf16.msra.mxu1 %v20756_v6  ;;  %v20797_v9 = vld [vmem:[#allocation14_spill] sm:$0xff] }
 0x505   :  { %2956 = vmatprep.subr.bf16.mxu0 %v20757_v29  ;;  %2999 = vmatprep.subr.bf16.mxu1 %v20758_v40  ;;  %v2955_v5 = vpack.c.bf16 %v16591_v56, %v16594_v63  ;;  %v20798_v6 = vld [vmem:[#allocation30_spill] sm:$0xff]  ;;  %v20799_v29 = vld [vmem:[#allocation71_spill] sm:$0xff] }
 0x506   :  { %v16621_v40 = vld [vmem:[%s20221_s7 + $0x84] ss:$16 sps:$4 sm:$0xff]  }
 0x507   :  { %2798 = vmatmul.mubr.bf16.vlgmr.msra.gmra.mrb[44].mxu0 %v2677_v0  ;;  %2841 = vmatmul.mubr.bf16.vlgmr.msra.gmra.mrb[44].mxu1 %v2677_v0  ;;  %v20794_v0 = vld [vmem:[#allocation66_spill] sm:$0xff] }
 0x508   :  { %2957 = vmatpush1.bf16.msra.mxu0 %v20759_v33  ;;  %3000 = vmatpush1.bf16.msra.mxu1 %v20760_v57  ;;  %v16627_v33 = vld [vmem:[%s20221_s7 + $0x8c] ss:$16 sps:$4 sm:$0xff]   ;;  %v16645_v57 = vld [vmem:[%s20221_s7 + $0xa4] ss:$16 sps:$4 sm:$0xff]  }
 0x509   :  { %2958 = vmatprep.subr.bf16.mxu0 %v20761_v45  ;;  %3001 = vmatprep.subr.bf16.mxu1 %v20762_v17  ;;  %v16651_v45 = vld [vmem:[%s20221_s7 + $0xac] ss:$16 sps:$4 sm:$0xff]   ;;  %v16657_v17 = vld [vmem:[%s20221_s7 + $0xa0] ss:$16 sps:$4 sm:$0xff]  }
 0x50a   :  { %2988 = vmatprep.mubr.bf16.mxu0 %v20604_v16  ;;  %3031 = vmatprep.mubr.bf16.mxu1 %v20604_v16 }
 0x50c   :  { %2959 = vmatpush1.bf16.msra.mxu0 %v20763_v46  ;;  %3002 = vmatpush1.bf16.msra.mxu1 %v20764_v54  ;;  %v16663_v46 = vld [vmem:[%s20221_s7 + $0xa8] ss:$16 sps:$4 sm:$0xff]   ;;  %v16669_v54 = vld [vmem:[%s20221_s7 + $0xc4] ss:$16 sps:$4 sm:$0xff]  }
 0x50d   :  { %2960 = vmatprep.subr.bf16.mxu0 %v20765_v60  ;;  %3003 = vmatprep.subr.bf16.mxu1 %v20766_v11  ;;  %v16675_v60 = vld [vmem:[%s20221_s7 + $0xcc] ss:$16 sps:$4 sm:$0xff]   ;;  %v16681_v11 = vld [vmem:[%s20221_s7 + $0xc0] ss:$16 sps:$4 sm:$0xff]  }
 0x510   :  { %2961 = vmatpush1.bf16.msra.mxu0 %v20767_v44  ;;  %3004 = vmatpush1.bf16.msra.mxu1 %v20768_v42  ;;  %v16687_v44 = vld [vmem:[%s20221_s7 + $0xc8] ss:$16 sps:$4 sm:$0xff]   ;;  %v16693_v42 = vld [vmem:[%s20221_s7 + $0xe4] ss:$16 sps:$4 sm:$0xff]  }
 0x511   :  { %2962 = vmatprep.subr.bf16.mxu0 %v20769_v61  ;;  %3005 = vmatprep.subr.bf16.mxu1 %v20770_v55  ;;  %v16699_v61 = vld [vmem:[%s20221_s7 + $0xec] ss:$16 sps:$4 sm:$0xff]   ;;  %v16705_v55 = vld [vmem:[%s20221_s7 + $0xe0] ss:$16 sps:$4 sm:$0xff]  }
 0x514   :  { %2963 = vmatpush1.bf16.msra.mxu0 %v20771_v58  ;;  %3006 = vmatpush1.bf16.msra.mxu1 %v20772_v59  ;;  %v16711_v58 = vld [vmem:[%s20221_s7 + $0xe8] ss:$16 sps:$4 sm:$0xff]  }
 0x515   :  { %2964 = vmatprep.subr.bf16.mxu0 %v20773_v15  ;;  %3007 = vmatprep.subr.bf16.mxu1 %v20774_v28  ;;  %v20800_v59 = vld [vmem:[#allocation72_spill] sm:$0xff]  ;;  %v20801_v15 = vld [vmem:[#allocation73_spill] sm:$0xff] }
 0x518   :  { %2965 = vmatpush1.bf16.msra.mxu0 %v20775_v48  ;;  %3008 = vmatpush1.bf16.msra.mxu1 %v20776_v62  ;;  %v20802_v62 = vld [vmem:[#allocation68_spill] sm:$0xff] }
 0x519   :  { %2966 = vmatprep.subr.bf16.mxu0 %v20777_v47  ;;  %3009 = vmatprep.subr.bf16.mxu1 %v20778_v34 }
 0x51c   :  { %2967 = vmatpush1.bf16.msra.mxu0 %v20779_v31  ;;  %3010 = vmatpush1.bf16.msra.mxu1 %v20780_v7 }
 0x51d   :  { %2968 = vmatprep.subr.bf16.mxu0 %v20781_v20  ;;  %3011 = vmatprep.subr.bf16.mxu1 %v20782_v19 }
 0x520   :  { %2969 = vmatpush1.bf16.msra.mxu0 %v20783_v35  ;;  %3012 = vmatpush1.bf16.msra.mxu1 %v20784_v37 }
 0x521   :  { %2970 = vmatprep.subr.bf16.mxu0 %v20785_v32  ;;  %3013 = vmatprep.subr.bf16.mxu1 %v16317_v43  ;;  %v20788_v43 = vld [vmem:[#allocation60_spill] sm:$0xff] }
 0x524   :  { %2971 = vmatpush1.bf16.msra.mxu0 %v16329_v14  ;;  %3014 = vmatpush1.bf16.msra.mxu1 %v16335_v23  ;;  %v20792_v23 = vld [vmem:[#allocation64_spill] sm:$0xff]  ;;  %v20793_v14 = vld [vmem:[#allocation65_spill] sm:$0xff] }
 0x525   :  { %3108 = vmatprep.subr.bf16.mxu0 %v20786_v41  ;;  %3151 = vmatprep.subr.bf16.mxu1 %v20787_v39  ;;  %v20803_v41 = vld [vmem:[#allocation69_spill] sm:$0xff] }
 0x527   :  { %2989 = vmatmul.mubr.bf16.vlgmr.msra.gmra.mrb[16].mxu0 %v2955_v5  ;;  %3032 = vmatmul.mubr.bf16.vlgmr.msra.gmra.mrb[16].mxu1 %v2955_v5 }
 0x528   :  { %3109 = vmatpush1.bf16.msra.mxu0 %v20788_v43  ;;  %3152 = vmatpush1.bf16.msra.mxu1 %v20789_v49  ;;  %v20804_v49 = vld [vmem:[#allocation70_spill] sm:$0xff] }
 0x529   :  { %3110 = vmatprep.subr.bf16.mxu0 %v20790_v8  ;;  %3153 = vmatprep.subr.bf16.mxu1 %v20791_v51 }
 0x52a   :  { %3140 = vmatprep.mubr.bf16.mxu0 %v20604_v16  ;;  %3183 = vmatprep.mubr.bf16.mxu1 %v20604_v16 }
 0x52c   :  { %3111 = vmatpush1.bf16.msra.mxu0 %v20792_v23  ;;  %3154 = vmatpush1.bf16.msra.mxu1 %v20793_v14 }
 0x52d   :  { %3112 = vmatprep.subr.bf16.mxu0 %v20794_v0  ;;  %3155 = vmatprep.subr.bf16.mxu1 %v20795_v2 }
 0x530   :  { %3113 = vmatpush1.bf16.msra.mxu0 %v20796_v22  ;;  %3156 = vmatpush1.bf16.msra.mxu1 %v20797_v9 }
 0x531   :  { %3114 = vmatprep.subr.bf16.mxu0 %v16417_v1  ;;  %3157 = vmatprep.subr.bf16.mxu1 %v16423_v24  ;;  %v16633_v24 = vld [vmem:[%s20221_s7 + $0x80] ss:$16 sps:$4 sm:$0xff]   ;;  %v16639_v1 = vld [vmem:[%s20221_s7 + $0x88] ss:$16 sps:$4 sm:$0xff]  }
 0x534   :  { %3115 = vmatpush1.bf16.msra.mxu0 %v20798_v6  ;;  %3158 = vmatpush1.bf16.msra.mxu1 %v20799_v29 }
 0x535   :  { %3116 = vmatprep.subr.bf16.mxu0 %v16621_v40  ;;  %3159 = vmatprep.subr.bf16.mxu1 %v16627_v33 }
 0x538   :  { %3117 = vmatpush1.bf16.msra.mxu0 %v16633_v24  ;;  %3160 = vmatpush1.bf16.msra.mxu1 %v16639_v1 }
 0x539   :  { %3118 = vmatprep.subr.bf16.mxu0 %v16645_v57  ;;  %3161 = vmatprep.subr.bf16.mxu1 %v16651_v45 }
 0x53c   :  { %3119 = vmatpush1.bf16.msra.mxu0 %v16657_v17  ;;  %3162 = vmatpush1.bf16.msra.mxu1 %v16663_v46 }
 0x53d   :  { %3120 = vmatprep.subr.bf16.mxu0 %v16669_v54  ;;  %3163 = vmatprep.subr.bf16.mxu1 %v16675_v60 }
 0x540   :  { %3121 = vmatpush1.bf16.msra.mxu0 %v16681_v11  ;;  %3164 = vmatpush1.bf16.msra.mxu1 %v16687_v44 }
 0x541   :  { %3122 = vmatprep.subr.bf16.mxu0 %v16693_v42  ;;  %3165 = vmatprep.subr.bf16.mxu1 %v16699_v61 }
 0x544   :  { %3123 = vmatpush1.bf16.msra.mxu0 %v16705_v55  ;;  %3166 = vmatpush1.bf16.msra.mxu1 %v16711_v58 }
 0x545   :  { %3194 = vmatprep.subr.bf16.mxu0 %v20800_v59  ;;  %3237 = vmatprep.subr.bf16.mxu1 %v20801_v15 }
 0x5da   :  { %v2799_v28 = vpop.f32.mrb[44].mxu0  ;;  %v2842_v48 = vpop.f32.mrb[44].mxu1 }
 0x5db   :  { %v2851_v18 = vadd.f32 %v2799_v28, %v20802_v62  ;;  %v2801_v47 = vpop.f32.mrb[45].mxu0  ;;  %v2844_v34 = vpop.f32.mrb[45].mxu1  ;;  %v2853_v8 = vadd.f32 %v2842_v48, %v20804_v49 }
 0x5dc   :  { %v2852_v50 = vadd.f32 %v2801_v47, %v15644_v36  ;;  %v2803_v31 = vpop.f32.mrb[46].mxu0  ;;  %v2846_v7 = vpop.f32.mrb[46].mxu1  ;;  %v2854_v39 = vadd.f32 %v2844_v34, %v20803_v41 }
 0x5dd   :  { %v11495_v25 = vmul.f32 -1.442695, %v2851_v18  ;;  %v2855_v20 = vadd.f32 %v2803_v31, %v20802_v62  ;;  %v2805_v19 = vpop.f32.mrb[47].mxu0  ;;  %v2848_v10 = vpop.f32.mrb[47].mxu1  ;;  %v2857_v22 = vadd.f32 %v2846_v7, %v20804_v49 }
 0x5de   :  { %v11497_v35 = vmul.f32 -1.442695, %v2852_v50  ;;  %v2856_v37 = vadd.f32 %v2805_v19, %v15644_v36  ;;  %v2858_v43 = vadd.f32 %v2848_v10, %v20803_v41  ;;  %v11499_v51 = vmul.f32 -1.442695, %v2854_v39  ;;  %v20805_v39 = vld [vmem:[#allocation29_spill] sm:$0xff] }
 0x5df   :  { %13456 = vpow2.f32 %v11495_v25  ;;  %v11496_v32 = vmul.f32 -1.442695, %v2855_v20 }
 0x5e0   :  { %13458 = vpow2.f32 %v11497_v35  ;;  %v11498_v5 = vmul.f32 -1.442695, %v2856_v37  ;;  %v11500_v23 = vmul.f32 -1.442695, %v2858_v43 }
 0x5e1   :  { %13460 = vpow2.f32 %v11496_v32 }
 0x5e2   :  { %13462 = vpow2.f32 %v11498_v5 }
 0x5e3   :  { %13464 = vtanh.f32 %v2853_v8 }
 0x5e4   :  { %13466 = vpow2.f32 %v11499_v51 }
 0x5e5   :  { %13468 = vpow2.f32 %v11500_v23 }
 0x5e9   :  { %v13457_v14 = vpop.eup %13456 }
 0x5ea   :  { %v13459_v0 = vpop.eup %13458  ;;  %v2865_v2 = vadd.f32 1.0, %v13457_v14 }
 0x5eb   :  { %v2877_v9 = vadd.f32 1.0, %v13459_v0  ;;  %v13461_v6 = vpop.eup %13460 }
 0x5ec   :  { %13470 = vrcp.f32 %v2865_v2  ;;  %v2866_v29 = vadd.f32 1.0, %v13461_v6  ;;  %v13463_v59 = vpop.eup %13462 }
 0x5ed   :  { %13472 = vrcp.f32 %v2877_v9  ;;  %v2878_v15 = vadd.f32 1.0, %v13463_v59  ;;  %v13465_v28 = vpop.eup %13464 }
 0x5ee   :  { %13474 = vtanh.f32 %v2857_v22  ;;  %v13467_v48 = vpop.eup %13466 }
 0x5ef   :  { %13476 = vrcp.f32 %v2866_v29  ;;  %v13469_v18 = vpop.eup %13468  ;;  %v2891_v31 = vadd.f32 1.0, %v13467_v48 }
 0x5f0   :  { %13478 = vrcp.f32 %v2878_v15  ;;  %v2892_v35 = vadd.f32 1.0, %v13469_v18 }
 0x5f1   :  { %13480 = vrcp.f32 %v2891_v31 }
 0x5f6   :  { %v13471_v47 = vpop.eup %13470 }
 0x5f7   :  { %v13473_v34 = vpop.eup %13472  ;;  %v2899_v50 = vmul.f32 %v13471_v47, %v13465_v28 }
 0x5f8   :  { %v13475_v25 = vpop.eup %13474  ;;  %v2897_v7 = vmul.f32 %v13473_v34, %v16484_v52 }
 0x5f9   :  { %v13477_v20 = vpop.eup %13476 }
 0x5fa   :  { %v2901_v19 = vadd.f32 %v2899_v50, %v2897_v7  ;;  %v2900_v10 = vmul.f32 %v13477_v20, %v13475_v25  ;;  %v2990_v37 = vpop.f32.mrb[16].mxu0  ;;  %v3033_v32 = vpop.f32.mrb[16].mxu1 }
 0x5fb   :  { %v13479_v5 = vpop.eup %13478  ;;  %v3050_v43 = vadd.f32 %v2990_v37, %v20805_v39  ;;  %v2992_v8 = vpop.f32.mrb[17].mxu0 }
 0x5fc   :  { %v3035_v51 = vpop.f32.mrb[17].mxu1  ;;  %13482 = vtanh.f32 %v2901_v19  ;;  %v2935_v23 = vsub.f32 %v2901_v19, %v16484_v52  ;;  %v2898_v14 = vmul.f32 %v13479_v5, %v16489_v12  ;;  %v3051_v0 = vadd.f32 %v2992_v8, %v20695_v21  ;;  %v2994_v2 = vpop.f32.mrb[18].mxu0 }
 0x5fd   :  { %v3037_v22 = vpop.f32.mrb[18].mxu1  ;;  %v11503_v9 = vmul.f32 -1.442695, %v3050_v43  ;;  %v3054_v6 = vadd.f32 %v2994_v2, %v20805_v39  ;;  %v2996_v29 = vpop.f32.mrb[19].mxu0  ;;  %13484 = vrcp.f32 %v2892_v35  ;;  %v3053_v7 = vadd.f32 %v3035_v51, %v15307_v13 }
 0x5fe   :  { %v3039_v59 = vpop.f32.mrb[19].mxu1  ;;  %v2937_v15 = vmul.f32 %v2935_v23, %v16519_v3  ;;  %v2902_v28 = vadd.f32 %v2900_v10, %v2898_v14  ;;  %v11505_v48 = vmul.f32 -1.442695, %v3051_v0  ;;  %v3055_v47 = vadd.f32 %v2996_v29, %v20695_v21  ;;  %v13481_v19 = vpop.eup %13480 }
 0x5ff   :  { %13486 = vpow2.f32 %v11503_v9  ;;  %v11504_v18 = vmul.f32 -1.442695, %v3054_v6  ;;  %v3052_v35 = vadd.f32 %v3033_v32, %v15311_v27  ;;  %v11507_v5 = vmul.f32 -1.442695, %v3053_v7 }
 0x600   :  { %13488 = vtanh.f32 %v2902_v28  ;;  %v2936_v34 = vsub.f32 %v2902_v28, %v16489_v12  ;;  %v16734_v50 = vadd.f32 %v2937_v15, %v16484_v52  ;;  %v11506_v31 = vmul.f32 -1.442695, %v3055_v47 }
 0x601   :  { %13490 = vpow2.f32 %v11505_v48  ;;  %v3057_v52 = vadd.f32 %v3039_v59, %v15307_v13  ;;  %v3056_v23 = vadd.f32 %v3037_v22, %v15311_v27 }
 0x602   :  { %v2938_v25 = vmul.f32 %v2936_v34, %v16530_v26  ;;  %13492 = vpow2.f32 %v11504_v18 }
 0x603   :  { %13494 = vpow2.f32 %v11506_v31  ;;  %v11508_v9 = vmul.f32 -1.442695, %v3057_v52 }
 0x604   :  { %v16739_v20 = vadd.f32 %v2938_v25, %v16489_v12  ;;  %13496 = vtanh.f32 %v3052_v35 }
 0x605   :  { %13498 = vpow2.f32 %v11507_v5 }
 0x606   :  { %v13483_v10 = vpop.eup %13482 }
 0x607   :  { %v2905_v37 = vmul.f32 %v13483_v10, %v13481_v19  ;;  %v13485_v43 = vpop.eup %13484  ;;  %v16771_v19 = vld [vmem:[%s20220_s6 + $0x24] ss:$16 sps:$4 sm:$0xff]   ;;  %v16777_v10 = vld [vmem:[%s20220_s6 + $0x2c] ss:$16 sps:$4 sm:$0xff]  }
 0x609   :  { %v13487_v8 = vpop.eup %13486  ;;  %v2929_v14 = vsub.f32 %v2905_v37, %v16499_v53 }
 0x60a   :  { %v13489_v51 = vpop.eup %13488  ;;  %v3064_v0 = vadd.f32 1.0, %v13487_v8  ;;  %v16786_v8 = vld [vmem:[%s20220_s6 + $0x20] ss:$16 sps:$4 sm:$0xff]  }
 0x60b   :  { %v13491_v12 = vpop.eup %13490  ;;  %v2906_v2 = vmul.f32 %v13489_v51, %v13485_v43  ;;  %v2931_v59 = vmul.f32 %v2929_v14, %v16519_v3 }
 0x60c   :  { %13500 = vrcp.f32 %v3064_v0  ;;  %v3076_v6 = vadd.f32 1.0, %v13491_v12  ;;  %v13493_v32 = vpop.eup %13492  ;;  %v16798_v0 = vld [vmem:[%s20220_s6 + $0x44] ss:$16 sps:$4 sm:$0xff]   ;;  %v16804_v12 = vld [vmem:[%s20220_s6 + $0x4c] ss:$16 sps:$4 sm:$0xff]  }
 0x60d   :  { %13502 = vtanh.f32 %v3056_v23  ;;  %v2930_v29 = vsub.f32 %v2906_v2, %v16502_v30  ;;  %v3065_v15 = vadd.f32 1.0, %v13493_v32  ;;  %v13495_v22 = vpop.eup %13494  ;;  %v16749_v18 = vadd.f32 %v2931_v59, %v16499_v53  ;;  %v16765_v53 = vld [vmem:[%s20220_s6 + $0x8] ss:$16 sps:$4 sm:$0xff]   ;;  %v16814_v59 = vld [vmem:[%s20220_s6 + $0x40] ss:$16 sps:$4 sm:$0xff]  }
 0x60e   :  { %13504 = vrcp.f32 %v3076_v6  ;;  %v3077_v48 = vadd.f32 1.0, %v13495_v22  ;;  %v13497_v31 = vpop.eup %13496  ;;  %v16792_v23 = vld [vmem:[%s20220_s6 + $0x28] ss:$16 sps:$4 sm:$0xff]  }
 0x60f   :  { %13506 = vpow2.f32 %v11508_v9  ;;  %v2932_v28 = vmul.f32 %v2930_v29, %v16530_v26  ;;  %v13499_v3 = vpop.eup %13498  ;;  %v16759_v26 = vld [vmem:[%s20220_s6] ss:$16 sps:$4 sm:$0xff]   ;;  %v16809_v29 = vpop.permute.xlu0 %3340 }
 0x610   :  { %13508 = vrcp.f32 %v3065_v15  ;;  %v3090_v37 = vadd.f32 1.0, %v13499_v3  ;;  %v16820_v15 = vld [vmem:[%s20220_s6 + $0x48] ss:$16 sps:$4 sm:$0xff]  }
 0x611   :  { %v16752_v47 = vadd.f32 %v2932_v28, %v16502_v30  ;;  %13510 = vrcp.f32 %v3077_v48  ;;  %v16827_v48 = vld [vmem:[%s20220_s6 + $0x64] ss:$16 sps:$4 sm:$0xff]  }
 0x612   :  { %13512 = vrcp.f32 %v3090_v37  ;;  %v16864_v37 = vld [vmem:[%s20220_s6 + $0x8c] ss:$16 sps:$4 sm:$0xff]  }
 0x613   :  { %v3107_v34 = vpack.c.bf16 %v16752_v47, %v16749_v18 }
 0x615   :  { %3141 = vmatmul.mubr.bf16.vlgmr.msra.gmra.mrb[48].mxu0 %v3107_v34  ;;  %3184 = vmatmul.mubr.bf16.vlgmr.msra.gmra.mrb[48].mxu1 %v3107_v34  ;;  %v16833_v34 = vld [vmem:[%s20220_s6 + $0x6c] ss:$16 sps:$4 sm:$0xff]  }
 0x616   :  { %v13501_v25 = vpop.eup %13500  ;;  %3195 = vmatpush1.bf16.msra.mxu0 %v16759_v26  ;;  %3238 = vmatpush1.bf16.msra.mxu1 %v16765_v53 }
 0x617   :  { %v13503_v30 = vpop.eup %13502  ;;  %v3098_v7 = vmul.f32 %v13501_v25, %v13497_v31  ;;  %3196 = vmatprep.subr.bf16.mxu0 %v16771_v19  ;;  %3239 = vmatprep.subr.bf16.mxu1 %v16777_v10  ;;  %v16840_v25 = vpop.permute.xlu1 %3345 }
 0x618   :  { %v13505_v35 = vpop.eup %13504  ;;  %3226 = vmatprep.mubr.bf16.mxu0 %v20604_v16  ;;  %3269 = vmatprep.mubr.bf16.mxu1 %v20604_v16 }
 0x619   :  { %v13507_v5 = vpop.eup %13506  ;;  %v3096_v52 = vmul.f32 %v13505_v35, %v16528_v4 }
 0x61a   :  { %v13509_v43 = vpop.eup %13508  ;;  %3197 = vmatpush1.bf16.msra.mxu0 %v16786_v8  ;;  %3240 = vmatpush1.bf16.msra.mxu1 %v16792_v23  ;;  %v3091_v9 = vadd.f32 1.0, %v13507_v5 }
 0x61b   :  { %v3100_v14 = vadd.f32 %v3098_v7, %v3096_v52  ;;  %v3099_v51 = vmul.f32 %v13509_v43, %v13503_v30  ;;  %3198 = vmatprep.subr.bf16.mxu0 %v16798_v0  ;;  %3241 = vmatprep.subr.bf16.mxu1 %v16804_v12  ;;  %v13511_v2 = vpop.eup %13510  ;;  %v16845_v30 = vld [vmem:[%s20220_s6 + $0x60] ss:$16 sps:$4 sm:$0xff]   ;;  %v16851_v7 = vld [vmem:[%s20220_s6 + $0x68] ss:$16 sps:$4 sm:$0xff]  }
 0x61c   :  { %v3097_v32 = vmul.f32 %v13511_v2, %v16538_v38  ;;  %v13513_v52 = vpop.eup %13512  ;;  %v16873_v43 = vld [vmem:[%s20220_s6 + $0x80] ss:$16 sps:$4 sm:$0xff]   ;;  %v16891_v2 = vld [vmem:[%s20220_s6 + $0xac] ss:$16 sps:$4 sm:$0xff]  }
 0x61d   :  { %13514 = vtanh.f32 %v3100_v14  ;;  %v3352_v6 = vsub.f32 %v3100_v14, %v16528_v4  ;;  %v16879_v14 = vld [vmem:[%s20220_s6 + $0x88] ss:$16 sps:$4 sm:$0xff]  }
 0x61e   :  { %3199 = vmatpush1.bf16.msra.mxu0 %v16814_v59  ;;  %3242 = vmatpush1.bf16.msra.mxu1 %v16820_v15  ;;  %v3101_v28 = vadd.f32 %v3099_v51, %v3097_v32  ;;  %13516 = vrcp.f32 %v3091_v9  ;;  %v16899_v32 = vld [vmem:[%s20220_s6 + $0xa0] ss:$16 sps:$4 sm:$0xff]  }
 0x61f   :  { %v3354_v22 = vmul.f32 %v3352_v6, %v16809_v29  ;;  %3200 = vmatprep.subr.bf16.mxu0 %v16827_v48  ;;  %3243 = vmatprep.subr.bf16.mxu1 %v16833_v34 }
 0x620   :  { %13518 = vtanh.f32 %v3101_v28  ;;  %v3353_v31 = vsub.f32 %v3101_v28, %v16538_v38 }
 0x621   :  { %v16838_v3 = vadd.f32 %v3354_v22, %v16528_v4  ;;  %v16858_v4 = vld [vmem:[%s20220_s6 + $0x84] ss:$16 sps:$4 sm:$0xff]   ;;  %v16905_v22 = vld [vmem:[%s20220_s6 + $0xa8] ss:$16 sps:$4 sm:$0xff]  }
 0x622   :  { %3201 = vmatpush1.bf16.msra.mxu0 %v16845_v30  ;;  %3244 = vmatpush1.bf16.msra.mxu1 %v16851_v7  ;;  %v3355_v35 = vmul.f32 %v3353_v31, %v16840_v25  ;;  %20806 = vst [vmem:[#allocation15_spill] sm:$0xff] %v16905_v22  ;;  %v16911_v31 = vld [vmem:[%s20220_s6 + $0xc4] ss:$16 sps:$4 sm:$0xff]  }
 0x623   :  { %3202 = vmatprep.subr.bf16.mxu0 %v16858_v4  ;;  %3245 = vmatprep.subr.bf16.mxu1 %v16864_v37  ;;  %20807 = vst [vmem:[#allocation16_spill] sm:$0xff] %v16911_v31 }
 0x624   :  { %v16868_v5 = vadd.f32 %v3355_v35, %v16538_v38  ;;  %v16885_v38 = vld [vmem:[%s20220_s6 + $0xa4] ss:$16 sps:$4 sm:$0xff]   ;;  %v16917_v35 = vld [vmem:[%s20220_s6 + $0xcc] ss:$16 sps:$4 sm:$0xff]  }
 0x626   :  { %3203 = vmatpush1.bf16.msra.mxu0 %v16873_v43  ;;  %3246 = vmatpush1.bf16.msra.mxu1 %v16879_v14 }
 0x627   :  { %v13515_v51 = vpop.eup %13514  ;;  %3204 = vmatprep.subr.bf16.mxu0 %v16885_v38  ;;  %3247 = vmatprep.subr.bf16.mxu1 %v16891_v2 }
 0x628   :  { %v16894_v9 = vmul.f32 %v13515_v51, %v13513_v52  ;;  %v13517_v6 = vpop.eup %13516  ;;  %v16925_v51 = vld [vmem:[%s20220_s6 + $0xc0] ss:$16 sps:$4 sm:$0xff]  }
 0x629   :  { %20808 = vst [vmem:[#allocation17_spill] sm:$0xff] %v16925_v51 }
 0x62a   :  { %3205 = vmatpush1.bf16.msra.mxu0 %v16899_v32  ;;  %3248 = vmatpush1.bf16.msra.mxu1 %v16905_v22  ;;  %v13519_v28 = vpop.eup %13518 }
 0x62b   :  { %3206 = vmatprep.subr.bf16.mxu0 %v16911_v31  ;;  %3249 = vmatprep.subr.bf16.mxu1 %v16917_v35  ;;  %v16920_v52 = vmul.f32 %v13519_v28, %v13517_v6  ;;  %v16931_v31 = vld [vmem:[%s20220_s6 + $0xc8] ss:$16 sps:$4 sm:$0xff]   ;;  %v16939_v6 = vld [vmem:[%s20220_s6 + $0xe4] ss:$16 sps:$4 sm:$0xff]   ;;  %v16945_v28 = vld [vmem:[%s20220_s6 + $0xec] ss:$16 sps:$4 sm:$0xff]  }
 0x62c   :  { %20809 = vst [vmem:[#allocation18_spill] sm:$0xff] %v16931_v31  ;;  %20810 = vst [vmem:[#allocation19_spill] sm:$0xff] %v16939_v6 }
 0x62d   :  { %v3106_v22 = vpack.c.bf16 %v16920_v52, %v16894_v9  ;;  %20811 = vst [vmem:[#allocation20_spill] sm:$0xff] %v16945_v28 }
 0x62e   :  { %3207 = vmatpush1.bf16.msra.mxu0 %v16925_v51  ;;  %3250 = vmatpush1.bf16.msra.mxu1 %v16931_v31  ;;  %v16951_v31 = vld [vmem:[%s20220_s6 + $0xe0] ss:$16 sps:$4 sm:$0xff]   ;;  %v16957_v51 = vld [vmem:[%s20220_s6 + $0xe8] ss:$16 sps:$4 sm:$0xff]  }
 0x62f   :  { %3208 = vmatprep.subr.bf16.mxu0 %v16939_v6  ;;  %3251 = vmatprep.subr.bf16.mxu1 %v16945_v28  ;;  %20812 = vst [vmem:[#allocation21_spill] sm:$0xff] %v16951_v31  ;;  %20813 = vst [vmem:[#allocation22_spill] sm:$0xff] %v16957_v51  ;;  %v16963_v6 = vld [vmem:[%s20218_s4 + $0x4] ss:$16 sps:$4 sm:$0xff]   ;;  %v16969_v28 = vld [vmem:[%s20218_s4 + $0xc] ss:$16 sps:$4 sm:$0xff]  }
 0x630   :  { %20814 = vst [vmem:[#allocation23_spill] sm:$0xff] %v16963_v6  ;;  %20815 = vst [vmem:[#allocation24_spill] sm:$0xff] %v16969_v28 }
 0x632   :  { %3209 = vmatpush1.bf16.msra.mxu0 %v16951_v31  ;;  %3252 = vmatpush1.bf16.msra.mxu1 %v16957_v51  ;;  %v16975_v51 = vld [vmem:[%s20218_s4] ss:$16 sps:$4 sm:$0xff]  }
 0x633   :  { %3385 = vmatprep.subr.bf16.mxu0 %v16963_v6  ;;  %3428 = vmatprep.subr.bf16.mxu1 %v16969_v28  ;;  %20816 = vst [vmem:[#allocation25_spill] sm:$0xff] %v16975_v51  ;;  %v16981_v6 = vld [vmem:[%s20218_s4 + $0x8] ss:$16 sps:$4 sm:$0xff]   ;;  %v16987_v28 = vld [vmem:[%s20218_s4 + $0x24] ss:$16 sps:$4 sm:$0xff]  }
 0x634   :  { %20817 = vst [vmem:[#allocation26_spill] sm:$0xff] %v16981_v6  ;;  %20818 = vst [vmem:[#allocation33_spill] sm:$0xff] %v16987_v28 }
 0x635   :  { %3227 = vmatmul.mubr.bf16.vlgmr.msra.gmra.mrb[48].mxu0 %v3106_v22  ;;  %3270 = vmatmul.mubr.bf16.vlgmr.msra.gmra.mrb[48].mxu1 %v3106_v22  ;;  %v16993_v22 = vld [vmem:[%s20218_s4 + $0x2c] ss:$16 sps:$4 sm:$0xff]  }
 0x636   :  { %3386 = vmatpush1.bf16.msra.mxu0 %v16975_v51  ;;  %3429 = vmatpush1.bf16.msra.mxu1 %v16981_v6  ;;  %20819 = vst [vmem:[#allocation34_spill] sm:$0xff] %v16993_v22  ;;  %v17001_v6 = vld [vmem:[%s20218_s4 + $0x20] ss:$16 sps:$4 sm:$0xff]   ;;  %v17019_v51 = vld [vmem:[%s20218_s4 + $0x4c] ss:$16 sps:$4 sm:$0xff]  }
 0x637   :  { %3387 = vmatprep.subr.bf16.mxu0 %v16987_v28  ;;  %3430 = vmatprep.subr.bf16.mxu1 %v16993_v22  ;;  %20820 = vst [vmem:[#allocation35_spill] sm:$0xff] %v17001_v6  ;;  %v17007_v28 = vld [vmem:[%s20218_s4 + $0x28] ss:$16 sps:$4 sm:$0xff]   ;;  %v17013_v22 = vld [vmem:[%s20218_s4 + $0x44] ss:$16 sps:$4 sm:$0xff]   ;;  %20823 = vst [vmem:[#allocation38_spill] sm:$0xff] %v17019_v51 }
 0x638   :  { %3417 = vmatprep.mubr.bf16.mxu0 %v20604_v16  ;;  %3460 = vmatprep.mubr.bf16.mxu1 %v20604_v16  ;;  %20821 = vst [vmem:[#allocation36_spill] sm:$0xff] %v17007_v28  ;;  %20822 = vst [vmem:[#allocation37_spill] sm:$0xff] %v17013_v22 }
 0x63a   :  { %3388 = vmatpush1.bf16.msra.mxu0 %v17001_v6  ;;  %3431 = vmatpush1.bf16.msra.mxu1 %v17007_v28  ;;  %v17025_v6 = vld [vmem:[%s20218_s4 + $0x40] ss:$16 sps:$4 sm:$0xff]   ;;  %v17031_v28 = vld [vmem:[%s20218_s4 + $0x48] ss:$16 sps:$4 sm:$0xff]  }
 0x63b   :  { %3389 = vmatprep.subr.bf16.mxu0 %v17013_v22  ;;  %3432 = vmatprep.subr.bf16.mxu1 %v17019_v51  ;;  %20824 = vst [vmem:[#allocation39_spill] sm:$0xff] %v17025_v6  ;;  %20825 = vst [vmem:[#allocation40_spill] sm:$0xff] %v17031_v28  ;;  %v17037_v22 = vld [vmem:[%s20218_s4 + $0x64] ss:$16 sps:$4 sm:$0xff]   ;;  %v17043_v51 = vld [vmem:[%s20218_s4 + $0x6c] ss:$16 sps:$4 sm:$0xff]  }
 0x63c   :  { %20826 = vst [vmem:[#allocation41_spill] sm:$0xff] %v17037_v22  ;;  %20827 = vst [vmem:[#allocation42_spill] sm:$0xff] %v17043_v51 }
 0x63e   :  { %3390 = vmatpush1.bf16.msra.mxu0 %v17025_v6  ;;  %3433 = vmatpush1.bf16.msra.mxu1 %v17031_v28  ;;  %v17049_v6 = vld [vmem:[%s20218_s4 + $0x60] ss:$16 sps:$4 sm:$0xff]   ;;  %v17055_v28 = vld [vmem:[%s20218_s4 + $0x68] ss:$16 sps:$4 sm:$0xff]  }
 0x63f   :  { %3391 = vmatprep.subr.bf16.mxu0 %v17037_v22  ;;  %3434 = vmatprep.subr.bf16.mxu1 %v17043_v51  ;;  %20828 = vst [vmem:[#allocation43_spill] sm:$0xff] %v17049_v6  ;;  %20829 = vst [vmem:[#allocation44_spill] sm:$0xff] %v17055_v28  ;;  %v17061_v22 = vld [vmem:[%s20218_s4 + $0x84] ss:$16 sps:$4 sm:$0xff]   ;;  %v17067_v51 = vld [vmem:[%s20218_s4 + $0x8c] ss:$16 sps:$4 sm:$0xff]  }
 0x640   :  { %20830 = vst [vmem:[#allocation45_spill] sm:$0xff] %v17061_v22  ;;  %20831 = vst [vmem:[#allocation46_spill] sm:$0xff] %v17067_v51 }
 0x642   :  { %3392 = vmatpush1.bf16.msra.mxu0 %v17049_v6  ;;  %3435 = vmatpush1.bf16.msra.mxu1 %v17055_v28  ;;  %v17073_v6 = vld [vmem:[%s20218_s4 + $0x80] ss:$16 sps:$4 sm:$0xff]   ;;  %v17079_v28 = vld [vmem:[%s20218_s4 + $0x88] ss:$16 sps:$4 sm:$0xff]  }
 0x643   :  { %3393 = vmatprep.subr.bf16.mxu0 %v17061_v22  ;;  %3436 = vmatprep.subr.bf16.mxu1 %v17067_v51  ;;  %20832 = vst [vmem:[#allocation47_spill] sm:$0xff] %v17073_v6  ;;  %20833 = vst [vmem:[#allocation48_spill] sm:$0xff] %v17079_v28  ;;  %v3337_v22 = vsub.f32 %v16920_v52, %v16591_v56  ;;  %v17087_v51 = vld [vmem:[%s20218_s4 + $0xa4] ss:$16 sps:$4 sm:$0xff]   ;;  %v17101_v52 = vld [vmem:[%s20218_s4 + $0xa0] ss:$16 sps:$4 sm:$0xff]  }
 0x644   :  { %20834 = vst [vmem:[#allocation49_spill] sm:$0xff] %v17087_v51  ;;  %20836 = vst [vmem:[#allocation51_spill] sm:$0xff] %v17101_v52 }
 0x645   :  { %v3349_v31 = vmul.f32 %v16840_v25, %v3337_v22  ;;  %v17127_v22 = vld [vmem:[%s20218_s4 + $0xc0] ss:$16 sps:$4 sm:$0xff]  }
 0x646   :  { %3394 = vmatpush1.bf16.msra.mxu0 %v17073_v6  ;;  %3437 = vmatpush1.bf16.msra.mxu1 %v17079_v28  ;;  %v17093_v6 = vld [vmem:[%s20218_s4 + $0xac] ss:$16 sps:$4 sm:$0xff]   ;;  %v3336_v28 = vsub.f32 %v16894_v9, %v16594_v63  ;;  %v17114_v9 = vld [vmem:[%s20218_s4 + $0xc4] ss:$16 sps:$4 sm:$0xff]   ;;  %20840 = vst [vmem:[#allocation55_spill] sm:$0xff] %v17127_v22 }
 0x647   :  { %3395 = vmatprep.subr.bf16.mxu0 %v17087_v51  ;;  %20835 = vst [vmem:[#allocation50_spill] sm:$0xff] %v17093_v6  ;;  %3438 = vmatprep.subr.bf16.mxu1 %v17093_v6  ;;  %v17107_v51 = vld [vmem:[%s20218_s4 + $0xa8] ss:$16 sps:$4 sm:$0xff]   ;;  %20838 = vst [vmem:[#allocation53_spill] sm:$0xff] %v17114_v9 }
 0x648   :  { %20837 = vst [vmem:[#allocation52_spill] sm:$0xff] %v17107_v51  ;;  %v3348_v6 = vmul.f32 %v16809_v29, %v3336_v28  ;;  %v17145_v28 = vld [vmem:[%s20218_s4 + $0xec] ss:$16 sps:$4 sm:$0xff]  }
 0x64a   :  { %3396 = vmatpush1.bf16.msra.mxu0 %v17101_v52  ;;  %3439 = vmatpush1.bf16.msra.mxu1 %v17107_v51  ;;  %v17120_v52 = vld [vmem:[%s20218_s4 + $0xcc] ss:$16 sps:$4 sm:$0xff]   ;;  %v17152_v51 = vadd.f32 %v3348_v6, %v16594_v63  ;;  %v17171_v63 = vld [vmem:[%s20221_s7 + $0x4] ss:$16 sps:$4 sm:$0xff]   ;;  %v17183_v6 = vld [vmem:[%s20221_s7] ss:$16 sps:$4 sm:$0xff]  }
 0x64b   :  { %3397 = vmatprep.subr.bf16.mxu0 %v17114_v9  ;;  %20839 = vst [vmem:[#allocation54_spill] sm:$0xff] %v17120_v52  ;;  %3440 = vmatprep.subr.bf16.mxu1 %v17120_v52  ;;  %v17133_v9 = vld [vmem:[%s20218_s4 + $0xc8] ss:$16 sps:$4 sm:$0xff]   ;;  %v17139_v52 = vld [vmem:[%s20218_s4 + $0xe4] ss:$16 sps:$4 sm:$0xff]   ;;  %20843 = vst [vmem:[#allocation58_spill] sm:$0xff] %v17171_v63 }
 0x64c   :  { %20841 = vst [vmem:[#allocation56_spill] sm:$0xff] %v17133_v9  ;;  %20842 = vst [vmem:[#allocation57_spill] sm:$0xff] %v17139_v52 }
 0x64d   :  { %20845 = vst [vmem:[#allocation60_spill] sm:$0xff] %v17183_v6 }
 0x64e   :  { %3398 = vmatpush1.bf16.msra.mxu0 %v17127_v22  ;;  %3441 = vmatpush1.bf16.msra.mxu1 %v17133_v9  ;;  %v17149_v22 = vadd.f32 %v3349_v31, %v16591_v56  ;;  %v17157_v9 = vld [vmem:[%s20218_s4 + $0xe0] ss:$16 sps:$4 sm:$0xff]   ;;  %v17177_v31 = vld [vmem:[%s20221_s7 + $0xc] ss:$16 sps:$4 sm:$0xff]  }
 0x64f   :  { %3399 = vmatprep.subr.bf16.mxu0 %v17139_v52  ;;  %3442 = vmatprep.subr.bf16.mxu1 %v17145_v28  ;;  %v17163_v52 = vld [vmem:[%s20218_s4 + $0xe8] ss:$16 sps:$4 sm:$0xff]   ;;  %20844 = vst [vmem:[#allocation59_spill] sm:$0xff] %v17177_v31 }
 0x650   :  { %v3384_v56 = vpack.c.bf16 %v17149_v22, %v17152_v51 }
 0x652   :  { %3400 = vmatpush1.bf16.msra.mxu0 %v17157_v9  ;;  %3443 = vmatpush1.bf16.msra.mxu1 %v17163_v52 }
 0x653   :  { %3537 = vmatprep.subr.bf16.mxu0 %v17171_v63  ;;  %3580 = vmatprep.subr.bf16.mxu1 %v17177_v31  ;;  %v17189_v63 = vld [vmem:[%s20221_s7 + $0x8] ss:$16 sps:$4 sm:$0xff]   ;;  %v17195_v31 = vld [vmem:[%s20221_s7 + $0x24] ss:$16 sps:$4 sm:$0xff]  }
 0x654   :  { %20846 = vst [vmem:[#allocation61_spill] sm:$0xff] %v17189_v63  ;;  %20847 = vst [vmem:[#allocation62_spill] sm:$0xff] %v17195_v31 }
 0x655   :  { %3418 = vmatmul.mubr.bf16.vlgmr.msra.gmra.mrb[20].mxu0 %v3384_v56  ;;  %3461 = vmatmul.mubr.bf16.vlgmr.msra.gmra.mrb[20].mxu1 %v3384_v56  ;;  %v17201_v56 = vld [vmem:[%s20221_s7 + $0x2c] ss:$16 sps:$4 sm:$0xff]  }
 0x656   :  { %3538 = vmatpush1.bf16.msra.mxu0 %v17183_v6  ;;  %3581 = vmatpush1.bf16.msra.mxu1 %v17189_v63  ;;  %20848 = vst [vmem:[#allocation63_spill] sm:$0xff] %v17201_v56  ;;  %v17209_v63 = vld [vmem:[%s20221_s7 + $0x20] ss:$16 sps:$4 sm:$0xff]   ;;  %v17227_v6 = vld [vmem:[%s20221_s7 + $0x4c] ss:$16 sps:$4 sm:$0xff]  }
 0x657   :  { %3539 = vmatprep.subr.bf16.mxu0 %v17195_v31  ;;  %3582 = vmatprep.subr.bf16.mxu1 %v17201_v56  ;;  %20849 = vst [vmem:[#allocation64_spill] sm:$0xff] %v17209_v63  ;;  %v17215_v31 = vld [vmem:[%s20221_s7 + $0x28] ss:$16 sps:$4 sm:$0xff]   ;;  %v17221_v56 = vld [vmem:[%s20221_s7 + $0x44] ss:$16 sps:$4 sm:$0xff]   ;;  %20852 = vst [vmem:[#allocation67_spill] sm:$0xff] %v17227_v6 }
 0x658   :  { %3569 = vmatprep.mubr.bf16.mxu0 %v20604_v16  ;;  %3612 = vmatprep.mubr.bf16.mxu1 %v20604_v16  ;;  %20850 = vst [vmem:[#allocation65_spill] sm:$0xff] %v17215_v31  ;;  %20851 = vst [vmem:[#allocation66_spill] sm:$0xff] %v17221_v56 }
 0x65a   :  { %3540 = vmatpush1.bf16.msra.mxu0 %v17209_v63  ;;  %3583 = vmatpush1.bf16.msra.mxu1 %v17215_v31  ;;  %v17233_v63 = vld [vmem:[%s20221_s7 + $0x40] ss:$16 sps:$4 sm:$0xff]   ;;  %v17239_v31 = vld [vmem:[%s20221_s7 + $0x48] ss:$16 sps:$4 sm:$0xff]  }
 0x65b   :  { %3541 = vmatprep.subr.bf16.mxu0 %v17221_v56  ;;  %3584 = vmatprep.subr.bf16.mxu1 %v17227_v6  ;;  %20853 = vst [vmem:[#allocation13_spill] sm:$0xff] %v17233_v63  ;;  %20854 = vst [vmem:[#allocation14_spill] sm:$0xff] %v17239_v31  ;;  %v17245_v56 = vld [vmem:[%s20221_s7 + $0x64] ss:$16 sps:$4 sm:$0xff]   ;;  %v17251_v6 = vld [vmem:[%s20221_s7 + $0x6c] ss:$16 sps:$4 sm:$0xff]  }
 0x65e   :  { %3542 = vmatpush1.bf16.msra.mxu0 %v17233_v63  ;;  %3585 = vmatpush1.bf16.msra.mxu1 %v17239_v31  ;;  %v17257_v63 = vld [vmem:[%s20221_s7 + $0x60] ss:$16 sps:$4 sm:$0xff]   ;;  %v17263_v31 = vld [vmem:[%s20221_s7 + $0x68] ss:$16 sps:$4 sm:$0xff]  }
 0x65f   :  { %3543 = vmatprep.subr.bf16.mxu0 %v17245_v56  ;;  %3586 = vmatprep.subr.bf16.mxu1 %v17251_v6  ;;  %20855 = vst [vmem:[#allocation30_spill] sm:$0xff] %v17257_v63  ;;  %20856 = vst [vmem:[#allocation71_spill] sm:$0xff] %v17263_v31 }
 0x662   :  { %3544 = vmatpush1.bf16.msra.mxu0 %v17257_v63  ;;  %3587 = vmatpush1.bf16.msra.mxu1 %v17263_v31 }
 0x663   :  { %3545 = vmatprep.subr.bf16.mxu0 %v16621_v40  ;;  %3588 = vmatprep.subr.bf16.mxu1 %v16627_v33  ;;  %v17285_v40 = vld [vmem:[%s20220_s6 + $0x4] ss:$16 sps:$4 sm:$0xff]   ;;  %v17291_v33 = vld [vmem:[%s20220_s6 + $0xc] ss:$16 sps:$4 sm:$0xff]  }
 0x664   :  { %20857 = vst [vmem:[#allocation72_spill] sm:$0xff] %v17285_v40  ;;  %20858 = vst [vmem:[#allocation73_spill] sm:$0xff] %v17291_v33 }
 0x666   :  { %3546 = vmatpush1.bf16.msra.mxu0 %v16633_v24  ;;  %3589 = vmatpush1.bf16.msra.mxu1 %v16639_v1 }
 0x667   :  { %3547 = vmatprep.subr.bf16.mxu0 %v16645_v57  ;;  %3590 = vmatprep.subr.bf16.mxu1 %v16651_v45 }
 0x66a   :  { %3548 = vmatpush1.bf16.msra.mxu0 %v16657_v17  ;;  %3591 = vmatpush1.bf16.msra.mxu1 %v16663_v46 }
 0x66b   :  { %3549 = vmatprep.subr.bf16.mxu0 %v16669_v54  ;;  %3592 = vmatprep.subr.bf16.mxu1 %v16675_v60 }
 0x66e   :  { %3550 = vmatpush1.bf16.msra.mxu0 %v16681_v11  ;;  %3593 = vmatpush1.bf16.msra.mxu1 %v16687_v44 }
 0x66f   :  { %3551 = vmatprep.subr.bf16.mxu0 %v16693_v42  ;;  %3594 = vmatprep.subr.bf16.mxu1 %v16699_v61 }
 0x672   :  { %3552 = vmatpush1.bf16.msra.mxu0 %v16705_v55  ;;  %3595 = vmatpush1.bf16.msra.mxu1 %v16711_v58 }
 0x673   :  { %3623 = vmatprep.subr.bf16.mxu0 %v17285_v40  ;;  %3666 = vmatprep.subr.bf16.mxu1 %v17291_v33 }
 0x708   :  { %v3228_v24 = vpop.f32.mrb[48].mxu0  ;;  %v3271_v1 = vpop.f32.mrb[48].mxu1 }
 0x709   :  { %v3280_v57 = vadd.f32 %v3228_v24, %v20802_v62  ;;  %v3230_v45 = vpop.f32.mrb[49].mxu0  ;;  %v3273_v17 = vpop.f32.mrb[49].mxu1 }
 0x70a   :  { %v3281_v46 = vadd.f32 %v3230_v45, %v15644_v36  ;;  %v3232_v54 = vpop.f32.mrb[50].mxu0  ;;  %v3275_v60 = vpop.f32.mrb[50].mxu1  ;;  %v3283_v24 = vadd.f32 %v3273_v17, %v20803_v41  ;;  %v3282_v45 = vadd.f32 %v3271_v1, %v20804_v49 }
 0x70b   :  { %v11509_v11 = vmul.f32 -1.442695, %v3280_v57  ;;  %v3284_v44 = vadd.f32 %v3232_v54, %v20802_v62  ;;  %v3234_v42 = vpop.f32.mrb[51].mxu0  ;;  %v3277_v61 = vpop.f32.mrb[51].mxu1 }
 0x70c   :  { %v11511_v55 = vmul.f32 -1.442695, %v3281_v46  ;;  %v3285_v58 = vadd.f32 %v3234_v42, %v15644_v36  ;;  %v3287_v31 = vadd.f32 %v3277_v61, %v20803_v41  ;;  %v11513_v57 = vmul.f32 -1.442695, %v3283_v24 }
 0x70d   :  { %13520 = vpow2.f32 %v11509_v11  ;;  %v11510_v33 = vmul.f32 -1.442695, %v3284_v44  ;;  %v3286_v11 = vadd.f32 %v3275_v60, %v20804_v49 }
 0x70e   :  { %13522 = vpow2.f32 %v11511_v55  ;;  %v11512_v40 = vmul.f32 -1.442695, %v3285_v58  ;;  %v11514_v63 = vmul.f32 -1.442695, %v3287_v31 }
 0x70f   :  { %13524 = vpow2.f32 %v11510_v33 }
 0x710   :  { %13526 = vpow2.f32 %v11512_v40 }
 0x711   :  { %13528 = vtanh.f32 %v3282_v45 }
 0x712   :  { %13530 = vpow2.f32 %v11513_v57 }
 0x713   :  { %13532 = vpow2.f32 %v11514_v63 }
 0x717   :  { %v13521_v54 = vpop.eup %13520 }
 0x718   :  { %v13523_v62 = vpop.eup %13522  ;;  %v3294_v46 = vadd.f32 1.0, %v13521_v54 }
 0x719   :  { %v3306_v44 = vadd.f32 1.0, %v13523_v62  ;;  %v13525_v42 = vpop.eup %13524 }
 0x71a   :  { %13534 = vrcp.f32 %v3294_v46  ;;  %v3295_v33 = vadd.f32 1.0, %v13525_v42  ;;  %v13527_v17 = vpop.eup %13526 }
 0x71b   :  { %13536 = vrcp.f32 %v3306_v44  ;;  %v3307_v40 = vadd.f32 1.0, %v13527_v17  ;;  %v13529_v1 = vpop.eup %13528 }
 0x71c   :  { %13538 = vtanh.f32 %v3286_v11  ;;  %v13531_v31 = vpop.eup %13530 }
 0x71d   :  { %13540 = vrcp.f32 %v3295_v33  ;;  %v13533_v61 = vpop.eup %13532  ;;  %v3320_v45 = vadd.f32 1.0, %v13531_v31 }
 0x71e   :  { %13542 = vrcp.f32 %v3307_v40  ;;  %v3321_v46 = vadd.f32 1.0, %v13533_v61 }
 0x71f   :  { %13544 = vrcp.f32 %v3320_v45 }
 0x724   :  { %v13535_v55 = vpop.eup %13534 }
 0x725   :  { %v13537_v58 = vpop.eup %13536  ;;  %v3328_v24 = vmul.f32 %v13535_v55, %v13529_v1 }
 0x726   :  { %v13539_v57 = vpop.eup %13538  ;;  %v3326_v62 = vmul.f32 %v13537_v58, %v16734_v50 }
 0x727   :  { %v13541_v63 = vpop.eup %13540 }
 0x728   :  { %v3330_v60 = vadd.f32 %v3328_v24, %v3326_v62  ;;  %v3329_v54 = vmul.f32 %v13541_v63, %v13539_v57  ;;  %v3419_v44 = vpop.f32.mrb[20].mxu0  ;;  %v3462_v42 = vpop.f32.mrb[20].mxu1 }
 0x729   :  { %v13543_v11 = vpop.eup %13542  ;;  %v3479_v33 = vadd.f32 %v3419_v44, %v20805_v39  ;;  %v3421_v17 = vpop.f32.mrb[21].mxu0 }
 0x72a   :  { %v3464_v40 = vpop.f32.mrb[21].mxu1  ;;  %13546 = vtanh.f32 %v3330_v60  ;;  %v3364_v49 = vsub.f32 %v3330_v60, %v16734_v50  ;;  %v3327_v1 = vmul.f32 %v13543_v11, %v16739_v20  ;;  %v3480_v31 = vadd.f32 %v3421_v17, %v20695_v21  ;;  %v3423_v55 = vpop.f32.mrb[22].mxu0 }
 0x72b   :  { %v3466_v58 = vpop.f32.mrb[22].mxu1  ;;  %v11517_v24 = vmul.f32 -1.442695, %v3479_v33  ;;  %v3483_v61 = vadd.f32 %v3423_v55, %v20805_v39  ;;  %v3425_v57 = vpop.f32.mrb[23].mxu0  ;;  %13548 = vrcp.f32 %v3321_v46  ;;  %v3482_v39 = vadd.f32 %v3464_v40, %v15307_v13 }
 0x72c   :  { %v3468_v62 = vpop.f32.mrb[23].mxu1  ;;  %v3366_v45 = vmul.f32 %v3364_v49, %v16809_v29  ;;  %v3331_v63 = vadd.f32 %v3329_v54, %v3327_v1  ;;  %v11519_v44 = vmul.f32 -1.442695, %v3480_v31  ;;  %v3484_v60 = vadd.f32 %v3425_v57, %v20695_v21  ;;  %v13545_v54 = vpop.eup %13544 }
 0x72d   :  { %13550 = vpow2.f32 %v11517_v24  ;;  %v11518_v41 = vmul.f32 -1.442695, %v3483_v61  ;;  %v3481_v1 = vadd.f32 %v3462_v42, %v15311_v27  ;;  %v11521_v24 = vmul.f32 -1.442695, %v3482_v39 }
 0x72e   :  { %13552 = vtanh.f32 %v3331_v63  ;;  %v3365_v11 = vsub.f32 %v3331_v63, %v16739_v20  ;;  %v17312_v17 = vadd.f32 %v3366_v45, %v16734_v50  ;;  %v11520_v33 = vmul.f32 -1.442695, %v3484_v60 }
 0x72f   :  { %13554 = vpow2.f32 %v11519_v44  ;;  %v3486_v50 = vadd.f32 %v3468_v62, %v15307_v13  ;;  %v3485_v45 = vadd.f32 %v3466_v58, %v15311_v27 }
 0x730   :  { %v3367_v55 = vmul.f32 %v3365_v11, %v16840_v25  ;;  %13556 = vpow2.f32 %v11518_v41 }
 0x731   :  { %13558 = vpow2.f32 %v11520_v33  ;;  %v11522_v60 = vmul.f32 -1.442695, %v3486_v50 }
 0x732   :  { %v17317_v49 = vadd.f32 %v3367_v55, %v16739_v20  ;;  %13560 = vtanh.f32 %v3481_v1 }
 0x733   :  { %13562 = vpow2.f32 %v11521_v24 }
 0x734   :  { %v13547_v46 = vpop.eup %13546 }
 0x735   :  { %v3334_v31 = vmul.f32 %v13547_v46, %v13545_v54  ;;  %v13549_v61 = vpop.eup %13548 }
 0x737   :  { %v13551_v57 = vpop.eup %13550  ;;  %v3358_v63 = vsub.f32 %v3334_v31, %v16749_v18 }
 0x738   :  { %v13553_v40 = vpop.eup %13552  ;;  %v3493_v41 = vadd.f32 1.0, %v13551_v57 }
 0x739   :  { %v13555_v20 = vpop.eup %13554  ;;  %v3335_v44 = vmul.f32 %v13553_v40, %v13549_v61  ;;  %v3360_v62 = vmul.f32 %v3358_v63, %v16809_v29 }
 0x73a   :  { %13564 = vrcp.f32 %v3493_v41  ;;  %v3505_v11 = vadd.f32 1.0, %v13555_v20  ;;  %v13557_v42 = vpop.eup %13556  ;;  %v17347_v20 = vpop.permute.xlu0 %3769 }
 0x73b   :  { %13566 = vtanh.f32 %v3485_v45  ;;  %v3359_v39 = vsub.f32 %v3335_v44, %v16752_v47  ;;  %v3494_v33 = vadd.f32 1.0, %v13557_v42  ;;  %v13559_v58 = vpop.eup %13558  ;;  %v17327_v46 = vadd.f32 %v3360_v62, %v16749_v18  ;;  %v17358_v44 = vpop.permute.xlu1 %3774  ;;  %v20867_v42 = vld [vmem:[#allocation23_spill] sm:$0xff]  ;;  %v20870_v62 = vld [vmem:[#allocation26_spill] sm:$0xff] }
 0x73c   :  { %13568 = vrcp.f32 %v3505_v11  ;;  %v3506_v54 = vadd.f32 1.0, %v13559_v58  ;;  %v13561_v24 = vpop.eup %13560  ;;  %v20865_v11 = vld [vmem:[#allocation21_spill] sm:$0xff]  ;;  %v20872_v58 = vld [vmem:[#allocation34_spill] sm:$0xff] }
 0x73d   :  { %13570 = vpow2.f32 %v11522_v60  ;;  %v3361_v55 = vmul.f32 %v3359_v39, %v16840_v25  ;;  %v13563_v29 = vpop.eup %13562  ;;  %v20868_v39 = vld [vmem:[#allocation24_spill] sm:$0xff] }
 0x73e   :  { %13572 = vrcp.f32 %v3494_v33  ;;  %v20871_v33 = vld [vmem:[#allocation33_spill] sm:$0xff] }
 0x73f   :  { %v17330_v1 = vadd.f32 %v3361_v55, %v16752_v47  ;;  %13574 = vrcp.f32 %v3506_v54  ;;  %v3519_v47 = vadd.f32 1.0, %v13563_v29  ;;  %v20873_v55 = vld [vmem:[#allocation35_spill] sm:$0xff]  ;;  %v20874_v54 = vld [vmem:[#allocation36_spill] sm:$0xff] }
 0x740   :  { %v20877_v29 = vld [vmem:[#allocation39_spill] sm:$0xff] }
 0x741   :  { %v3536_v31 = vpack.c.bf16 %v17330_v1, %v17327_v46  ;;  %13576 = vrcp.f32 %v3519_v47  ;;  %v20882_v47 = vld [vmem:[#allocation44_spill] sm:$0xff] }
 0x743   :  { %3570 = vmatmul.mubr.bf16.vlgmr.msra.gmra.mrb[52].mxu0 %v3536_v31  ;;  %3613 = vmatmul.mubr.bf16.vlgmr.msra.gmra.mrb[52].mxu1 %v3536_v31  ;;  %v20875_v31 = vld [vmem:[#allocation37_spill] sm:$0xff] }
 0x744   :  { %v13565_v50 = vpop.eup %13564  ;;  %3624 = vmatpush1.bf16.msra.mxu0 %v16759_v26  ;;  %3667 = vmatpush1.bf16.msra.mxu1 %v16765_v53 }
 0x745   :  { %v13567_v25 = vpop.eup %13566  ;;  %v3527_v61 = vmul.f32 %v13565_v50, %v13561_v24  ;;  %3625 = vmatprep.subr.bf16.mxu0 %v16771_v19  ;;  %3668 = vmatprep.subr.bf16.mxu1 %v16777_v10  ;;  %v20876_v24 = vld [vmem:[#allocation38_spill] sm:$0xff]  ;;  %v20878_v50 = vld [vmem:[#allocation40_spill] sm:$0xff] }
 0x746   :  { %v13569_v18 = vpop.eup %13568  ;;  %3655 = vmatprep.mubr.bf16.mxu0 %v20604_v16  ;;  %3698 = vmatprep.mubr.bf16.mxu1 %v20604_v16 }
 0x747   :  { %v13571_v57 = vpop.eup %13570  ;;  %v3525_v45 = vmul.f32 %v13569_v18, %v16838_v3  ;;  %v20881_v18 = vld [vmem:[#allocation43_spill] sm:$0xff] }
 0x748   :  { %v13573_v63 = vpop.eup %13572  ;;  %3626 = vmatpush1.bf16.msra.mxu0 %v16786_v8  ;;  %3669 = vmatpush1.bf16.msra.mxu1 %v16792_v23  ;;  %v3520_v10 = vadd.f32 1.0, %v13571_v57  ;;  %v20883_v57 = vld [vmem:[#allocation45_spill] sm:$0xff] }
 0x749   :  { %v3529_v26 = vadd.f32 %v3527_v61, %v3525_v45  ;;  %v3528_v53 = vmul.f32 %v13573_v63, %v13567_v25  ;;  %3627 = vmatprep.subr.bf16.mxu0 %v16798_v0  ;;  %3670 = vmatprep.subr.bf16.mxu1 %v16804_v12  ;;  %v13575_v19 = vpop.eup %13574  ;;  %v20879_v25 = vld [vmem:[#allocation41_spill] sm:$0xff]  ;;  %v20880_v61 = vld [vmem:[#allocation42_spill] sm:$0xff]  ;;  %v20885_v63 = vld [vmem:[#allocation47_spill] sm:$0xff] }
 0x74a   :  { %v3526_v41 = vmul.f32 %v13575_v19, %v16868_v5  ;;  %v20884_v45 = vld [vmem:[#allocation46_spill] sm:$0xff]  ;;  %v20887_v19 = vld [vmem:[#allocation49_spill] sm:$0xff] }
 0x74b   :  { %13578 = vtanh.f32 %v3529_v26  ;;  %v3781_v40 = vsub.f32 %v3529_v26, %v16838_v3  ;;  %v20886_v26 = vld [vmem:[#allocation48_spill] sm:$0xff] }
 0x74c   :  { %3628 = vmatpush1.bf16.msra.mxu0 %v16814_v59  ;;  %3671 = vmatpush1.bf16.msra.mxu1 %v16820_v15  ;;  %v3530_v23 = vadd.f32 %v3528_v53, %v3526_v41  ;;  %13580 = vrcp.f32 %v3520_v10  ;;  %v20888_v10 = vld [vmem:[#allocation50_spill] sm:$0xff]  ;;  %v20889_v41 = vld [vmem:[#allocation51_spill] sm:$0xff] }
 0x74d   :  { %v3783_v8 = vmul.f32 %v3781_v40, %v17347_v20  ;;  %3629 = vmatprep.subr.bf16.mxu0 %v16827_v48  ;;  %3672 = vmatprep.subr.bf16.mxu1 %v16833_v34  ;;  %v13577_v48 = vpop.eup %13576 }
 0x74e   :  { %13582 = vtanh.f32 %v3530_v23  ;;  %v3782_v0 = vsub.f32 %v3530_v23, %v16868_v5 }
 0x74f   :  { %v17356_v12 = vadd.f32 %v3783_v8, %v16838_v3  ;;  %v20890_v8 = vld [vmem:[#allocation52_spill] sm:$0xff] }
 0x750   :  { %3630 = vmatpush1.bf16.msra.mxu0 %v16845_v30  ;;  %3673 = vmatpush1.bf16.msra.mxu1 %v16851_v7  ;;  %v3784_v59 = vmul.f32 %v3782_v0, %v17358_v44  ;;  %v20859_v7 = vld [vmem:[#allocation15_spill] sm:$0xff]  ;;  %v20891_v0 = vld [vmem:[#allocation53_spill] sm:$0xff] }
 0x751   :  { %3631 = vmatprep.subr.bf16.mxu0 %v16858_v4  ;;  %3674 = vmatprep.subr.bf16.mxu1 %v16864_v37  ;;  %v20860_v37 = vld [vmem:[#allocation16_spill] sm:$0xff] }
 0x752   :  { %v17366_v15 = vadd.f32 %v3784_v59, %v16868_v5  ;;  %v20892_v59 = vld [vmem:[#allocation54_spill] sm:$0xff] }
 0x754   :  { %3632 = vmatpush1.bf16.msra.mxu0 %v16873_v43  ;;  %3675 = vmatpush1.bf16.msra.mxu1 %v16879_v14  ;;  %v20861_v43 = vld [vmem:[#allocation17_spill] sm:$0xff]  ;;  %v20862_v14 = vld [vmem:[#allocation18_spill] sm:$0xff] }
 0x755   :  { %v13579_v34 = vpop.eup %13578  ;;  %3633 = vmatprep.subr.bf16.mxu0 %v16885_v38  ;;  %3676 = vmatprep.subr.bf16.mxu1 %v16891_v2  ;;  %v20863_v38 = vld [vmem:[#allocation19_spill] sm:$0xff]  ;;  %v20864_v2 = vld [vmem:[#allocation20_spill] sm:$0xff] }
 0x756   :  { %v3533_v3 = vmul.f32 %v13579_v34, %v13577_v48  ;;  %v13581_v30 = vpop.eup %13580  ;;  %v20893_v34 = vld [vmem:[#allocation55_spill] sm:$0xff] }
 0x758   :  { %3634 = vmatpush1.bf16.msra.mxu0 %v16899_v32  ;;  %3677 = vmatpush1.bf16.msra.mxu1 %v20859_v7  ;;  %v13583_v4 = vpop.eup %13582  ;;  %v20866_v32 = vld [vmem:[#allocation22_spill] sm:$0xff]  ;;  %v3765_v40 = vsub.f32 %v3533_v3, %v17152_v51  ;;  %v20895_v7 = vld [vmem:[#allocation57_spill] sm:$0xff] }
 0x759   :  { %3635 = vmatprep.subr.bf16.mxu0 %v20860_v37  ;;  %3678 = vmatprep.subr.bf16.mxu1 %v16917_v35  ;;  %v3534_v5 = vmul.f32 %v13583_v4, %v13581_v30  ;;  %v20869_v35 = vld [vmem:[#allocation25_spill] sm:$0xff]  ;;  %v20894_v30 = vld [vmem:[#allocation56_spill] sm:$0xff] }
 0x75a   :  { %v3777_v48 = vmul.f32 %v17347_v20, %v3765_v40 }
 0x75b   :  { %v3535_v60 = vpack.c.bf16 %v3534_v5, %v3533_v3  ;;  %v3766_v53 = vsub.f32 %v3534_v5, %v17149_v22  ;;  %v20896_v5 = vld [vmem:[#allocation58_spill] sm:$0xff] }
 0x75c   :  { %3636 = vmatpush1.bf16.msra.mxu0 %v20861_v43  ;;  %3679 = vmatpush1.bf16.msra.mxu1 %v20862_v14  ;;  %v17422_v4 = vadd.f32 %v3777_v48, %v17152_v51  ;;  %v20897_v43 = vld [vmem:[#allocation59_spill] sm:$0xff]  ;;  %v20900_v14 = vld [vmem:[#allocation62_spill] sm:$0xff] }
 0x75d   :  { %3637 = vmatprep.subr.bf16.mxu0 %v20863_v38  ;;  %3680 = vmatprep.subr.bf16.mxu1 %v20864_v2  ;;  %v3778_v23 = vmul.f32 %v17358_v44, %v3766_v53  ;;  %v20901_v51 = vld [vmem:[#allocation63_spill] sm:$0xff]  ;;  %v20906_v2 = vld [vmem:[#allocation13_spill] sm:$0xff] }
 0x75e   :  { %v20905_v38 = vld [vmem:[#allocation67_spill] sm:$0xff] }
 0x75f   :  { %v17419_v3 = vadd.f32 %v3778_v23, %v17149_v22  ;;  %v20899_v22 = vld [vmem:[#allocation61_spill] sm:$0xff] }
 0x760   :  { %3638 = vmatpush1.bf16.msra.mxu0 %v20865_v11  ;;  %3681 = vmatpush1.bf16.msra.mxu1 %v20866_v32  ;;  %v20907_v11 = vld [vmem:[#allocation14_spill] sm:$0xff] }
 0x761   :  { %3814 = vmatprep.subr.bf16.mxu0 %v20867_v42  ;;  %3857 = vmatprep.subr.bf16.mxu1 %v20868_v39  ;;  %v3813_v37 = vpack.c.bf16 %v17419_v3, %v17422_v4  ;;  %v20908_v32 = vld [vmem:[#allocation30_spill] sm:$0xff]  ;;  %v20909_v42 = vld [vmem:[#allocation71_spill] sm:$0xff] }
 0x762   :  { %v17449_v39 = vld [vmem:[%s20221_s7 + $0x84] ss:$16 sps:$4 sm:$0xff]  }
 0x763   :  { %3656 = vmatmul.mubr.bf16.vlgmr.msra.gmra.mrb[52].mxu0 %v3535_v60  ;;  %3699 = vmatmul.mubr.bf16.vlgmr.msra.gmra.mrb[52].mxu1 %v3535_v60  ;;  %v20904_v60 = vld [vmem:[#allocation66_spill] sm:$0xff] }
 0x764   :  { %3815 = vmatpush1.bf16.msra.mxu0 %v20869_v35  ;;  %3858 = vmatpush1.bf16.msra.mxu1 %v20870_v62  ;;  %v17455_v35 = vld [vmem:[%s20221_s7 + $0x8c] ss:$16 sps:$4 sm:$0xff]   ;;  %v17473_v62 = vld [vmem:[%s20221_s7 + $0xa4] ss:$16 sps:$4 sm:$0xff]  }
 0x765   :  { %3816 = vmatprep.subr.bf16.mxu0 %v20871_v33  ;;  %3859 = vmatprep.subr.bf16.mxu1 %v20872_v58  ;;  %v17479_v33 = vld [vmem:[%s20221_s7 + $0xac] ss:$16 sps:$4 sm:$0xff]   ;;  %v17485_v58 = vld [vmem:[%s20221_s7 + $0xa0] ss:$16 sps:$4 sm:$0xff]  }
 0x766   :  { %3846 = vmatprep.mubr.bf16.mxu0 %v20604_v16  ;;  %3889 = vmatprep.mubr.bf16.mxu1 %v20604_v16 }
 0x768   :  { %3817 = vmatpush1.bf16.msra.mxu0 %v20873_v55  ;;  %3860 = vmatpush1.bf16.msra.mxu1 %v20874_v54  ;;  %v17491_v55 = vld [vmem:[%s20221_s7 + $0xa8] ss:$16 sps:$4 sm:$0xff]   ;;  %v17497_v54 = vld [vmem:[%s20221_s7 + $0xc4] ss:$16 sps:$4 sm:$0xff]  }
 0x769   :  { %3818 = vmatprep.subr.bf16.mxu0 %v20875_v31  ;;  %3861 = vmatprep.subr.bf16.mxu1 %v20876_v24  ;;  %v17503_v31 = vld [vmem:[%s20221_s7 + $0xcc] ss:$16 sps:$4 sm:$0xff]   ;;  %v17509_v24 = vld [vmem:[%s20221_s7 + $0xc0] ss:$16 sps:$4 sm:$0xff]  }
 0x76c   :  { %3819 = vmatpush1.bf16.msra.mxu0 %v20877_v29  ;;  %3862 = vmatpush1.bf16.msra.mxu1 %v20878_v50  ;;  %v17515_v29 = vld [vmem:[%s20221_s7 + $0xc8] ss:$16 sps:$4 sm:$0xff]   ;;  %v17521_v50 = vld [vmem:[%s20221_s7 + $0xe4] ss:$16 sps:$4 sm:$0xff]  }
 0x76d   :  { %3820 = vmatprep.subr.bf16.mxu0 %v20879_v25  ;;  %3863 = vmatprep.subr.bf16.mxu1 %v20880_v61  ;;  %v17527_v25 = vld [vmem:[%s20221_s7 + $0xec] ss:$16 sps:$4 sm:$0xff]   ;;  %v17533_v61 = vld [vmem:[%s20221_s7 + $0xe0] ss:$16 sps:$4 sm:$0xff]  }
 0x770   :  { %3821 = vmatpush1.bf16.msra.mxu0 %v20881_v18  ;;  %3864 = vmatpush1.bf16.msra.mxu1 %v20882_v47  ;;  %v17539_v18 = vld [vmem:[%s20221_s7 + $0xe8] ss:$16 sps:$4 sm:$0xff]  }
 0x771   :  { %3822 = vmatprep.subr.bf16.mxu0 %v20883_v57  ;;  %3865 = vmatprep.subr.bf16.mxu1 %v20884_v45  ;;  %v20910_v47 = vld [vmem:[#allocation72_spill] sm:$0xff]  ;;  %v20911_v57 = vld [vmem:[#allocation73_spill] sm:$0xff] }
 0x774   :  { %3823 = vmatpush1.bf16.msra.mxu0 %v20885_v63  ;;  %3866 = vmatpush1.bf16.msra.mxu1 %v20886_v26  ;;  %v20912_v26 = vld [vmem:[#allocation68_spill] sm:$0xff] }
 0x775   :  { %3824 = vmatprep.subr.bf16.mxu0 %v20887_v19  ;;  %3867 = vmatprep.subr.bf16.mxu1 %v20888_v10 }
 0x778   :  { %3825 = vmatpush1.bf16.msra.mxu0 %v20889_v41  ;;  %3868 = vmatpush1.bf16.msra.mxu1 %v20890_v8 }
 0x779   :  { %3826 = vmatprep.subr.bf16.mxu0 %v20891_v0  ;;  %3869 = vmatprep.subr.bf16.mxu1 %v20892_v59 }
 0x77c   :  { %3827 = vmatpush1.bf16.msra.mxu0 %v20893_v34  ;;  %3870 = vmatpush1.bf16.msra.mxu1 %v20894_v30 }
 0x77d   :  { %3828 = vmatprep.subr.bf16.mxu0 %v20895_v7  ;;  %3871 = vmatprep.subr.bf16.mxu1 %v17145_v28  ;;  %v20898_v28 = vld [vmem:[#allocation60_spill] sm:$0xff] }
 0x780   :  { %3829 = vmatpush1.bf16.msra.mxu0 %v17157_v9  ;;  %3872 = vmatpush1.bf16.msra.mxu1 %v17163_v52  ;;  %v20902_v52 = vld [vmem:[#allocation64_spill] sm:$0xff]  ;;  %v20903_v9 = vld [vmem:[#allocation65_spill] sm:$0xff] }
 0x781   :  { %3966 = vmatprep.subr.bf16.mxu0 %v20896_v5  ;;  %4009 = vmatprep.subr.bf16.mxu1 %v20897_v43  ;;  %v20913_v5 = vld [vmem:[#allocation69_spill] sm:$0xff] }
 0x783   :  { %3847 = vmatmul.mubr.bf16.vlgmr.msra.gmra.mrb[24].mxu0 %v3813_v37  ;;  %3890 = vmatmul.mubr.bf16.vlgmr.msra.gmra.mrb[24].mxu1 %v3813_v37 }
 0x784   :  { %3967 = vmatpush1.bf16.msra.mxu0 %v20898_v28  ;;  %4010 = vmatpush1.bf16.msra.mxu1 %v20899_v22  ;;  %v20914_v22 = vld [vmem:[#allocation70_spill] sm:$0xff] }
 0x785   :  { %3968 = vmatprep.subr.bf16.mxu0 %v20900_v14  ;;  %4011 = vmatprep.subr.bf16.mxu1 %v20901_v51 }
 0x786   :  { %3998 = vmatprep.mubr.bf16.mxu0 %v20604_v16  ;;  %4041 = vmatprep.mubr.bf16.mxu1 %v20604_v16 }
 0x788   :  { %3969 = vmatpush1.bf16.msra.mxu0 %v20902_v52  ;;  %4012 = vmatpush1.bf16.msra.mxu1 %v20903_v9 }
 0x789   :  { %3970 = vmatprep.subr.bf16.mxu0 %v20904_v60  ;;  %4013 = vmatprep.subr.bf16.mxu1 %v20905_v38 }
 0x78c   :  { %3971 = vmatpush1.bf16.msra.mxu0 %v20906_v2  ;;  %4014 = vmatpush1.bf16.msra.mxu1 %v20907_v11 }
 0x78d   :  { %3972 = vmatprep.subr.bf16.mxu0 %v17245_v56  ;;  %4015 = vmatprep.subr.bf16.mxu1 %v17251_v6  ;;  %v17461_v6 = vld [vmem:[%s20221_s7 + $0x80] ss:$16 sps:$4 sm:$0xff]   ;;  %v17467_v56 = vld [vmem:[%s20221_s7 + $0x88] ss:$16 sps:$4 sm:$0xff]  }
 0x790   :  { %3973 = vmatpush1.bf16.msra.mxu0 %v20908_v32  ;;  %4016 = vmatpush1.bf16.msra.mxu1 %v20909_v42 }
 0x791   :  { %3974 = vmatprep.subr.bf16.mxu0 %v17449_v39  ;;  %4017 = vmatprep.subr.bf16.mxu1 %v17455_v35 }
 0x794   :  { %3975 = vmatpush1.bf16.msra.mxu0 %v17461_v6  ;;  %4018 = vmatpush1.bf16.msra.mxu1 %v17467_v56 }
 0x795   :  { %3976 = vmatprep.subr.bf16.mxu0 %v17473_v62  ;;  %4019 = vmatprep.subr.bf16.mxu1 %v17479_v33 }
 0x798   :  { %3977 = vmatpush1.bf16.msra.mxu0 %v17485_v58  ;;  %4020 = vmatpush1.bf16.msra.mxu1 %v17491_v55 }
 0x799   :  { %3978 = vmatprep.subr.bf16.mxu0 %v17497_v54  ;;  %4021 = vmatprep.subr.bf16.mxu1 %v17503_v31 }
 0x79c   :  { %3979 = vmatpush1.bf16.msra.mxu0 %v17509_v24  ;;  %4022 = vmatpush1.bf16.msra.mxu1 %v17515_v29 }
 0x79d   :  { %3980 = vmatprep.subr.bf16.mxu0 %v17521_v50  ;;  %4023 = vmatprep.subr.bf16.mxu1 %v17527_v25 }
 0x7a0   :  { %3981 = vmatpush1.bf16.msra.mxu0 %v17533_v61  ;;  %4024 = vmatpush1.bf16.msra.mxu1 %v17539_v18 }
 0x7a1   :  { %4052 = vmatprep.subr.bf16.mxu0 %v20910_v47  ;;  %4095 = vmatprep.subr.bf16.mxu1 %v20911_v57 }
 0x836   :  { %v3657_v45 = vpop.f32.mrb[52].mxu0  ;;  %v3700_v63 = vpop.f32.mrb[52].mxu1 }
 0x837   :  { %v3709_v53 = vadd.f32 %v3657_v45, %v20912_v26  ;;  %v3659_v19 = vpop.f32.mrb[53].mxu0  ;;  %v3702_v10 = vpop.f32.mrb[53].mxu1  ;;  %v3711_v14 = vadd.f32 %v3700_v63, %v20914_v22 }
 0x838   :  { %v3710_v40 = vadd.f32 %v3659_v19, %v15644_v36  ;;  %v3661_v41 = vpop.f32.mrb[54].mxu0  ;;  %v3704_v8 = vpop.f32.mrb[54].mxu1  ;;  %v3712_v43 = vadd.f32 %v3702_v10, %v20913_v5 }
 0x839   :  { %v11523_v23 = vmul.f32 -1.442695, %v3709_v53  ;;  %v3713_v0 = vadd.f32 %v3661_v41, %v20912_v26  ;;  %v3663_v59 = vpop.f32.mrb[55].mxu0  ;;  %v3706_v48 = vpop.f32.mrb[55].mxu1  ;;  %v3715_v2 = vadd.f32 %v3704_v8, %v20914_v22 }
 0x83a   :  { %v11525_v34 = vmul.f32 -1.442695, %v3710_v40  ;;  %v3714_v30 = vadd.f32 %v3663_v59, %v15644_v36  ;;  %v3716_v28 = vadd.f32 %v3706_v48, %v20913_v5  ;;  %v11527_v51 = vmul.f32 -1.442695, %v3712_v43  ;;  %v20915_v43 = vld [vmem:[#allocation29_spill] sm:$0xff] }
 0x83b   :  { %13584 = vpow2.f32 %v11523_v23  ;;  %v11524_v7 = vmul.f32 -1.442695, %v3713_v0 }
 0x83c   :  { %13586 = vpow2.f32 %v11525_v34  ;;  %v11526_v37 = vmul.f32 -1.442695, %v3714_v30  ;;  %v11528_v52 = vmul.f32 -1.442695, %v3716_v28 }
 0x83d   :  { %13588 = vpow2.f32 %v11524_v7 }
 0x83e   :  { %13590 = vpow2.f32 %v11526_v37 }
 0x83f   :  { %13592 = vtanh.f32 %v3711_v14 }
 0x840   :  { %13594 = vpow2.f32 %v11527_v51 }
 0x841   :  { %13596 = vpow2.f32 %v11528_v52 }
 0x845   :  { %v13585_v9 = vpop.eup %13584 }
 0x846   :  { %v13587_v60 = vpop.eup %13586  ;;  %v3723_v38 = vadd.f32 1.0, %v13585_v9 }
 0x847   :  { %v3735_v11 = vadd.f32 1.0, %v13587_v60  ;;  %v13589_v32 = vpop.eup %13588 }
 0x848   :  { %13598 = vrcp.f32 %v3723_v38  ;;  %v3724_v42 = vadd.f32 1.0, %v13589_v32  ;;  %v13591_v47 = vpop.eup %13590 }
 0x849   :  { %13600 = vrcp.f32 %v3735_v11  ;;  %v3736_v57 = vadd.f32 1.0, %v13591_v47  ;;  %v13593_v45 = vpop.eup %13592 }
 0x84a   :  { %13602 = vtanh.f32 %v3715_v2  ;;  %v13595_v63 = vpop.eup %13594 }
 0x84b   :  { %13604 = vrcp.f32 %v3724_v42  ;;  %v13597_v53 = vpop.eup %13596  ;;  %v3749_v41 = vadd.f32 1.0, %v13595_v63 }
 0x84c   :  { %13606 = vrcp.f32 %v3736_v57  ;;  %v3750_v34 = vadd.f32 1.0, %v13597_v53 }
 0x84d   :  { %13608 = vrcp.f32 %v3749_v41 }
 0x852   :  { %v13599_v19 = vpop.eup %13598 }
 0x853   :  { %v13601_v10 = vpop.eup %13600  ;;  %v3757_v40 = vmul.f32 %v13599_v19, %v13593_v45 }
 0x854   :  { %v13603_v23 = vpop.eup %13602  ;;  %v3755_v8 = vmul.f32 %v13601_v10, %v17312_v17 }
 0x855   :  { %v13605_v0 = vpop.eup %13604 }
 0x856   :  { %v3759_v59 = vadd.f32 %v3757_v40, %v3755_v8  ;;  %v3758_v48 = vmul.f32 %v13605_v0, %v13603_v23  ;;  %v3848_v30 = vpop.f32.mrb[24].mxu0  ;;  %v3891_v7 = vpop.f32.mrb[24].mxu1 }
 0x857   :  { %v13607_v37 = vpop.eup %13606  ;;  %v3908_v28 = vadd.f32 %v3848_v30, %v20915_v43  ;;  %v3850_v14 = vpop.f32.mrb[25].mxu0 }
 0x858   :  { %v3893_v51 = vpop.f32.mrb[25].mxu1  ;;  %13610 = vtanh.f32 %v3759_v59  ;;  %v3793_v52 = vsub.f32 %v3759_v59, %v17312_v17  ;;  %v3756_v9 = vmul.f32 %v13607_v37, %v17317_v49  ;;  %v3909_v60 = vadd.f32 %v3850_v14, %v20695_v21  ;;  %v3852_v38 = vpop.f32.mrb[26].mxu0 }
 0x859   :  { %v3895_v2 = vpop.f32.mrb[26].mxu1  ;;  %v11531_v11 = vmul.f32 -1.442695, %v3908_v28  ;;  %v3912_v32 = vadd.f32 %v3852_v38, %v20915_v43  ;;  %v3854_v42 = vpop.f32.mrb[27].mxu0  ;;  %13612 = vrcp.f32 %v3750_v34  ;;  %v3911_v8 = vadd.f32 %v3893_v51, %v15307_v13 }
 0x85a   :  { %v3897_v47 = vpop.f32.mrb[27].mxu1  ;;  %v3795_v57 = vmul.f32 %v3793_v52, %v17347_v20  ;;  %v3760_v45 = vadd.f32 %v3758_v48, %v3756_v9  ;;  %v11533_v63 = vmul.f32 -1.442695, %v3909_v60  ;;  %v3913_v19 = vadd.f32 %v3854_v42, %v20695_v21  ;;  %v13609_v59 = vpop.eup %13608 }
 0x85b   :  { %13614 = vpow2.f32 %v11531_v11  ;;  %v11532_v53 = vmul.f32 -1.442695, %v3912_v32  ;;  %v3910_v34 = vadd.f32 %v3891_v7, %v15311_v27  ;;  %v11535_v37 = vmul.f32 -1.442695, %v3911_v8 }
 0x85c   :  { %13616 = vtanh.f32 %v3760_v45  ;;  %v3794_v10 = vsub.f32 %v3760_v45, %v17317_v49  ;;  %v17562_v40 = vadd.f32 %v3795_v57, %v17312_v17  ;;  %v11534_v41 = vmul.f32 -1.442695, %v3913_v19 }
 0x85d   :  { %13618 = vpow2.f32 %v11533_v63  ;;  %v3915_v17 = vadd.f32 %v3897_v47, %v15307_v13  ;;  %v3914_v52 = vadd.f32 %v3895_v2, %v15311_v27 }
 0x85e   :  { %v3796_v23 = vmul.f32 %v3794_v10, %v17358_v44  ;;  %13620 = vpow2.f32 %v11532_v53 }
 0x85f   :  { %13622 = vpow2.f32 %v11534_v41  ;;  %v11536_v11 = vmul.f32 -1.442695, %v3915_v17 }
 0x860   :  { %v17567_v0 = vadd.f32 %v3796_v23, %v17317_v49  ;;  %13624 = vtanh.f32 %v3910_v34 }
 0x861   :  { %13626 = vpow2.f32 %v11535_v37 }
 0x862   :  { %v13611_v48 = vpop.eup %13610 }
 0x863   :  { %v3763_v30 = vmul.f32 %v13611_v48, %v13609_v59  ;;  %v13613_v28 = vpop.eup %13612  ;;  %v17599_v59 = vld [vmem:[%s20220_s6 + $0x24] ss:$16 sps:$4 sm:$0xff]   ;;  %v17605_v48 = vld [vmem:[%s20220_s6 + $0x2c] ss:$16 sps:$4 sm:$0xff]  }
 0x865   :  { %v13615_v14 = vpop.eup %13614  ;;  %v3787_v9 = vsub.f32 %v3763_v30, %v17327_v46 }
 0x866   :  { %v13617_v51 = vpop.eup %13616  ;;  %v3922_v60 = vadd.f32 1.0, %v13615_v14  ;;  %v17614_v14 = vld [vmem:[%s20220_s6 + $0x20] ss:$16 sps:$4 sm:$0xff]  }
 0x867   :  { %v13619_v49 = vpop.eup %13618  ;;  %v3764_v38 = vmul.f32 %v13617_v51, %v13613_v28  ;;  %v3789_v47 = vmul.f32 %v3787_v9, %v17347_v20 }
 0x868   :  { %13628 = vrcp.f32 %v3922_v60  ;;  %v3934_v32 = vadd.f32 1.0, %v13619_v49  ;;  %v13621_v7 = vpop.eup %13620  ;;  %v17626_v60 = vld [vmem:[%s20220_s6 + $0x44] ss:$16 sps:$4 sm:$0xff]   ;;  %v17632_v49 = vld [vmem:[%s20220_s6 + $0x4c] ss:$16 sps:$4 sm:$0xff]  }
 0x869   :  { %13630 = vtanh.f32 %v3914_v52  ;;  %v3788_v42 = vsub.f32 %v3764_v38, %v17330_v1  ;;  %v3923_v57 = vadd.f32 1.0, %v13621_v7  ;;  %v13623_v2 = vpop.eup %13622  ;;  %v17577_v53 = vadd.f32 %v3789_v47, %v17327_v46  ;;  %v17593_v46 = vld [vmem:[%s20220_s6 + $0x8] ss:$16 sps:$4 sm:$0xff]   ;;  %v17642_v47 = vld [vmem:[%s20220_s6 + $0x40] ss:$16 sps:$4 sm:$0xff]  }
 0x86a   :  { %13632 = vrcp.f32 %v3934_v32  ;;  %v3935_v63 = vadd.f32 1.0, %v13623_v2  ;;  %v13625_v41 = vpop.eup %13624  ;;  %v17620_v52 = vld [vmem:[%s20220_s6 + $0x28] ss:$16 sps:$4 sm:$0xff]  }
 0x86b   :  { %13634 = vpow2.f32 %v11536_v11  ;;  %v3790_v45 = vmul.f32 %v3788_v42, %v17358_v44  ;;  %v13627_v20 = vpop.eup %13626  ;;  %v17587_v44 = vld [vmem:[%s20220_s6] ss:$16 sps:$4 sm:$0xff]   ;;  %v17637_v42 = vpop.permute.xlu0 %4198 }
 0x86c   :  { %13636 = vrcp.f32 %v3923_v57  ;;  %v3948_v30 = vadd.f32 1.0, %v13627_v20  ;;  %v17648_v57 = vld [vmem:[%s20220_s6 + $0x48] ss:$16 sps:$4 sm:$0xff]  }
 0x86d   :  { %v17580_v19 = vadd.f32 %v3790_v45, %v17330_v1  ;;  %13638 = vrcp.f32 %v3935_v63  ;;  %v17655_v63 = vld [vmem:[%s20220_s6 + $0x64] ss:$16 sps:$4 sm:$0xff]  }
 0x86e   :  { %13640 = vrcp.f32 %v3948_v30  ;;  %v17692_v30 = vld [vmem:[%s20220_s6 + $0x8c] ss:$16 sps:$4 sm:$0xff]  }
 0x86f   :  { %v3965_v10 = vpack.c.bf16 %v17580_v19, %v17577_v53 }
 0x871   :  { %3999 = vmatmul.mubr.bf16.vlgmr.msra.gmra.mrb[56].mxu0 %v3965_v10  ;;  %4042 = vmatmul.mubr.bf16.vlgmr.msra.gmra.mrb[56].mxu1 %v3965_v10  ;;  %v17661_v10 = vld [vmem:[%s20220_s6 + $0x6c] ss:$16 sps:$4 sm:$0xff]  }
 0x872   :  { %v13629_v23 = vpop.eup %13628  ;;  %4053 = vmatpush1.bf16.msra.mxu0 %v17587_v44  ;;  %4096 = vmatpush1.bf16.msra.mxu1 %v17593_v46 }
 0x873   :  { %v13631_v1 = vpop.eup %13630  ;;  %v3956_v8 = vmul.f32 %v13629_v23, %v13625_v41  ;;  %4054 = vmatprep.subr.bf16.mxu0 %v17599_v59  ;;  %4097 = vmatprep.subr.bf16.mxu1 %v17605_v48  ;;  %v17668_v23 = vpop.permute.xlu1 %4203 }
 0x874   :  { %v13633_v34 = vpop.eup %13632  ;;  %4084 = vmatprep.mubr.bf16.mxu0 %v20604_v16  ;;  %4127 = vmatprep.mubr.bf16.mxu1 %v20604_v16 }
 0x875   :  { %v13635_v37 = vpop.eup %13634  ;;  %v3954_v17 = vmul.f32 %v13633_v34, %v17356_v12 }
 0x876   :  { %v13637_v28 = vpop.eup %13636  ;;  %4055 = vmatpush1.bf16.msra.mxu0 %v17614_v14  ;;  %4098 = vmatpush1.bf16.msra.mxu1 %v17620_v52  ;;  %v3949_v11 = vadd.f32 1.0, %v13635_v37 }
 0x877   :  { %v3958_v9 = vadd.f32 %v3956_v8, %v3954_v17  ;;  %v3957_v51 = vmul.f32 %v13637_v28, %v13631_v1  ;;  %4056 = vmatprep.subr.bf16.mxu0 %v17626_v60  ;;  %4099 = vmatprep.subr.bf16.mxu1 %v17632_v49  ;;  %v13639_v38 = vpop.eup %13638  ;;  %v17673_v1 = vld [vmem:[%s20220_s6 + $0x60] ss:$16 sps:$4 sm:$0xff]   ;;  %v17679_v8 = vld [vmem:[%s20220_s6 + $0x68] ss:$16 sps:$4 sm:$0xff]  }
 0x878   :  { %v3955_v7 = vmul.f32 %v13639_v38, %v17366_v15  ;;  %v13641_v17 = vpop.eup %13640  ;;  %v17701_v28 = vld [vmem:[%s20220_s6 + $0x80] ss:$16 sps:$4 sm:$0xff]   ;;  %v17719_v38 = vld [vmem:[%s20220_s6 + $0xac] ss:$16 sps:$4 sm:$0xff]  }
 0x879   :  { %13642 = vtanh.f32 %v3958_v9  ;;  %v4210_v32 = vsub.f32 %v3958_v9, %v17356_v12  ;;  %v17707_v9 = vld [vmem:[%s20220_s6 + $0x88] ss:$16 sps:$4 sm:$0xff]  }
 0x87a   :  { %4057 = vmatpush1.bf16.msra.mxu0 %v17642_v47  ;;  %4100 = vmatpush1.bf16.msra.mxu1 %v17648_v57  ;;  %v3959_v45 = vadd.f32 %v3957_v51, %v3955_v7  ;;  %13644 = vrcp.f32 %v3949_v11  ;;  %v17727_v7 = vld [vmem:[%s20220_s6 + $0xa0] ss:$16 sps:$4 sm:$0xff]  }
 0x87b   :  { %v4212_v2 = vmul.f32 %v4210_v32, %v17637_v42  ;;  %4058 = vmatprep.subr.bf16.mxu0 %v17655_v63  ;;  %4101 = vmatprep.subr.bf16.mxu1 %v17661_v10 }
 0x87c   :  { %13646 = vtanh.f32 %v3959_v45  ;;  %v4211_v41 = vsub.f32 %v3959_v45, %v17366_v15 }
 0x87d   :  { %v17666_v20 = vadd.f32 %v4212_v2, %v17356_v12  ;;  %v17686_v12 = vld [vmem:[%s20220_s6 + $0x84] ss:$16 sps:$4 sm:$0xff]   ;;  %v17733_v2 = vld [vmem:[%s20220_s6 + $0xa8] ss:$16 sps:$4 sm:$0xff]  }
 0x87e   :  { %4059 = vmatpush1.bf16.msra.mxu0 %v17673_v1  ;;  %4102 = vmatpush1.bf16.msra.mxu1 %v17679_v8  ;;  %v4213_v34 = vmul.f32 %v4211_v41, %v17668_v23  ;;  %20916 = vst [vmem:[#allocation15_spill] sm:$0xff] %v17733_v2  ;;  %v17739_v41 = vld [vmem:[%s20220_s6 + $0xc4] ss:$16 sps:$4 sm:$0xff]  }
 0x87f   :  { %4060 = vmatprep.subr.bf16.mxu0 %v17686_v12  ;;  %4103 = vmatprep.subr.bf16.mxu1 %v17692_v30  ;;  %20917 = vst [vmem:[#allocation16_spill] sm:$0xff] %v17739_v41 }
 0x880   :  { %v17696_v37 = vadd.f32 %v4213_v34, %v17366_v15  ;;  %v17713_v15 = vld [vmem:[%s20220_s6 + $0xa4] ss:$16 sps:$4 sm:$0xff]   ;;  %v17745_v34 = vld [vmem:[%s20220_s6 + $0xcc] ss:$16 sps:$4 sm:$0xff]  }
 0x881   :  { %20918 = vst [vmem:[#allocation17_spill] sm:$0xff] %v17745_v34 }
 0x882   :  { %4061 = vmatpush1.bf16.msra.mxu0 %v17701_v28  ;;  %4104 = vmatpush1.bf16.msra.mxu1 %v17707_v9 }
 0x883   :  { %v13643_v51 = vpop.eup %13642  ;;  %4062 = vmatprep.subr.bf16.mxu0 %v17713_v15  ;;  %4105 = vmatprep.subr.bf16.mxu1 %v17719_v38 }
 0x884   :  { %v17722_v11 = vmul.f32 %v13643_v51, %v13641_v17  ;;  %v13645_v32 = vpop.eup %13644  ;;  %v17753_v51 = vld [vmem:[%s20220_s6 + $0xc0] ss:$16 sps:$4 sm:$0xff]  }
 0x885   :  { %20919 = vst [vmem:[#allocation18_spill] sm:$0xff] %v17753_v51 }
 0x886   :  { %4063 = vmatpush1.bf16.msra.mxu0 %v17727_v7  ;;  %4106 = vmatpush1.bf16.msra.mxu1 %v17733_v2  ;;  %v13647_v45 = vpop.eup %13646 }
 0x887   :  { %4064 = vmatprep.subr.bf16.mxu0 %v17739_v41  ;;  %4107 = vmatprep.subr.bf16.mxu1 %v17745_v34  ;;  %v17748_v17 = vmul.f32 %v13647_v45, %v13645_v32  ;;  %v17759_v41 = vld [vmem:[%s20220_s6 + $0xc8] ss:$16 sps:$4 sm:$0xff]   ;;  %v17767_v32 = vld [vmem:[%s20220_s6 + $0xe4] ss:$16 sps:$4 sm:$0xff]   ;;  %v17773_v45 = vld [vmem:[%s20220_s6 + $0xec] ss:$16 sps:$4 sm:$0xff]  }
 0x888   :  { %20920 = vst [vmem:[#allocation19_spill] sm:$0xff] %v17759_v41  ;;  %20921 = vst [vmem:[#allocation20_spill] sm:$0xff] %v17767_v32  ;;  %v14438_v34 = vld [vmem:[%s20218_s4 + $0xc4] ss:$16 sps:$4 sm:$0xff]  }
 0x889   :  { %v3964_v2 = vpack.c.bf16 %v17748_v17, %v17722_v11  ;;  %20922 = vst [vmem:[#allocation21_spill] sm:$0xff] %v17773_v45 }
 0x88a   :  { %4065 = vmatpush1.bf16.msra.mxu0 %v17753_v51  ;;  %4108 = vmatpush1.bf16.msra.mxu1 %v17759_v41  ;;  %v17779_v41 = vld [vmem:[%s20220_s6 + $0xe0] ss:$16 sps:$4 sm:$0xff]   ;;  %v17785_v51 = vld [vmem:[%s20220_s6 + $0xe8] ss:$16 sps:$4 sm:$0xff]  }
 0x88b   :  { %4066 = vmatprep.subr.bf16.mxu0 %v17767_v32  ;;  %4109 = vmatprep.subr.bf16.mxu1 %v17773_v45  ;;  %20923 = vst [vmem:[#allocation22_spill] sm:$0xff] %v17779_v41  ;;  %20924 = vst [vmem:[#allocation23_spill] sm:$0xff] %v17785_v51  ;;  %v14414_v32 = vld [vmem:[%s20218_s4 + $0x4] ss:$16 sps:$4 sm:$0xff]   ;;  %v14415_v45 = vld [vmem:[%s20218_s4 + $0xc] ss:$16 sps:$4 sm:$0xff]  }
 0x88e   :  { %4067 = vmatpush1.bf16.msra.mxu0 %v17779_v41  ;;  %4110 = vmatpush1.bf16.msra.mxu1 %v17785_v51  ;;  %v14416_v41 = vld [vmem:[%s20218_s4] ss:$16 sps:$4 sm:$0xff]   ;;  %v14417_v51 = vld [vmem:[%s20218_s4 + $0x8] ss:$16 sps:$4 sm:$0xff]  }
 0x88f   :  { %4243 = vmatprep.subr.bf16.mxu0 %v14414_v32  ;;  %4286 = vmatprep.subr.bf16.mxu1 %v14415_v45  ;;  %v14418_v32 = vld [vmem:[%s20218_s4 + $0x24] ss:$16 sps:$4 sm:$0xff]   ;;  %v14419_v45 = vld [vmem:[%s20218_s4 + $0x2c] ss:$16 sps:$4 sm:$0xff]  }
 0x891   :  { %4085 = vmatmul.mubr.bf16.vlgmr.msra.gmra.mrb[56].mxu0 %v3964_v2  ;;  %4128 = vmatmul.mubr.bf16.vlgmr.msra.gmra.mrb[56].mxu1 %v3964_v2  ;;  %v14420_v2 = vld [vmem:[%s20218_s4 + $0x20] ss:$16 sps:$4 sm:$0xff]  }
 0x892   :  { %4244 = vmatpush1.bf16.msra.mxu0 %v14416_v41  ;;  %4287 = vmatpush1.bf16.msra.mxu1 %v14417_v51  ;;  %v14421_v41 = vld [vmem:[%s20218_s4 + $0x28] ss:$16 sps:$4 sm:$0xff]   ;;  %v14422_v51 = vld [vmem:[%s20218_s4 + $0x44] ss:$16 sps:$4 sm:$0xff]  }
 0x893   :  { %4245 = vmatprep.subr.bf16.mxu0 %v14418_v32  ;;  %4288 = vmatprep.subr.bf16.mxu1 %v14419_v45  ;;  %v14423_v32 = vld [vmem:[%s20218_s4 + $0x4c] ss:$16 sps:$4 sm:$0xff]   ;;  %v14424_v45 = vld [vmem:[%s20218_s4 + $0x40] ss:$16 sps:$4 sm:$0xff]  }
 0x894   :  { %4275 = vmatprep.mubr.bf16.mxu0 %v20604_v16  ;;  %4318 = vmatprep.mubr.bf16.mxu1 %v20604_v16 }
 0x896   :  { %4246 = vmatpush1.bf16.msra.mxu0 %v14420_v2  ;;  %4289 = vmatpush1.bf16.msra.mxu1 %v14421_v41  ;;  %v14425_v2 = vld [vmem:[%s20218_s4 + $0x48] ss:$16 sps:$4 sm:$0xff]   ;;  %v14426_v41 = vld [vmem:[%s20218_s4 + $0x64] ss:$16 sps:$4 sm:$0xff]  }
 0x897   :  { %4247 = vmatprep.subr.bf16.mxu0 %v14422_v51  ;;  %4290 = vmatprep.subr.bf16.mxu1 %v14423_v32  ;;  %v14427_v51 = vld [vmem:[%s20218_s4 + $0x6c] ss:$16 sps:$4 sm:$0xff]   ;;  %v14428_v32 = vld [vmem:[%s20218_s4 + $0x60] ss:$16 sps:$4 sm:$0xff]  }
 0x89a   :  { %4248 = vmatpush1.bf16.msra.mxu0 %v14424_v45  ;;  %4291 = vmatpush1.bf16.msra.mxu1 %v14425_v2  ;;  %v14429_v45 = vld [vmem:[%s20218_s4 + $0x68] ss:$16 sps:$4 sm:$0xff]   ;;  %v14430_v2 = vld [vmem:[%s20218_s4 + $0x84] ss:$16 sps:$4 sm:$0xff]  }
 0x89b   :  { %4249 = vmatprep.subr.bf16.mxu0 %v14426_v41  ;;  %4292 = vmatprep.subr.bf16.mxu1 %v14427_v51  ;;  %v14431_v41 = vld [vmem:[%s20218_s4 + $0x8c] ss:$16 sps:$4 sm:$0xff]   ;;  %v14432_v51 = vld [vmem:[%s20218_s4 + $0x80] ss:$16 sps:$4 sm:$0xff]  }
 0x89e   :  { %4250 = vmatpush1.bf16.msra.mxu0 %v14428_v32  ;;  %4293 = vmatpush1.bf16.msra.mxu1 %v14429_v45  ;;  %v14433_v32 = vld [vmem:[%s20218_s4 + $0x88] ss:$16 sps:$4 sm:$0xff]   ;;  %v4195_v45 = vsub.f32 %v17748_v17, %v17419_v3 }
 0x89f   :  { %4251 = vmatprep.subr.bf16.mxu0 %v14430_v2  ;;  %4294 = vmatprep.subr.bf16.mxu1 %v14431_v41  ;;  %v14434_v2 = vld [vmem:[%s20218_s4 + $0xa4] ss:$16 sps:$4 sm:$0xff]   ;;  %v14435_v41 = vld [vmem:[%s20218_s4 + $0xac] ss:$16 sps:$4 sm:$0xff]   ;;  %v14437_v17 = vld [vmem:[%s20218_s4 + $0xa8] ss:$16 sps:$4 sm:$0xff]  }
 0x8a2   :  { %4252 = vmatpush1.bf16.msra.mxu0 %v14432_v51  ;;  %4295 = vmatpush1.bf16.msra.mxu1 %v14433_v32  ;;  %v4194_v51 = vsub.f32 %v17722_v11, %v17422_v4  ;;  %v14436_v32 = vld [vmem:[%s20218_s4 + $0xa0] ss:$16 sps:$4 sm:$0xff]   ;;  %v14439_v11 = vld [vmem:[%s20218_s4 + $0xcc] ss:$16 sps:$4 sm:$0xff]  }
 0x8a3   :  { %4253 = vmatprep.subr.bf16.mxu0 %v14434_v2  ;;  %4296 = vmatprep.subr.bf16.mxu1 %v14435_v41  ;;  %v4207_v2 = vmul.f32 %v17668_v23, %v4195_v45  ;;  %v14441_v45 = vld [vmem:[%s20218_s4 + $0xc8] ss:$16 sps:$4 sm:$0xff]  }
 0x8a4   :  { %v4206_v41 = vmul.f32 %v17637_v42, %v4194_v51 }
 0x8a5   :  { %v17887_v51 = vadd.f32 %v4207_v2, %v17419_v3  ;;  %v14446_v3 = vld [vmem:[%s20221_s7 + $0x4] ss:$16 sps:$4 sm:$0xff]   ;;  %v14448_v2 = vld [vmem:[%s20221_s7] ss:$16 sps:$4 sm:$0xff]  }
 0x8a6   :  { %4254 = vmatpush1.bf16.msra.mxu0 %v14436_v32  ;;  %4297 = vmatpush1.bf16.msra.mxu1 %v14437_v17  ;;  %v14440_v32 = vld [vmem:[%s20218_s4 + $0xc0] ss:$16 sps:$4 sm:$0xff]   ;;  %v14443_v17 = vld [vmem:[%s20218_s4 + $0xec] ss:$16 sps:$4 sm:$0xff]  }
 0x8a7   :  { %4255 = vmatprep.subr.bf16.mxu0 %v14438_v34  ;;  %4298 = vmatprep.subr.bf16.mxu1 %v14439_v11  ;;  %v14442_v34 = vld [vmem:[%s20218_s4 + $0xe4] ss:$16 sps:$4 sm:$0xff]   ;;  %v17890_v11 = vadd.f32 %v4206_v41, %v17422_v4  ;;  %v14447_v4 = vld [vmem:[%s20221_s7 + $0xc] ss:$16 sps:$4 sm:$0xff]   ;;  %v14449_v41 = vld [vmem:[%s20221_s7 + $0x8] ss:$16 sps:$4 sm:$0xff]  }
 0x8aa   :  { %4256 = vmatpush1.bf16.msra.mxu0 %v14440_v32  ;;  %4299 = vmatpush1.bf16.msra.mxu1 %v14441_v45  ;;  %v14444_v32 = vld [vmem:[%s20218_s4 + $0xe0] ss:$16 sps:$4 sm:$0xff]   ;;  %v14445_v45 = vld [vmem:[%s20218_s4 + $0xe8] ss:$16 sps:$4 sm:$0xff]  }
 0x8ab   :  { %4257 = vmatprep.subr.bf16.mxu0 %v14442_v34  ;;  %4300 = vmatprep.subr.bf16.mxu1 %v14443_v17  ;;  %v4242_v34 = vpack.c.bf16 %v17887_v51, %v17890_v11  ;;  %v14450_v17 = vld [vmem:[%s20221_s7 + $0x24] ss:$16 sps:$4 sm:$0xff]  }
 0x8ae   :  { %4258 = vmatpush1.bf16.msra.mxu0 %v14444_v32  ;;  %4301 = vmatpush1.bf16.msra.mxu1 %v14445_v45  ;;  %v14451_v32 = vld [vmem:[%s20221_s7 + $0x2c] ss:$16 sps:$4 sm:$0xff]   ;;  %v14452_v45 = vld [vmem:[%s20221_s7 + $0x20] ss:$16 sps:$4 sm:$0xff]  }
 0x8af   :  { %4395 = vmatprep.subr.bf16.mxu0 %v14446_v3  ;;  %4438 = vmatprep.subr.bf16.mxu1 %v14447_v4  ;;  %v14454_v3 = vld [vmem:[%s20221_s7 + $0x44] ss:$16 sps:$4 sm:$0xff]   ;;  %v14455_v4 = vld [vmem:[%s20221_s7 + $0x4c] ss:$16 sps:$4 sm:$0xff]  }
 0x8b1   :  { %4276 = vmatmul.mubr.bf16.vlgmr.msra.gmra.mrb[28].mxu0 %v4242_v34  ;;  %4319 = vmatmul.mubr.bf16.vlgmr.msra.gmra.mrb[28].mxu1 %v4242_v34  ;;  %v14453_v34 = vld [vmem:[%s20221_s7 + $0x28] ss:$16 sps:$4 sm:$0xff]  }
 0x8b2   :  { %4396 = vmatpush1.bf16.msra.mxu0 %v14448_v2  ;;  %4439 = vmatpush1.bf16.msra.mxu1 %v14449_v41  ;;  %v14456_v2 = vld [vmem:[%s20221_s7 + $0x40] ss:$16 sps:$4 sm:$0xff]   ;;  %v14457_v41 = vld [vmem:[%s20221_s7 + $0x48] ss:$16 sps:$4 sm:$0xff]  }
 0x8b3   :  { %4397 = vmatprep.subr.bf16.mxu0 %v14450_v17  ;;  %4440 = vmatprep.subr.bf16.mxu1 %v14451_v32  ;;  %v14458_v17 = vld [vmem:[%s20221_s7 + $0x64] ss:$16 sps:$4 sm:$0xff]   ;;  %v14459_v32 = vld [vmem:[%s20221_s7 + $0x6c] ss:$16 sps:$4 sm:$0xff]  }
 0x8b4   :  { %4427 = vmatprep.mubr.bf16.mxu0 %v20604_v16  ;;  %4470 = vmatprep.mubr.bf16.mxu1 %v20604_v16 }
 0x8b6   :  { %4398 = vmatpush1.bf16.msra.mxu0 %v14452_v45  ;;  %4441 = vmatpush1.bf16.msra.mxu1 %v14453_v34  ;;  %v14460_v45 = vld [vmem:[%s20221_s7 + $0x60] ss:$16 sps:$4 sm:$0xff]   ;;  %v14461_v34 = vld [vmem:[%s20221_s7 + $0x68] ss:$16 sps:$4 sm:$0xff]  }
 0x8b7   :  { %4399 = vmatprep.subr.bf16.mxu0 %v14454_v3  ;;  %4442 = vmatprep.subr.bf16.mxu1 %v14455_v4 }
 0x8ba   :  { %4400 = vmatpush1.bf16.msra.mxu0 %v14456_v2  ;;  %4443 = vmatpush1.bf16.msra.mxu1 %v14457_v41 }
 0x8bb   :  { %4401 = vmatprep.subr.bf16.mxu0 %v14458_v17  ;;  %4444 = vmatprep.subr.bf16.mxu1 %v14459_v32 }
 0x8be   :  { %4402 = vmatpush1.bf16.msra.mxu0 %v14460_v45  ;;  %4445 = vmatpush1.bf16.msra.mxu1 %v14461_v34 }
 0x8bf   :  { %4403 = vmatprep.subr.bf16.mxu0 %v17449_v39  ;;  %4446 = vmatprep.subr.bf16.mxu1 %v17455_v35  ;;  %v14462_v39 = vld [vmem:[%s20220_s6 + $0x4] ss:$16 sps:$4 sm:$0xff]   ;;  %v14463_v35 = vld [vmem:[%s20220_s6 + $0xc] ss:$16 sps:$4 sm:$0xff]  }
 0x8c2   :  { %4404 = vmatpush1.bf16.msra.mxu0 %v17461_v6  ;;  %4447 = vmatpush1.bf16.msra.mxu1 %v17467_v56 }
 0x8c3   :  { %4405 = vmatprep.subr.bf16.mxu0 %v17473_v62  ;;  %4448 = vmatprep.subr.bf16.mxu1 %v17479_v33 }
 0x8c6   :  { %4406 = vmatpush1.bf16.msra.mxu0 %v17485_v58  ;;  %4449 = vmatpush1.bf16.msra.mxu1 %v17491_v55 }
 0x8c7   :  { %4407 = vmatprep.subr.bf16.mxu0 %v17497_v54  ;;  %4450 = vmatprep.subr.bf16.mxu1 %v17503_v31 }
 0x8ca   :  { %4408 = vmatpush1.bf16.msra.mxu0 %v17509_v24  ;;  %4451 = vmatpush1.bf16.msra.mxu1 %v17515_v29 }
 0x8cb   :  { %4409 = vmatprep.subr.bf16.mxu0 %v17521_v50  ;;  %4452 = vmatprep.subr.bf16.mxu1 %v17527_v25 }
 0x8ce   :  { %4410 = vmatpush1.bf16.msra.mxu0 %v17533_v61  ;;  %4453 = vmatpush1.bf16.msra.mxu1 %v17539_v18 }
 0x8cf   :  { %4481 = vmatprep.subr.bf16.mxu0 %v14462_v39  ;;  %4524 = vmatprep.subr.bf16.mxu1 %v14463_v35 }
 0x964   :  { %v4086_v6 = vpop.f32.mrb[56].mxu0  ;;  %v4129_v56 = vpop.f32.mrb[56].mxu1 }
 0x965   :  { %v4138_v62 = vadd.f32 %v4086_v6, %v20912_v26  ;;  %v4088_v33 = vpop.f32.mrb[57].mxu0  ;;  %v4131_v58 = vpop.f32.mrb[57].mxu1  ;;  %v4140_v17 = vadd.f32 %v4129_v56, %v20914_v22 }
 0x966   :  { %v4139_v55 = vadd.f32 %v4088_v33, %v15644_v36  ;;  %v4090_v54 = vpop.f32.mrb[58].mxu0  ;;  %v4133_v31 = vpop.f32.mrb[58].mxu1  ;;  %v4141_v2 = vadd.f32 %v4131_v58, %v20913_v5 }
 0x967   :  { %v11537_v24 = vmul.f32 -1.442695, %v4138_v62  ;;  %v4142_v29 = vadd.f32 %v4090_v54, %v20912_v26  ;;  %v4092_v50 = vpop.f32.mrb[59].mxu0  ;;  %v4135_v25 = vpop.f32.mrb[59].mxu1  ;;  %v4144_v6 = vadd.f32 %v4133_v31, %v20914_v22 }
 0x968   :  { %v11539_v61 = vmul.f32 -1.442695, %v4139_v55  ;;  %v4143_v18 = vadd.f32 %v4092_v50, %v15644_v36  ;;  %v4145_v41 = vadd.f32 %v4135_v25, %v20913_v5  ;;  %v11541_v32 = vmul.f32 -1.442695, %v4141_v2 }
 0x969   :  { %13648 = vpow2.f32 %v11537_v24  ;;  %v11538_v3 = vmul.f32 -1.442695, %v4142_v29 }
 0x96a   :  { %13650 = vpow2.f32 %v11539_v61  ;;  %v11540_v4 = vmul.f32 -1.442695, %v4143_v18  ;;  %v11542_v45 = vmul.f32 -1.442695, %v4145_v41 }
 0x96b   :  { %13652 = vpow2.f32 %v11538_v3 }
 0x96c   :  { %13654 = vpow2.f32 %v11540_v4 }
 0x96d   :  { %13656 = vtanh.f32 %v4140_v17 }
 0x96e   :  { %13658 = vpow2.f32 %v11541_v32 }
 0x96f   :  { %13660 = vpow2.f32 %v11542_v45 }
 0x973   :  { %v13649_v34 = vpop.eup %13648 }
 0x974   :  { %v13651_v39 = vpop.eup %13650  ;;  %v4152_v35 = vadd.f32 1.0, %v13649_v34 }
 0x975   :  { %v4164_v62 = vadd.f32 1.0, %v13651_v39  ;;  %v13653_v33 = vpop.eup %13652 }
 0x976   :  { %13662 = vrcp.f32 %v4152_v35  ;;  %v4153_v58 = vadd.f32 1.0, %v13653_v33  ;;  %v13655_v55 = vpop.eup %13654 }
 0x977   :  { %13664 = vrcp.f32 %v4164_v62  ;;  %v4165_v54 = vadd.f32 1.0, %v13655_v55  ;;  %v13657_v56 = vpop.eup %13656 }
 0x978   :  { %13666 = vtanh.f32 %v4144_v6  ;;  %v13659_v24 = vpop.eup %13658 }
 0x979   :  { %13668 = vrcp.f32 %v4153_v58  ;;  %v13661_v29 = vpop.eup %13660  ;;  %v4178_v18 = vadd.f32 1.0, %v13659_v24 }
 0x97a   :  { %13670 = vrcp.f32 %v4165_v54  ;;  %v4179_v17 = vadd.f32 1.0, %v13661_v29 }
 0x97b   :  { %13672 = vrcp.f32 %v4178_v18 }
 0x980   :  { %v13663_v50 = vpop.eup %13662 }
 0x981   :  { %v13665_v25 = vpop.eup %13664  ;;  %v4186_v61 = vmul.f32 %v13663_v50, %v13657_v56 }
 0x982   :  { %v13667_v3 = vpop.eup %13666  ;;  %v4184_v31 = vmul.f32 %v13665_v25, %v17562_v40 }
 0x983   :  { %v13669_v4 = vpop.eup %13668 }
 0x984   :  { %v4188_v2 = vadd.f32 %v4186_v61, %v4184_v31  ;;  %v4187_v41 = vmul.f32 %v13669_v4, %v13667_v3  ;;  %v4277_v32 = vpop.f32.mrb[28].mxu0  ;;  %v4320_v45 = vpop.f32.mrb[28].mxu1 }
 0x985   :  { %v13671_v34 = vpop.eup %13670  ;;  %v4337_v39 = vadd.f32 %v4277_v32, %v20915_v43  ;;  %v4279_v35 = vpop.f32.mrb[29].mxu0 }
 0x986   :  { %v4322_v6 = vpop.f32.mrb[29].mxu1  ;;  %13674 = vtanh.f32 %v4188_v2  ;;  %v4222_v62 = vsub.f32 %v4188_v2, %v17562_v40  ;;  %v4185_v33 = vmul.f32 %v13671_v34, %v17567_v0  ;;  %v4338_v58 = vadd.f32 %v4279_v35, %v20695_v21  ;;  %v4281_v55 = vpop.f32.mrb[30].mxu0 }
 0x987   :  { %v4324_v54 = vpop.f32.mrb[30].mxu1  ;;  %v11545_v56 = vmul.f32 -1.442695, %v4337_v39  ;;  %v4341_v24 = vadd.f32 %v4281_v55, %v20915_v43  ;;  %v4283_v29 = vpop.f32.mrb[31].mxu0  ;;  %13676 = vrcp.f32 %v4179_v17  ;;  %v4340_v34 = vadd.f32 %v4322_v6, %v15307_v13 }
 0x988   :  { %v4326_v50 = vpop.f32.mrb[31].mxu1  ;;  %v4224_v25 = vmul.f32 %v4222_v62, %v17637_v42  ;;  %v4189_v61 = vadd.f32 %v4187_v41, %v4185_v33  ;;  %v11547_v18 = vmul.f32 -1.442695, %v4338_v58  ;;  %v4342_v31 = vadd.f32 %v4283_v29, %v20695_v21  ;;  %v13673_v17 = vpop.eup %13672 }
 0x989   :  { %13678 = vpow2.f32 %v11545_v56  ;;  %v11546_v3 = vmul.f32 -1.442695, %v4341_v24  ;;  %v4339_v21 = vadd.f32 %v4320_v45, %v15311_v27  ;;  %v11549_v62 = vmul.f32 -1.442695, %v4340_v34 }
 0x98a   :  { %13680 = vtanh.f32 %v4189_v61  ;;  %v4223_v4 = vsub.f32 %v4189_v61, %v17567_v0  ;;  %v17990_v2 = vadd.f32 %v4224_v25, %v17562_v40  ;;  %v11548_v32 = vmul.f32 -1.442695, %v4342_v31 }
 0x98b   :  { %13682 = vpow2.f32 %v11547_v18  ;;  %v4344_v40 = vadd.f32 %v4326_v50, %v15307_v13  ;;  %v4343_v55 = vadd.f32 %v4324_v54, %v15311_v27 }
 0x98c   :  { %v4225_v43 = vmul.f32 %v4223_v4, %v17668_v23  ;;  %13684 = vpow2.f32 %v11546_v3 }
 0x98d   :  { %13686 = vpow2.f32 %v11548_v32  ;;  %v11550_v25 = vmul.f32 -1.442695, %v4344_v40 }
 0x98e   :  { %v17995_v41 = vadd.f32 %v4225_v43, %v17567_v0  ;;  %13688 = vtanh.f32 %v4339_v21 }
 0x98f   :  { %13690 = vpow2.f32 %v11549_v62 }
 0x990   :  { %v13675_v39 = vpop.eup %13674 }
 0x991   :  { %v4192_v35 = vmul.f32 %v13675_v39, %v13673_v17  ;;  %v13677_v33 = vpop.eup %13676 }
 0x993   :  { %v13679_v58 = vpop.eup %13678  ;;  %v4216_v56 = vsub.f32 %v4192_v35, %v17577_v53 }
 0x994   :  { %v13681_v6 = vpop.eup %13680  ;;  %v4351_v24 = vadd.f32 1.0, %v13679_v58  ;;  %v18036_v58 = vpop.permute.xlu1 %4632 }
 0x995   :  { %v13683_v0 = vpop.eup %13682  ;;  %v4193_v29 = vmul.f32 %v13681_v6, %v13677_v33  ;;  %v4218_v13 = vmul.f32 %v4216_v56, %v17637_v42  ;;  %v18025_v33 = vpop.permute.xlu0 %4627  ;;  %v20929_v56 = vld [vmem:[#allocation19_spill] sm:$0xff] }
 0x996   :  { %13692 = vrcp.f32 %v4351_v24  ;;  %v4363_v61 = vadd.f32 1.0, %v13683_v0  ;;  %v13685_v45 = vpop.eup %13684  ;;  %v20931_v24 = vld [vmem:[#allocation21_spill] sm:$0xff] }
 0x997   :  { %13694 = vtanh.f32 %v4343_v55  ;;  %v4217_v18 = vsub.f32 %v4193_v29, %v17580_v19  ;;  %v4352_v50 = vadd.f32 1.0, %v13685_v45  ;;  %v13687_v27 = vpop.eup %13686  ;;  %v18005_v31 = vadd.f32 %v4218_v13, %v17577_v53  ;;  %v20927_v55 = vld [vmem:[#allocation17_spill] sm:$0xff]  ;;  %v12751_v29 = vld [vmem:[%s20223_s9 + $0xc] ss:$16 sps:$4 sm:$0xff]   ;;  %v20933_v45 = vld [vmem:[#allocation23_spill] sm:$0xff] }
 0x998   :  { %13696 = vrcp.f32 %v4363_v61  ;;  %v4364_v3 = vadd.f32 1.0, %v13687_v27  ;;  %v13689_v43 = vpop.eup %13688  ;;  %v12748_v0 = vld [vmem:[%s20223_s9 + $0x4] ss:$16 sps:$4 sm:$0xff]   ;;  %v20932_v61 = vld [vmem:[#allocation22_spill] sm:$0xff] }
 0x999   :  { %13698 = vpow2.f32 %v11550_v25  ;;  %v4219_v54 = vmul.f32 %v4217_v18, %v17668_v23  ;;  %v13691_v42 = vpop.eup %13690  ;;  %v12746_v18 = vld [vmem:[%s20223_s9] ss:$16 sps:$4 sm:$0xff]   ;;  %v12749_v13 = vld [vmem:[%s20223_s9 + $0x8] ss:$16 sps:$4 sm:$0xff]  }
 0x99a   :  { %13700 = vrcp.f32 %v4352_v50 }
 0x99b   :  { %v18008_v4 = vadd.f32 %v4219_v54, %v17580_v19  ;;  %13702 = vrcp.f32 %v4364_v3  ;;  %v4377_v19 = vadd.f32 1.0, %v13691_v42  ;;  %v12754_v54 = vld [vmem:[%s20223_s9 + $0x24] ss:$16 sps:$4 sm:$0xff]   ;;  %v12757_v3 = vld [vmem:[%s20223_s9 + $0x2c] ss:$16 sps:$4 sm:$0xff]  }
 0x99c   :  { %v12763_v42 = vld [vmem:[%s20223_s9 + $0x4c] ss:$16 sps:$4 sm:$0xff]  }
 0x99d   :  { %v4394_v32 = vpack.c.bf16 %v18008_v4, %v18005_v31  ;;  %13704 = vrcp.f32 %v4377_v19  ;;  %v12764_v19 = vld [vmem:[%s20223_s9 + $0x60] ss:$16 sps:$4 sm:$0xff]  }
 0x99f   :  { %4428 = vmatmul.mubr.bf16.vlgmr.msra.gmra.mrb[60].mxu0 %v4394_v32  ;;  %4471 = vmatmul.mubr.bf16.vlgmr.msra.gmra.mrb[60].mxu1 %v4394_v32 }
 0x9a0   :  { %v13693_v34 = vpop.eup %13692  ;;  %4482 = vmatpush1.bf16.msra.mxu0 %v17587_v44  ;;  %4525 = vmatpush1.bf16.msra.mxu1 %v17593_v46 }
 0x9a1   :  { %v13695_v23 = vpop.eup %13694  ;;  %v4385_v17 = vmul.f32 %v13693_v34, %v13689_v43  ;;  %4483 = vmatprep.subr.bf16.mxu0 %v17599_v59  ;;  %4526 = vmatprep.subr.bf16.mxu1 %v17605_v48  ;;  %v12760_v43 = vld [vmem:[%s20223_s9 + $0x44] ss:$16 sps:$4 sm:$0xff]   ;;  %v12758_v34 = vld [vmem:[%s20223_s9 + $0x40] ss:$16 sps:$4 sm:$0xff]  }
 0x9a2   :  { %v13697_v53 = vpop.eup %13696  ;;  %4513 = vmatprep.mubr.bf16.mxu0 %v20604_v16  ;;  %4556 = vmatprep.mubr.bf16.mxu1 %v20604_v16 }
 0x9a3   :  { %v13699_v39 = vpop.eup %13698  ;;  %v4383_v21 = vmul.f32 %v13697_v53, %v17666_v20  ;;  %v12769_v53 = vld [vmem:[%s20223_s9 + $0x6c] ss:$16 sps:$4 sm:$0xff]  }
 0x9a4   :  { %v13701_v35 = vpop.eup %13700  ;;  %4484 = vmatpush1.bf16.msra.mxu0 %v17614_v14  ;;  %4527 = vmatpush1.bf16.msra.mxu1 %v17620_v52  ;;  %v4378_v48 = vadd.f32 1.0, %v13699_v39  ;;  %v12767_v39 = vld [vmem:[%s20223_s9 + $0x68] ss:$16 sps:$4 sm:$0xff]  }
 0x9a5   :  { %v4387_v44 = vadd.f32 %v4385_v17, %v4383_v21  ;;  %v4386_v46 = vmul.f32 %v13701_v35, %v13695_v23  ;;  %4485 = vmatprep.subr.bf16.mxu0 %v17626_v60  ;;  %4528 = vmatprep.subr.bf16.mxu1 %v17632_v49  ;;  %v13703_v59 = vpop.eup %13702  ;;  %v12761_v23 = vld [vmem:[%s20223_s9 + $0x48] ss:$16 sps:$4 sm:$0xff]   ;;  %v12766_v17 = vld [vmem:[%s20223_s9 + $0x64] ss:$16 sps:$4 sm:$0xff]   ;;  %v12775_v35 = vld [vmem:[%s20223_s9 + $0x8c] ss:$16 sps:$4 sm:$0xff]  }
 0x9a6   :  { %v4384_v40 = vmul.f32 %v13703_v59, %v17696_v37  ;;  %v12772_v21 = vld [vmem:[%s20223_s9 + $0x84] ss:$16 sps:$4 sm:$0xff]  }
 0x9a7   :  { %13706 = vtanh.f32 %v4387_v44  ;;  %v4639_v62 = vsub.f32 %v4387_v44, %v17666_v20  ;;  %v12770_v44 = vld [vmem:[%s20223_s9 + $0x80] ss:$16 sps:$4 sm:$0xff]   ;;  %v12778_v59 = vld [vmem:[%s20223_s9 + $0xa4] ss:$16 sps:$4 sm:$0xff]  }
 0x9a8   :  { %4486 = vmatpush1.bf16.msra.mxu0 %v17642_v47  ;;  %4529 = vmatpush1.bf16.msra.mxu1 %v17648_v57  ;;  %v4388_v14 = vadd.f32 %v4386_v46, %v4384_v40  ;;  %13708 = vrcp.f32 %v4378_v48  ;;  %v12773_v46 = vld [vmem:[%s20223_s9 + $0x88] ss:$16 sps:$4 sm:$0xff]   ;;  %v12781_v48 = vld [vmem:[%s20223_s9 + $0xac] ss:$16 sps:$4 sm:$0xff]  }
 0x9a9   :  { %4487 = vmatprep.subr.bf16.mxu0 %v17655_v63  ;;  %4530 = vmatprep.subr.bf16.mxu1 %v17661_v10  ;;  %v4641_v52 = vmul.f32 %v4639_v62, %v18025_v33  ;;  %v13705_v63 = vpop.eup %13704  ;;  %v12776_v62 = vld [vmem:[%s20223_s9 + $0xa0] ss:$16 sps:$4 sm:$0xff]   ;;  %v12779_v40 = vld [vmem:[%s20223_s9 + $0xa8] ss:$16 sps:$4 sm:$0xff]  }
 0x9aa   :  { %13710 = vtanh.f32 %v4388_v14  ;;  %v4640_v60 = vsub.f32 %v4388_v14, %v17696_v37  ;;  %v12784_v14 = vld [vmem:[%s20223_s9 + $0xc4] ss:$16 sps:$4 sm:$0xff]  }
 0x9ab   :  { %v18034_v49 = vadd.f32 %v4641_v52, %v17666_v20  ;;  %v12787_v52 = vld [vmem:[%s20223_s9 + $0xcc] ss:$16 sps:$4 sm:$0xff]  }
 0x9ac   :  { %4488 = vmatpush1.bf16.msra.mxu0 %v17673_v1  ;;  %4531 = vmatpush1.bf16.msra.mxu1 %v17679_v8  ;;  %v4642_v47 = vmul.f32 %v4640_v60, %v18036_v58  ;;  %v20925_v8 = vld [vmem:[#allocation15_spill] sm:$0xff] }
 0x9ad   :  { %4489 = vmatprep.subr.bf16.mxu0 %v17686_v12  ;;  %4532 = vmatprep.subr.bf16.mxu1 %v17692_v30  ;;  %v12782_v60 = vld [vmem:[%s20223_s9 + $0xc0] ss:$16 sps:$4 sm:$0xff]  }
 0x9ae   :  { %v18044_v57 = vadd.f32 %v4642_v47, %v17696_v37  ;;  %v20926_v37 = vld [vmem:[#allocation16_spill] sm:$0xff] }
 0x9af   :  { %v12785_v47 = vld [vmem:[%s20223_s9 + $0xc8] ss:$16 sps:$4 sm:$0xff]  }
 0x9b0   :  { %4490 = vmatpush1.bf16.msra.mxu0 %v17701_v28  ;;  %4533 = vmatpush1.bf16.msra.mxu1 %v17707_v9  ;;  %v20928_v9 = vld [vmem:[#allocation18_spill] sm:$0xff] }
 0x9b1   :  { %v13707_v10 = vpop.eup %13706  ;;  %4491 = vmatprep.subr.bf16.mxu0 %v17713_v15  ;;  %4534 = vmatprep.subr.bf16.mxu1 %v17719_v38 }
 0x9b2   :  { %v4391_v20 = vmul.f32 %v13707_v10, %v13705_v63  ;;  %v13709_v1 = vpop.eup %13708  ;;  %v12790_v63 = vld [vmem:[%s20223_s9 + $0xe4] ss:$16 sps:$4 sm:$0xff]   ;;  %v12793_v10 = vld [vmem:[%s20223_s9 + $0xec] ss:$16 sps:$4 sm:$0xff]  }
 0x9b4   :  { %4492 = vmatpush1.bf16.msra.mxu0 %v17727_v7  ;;  %4535 = vmatpush1.bf16.msra.mxu1 %v20925_v8  ;;  %v4623_v12 = vsub.f32 %v4391_v20, %v17890_v11  ;;  %v13711_v30 = vpop.eup %13710  ;;  %v20930_v7 = vld [vmem:[#allocation20_spill] sm:$0xff]  ;;  %v18169_v8 = vld [vmem:[%s20224_s10 + $0x4] ss:$16 sps:$4 sm:$0xff]  }
 0x9b5   :  { %4493 = vmatprep.subr.bf16.mxu0 %v20926_v37  ;;  %4536 = vmatprep.subr.bf16.mxu1 %v20927_v55  ;;  %v4392_v28 = vmul.f32 %v13711_v30, %v13709_v1  ;;  %v12791_v1 = vld [vmem:[%s20223_s9 + $0xe8] ss:$16 sps:$4 sm:$0xff]   ;;  %v12794_v30 = vld [vmem:[%s20216_s2] sm:$0xff]  }
 0x9b6   :  { %v4635_v6 = vmul.f32 %v18025_v33, %v4623_v12  ;;  %v18174_v12 = vld [vmem:[%s20224_s10 + $0xc] ss:$16 sps:$4 sm:$0xff]   ;;  %v18182_v37 = vld [vmem:[%s20224_s10] ss:$16 sps:$4 sm:$0xff]   ;;  %v18188_v55 = vld [vmem:[%s20224_s10 + $0x24] ss:$16 sps:$4 sm:$0xff]  }
 0x9b7   :  { %v4393_v15 = vpack.c.bf16 %v4392_v28, %v4391_v20  ;;  %v4624_v38 = vsub.f32 %v4392_v28, %v17887_v51  ;;  %v12788_v20 = vld [vmem:[%s20223_s9 + $0xe0] ss:$16 sps:$4 sm:$0xff]   ;;  %v18194_v28 = vld [vmem:[%s20224_s10 + $0x8] ss:$16 sps:$4 sm:$0xff]  }
 0x9b8   :  { %4494 = vmatpush1.bf16.msra.mxu0 %v20928_v9  ;;  %4537 = vmatpush1.bf16.msra.mxu1 %v20929_v56  ;;  %v4637_v50 = vadd.f32 %v4635_v6, %v17890_v11  ;;  %v12755_v11 = vld [vmem:[%s20223_s9 + $0x28] ss:$16 sps:$4 sm:$0xff]   ;;  %v18199_v9 = vld [vmem:[%s20224_s10 + $0x2c] ss:$16 sps:$4 sm:$0xff]   ;;  %v18205_v56 = vld [vmem:[%s20224_s10 + $0x20] ss:$16 sps:$4 sm:$0xff]  }
 0x9b9   :  { %4495 = vmatprep.subr.bf16.mxu0 %v20930_v7  ;;  %4538 = vmatprep.subr.bf16.mxu1 %v20931_v24  ;;  %v4636_v25 = vmul.f32 %v18036_v58, %v4624_v38  ;;  %v18219_v38 = vld [vmem:[%s20224_s10 + $0x28] ss:$16 sps:$4 sm:$0xff]   ;;  %v18229_v7 = vld [vmem:[%s20224_s10 + $0x40] ss:$16 sps:$4 sm:$0xff]   ;;  %v18235_v24 = vld [vmem:[%s20224_s10 + $0x64] ss:$16 sps:$4 sm:$0xff]  }
 0x9ba   :  { %v12801_v6 = vld [vmem:[%s20216_s2 + $0x8] sm:$0xff]  }
 0x9bb   :  { %v4638_v27 = vadd.f32 %v4636_v25, %v17887_v51  ;;  %v12752_v51 = vld [vmem:[%s20223_s9 + $0x20] ss:$16 sps:$4 sm:$0xff]  }
 0x9bc   :  { %4496 = vmatpush1.bf16.msra.mxu0 %v20932_v61  ;;  %4539 = vmatpush1.bf16.msra.mxu1 %v20933_v45  ;;  %v18253_v25 = vld [vmem:[%s20224_s10 + $0x60] ss:$16 sps:$4 sm:$0xff]   ;;  %v18258_v61 = vld [vmem:[%s20224_s10 + $0x6c] ss:$16 sps:$4 sm:$0xff]   ;;  %v18265_v45 = vld [vmem:[%s20224_s10 + $0x84] ss:$16 sps:$4 sm:$0xff]  }
 0x9bd   :  { %4897 = vmatprep.subr.bf16.mxu0 %v12748_v0  ;;  %4990 = vmatprep.subr.bf16.mxu1 %v12751_v29  ;;  %v18084_v32 = vpack.c.bf16 %v4638_v27, %v4637_v50  ;;  %v18241_v0 = vld [vmem:[%s20224_s10 + $0x4c] ss:$16 sps:$4 sm:$0xff]   ;;  %v18246_v29 = vld [vmem:[%s20224_s10 + $0x48] ss:$16 sps:$4 sm:$0xff]   ;;  %v18288_v27 = vld [vmem:[%s20224_s10 + $0xa4] ss:$16 sps:$4 sm:$0xff]  }
 0x9be   :  { %v18283_v50 = vld [vmem:[%s20224_s10 + $0x68] ss:$16 sps:$4 sm:$0xff]  }
 0x9bf   :  { %4514 = vmatmul.mubr.bf16.vlgmr.msra.gmra.mrb[60].mxu0 %v4393_v15  ;;  %4557 = vmatmul.mubr.bf16.vlgmr.msra.gmra.mrb[60].mxu1 %v4393_v15  ;;  %v18213_v15 = vld [vmem:[%s20224_s10 + $0x44] ss:$16 sps:$4 sm:$0xff]  }
 0x9c0   :  { %4898 = vmatpush1.bf16.msra.mxu0 %v12746_v18  ;;  %4991 = vmatpush1.bf16.msra.mxu1 %v12749_v13  ;;  %v12808_v18 = vld [vmem:[%s20216_s2 + $0x10] sm:$0xff]  }
 0x9c1   :  { %4899 = vmatprep.subr.bf16.mxu0 %v12754_v54  ;;  %4992 = vmatprep.subr.bf16.mxu1 %v12757_v3  ;;  %v18277_v13 = vld [vmem:[%s20224_s10 + $0x80] ss:$16 sps:$4 sm:$0xff]   ;;  %v18293_v54 = vld [vmem:[%s20224_s10 + $0x8c] ss:$16 sps:$4 sm:$0xff]  }
 0x9c2   :  { %4929 = vmatprep.mubr.bf16.mxu0 %v20604_v16  ;;  %5022 = vmatprep.mubr.bf16.mxu1 %v20604_v16  ;;  %v18302_v3 = vld [vmem:[%s20224_s10 + $0xa0] ss:$16 sps:$4 sm:$0xff]  }
 0x9c4   :  { %4900 = vmatpush1.bf16.msra.mxu0 %v12752_v51  ;;  %4993 = vmatpush1.bf16.msra.mxu1 %v12755_v11  ;;  %v18307_v51 = vld [vmem:[%s20224_s10 + $0x88] ss:$16 sps:$4 sm:$0xff]   ;;  %v18314_v11 = vld [vmem:[%s20224_s10 + $0xc4] ss:$16 sps:$4 sm:$0xff]  }
 0x9c5   :  { %4901 = vmatprep.subr.bf16.mxu0 %v12760_v43  ;;  %4994 = vmatprep.subr.bf16.mxu1 %v12763_v42  ;;  %v18319_v43 = vld [vmem:[%s20224_s10 + $0xac] ss:$16 sps:$4 sm:$0xff]  }
 0x9c6   :  { %v12815_v42 = vld [vmem:[%s20216_s2 + $0x18] sm:$0xff]  }
 0x9c8   :  { %4902 = vmatpush1.bf16.msra.mxu0 %v12758_v34  ;;  %4995 = vmatpush1.bf16.msra.mxu1 %v12761_v23  ;;  %v18329_v34 = vld [vmem:[%s20224_s10 + $0xc0] ss:$16 sps:$4 sm:$0xff]   ;;  %v18334_v23 = vld [vmem:[%s20224_s10 + $0xa8] ss:$16 sps:$4 sm:$0xff]  }
 0x9c9   :  { %4903 = vmatprep.subr.bf16.mxu0 %v12766_v17  ;;  %4996 = vmatprep.subr.bf16.mxu1 %v12769_v53  ;;  %v18341_v17 = vld [vmem:[%s20224_s10 + $0xcc] ss:$16 sps:$4 sm:$0xff]   ;;  %v18346_v53 = vld [vmem:[%s20224_s10 + $0xe4] ss:$16 sps:$4 sm:$0xff]  }
 0x9cc   :  { %4904 = vmatpush1.bf16.msra.mxu0 %v12764_v19  ;;  %4997 = vmatpush1.bf16.msra.mxu1 %v12767_v39  ;;  %v18355_v19 = vld [vmem:[%s20224_s10 + $0xc8] ss:$16 sps:$4 sm:$0xff]   ;;  %v18360_v39 = vld [vmem:[%s20224_s10 + $0xe0] ss:$16 sps:$4 sm:$0xff]  }
 0x9cd   :  { %4905 = vmatprep.subr.bf16.mxu0 %v12772_v21  ;;  %4998 = vmatprep.subr.bf16.mxu1 %v12775_v35  ;;  %v18367_v21 = vld [vmem:[%s20224_s10 + $0xec] ss:$16 sps:$4 sm:$0xff]   ;;  %v12828_v35 = vld [vmem:[%s20216_s2 + $0x20] sm:$0xff]  }
 0x9d0   :  { %4906 = vmatpush1.bf16.msra.mxu0 %v12770_v44  ;;  %4999 = vmatpush1.bf16.msra.mxu1 %v12773_v46  ;;  %v18377_v44 = vld [vmem:[%s20224_s10 + $0xe8] ss:$16 sps:$4 sm:$0xff]  }
 0x9d1   :  { %4907 = vmatprep.subr.bf16.mxu0 %v12778_v59  ;;  %5000 = vmatprep.subr.bf16.mxu1 %v12781_v48  ;;  %v12838_v46 = vld [vmem:[%s20216_s2 + $0x28] sm:$0xff]   ;;  %v18392_v59 = vld [vmem:[#allocation4 + $0x4] ss:$16 sps:$4 sm:$0xff]  }
 0x9d2   :  { %v18394_v48 = vld [vmem:[#allocation4 + $0xc] ss:$16 sps:$4 sm:$0xff]  }
 0x9d3   :  { %20934 = vst [vmem:[#allocation24_spill] sm:$0xff] %v18394_v48 }
 0x9d4   :  { %4908 = vmatpush1.bf16.msra.mxu0 %v12776_v62  ;;  %5001 = vmatpush1.bf16.msra.mxu1 %v12779_v40  ;;  %v18396_v62 = vld [vmem:[#allocation4] ss:$16 sps:$4 sm:$0xff]   ;;  %v18398_v40 = vld [vmem:[#allocation4 + $0x8] ss:$16 sps:$4 sm:$0xff]  }
 0x9d5   :  { %4909 = vmatprep.subr.bf16.mxu0 %v12784_v14  ;;  %5002 = vmatprep.subr.bf16.mxu1 %v12787_v52  ;;  %20935 = vst [vmem:[#allocation25_spill] sm:$0xff] %v18396_v62  ;;  %20936 = vst [vmem:[#allocation26_spill] sm:$0xff] %v18398_v40  ;;  %v18406_v14 = vld [vmem:[#allocation4 + $0x2c] ss:$16 sps:$4 sm:$0xff]   ;;  %v18408_v52 = vld [vmem:[#allocation4 + $0x20] ss:$16 sps:$4 sm:$0xff]  }
 0x9d6   :  { %20938 = vst [vmem:[#allocation34_spill] sm:$0xff] %v18406_v14  ;;  %20939 = vst [vmem:[#allocation35_spill] sm:$0xff] %v18408_v52 }
 0x9d8   :  { %4910 = vmatpush1.bf16.msra.mxu0 %v12782_v60  ;;  %5003 = vmatpush1.bf16.msra.mxu1 %v12785_v47  ;;  %v18410_v60 = vld [vmem:[#allocation4 + $0x28] ss:$16 sps:$4 sm:$0xff]   ;;  %v18416_v47 = vld [vmem:[#allocation4 + $0x44] ss:$16 sps:$4 sm:$0xff]  }
 0x9d9   :  { %4911 = vmatprep.subr.bf16.mxu0 %v12790_v63  ;;  %5004 = vmatprep.subr.bf16.mxu1 %v12793_v10  ;;  %20940 = vst [vmem:[#allocation36_spill] sm:$0xff] %v18410_v60  ;;  %20941 = vst [vmem:[#allocation37_spill] sm:$0xff] %v18416_v47  ;;  %v18418_v63 = vld [vmem:[#allocation4 + $0x4c] ss:$16 sps:$4 sm:$0xff]   ;;  %v18420_v10 = vld [vmem:[#allocation4 + $0x40] ss:$16 sps:$4 sm:$0xff]  }
 0x9da   :  { %20942 = vst [vmem:[#allocation38_spill] sm:$0xff] %v18418_v63  ;;  %20943 = vst [vmem:[#allocation39_spill] sm:$0xff] %v18420_v10 }
 0x9dc   :  { %4912 = vmatpush1.bf16.msra.mxu0 %v12788_v20  ;;  %5005 = vmatpush1.bf16.msra.mxu1 %v12791_v1  ;;  %v18422_v20 = vld [vmem:[#allocation4 + $0x48] ss:$16 sps:$4 sm:$0xff]   ;;  %v18428_v1 = vld [vmem:[#allocation4 + $0x60] ss:$16 sps:$4 sm:$0xff]  }
 0x9dd   :  { %5334 = vmatprep.subr.bf16.mxu0 %v18169_v8  ;;  %5377 = vmatprep.subr.bf16.mxu1 %v18174_v12  ;;  %20944 = vst [vmem:[#allocation40_spill] sm:$0xff] %v18422_v20  ;;  %20945 = vst [vmem:[#allocation41_spill] sm:$0xff] %v18428_v1 }
 0x9df   :  { %4930 = vmatmul.mubr.bf16.vlgmr.msra.gmra.mrb[64].mxu0 %v12794_v30  ;;  %5023 = vmatmul.mubr.bf16.vlgmr.msra.gmra.mrb[64].mxu1 %v12794_v30  ;;  %v18430_v30 = vld [vmem:[#allocation4 + $0x64] ss:$16 sps:$4 sm:$0xff]  }
 0x9e0   :  { %5335 = vmatpush1.bf16.msra.mxu0 %v18182_v37  ;;  %4939 = vmatprep.mubr.bf16.mxu0 %v20604_v16  ;;  %20946 = vst [vmem:[#allocation42_spill] sm:$0xff] %v18430_v30 }
 0x9e1   :  { %5336 = vmatprep.subr.bf16.mxu0 %v18188_v55  ;;  %5032 = vmatprep.mubr.bf16.mxu1 %v20604_v16 }
 0x9e2   :  { %5378 = vmatpush1.bf16.msra.mxu1 %v18194_v28 }
 0x9e3   :  { %5379 = vmatprep.subr.bf16.mxu1 %v18199_v9 }
 0x9e4   :  { %5337 = vmatpush1.bf16.msra.mxu0 %v18205_v56 }
 0x9e5   :  { %5338 = vmatprep.subr.bf16.mxu0 %v18213_v15 }
 0x9e6   :  { %5380 = vmatpush1.bf16.msra.mxu1 %v18219_v38 }
 0x9e7   :  { %4940 = vmatmul.mubr.bf16.gmra.mrb[68].mxu0 %v12801_v6  ;;  %5033 = vmatmul.mubr.bf16.gmra.mrb[68].mxu1 %v12801_v6  ;;  %v18432_v6 = vld [vmem:[#allocation4 + $0x68] ss:$16 sps:$4 sm:$0xff]  }
 0x9e8   :  { %5339 = vmatpush1.bf16.msra.mxu0 %v18229_v7  ;;  %4949 = vmatprep.mubr.bf16.mxu0 %v20604_v16  ;;  %20947 = vst [vmem:[#allocation43_spill] sm:$0xff] %v18432_v6 }
 0x9e9   :  { %5042 = vmatprep.mubr.bf16.mxu1 %v20604_v16  ;;  %5340 = vmatprep.subr.bf16.mxu0 %v18235_v24 }
 0x9ea   :  { %5381 = vmatprep.subr.bf16.mxu1 %v18241_v0 }
 0x9eb   :  { %5382 = vmatpush1.bf16.msra.mxu1 %v18246_v29 }
 0x9ec   :  { %5341 = vmatpush1.bf16.msra.mxu0 %v18253_v25  ;;  %5383 = vmatprep.subr.bf16.mxu1 %v18258_v61 }
 0x9ed   :  { %5342 = vmatprep.subr.bf16.mxu0 %v18265_v45 }
 0x9ef   :  { %4950 = vmatmul.mubr.bf16.gmra.mrb[72].mxu0 %v12808_v18  ;;  %5043 = vmatmul.mubr.bf16.gmra.mrb[72].mxu1 %v12808_v18  ;;  %v18434_v18 = vld [vmem:[#allocation4 + $0x6c] ss:$16 sps:$4 sm:$0xff]  }
 0x9f0   :  { %4959 = vmatprep.mubr.bf16.mxu0 %v20604_v16  ;;  %5052 = vmatprep.mubr.bf16.mxu1 %v20604_v16  ;;  %20948 = vst [vmem:[#allocation44_spill] sm:$0xff] %v18434_v18 }
 0x9f1   :  { %5343 = vmatpush1.bf16.msra.mxu0 %v18277_v13  ;;  %5384 = vmatpush1.bf16.msra.mxu1 %v18283_v50 }
 0x9f2   :  { %5344 = vmatprep.subr.bf16.mxu0 %v18288_v27  ;;  %5385 = vmatprep.subr.bf16.mxu1 %v18293_v54 }
 0x9f5   :  { %5345 = vmatpush1.bf16.msra.mxu0 %v18302_v3  ;;  %5386 = vmatpush1.bf16.msra.mxu1 %v18307_v51 }
 0x9f6   :  { %5346 = vmatprep.subr.bf16.mxu0 %v18314_v11  ;;  %5387 = vmatprep.subr.bf16.mxu1 %v18319_v43 }
 0x9f7   :  { %4960 = vmatmul.mubr.bf16.gmra.mrb[76].mxu0 %v12815_v42  ;;  %5053 = vmatmul.mubr.bf16.gmra.mrb[76].mxu1 %v12815_v42  ;;  %v18436_v42 = vld [vmem:[#allocation4 + $0x84] ss:$16 sps:$4 sm:$0xff]  }
 0x9f8   :  { %4969 = vmatprep.mubr.bf16.mxu0 %v20604_v16  ;;  %5062 = vmatprep.mubr.bf16.mxu1 %v20604_v16  ;;  %20949 = vst [vmem:[#allocation45_spill] sm:$0xff] %v18436_v42 }
 0x9f9   :  { %5347 = vmatpush1.bf16.msra.mxu0 %v18329_v34  ;;  %5388 = vmatpush1.bf16.msra.mxu1 %v18334_v23 }
 0x9fa   :  { %5389 = vmatprep.subr.bf16.mxu1 %v18341_v17  ;;  %5348 = vmatprep.subr.bf16.mxu0 %v18346_v53 }
 0x9fd   :  { %5390 = vmatpush1.bf16.msra.mxu1 %v18355_v19  ;;  %5349 = vmatpush1.bf16.msra.mxu0 %v18360_v39 }
 0x9fe   :  { %5391 = vmatprep.subr.bf16.mxu1 %v18367_v21  ;;  %5732 = vmatprep.subr.bf16.mxu0 %v18392_v59 }
 0x9ff   :  { %4970 = vmatmul.mubr.bf16.gmra.mrb[80].mxu0 %v12828_v35  ;;  %5063 = vmatmul.mubr.bf16.gmra.mrb[80].mxu1 %v12828_v35  ;;  %v18439_v35 = vld [vmem:[#allocation4 + $0x8c] ss:$16 sps:$4 sm:$0xff]  }
 0xa00   :  { %4979 = vmatprep.mubr.bf16.mxu0 %v20604_v16  ;;  %5072 = vmatprep.mubr.bf16.mxu1 %v20604_v16  ;;  %20950 = vst [vmem:[#allocation46_spill] sm:$0xff] %v18439_v35 }
 0xa01   :  { %5392 = vmatpush1.bf16.msra.mxu1 %v18377_v44 }
 0xa02   :  { %5775 = vmatprep.subr.bf16.mxu1 %v18394_v48 }
 0xa07   :  { %4980 = vmatmul.mubr.bf16.gmra.mrb[84].mxu0 %v12838_v46  ;;  %5073 = vmatmul.mubr.bf16.gmra.mrb[84].mxu1 %v12838_v46  ;;  %v18444_v46 = vld [vmem:[#allocation4 + $0x80] ss:$16 sps:$4 sm:$0xff]  }
 0xa08   :  { %5366 = vmatprep.mubr.bf16.mxu0 %v20604_v16  ;;  %5409 = vmatprep.mubr.bf16.mxu1 %v20604_v16  ;;  %20951 = vst [vmem:[#allocation47_spill] sm:$0xff] %v18444_v46 }
 0xa0f   :  { %5367 = vmatmul.mubr.bf16.vlgmr.msra.gmra.mrb[64].mxu0 %v18084_v32  ;;  %5410 = vmatmul.mubr.bf16.vlgmr.msra.gmra.mrb[64].mxu1 %v18084_v32  ;;  %v18404_v32 = vld [vmem:[#allocation4 + $0x24] ss:$16 sps:$4 sm:$0xff]  }
 0xa10   :  { %5764 = vmatprep.mubr.bf16.mxu0 %v20604_v16  ;;  %5807 = vmatprep.mubr.bf16.mxu1 %v20604_v16  ;;  %20937 = vst [vmem:[#allocation33_spill] sm:$0xff] %v18404_v32 }
 0xa11   :  { %5733 = vmatpush1.bf16.msra.mxu0 %v18396_v62  ;;  %5776 = vmatpush1.bf16.msra.mxu1 %v18398_v40 }
 0xa12   :  { %5734 = vmatprep.subr.bf16.mxu0 %v18404_v32  ;;  %5777 = vmatprep.subr.bf16.mxu1 %v18406_v14 }
 0xa15   :  { %5735 = vmatpush1.bf16.msra.mxu0 %v18408_v52  ;;  %5778 = vmatpush1.bf16.msra.mxu1 %v18410_v60 }
 0xa16   :  { %5736 = vmatprep.subr.bf16.mxu0 %v18416_v47  ;;  %5779 = vmatprep.subr.bf16.mxu1 %v18418_v63  ;;  %v18452_v63 = vld [vmem:[#allocation4 + $0xac] ss:$16 sps:$4 sm:$0xff]  }
 0xa17   :  { %20954 = vst [vmem:[#allocation50_spill] sm:$0xff] %v18452_v63 }
 0xa19   :  { %5737 = vmatpush1.bf16.msra.mxu0 %v18420_v10  ;;  %5780 = vmatpush1.bf16.msra.mxu1 %v18422_v20  ;;  %v18446_v20 = vld [vmem:[#allocation4 + $0x88] ss:$16 sps:$4 sm:$0xff]   ;;  %v18450_v10 = vld [vmem:[#allocation4 + $0xa4] ss:$16 sps:$4 sm:$0xff]  }
 0xa1a   :  { %5738 = vmatprep.subr.bf16.mxu0 %v18430_v30  ;;  %5781 = vmatprep.subr.bf16.mxu1 %v18434_v18  ;;  %20952 = vst [vmem:[#allocation48_spill] sm:$0xff] %v18446_v20  ;;  %20953 = vst [vmem:[#allocation49_spill] sm:$0xff] %v18450_v10  ;;  %v18456_v18 = vld [vmem:[#allocation4 + $0xa0] ss:$16 sps:$4 sm:$0xff]  }
 0xa1b   :  { %20955 = vst [vmem:[#allocation51_spill] sm:$0xff] %v18456_v18 }
 0xa1d   :  { %5739 = vmatpush1.bf16.msra.mxu0 %v18428_v1  ;;  %5782 = vmatpush1.bf16.msra.mxu1 %v18432_v6  ;;  %v18458_v1 = vld [vmem:[#allocation4 + $0xa8] ss:$16 sps:$4 sm:$0xff]   ;;  %v18462_v6 = vld [vmem:[#allocation4 + $0xc4] ss:$16 sps:$4 sm:$0xff]  }
 0xa1e   :  { %5740 = vmatprep.subr.bf16.mxu0 %v18436_v42  ;;  %5783 = vmatprep.subr.bf16.mxu1 %v18439_v35  ;;  %20956 = vst [vmem:[#allocation52_spill] sm:$0xff] %v18458_v1  ;;  %20957 = vst [vmem:[#allocation53_spill] sm:$0xff] %v18462_v6  ;;  %v18464_v42 = vld [vmem:[#allocation4 + $0xcc] ss:$16 sps:$4 sm:$0xff]   ;;  %v18468_v35 = vld [vmem:[#allocation4 + $0xc0] ss:$16 sps:$4 sm:$0xff]  }
 0xa1f   :  { %20958 = vst [vmem:[#allocation54_spill] sm:$0xff] %v18464_v42  ;;  %20959 = vst [vmem:[#allocation55_spill] sm:$0xff] %v18468_v35 }
 0xa21   :  { %5741 = vmatpush1.bf16.msra.mxu0 %v18444_v46  ;;  %5784 = vmatpush1.bf16.msra.mxu1 %v18446_v20  ;;  %v18470_v46 = vld [vmem:[#allocation4 + $0xc8] ss:$16 sps:$4 sm:$0xff]   ;;  %v18474_v20 = vld [vmem:[#allocation4 + $0xe4] ss:$16 sps:$4 sm:$0xff]  }
 0xa22   :  { %5742 = vmatprep.subr.bf16.mxu0 %v18450_v10  ;;  %5785 = vmatprep.subr.bf16.mxu1 %v18452_v63  ;;  %20960 = vst [vmem:[#allocation56_spill] sm:$0xff] %v18470_v46  ;;  %20961 = vst [vmem:[#allocation57_spill] sm:$0xff] %v18474_v20  ;;  %v18476_v10 = vld [vmem:[#allocation4 + $0xec] ss:$16 sps:$4 sm:$0xff]   ;;  %v18480_v63 = vld [vmem:[#allocation4 + $0xe0] ss:$16 sps:$4 sm:$0xff]  }
 0xa23   :  { %20962 = vst [vmem:[#allocation58_spill] sm:$0xff] %v18476_v10  ;;  %20963 = vst [vmem:[#allocation59_spill] sm:$0xff] %v18480_v63 }
 0xa25   :  { %5743 = vmatpush1.bf16.msra.mxu0 %v18456_v18  ;;  %5786 = vmatpush1.bf16.msra.mxu1 %v18458_v1  ;;  %v18482_v18 = vld [vmem:[#allocation4 + $0xe8] ss:$16 sps:$4 sm:$0xff]  }
 0xa26   :  { %5744 = vmatprep.subr.bf16.mxu0 %v18462_v6  ;;  %5787 = vmatprep.subr.bf16.mxu1 %v18464_v42  ;;  %20964 = vst [vmem:[#allocation60_spill] sm:$0xff] %v18482_v18  ;;  %v18491_v42 = vld [vmem:[%s20226_s12 + $0x4] ss:$16 sps:$4 sm:$0xff]  }
 0xa27   :  { %20965 = vst [vmem:[#allocation61_spill] sm:$0xff] %v18491_v42 }
 0xa29   :  { %5745 = vmatpush1.bf16.msra.mxu0 %v18468_v35  ;;  %5788 = vmatpush1.bf16.msra.mxu1 %v18470_v46  ;;  %v18496_v46 = vld [vmem:[%s20226_s12 + $0xc] ss:$16 sps:$4 sm:$0xff]  }
 0xa2a   :  { %5746 = vmatprep.subr.bf16.mxu0 %v18474_v20  ;;  %5789 = vmatprep.subr.bf16.mxu1 %v18476_v10  ;;  %20966 = vst [vmem:[#allocation62_spill] sm:$0xff] %v18496_v46 }
 0xa2d   :  { %5747 = vmatpush1.bf16.msra.mxu0 %v18480_v63  ;;  %5790 = vmatpush1.bf16.msra.mxu1 %v18482_v18 }
 0xa2e   :  { %5978 = vmatprep.subr.bf16.mxu0 %v18491_v42  ;;  %6021 = vmatprep.subr.bf16.mxu1 %v18496_v46 }
 0xa92   :  { %v4515_v20 = vpop.f32.mrb[60].mxu0  ;;  %v4558_v10 = vpop.f32.mrb[60].mxu1 }
 0xa93   :  { %v4567_v63 = vadd.f32 %v4515_v20, %v20912_v26  ;;  %v4517_v35 = vpop.f32.mrb[61].mxu0  ;;  %v4560_v18 = vpop.f32.mrb[61].mxu1 }
 0xa94   :  { %v4568_v6 = vadd.f32 %v4517_v35, %v15644_v36  ;;  %v4519_v1 = vpop.f32.mrb[62].mxu0  ;;  %v4562_v30 = vpop.f32.mrb[62].mxu1  ;;  %v4570_v20 = vadd.f32 %v4560_v18, %v20913_v5  ;;  %v4569_v35 = vadd.f32 %v4558_v10, %v20914_v22 }
 0xa95   :  { %v11551_v47 = vmul.f32 -1.442695, %v4567_v63  ;;  %v4571_v60 = vadd.f32 %v4519_v1, %v20912_v26  ;;  %v4521_v52 = vpop.f32.mrb[63].mxu0  ;;  %v4564_v14 = vpop.f32.mrb[63].mxu1  ;;  %v4573_v26 = vadd.f32 %v4562_v30, %v20914_v22 }
 0xa96   :  { %v11553_v32 = vmul.f32 -1.442695, %v4568_v6  ;;  %v4572_v42 = vadd.f32 %v4521_v52, %v15644_v36  ;;  %v11555_v62 = vmul.f32 -1.442695, %v4570_v20  ;;  %v4574_v63 = vadd.f32 %v4564_v14, %v20913_v5 }
 0xa97   :  { %13712 = vpow2.f32 %v11551_v47  ;;  %v11552_v46 = vmul.f32 -1.442695, %v4571_v60 }
 0xa98   :  { %13714 = vpow2.f32 %v11553_v32  ;;  %v11554_v40 = vmul.f32 -1.442695, %v4572_v42  ;;  %v11556_v36 = vmul.f32 -1.442695, %v4574_v63 }
 0xa99   :  { %13716 = vpow2.f32 %v11552_v46 }
 0xa9a   :  { %13718 = vpow2.f32 %v11554_v40 }
 0xa9b   :  { %13720 = vtanh.f32 %v4569_v35 }
 0xa9c   :  { %13722 = vpow2.f32 %v11555_v62 }
 0xa9d   :  { %13724 = vtanh.f32 %v4573_v26 }
 0xaa1   :  { %v13713_v1 = vpop.eup %13712 }
 0xaa2   :  { %v13715_v6 = vpop.eup %13714  ;;  %v4581_v48 = vadd.f32 1.0, %v13713_v1 }
 0xaa3   :  { %v4593_v52 = vadd.f32 1.0, %v13715_v6  ;;  %v13717_v32 = vpop.eup %13716 }
 0xaa4   :  { %13726 = vrcp.f32 %v4581_v48  ;;  %v4582_v60 = vadd.f32 1.0, %v13717_v32  ;;  %v13719_v40 = vpop.eup %13718 }
 0xaa5   :  { %13728 = vrcp.f32 %v4593_v52  ;;  %v4594_v47 = vadd.f32 1.0, %v13719_v40  ;;  %v13721_v5 = vpop.eup %13720 }
 0xaa6   :  { %13730 = vpow2.f32 %v11556_v36  ;;  %v13723_v14 = vpop.eup %13722 }
 0xaa7   :  { %13732 = vrcp.f32 %v4582_v60  ;;  %v13725_v22 = vpop.eup %13724  ;;  %v4607_v42 = vadd.f32 1.0, %v13723_v14 }
 0xaa8   :  { %13734 = vrcp.f32 %v4594_v47 }
 0xaa9   :  { %13736 = vrcp.f32 %v4607_v42 }
 0xaae   :  { %v13727_v10 = vpop.eup %13726 }
 0xaaf   :  { %v13729_v30 = vpop.eup %13728  ;;  %v4615_v18 = vmul.f32 %v13727_v10, %v13721_v5 }
 0xab0   :  { %v13731_v62 = vpop.eup %13730  ;;  %v4613_v46 = vmul.f32 %v13729_v30, %v17990_v2 }
 0xab1   :  { %v13733_v20 = vpop.eup %13732  ;;  %v4608_v26 = vadd.f32 1.0, %v13731_v62 }
 0xab2   :  { %v4617_v35 = vadd.f32 %v4615_v18, %v4613_v46  ;;  %v4616_v48 = vmul.f32 %v13733_v20, %v13725_v22  ;;  %v13735_v63 = vpop.eup %13734 }
 0xab3   :  { %v4614_v6 = vmul.f32 %v13735_v63, %v17995_v41  ;;  %v13737_v5 = vpop.eup %13736 }
 0xab4   :  { %13738 = vtanh.f32 %v4617_v35  ;;  %v4651_v1 = vsub.f32 %v4617_v35, %v17990_v2 }
 0xab5   :  { %v4618_v36 = vadd.f32 %v4616_v48, %v4614_v6  ;;  %13740 = vrcp.f32 %v4608_v26  ;;  %v18534_v48 = vld [vmem:[%s20226_s12 + $0x8] ss:$16 sps:$4 sm:$0xff]   ;;  %v18563_v26 = vld [vmem:[%s20226_s12 + $0x44] ss:$16 sps:$4 sm:$0xff]   ;;  %v18577_v6 = vld [vmem:[%s20226_s12 + $0x40] ss:$16 sps:$4 sm:$0xff]  }
 0xab6   :  { %v4653_v52 = vmul.f32 %v4651_v1, %v18025_v33  ;;  %20967 = vst [vmem:[#allocation63_spill] sm:$0xff] %v18534_v48  ;;  %20972 = vst [vmem:[#allocation13_spill] sm:$0xff] %v18563_v26  ;;  %v18568_v1 = vld [vmem:[%s20226_s12 + $0x4c] ss:$16 sps:$4 sm:$0xff]  }
 0xab7   :  { %13742 = vtanh.f32 %v4618_v36  ;;  %v4652_v32 = vsub.f32 %v4618_v36, %v17995_v41  ;;  %20973 = vst [vmem:[#allocation14_spill] sm:$0xff] %v18568_v1  ;;  %20974 = vst [vmem:[#allocation30_spill] sm:$0xff] %v18577_v6  ;;  %v18582_v36 = vld [vmem:[%s20226_s12 + $0x48] ss:$16 sps:$4 sm:$0xff]  }
 0xab8   :  { %v18514_v60 = vadd.f32 %v4653_v52, %v17990_v2  ;;  %20975 = vst [vmem:[#allocation71_spill] sm:$0xff] %v18582_v36  ;;  %v18589_v52 = vld [vmem:[%s20226_s12 + $0x64] ss:$16 sps:$4 sm:$0xff]  }
 0xab9   :  { %v4654_v40 = vmul.f32 %v4652_v32, %v18036_v58  ;;  %20976 = vst [vmem:[#allocation72_spill] sm:$0xff] %v18589_v52  ;;  %v18594_v32 = vld [vmem:[%s20226_s12 + $0x6c] ss:$16 sps:$4 sm:$0xff]  }
 0xaba   :  { %20977 = vst [vmem:[#allocation73_spill] sm:$0xff] %v18594_v32 }
 0xabb   :  { %v18518_v47 = vadd.f32 %v4654_v40, %v17995_v41  ;;  %v18529_v41 = vld [vmem:[%s20226_s12] ss:$16 sps:$4 sm:$0xff]  }
 0xabc   :  { %v18601_v40 = vld [vmem:[%s20226_s12 + $0x60] ss:$16 sps:$4 sm:$0xff]  }
 0xabd   :  { %20978 = vst [vmem:[#allocation68_spill] sm:$0xff] %v18601_v40 }
 0xabe   :  { %v13739_v14 = vpop.eup %13738 }
 0xabf   :  { %v4621_v22 = vmul.f32 %v13739_v14, %v13737_v5  ;;  %v13741_v10 = vpop.eup %13740  ;;  %v18606_v5 = vld [vmem:[%s20226_s12 + $0x68] ss:$16 sps:$4 sm:$0xff]   ;;  %v18613_v14 = vld [vmem:[%s20226_s12 + $0x84] ss:$16 sps:$4 sm:$0xff]  }
 0xac0   :  { %20979 = vst [vmem:[#allocation69_spill] sm:$0xff] %v18606_v5  ;;  %20980 = vst [vmem:[#allocation70_spill] sm:$0xff] %v18613_v14 }
 0xac1   :  { %v4645_v30 = vsub.f32 %v4621_v22, %v18005_v31  ;;  %v13743_v18 = vpop.eup %13742  ;;  %v18618_v22 = vld [vmem:[%s20226_s12 + $0x8c] ss:$16 sps:$4 sm:$0xff]  }
 0xac2   :  { %v4622_v42 = vmul.f32 %v13743_v18, %v13741_v10  ;;  %20981 = vst [vmem:[#allocation29_spill] sm:$0xff] %v18618_v22  ;;  %v18625_v10 = vld [vmem:[%s20226_s12 + $0x80] ss:$16 sps:$4 sm:$0xff]   ;;  %v18637_v18 = vld [vmem:[%s20226_s12 + $0xa4] ss:$16 sps:$4 sm:$0xff]  }
 0xac3   :  { %v4647_v46 = vmul.f32 %v4645_v30, %v18025_v33  ;;  %v18539_v33 = vld [vmem:[%s20226_s12 + $0x24] ss:$16 sps:$4 sm:$0xff]   ;;  %20982 = vst [vmem:[#allocation15_spill] sm:$0xff] %v18625_v10  ;;  %v18630_v30 = vld [vmem:[%s20226_s12 + $0x88] ss:$16 sps:$4 sm:$0xff]   ;;  %20984 = vst [vmem:[#allocation17_spill] sm:$0xff] %v18637_v18 }
 0xac4   :  { %v4646_v62 = vsub.f32 %v4622_v42, %v18008_v4  ;;  %20968 = vst [vmem:[#allocation64_spill] sm:$0xff] %v18539_v33  ;;  %20983 = vst [vmem:[#allocation16_spill] sm:$0xff] %v18630_v30  ;;  %v18642_v42 = vld [vmem:[%s20226_s12 + $0xac] ss:$16 sps:$4 sm:$0xff]  }
 0xac5   :  { %v4649_v20 = vadd.f32 %v4647_v46, %v18005_v31  ;;  %v18544_v31 = vld [vmem:[%s20226_s12 + $0x2c] ss:$16 sps:$4 sm:$0xff]   ;;  %20985 = vst [vmem:[#allocation18_spill] sm:$0xff] %v18642_v42  ;;  %v18652_v46 = vld [vmem:[%s20226_s12 + $0xa0] ss:$16 sps:$4 sm:$0xff]  }
 0xac6   :  { %v4648_v2 = vmul.f32 %v4646_v62, %v18036_v58  ;;  %20969 = vst [vmem:[#allocation65_spill] sm:$0xff] %v18544_v31  ;;  %v18556_v58 = vld [vmem:[%s20226_s12 + $0x28] ss:$16 sps:$4 sm:$0xff]   ;;  %v5428_v62 = vld [vmem:[%s20225_s11] sm:$0xf]  ;;  %20986 = vst [vmem:[#allocation19_spill] sm:$0xff] %v18652_v46 }
 0xac7   :  { %20971 = vst [vmem:[#allocation67_spill] sm:$0xff] %v18556_v58 }
 0xac8   :  { %v4650_v35 = vadd.f32 %v4648_v2, %v18008_v4  ;;  %v18551_v4 = vld [vmem:[%s20226_s12 + $0x20] ss:$16 sps:$4 sm:$0xff]   ;;  %v18657_v2 = vld [vmem:[%s20226_s12 + $0xa8] ss:$16 sps:$4 sm:$0xff]  }
 0xac9   :  { %20970 = vst [vmem:[#allocation66_spill] sm:$0xff] %v18551_v4  ;;  %20987 = vst [vmem:[#allocation20_spill] sm:$0xff] %v18657_v2 }
 0xaca   :  { %v5539_v63 = vpack.c.bf16 %v4650_v35, %v4649_v20  ;;  %v20988_v20 = vld [vmem:[#allocation27_spill] sm:$0xff] }
 0xacb   :  { %v5433_v35 = vrot.slane %v5428_v62, %v20988_v20 }
 0xacc   :  { %5765 = vmatmul.mubr.bf16.vlgmr.msra.gmra.mrb[88].mxu0 %v5539_v63  ;;  %5808 = vmatmul.mubr.bf16.vlgmr.msra.gmra.mrb[88].mxu1 %v5539_v63  ;;  %v18665_v63 = vld [vmem:[%s20226_s12 + $0xc4] ss:$16 sps:$4 sm:$0xff]  }
 0xacd   :  { %5979 = vmatpush1.bf16.msra.mxu0 %v18529_v41  ;;  %6022 = vmatpush1.bf16.msra.mxu1 %v18534_v48  ;;  %20989 = vst [vmem:[#allocation21_spill] sm:$0xff] %v18665_v63  ;;  %v18703_v48 = vld [vmem:[%s20226_s12 + $0xe0] ss:$16 sps:$4 sm:$0xff]  }
 0xace   :  { %5980 = vmatprep.subr.bf16.mxu0 %v18539_v33  ;;  %6023 = vmatprep.subr.bf16.mxu1 %v18544_v31  ;;  %v20994_v31 = vld [vmem:[#allocation31_spill] sm:$0xff] }
 0xacf   :  { %6010 = vmatprep.mubr.bf16.mxu0 %v20604_v16  ;;  %6053 = vmatprep.mubr.bf16.mxu1 %v20604_v16 }
 0xad1   :  { %5981 = vmatpush1.bf16.msra.mxu0 %v18551_v4  ;;  %6024 = vmatpush1.bf16.msra.mxu1 %v18556_v58 }
 0xad2   :  { %5982 = vmatprep.subr.bf16.mxu0 %v18563_v26  ;;  %6025 = vmatprep.subr.bf16.mxu1 %v18568_v1 }
 0xad5   :  { %5983 = vmatpush1.bf16.msra.mxu0 %v18577_v6  ;;  %6026 = vmatpush1.bf16.msra.mxu1 %v18582_v36 }
 0xad6   :  { %5984 = vmatprep.subr.bf16.mxu0 %v18589_v52  ;;  %6027 = vmatprep.subr.bf16.mxu1 %v18594_v32 }
 0xad9   :  { %5985 = vmatpush1.bf16.msra.mxu0 %v18601_v40  ;;  %6028 = vmatpush1.bf16.msra.mxu1 %v18606_v5 }
 0xada   :  { %5986 = vmatprep.subr.bf16.mxu0 %v18613_v14  ;;  %6029 = vmatprep.subr.bf16.mxu1 %v18618_v22 }
 0xadd   :  { %5987 = vmatpush1.bf16.msra.mxu0 %v18625_v10  ;;  %6030 = vmatpush1.bf16.msra.mxu1 %v18630_v30  ;;  %v18670_v30 = vld [vmem:[%s20226_s12 + $0xcc] ss:$16 sps:$4 sm:$0xff]  }
 0xade   :  { %5988 = vmatprep.subr.bf16.mxu0 %v18637_v18  ;;  %6031 = vmatprep.subr.bf16.mxu1 %v18642_v42  ;;  %20990 = vst [vmem:[#allocation22_spill] sm:$0xff] %v18670_v30  ;;  %v20991_v10 = vld [vmem:[#allocation28_spill] sm:$0xff]  ;;  %v18678_v42 = vld [vmem:[%s20226_s12 + $0xc0] ss:$16 sps:$4 sm:$0xff]  }
 0xadf   :  { %v5437_v22 = vrot.slane %v5428_v62, %v20991_v10  ;;  %v18683_v18 = vld [vmem:[%s20226_s12 + $0xc8] ss:$16 sps:$4 sm:$0xff]  }
 0xae1   :  { %5989 = vmatpush1.bf16.msra.mxu0 %v18652_v46  ;;  %6032 = vmatpush1.bf16.msra.mxu1 %v18657_v2  ;;  %v18690_v2 = vld [vmem:[%s20226_s12 + $0xe4] ss:$16 sps:$4 sm:$0xff]   ;;  %v18695_v46 = vld [vmem:[%s20226_s12 + $0xec] ss:$16 sps:$4 sm:$0xff]  }
 0xae2   :  { %v5368_v14 = vpop.f32.mrb[64].mxu0  ;;  %v5411_v5 = vpop.f32.mrb[64].mxu1  ;;  %5990 = vmatprep.subr.bf16.mxu0 %v18665_v63  ;;  %6033 = vmatprep.subr.bf16.mxu1 %v18670_v30  ;;  %20992 = vst [vmem:[#allocation23_spill] sm:$0xff] %v18690_v2  ;;  %20993 = vst [vmem:[#allocation27_spill] sm:$0xff] %v18695_v46  ;;  %v5445_v30 = vrot.slane %v5428_v62, %v20994_v31 }
 0xae3   :  { %v5450_v40 = vadd.f32 %v5433_v35, %v5368_v14  ;;  %v5370_v32 = vpop.f32.mrb[65].mxu0  ;;  %v5413_v52 = vpop.f32.mrb[65].mxu1 }
 0xae4   :  { %v5451_v36 = vadd.f32 %v5437_v22, %v5370_v32  ;;  %v5372_v6 = vpop.f32.mrb[66].mxu0  ;;  %v5415_v1 = vpop.f32.mrb[66].mxu1  ;;  %v18708_v32 = vld [vmem:[%s20226_s12 + $0xe8] ss:$16 sps:$4 sm:$0xff]  }
 0xae5   :  { %v11627_v14 = vmul.f32 -1.442695, %v5450_v40  ;;  %v5454_v26 = vadd.f32 %v5433_v35, %v5372_v6  ;;  %v5374_v58 = vpop.f32.mrb[67].mxu0  ;;  %v5417_v4 = vpop.f32.mrb[67].mxu1  ;;  %5991 = vmatpush1.bf16.msra.mxu0 %v18678_v42  ;;  %6034 = vmatpush1.bf16.msra.mxu1 %v18683_v18  ;;  %20995 = vst [vmem:[#allocation28_spill] sm:$0xff] %v18708_v32 }
 0xae6   :  { %v11629_v63 = vmul.f32 -1.442695, %v5451_v36  ;;  %v5455_v33 = vadd.f32 %v5437_v22, %v5374_v58  ;;  %5992 = vmatprep.subr.bf16.mxu0 %v18690_v2  ;;  %6035 = vmatprep.subr.bf16.mxu1 %v18695_v46  ;;  %v20996_v36 = vld [vmem:[#allocation32_spill] sm:$0xff]  ;;  %v5453_v22 = vadd.f32 %v5445_v30, %v5413_v52 }
 0xae7   :  { %13744 = vpow2.f32 %v11627_v14  ;;  %v11628_v6 = vmul.f32 -1.442695, %v5454_v26  ;;  %v5441_v40 = vrot.slane %v5428_v62, %v20996_v36  ;;  %v5457_v14 = vadd.f32 %v5445_v30, %v5417_v4 }
 0xae8   :  { %13746 = vpow2.f32 %v11629_v63  ;;  %v11630_v58 = vmul.f32 -1.442695, %v5455_v33  ;;  %v11631_v35 = vmul.f32 -1.442695, %v5453_v22 }
 0xae9   :  { %13748 = vpow2.f32 %v11628_v6  ;;  %5993 = vmatpush1.bf16.msra.mxu0 %v18703_v48  ;;  %6036 = vmatpush1.bf16.msra.mxu1 %v18708_v32  ;;  %v5452_v26 = vadd.f32 %v5441_v40, %v5411_v5  ;;  %v5456_v2 = vadd.f32 %v5441_v40, %v5415_v1  ;;  %v11632_v52 = vmul.f32 -1.442695, %v5457_v14 }
 0xaea   :  { %6354 = vmatprep.subr.bf16.mxu0 %v18169_v8  ;;  %6397 = vmatprep.subr.bf16.mxu1 %v18174_v12  ;;  %13750 = vpow2.f32 %v11630_v58 }
 0xaeb   :  { %13752 = vtanh.f32 %v5452_v26 }
 0xaec   :  { %13754 = vpow2.f32 %v11631_v35 }
 0xaed   :  { %13756 = vtanh.f32 %v5456_v2 }
 0xaf1   :  { %v13745_v46 = vpop.eup %13744 }
 0xaf2   :  { %v13747_v33 = vpop.eup %13746  ;;  %v5464_v63 = vadd.f32 1.0, %v13745_v46 }
 0xaf3   :  { %v5476_v62 = vadd.f32 1.0, %v13747_v33  ;;  %v13749_v6 = vpop.eup %13748 }
 0xaf4   :  { %13758 = vrcp.f32 %v5464_v63  ;;  %v5465_v32 = vadd.f32 1.0, %v13749_v6  ;;  %v13751_v8 = vpop.eup %13750 }
 0xaf5   :  { %13760 = vrcp.f32 %v5476_v62  ;;  %v5477_v12 = vadd.f32 1.0, %v13751_v8  ;;  %v13753_v5 = vpop.eup %13752 }
 0xaf6   :  { %13762 = vpow2.f32 %v11632_v52  ;;  %v13755_v4 = vpop.eup %13754 }
 0xaf7   :  { %13764 = vrcp.f32 %v5465_v32  ;;  %v13757_v1 = vpop.eup %13756  ;;  %v5490_v2 = vadd.f32 1.0, %v13755_v4 }
 0xaf8   :  { %13766 = vrcp.f32 %v5477_v12 }
 0xaf9   :  { %13768 = vrcp.f32 %v5490_v2 }
 0xafe   :  { %v13759_v30 = vpop.eup %13758 }
 0xaff   :  { %v13761_v58 = vpop.eup %13760  ;;  %v5498_v40 = vmul.f32 %v13759_v30, %v13753_v5  ;;  %v6064_v30 = vld [vmem:[%s20228_s14] sm:$0xf] }
 0xb00   :  { %v13763_v46 = vpop.eup %13762  ;;  %v5496_v22 = vmul.f32 %v13761_v58, %v18034_v49  ;;  %v6069_v58 = vrot.slane %v6064_v30, %v20988_v20 }
 0xb01   :  { %v13765_v26 = vpop.eup %13764  ;;  %v5491_v63 = vadd.f32 1.0, %v13763_v46 }
 0xb02   :  { %v18718_v35 = vadd.f32 %v5498_v40, %v5496_v22  ;;  %v5499_v14 = vmul.f32 %v13765_v26, %v13757_v1  ;;  %v13767_v33 = vpop.eup %13766  ;;  %v21029_v1 = vld [vmem:[#allocation62_spill] sm:$0xff]  ;;  %v6073_v40 = vrot.slane %v6064_v30, %v20991_v10 }
 0xb03   :  { %v5497_v32 = vmul.f32 %v13767_v33, %v18044_v57  ;;  %v13769_v62 = vpop.eup %13768  ;;  %v20997_v57 = vld [vmem:[#allocation24_spill] sm:$0xff] }
 0xb04   :  { %13770 = vtanh.f32 %v18718_v35 }
 0xb05   :  { %v18722_v52 = vadd.f32 %v5499_v14, %v5497_v32  ;;  %13772 = vrcp.f32 %v5491_v63 }
 0xb07   :  { %13774 = vtanh.f32 %v18722_v52 }
 0xb0e   :  { %v13771_v6 = vpop.eup %13770 }
 0xb0f   :  { %v13773_v49 = vpop.eup %13772  ;;  %v5504_v12 = vmul.f32 %v13771_v6, %v13769_v62 }
 0xb11   :  { %v13775_v8 = vpop.eup %13774 }
 0xb12   :  { %v5505_v5 = vmul.f32 %v13775_v8, %v13773_v49 }
 0xb14   :  { %v5506_v4 = vpack.c.bf16 %v5505_v5, %v5504_v12  ;;  %v6081_v5 = vrot.slane %v6064_v30, %v20994_v31 }
 0xb16   :  { %6011 = vmatmul.mubr.bf16.vlgmr.msra.gmra.mrb[88].mxu0 %v5506_v4  ;;  %6054 = vmatmul.mubr.bf16.vlgmr.msra.gmra.mrb[88].mxu1 %v5506_v4 }
 0xb17   :  { %6355 = vmatpush1.bf16.msra.mxu0 %v18182_v37  ;;  %6398 = vmatpush1.bf16.msra.mxu1 %v18194_v28  ;;  %v20998_v37 = vld [vmem:[#allocation25_spill] sm:$0xff] }
 0xb18   :  { %6356 = vmatprep.subr.bf16.mxu0 %v18188_v55  ;;  %6399 = vmatprep.subr.bf16.mxu1 %v18199_v9  ;;  %v20999_v55 = vld [vmem:[#allocation26_spill] sm:$0xff]  ;;  %v21000_v28 = vld [vmem:[#allocation33_spill] sm:$0xff] }
 0xb19   :  { %6386 = vmatprep.mubr.bf16.mxu0 %v20604_v16  ;;  %6429 = vmatprep.mubr.bf16.mxu1 %v20604_v16  ;;  %v21001_v9 = vld [vmem:[#allocation34_spill] sm:$0xff] }
 0xb1b   :  { %6357 = vmatpush1.bf16.msra.mxu0 %v18205_v56  ;;  %6400 = vmatpush1.bf16.msra.mxu1 %v18219_v38  ;;  %v21002_v56 = vld [vmem:[#allocation35_spill] sm:$0xff]  ;;  %v21004_v38 = vld [vmem:[#allocation37_spill] sm:$0xff] }
 0xb1c   :  { %6358 = vmatprep.subr.bf16.mxu0 %v18213_v15  ;;  %6401 = vmatprep.subr.bf16.mxu1 %v18241_v0  ;;  %v21003_v15 = vld [vmem:[#allocation36_spill] sm:$0xff] }
 0xb1d   :  { %v21007_v0 = vld [vmem:[#allocation40_spill] sm:$0xff] }
 0xb1f   :  { %6359 = vmatpush1.bf16.msra.mxu0 %v18229_v7  ;;  %6402 = vmatpush1.bf16.msra.mxu1 %v18246_v29  ;;  %v21005_v7 = vld [vmem:[#allocation38_spill] sm:$0xff] }
 0xb20   :  { %6360 = vmatprep.subr.bf16.mxu0 %v18235_v24  ;;  %6403 = vmatprep.subr.bf16.mxu1 %v18258_v61  ;;  %v21006_v24 = vld [vmem:[#allocation39_spill] sm:$0xff]  ;;  %v21008_v29 = vld [vmem:[#allocation42_spill] sm:$0xff]  ;;  %v21010_v61 = vld [vmem:[#allocation41_spill] sm:$0xff] }
 0xb23   :  { %6361 = vmatpush1.bf16.msra.mxu0 %v18253_v25  ;;  %6404 = vmatpush1.bf16.msra.mxu1 %v18283_v50  ;;  %v21009_v25 = vld [vmem:[#allocation44_spill] sm:$0xff]  ;;  %v21013_v50 = vld [vmem:[#allocation46_spill] sm:$0xff] }
 0xb24   :  { %6362 = vmatprep.subr.bf16.mxu0 %v18265_v45  ;;  %6405 = vmatprep.subr.bf16.mxu1 %v18293_v54  ;;  %v21011_v45 = vld [vmem:[#allocation43_spill] sm:$0xff]  ;;  %v21015_v54 = vld [vmem:[#allocation48_spill] sm:$0xff] }
 0xb27   :  { %6363 = vmatpush1.bf16.msra.mxu0 %v18277_v13  ;;  %6406 = vmatpush1.bf16.msra.mxu1 %v18307_v51  ;;  %v21012_v13 = vld [vmem:[#allocation45_spill] sm:$0xff]  ;;  %v21017_v51 = vld [vmem:[#allocation50_spill] sm:$0xff] }
 0xb28   :  { %6364 = vmatprep.subr.bf16.mxu0 %v18288_v27  ;;  %6407 = vmatprep.subr.bf16.mxu1 %v18319_v43  ;;  %v21014_v27 = vld [vmem:[#allocation47_spill] sm:$0xff]  ;;  %v21019_v43 = vld [vmem:[#allocation52_spill] sm:$0xff] }
 0xb2b   :  { %6365 = vmatpush1.bf16.msra.mxu0 %v18302_v3  ;;  %6408 = vmatpush1.bf16.msra.mxu1 %v18334_v23  ;;  %v21016_v3 = vld [vmem:[#allocation49_spill] sm:$0xff]  ;;  %v21021_v23 = vld [vmem:[#allocation54_spill] sm:$0xff] }
 0xb2c   :  { %6366 = vmatprep.subr.bf16.mxu0 %v18314_v11  ;;  %6409 = vmatprep.subr.bf16.mxu1 %v18341_v17  ;;  %v21018_v11 = vld [vmem:[#allocation51_spill] sm:$0xff] }
 0xb2d   :  { %v21022_v17 = vld [vmem:[#allocation55_spill] sm:$0xff] }
 0xb2f   :  { %6367 = vmatpush1.bf16.msra.mxu0 %v18329_v34  ;;  %6410 = vmatpush1.bf16.msra.mxu1 %v18355_v19  ;;  %v21020_v34 = vld [vmem:[#allocation53_spill] sm:$0xff] }
 0xb30   :  { %6368 = vmatprep.subr.bf16.mxu0 %v18346_v53  ;;  %6411 = vmatprep.subr.bf16.mxu1 %v18367_v21  ;;  %v21023_v53 = vld [vmem:[#allocation56_spill] sm:$0xff]  ;;  %v21024_v19 = vld [vmem:[#allocation57_spill] sm:$0xff]  ;;  %v21026_v21 = vld [vmem:[#allocation59_spill] sm:$0xff] }
 0xb33   :  { %6369 = vmatpush1.bf16.msra.mxu0 %v18360_v39  ;;  %6412 = vmatpush1.bf16.msra.mxu1 %v18377_v44  ;;  %v21025_v39 = vld [vmem:[#allocation58_spill] sm:$0xff]  ;;  %v21027_v44 = vld [vmem:[#allocation60_spill] sm:$0xff] }
 0xb34   :  { %6751 = vmatprep.subr.bf16.mxu0 %v18392_v59  ;;  %6794 = vmatprep.subr.bf16.mxu1 %v20997_v57  ;;  %v21028_v59 = vld [vmem:[#allocation61_spill] sm:$0xff] }
 0xb36   :  { %6387 = vmatmul.mubr.bf16.vlgmr.msra.gmra.mrb[68].mxu0 %v5506_v4  ;;  %6430 = vmatmul.mubr.bf16.vlgmr.msra.gmra.mrb[68].mxu1 %v5506_v4 }
 0xb37   :  { %6752 = vmatpush1.bf16.msra.mxu0 %v20998_v37  ;;  %6795 = vmatpush1.bf16.msra.mxu1 %v20999_v55  ;;  %v6077_v55 = vrot.slane %v6064_v30, %v20996_v36 }
 0xb38   :  { %6753 = vmatprep.subr.bf16.mxu0 %v21000_v28  ;;  %6796 = vmatprep.subr.bf16.mxu1 %v21001_v9 }
 0xb39   :  { %6783 = vmatprep.mubr.bf16.mxu0 %v20604_v16  ;;  %6826 = vmatprep.mubr.bf16.mxu1 %v20604_v16 }
 0xb3b   :  { %6754 = vmatpush1.bf16.msra.mxu0 %v21002_v56  ;;  %6797 = vmatpush1.bf16.msra.mxu1 %v21003_v15 }
 0xb3c   :  { %6755 = vmatprep.subr.bf16.mxu0 %v21004_v38  ;;  %6798 = vmatprep.subr.bf16.mxu1 %v21005_v7 }
 0xb3f   :  { %6756 = vmatpush1.bf16.msra.mxu0 %v21006_v24  ;;  %6799 = vmatpush1.bf16.msra.mxu1 %v21007_v0 }
 0xb40   :  { %6757 = vmatprep.subr.bf16.mxu0 %v21008_v29  ;;  %6800 = vmatprep.subr.bf16.mxu1 %v21009_v25 }
 0xb43   :  { %6758 = vmatpush1.bf16.msra.mxu0 %v21010_v61  ;;  %6801 = vmatpush1.bf16.msra.mxu1 %v21011_v45 }
 0xb44   :  { %6759 = vmatprep.subr.bf16.mxu0 %v21012_v13  ;;  %6802 = vmatprep.subr.bf16.mxu1 %v21013_v50 }
 0xb47   :  { %6760 = vmatpush1.bf16.msra.mxu0 %v21014_v27  ;;  %6803 = vmatpush1.bf16.msra.mxu1 %v21015_v54 }
 0xb48   :  { %6761 = vmatprep.subr.bf16.mxu0 %v21016_v3  ;;  %6804 = vmatprep.subr.bf16.mxu1 %v21017_v51  ;;  %v6448_v3 = vld [vmem:[%s20225_s11] sm:$0xf] }
 0xb4b   :  { %6762 = vmatpush1.bf16.msra.mxu0 %v21018_v11  ;;  %6805 = vmatpush1.bf16.msra.mxu1 %v21019_v43 }
 0xb4c   :  { %6763 = vmatprep.subr.bf16.mxu0 %v21020_v34  ;;  %6806 = vmatprep.subr.bf16.mxu1 %v21021_v23  ;;  %v6453_v23 = vrot.slane %v6448_v3, %v20988_v20 }
 0xb4f   :  { %6764 = vmatpush1.bf16.msra.mxu0 %v21022_v17  ;;  %6807 = vmatpush1.bf16.msra.mxu1 %v21023_v53 }
 0xb50   :  { %6765 = vmatprep.subr.bf16.mxu0 %v21024_v19  ;;  %6808 = vmatprep.subr.bf16.mxu1 %v21025_v39  ;;  %v6457_v39 = vrot.slane %v6448_v3, %v20991_v10 }
 0xb53   :  { %6766 = vmatpush1.bf16.msra.mxu0 %v21026_v21  ;;  %6809 = vmatpush1.bf16.msra.mxu1 %v21027_v44 }
 0xb54   :  { %6997 = vmatprep.subr.bf16.mxu0 %v21028_v59  ;;  %7040 = vmatprep.subr.bf16.mxu1 %v21029_v1 }
 0xbe9   :  { %v6012_v46 = vpop.f32.mrb[88].mxu0  ;;  %v6055_v22 = vpop.f32.mrb[88].mxu1 }
 0xbea   :  { %v6086_v26 = vadd.f32 %v6069_v58, %v6012_v46  ;;  %v6014_v2 = vpop.f32.mrb[89].mxu0  ;;  %v6057_v14 = vpop.f32.mrb[89].mxu1  ;;  %v6088_v56 = vadd.f32 %v6077_v55, %v6055_v22 }
 0xbeb   :  { %v6087_v33 = vadd.f32 %v6073_v40, %v6014_v2  ;;  %v6016_v63 = vpop.f32.mrb[90].mxu0  ;;  %v6059_v32 = vpop.f32.mrb[90].mxu1  ;;  %v6089_v28 = vadd.f32 %v6081_v5, %v6057_v14 }
 0xbec   :  { %v11697_v62 = vmul.f32 -1.442695, %v6086_v26  ;;  %v6090_v6 = vadd.f32 %v6069_v58, %v6016_v63  ;;  %v6018_v49 = vpop.f32.mrb[91].mxu0  ;;  %v6061_v8 = vpop.f32.mrb[91].mxu1  ;;  %v6092_v29 = vadd.f32 %v6077_v55, %v6059_v32 }
 0xbed   :  { %v11699_v12 = vmul.f32 -1.442695, %v6087_v33  ;;  %v6091_v4 = vadd.f32 %v6073_v40, %v6018_v49  ;;  %v6093_v9 = vadd.f32 %v6081_v5, %v6061_v8  ;;  %v11701_v15 = vmul.f32 -1.442695, %v6089_v28 }
 0xbee   :  { %13776 = vpow2.f32 %v11697_v62  ;;  %v11698_v57 = vmul.f32 -1.442695, %v6090_v6  ;;  %v6465_v5 = vrot.slane %v6448_v3, %v20994_v31 }
 0xbef   :  { %13778 = vpow2.f32 %v11699_v12  ;;  %v11700_v37 = vmul.f32 -1.442695, %v6091_v4  ;;  %v11702_v38 = vmul.f32 -1.442695, %v6093_v9 }
 0xbf0   :  { %13780 = vpow2.f32 %v11698_v57  ;;  %v6461_v57 = vrot.slane %v6448_v3, %v20996_v36 }
 0xbf1   :  { %13782 = vpow2.f32 %v11700_v37 }
 0xbf2   :  { %13784 = vtanh.f32 %v6088_v56 }
 0xbf3   :  { %13786 = vpow2.f32 %v11701_v15 }
 0xbf4   :  { %13788 = vpow2.f32 %v11702_v38 }
 0xbf8   :  { %v13777_v7 = vpop.eup %13776 }
 0xbf9   :  { %v13779_v24 = vpop.eup %13778  ;;  %v6100_v0 = vadd.f32 1.0, %v13777_v7 }
 0xbfa   :  { %v6112_v25 = vadd.f32 1.0, %v13779_v24  ;;  %v13781_v61 = vpop.eup %13780 }
 0xbfb   :  { %13790 = vrcp.f32 %v6100_v0  ;;  %v6101_v45 = vadd.f32 1.0, %v13781_v61  ;;  %v13783_v13 = vpop.eup %13782 }
 0xbfc   :  { %13792 = vrcp.f32 %v6112_v25  ;;  %v6113_v50 = vadd.f32 1.0, %v13783_v13  ;;  %v13785_v27 = vpop.eup %13784 }
 0xbfd   :  { %13794 = vtanh.f32 %v6092_v29  ;;  %v13787_v54 = vpop.eup %13786 }
 0xbfe   :  { %13796 = vrcp.f32 %v6101_v45  ;;  %v13789_v51 = vpop.eup %13788  ;;  %v6126_v19 = vadd.f32 1.0, %v13787_v54 }
 0xbff   :  { %13798 = vrcp.f32 %v6113_v50  ;;  %v6127_v44 = vadd.f32 1.0, %v13789_v51 }
 0xc00   :  { %13800 = vrcp.f32 %v6126_v19  ;;  %v21034_v19 = vld [vmem:[#allocation67_spill] sm:$0xff] }
 0xc01   :  { %13802 = vrcp.f32 %v6127_v44 }
 0xc05   :  { %v13791_v11 = vpop.eup %13790 }
 0xc06   :  { %v13793_v43 = vpop.eup %13792  ;;  %v6134_v34 = vmul.f32 %v13791_v11, %v13785_v27 }
 0xc07   :  { %v13795_v17 = vpop.eup %13794  ;;  %v6132_v53 = vmul.f32 %v13793_v43, %v18514_v60  ;;  %v21030_v43 = vld [vmem:[#allocation63_spill] sm:$0xff] }
 0xc08   :  { %v13797_v21 = vpop.eup %13796 }
 0xc09   :  { %v18806_v59 = vadd.f32 %v6134_v34, %v6132_v53  ;;  %v6135_v1 = vmul.f32 %v13797_v21, %v13795_v17  ;;  %v6388_v30 = vpop.f32.mrb[68].mxu0  ;;  %v6431_v58 = vpop.f32.mrb[68].mxu1  ;;  %v21031_v34 = vld [vmem:[#allocation64_spill] sm:$0xff]  ;;  %v21033_v53 = vld [vmem:[#allocation66_spill] sm:$0xff]  ;;  %v21035_v21 = vld [vmem:[#allocation13_spill] sm:$0xff] }
 0xc0a   :  { %v13799_v40 = vpop.eup %13798  ;;  %v6470_v46 = vadd.f32 %v6453_v23, %v6388_v30  ;;  %v6390_v22 = vpop.f32.mrb[69].mxu0  ;;  %v6472_v28 = vadd.f32 %v6461_v57, %v6431_v58 }
 0xc0b   :  { %v6433_v26 = vpop.f32.mrb[69].mxu1  ;;  %v6133_v2 = vmul.f32 %v13799_v40, %v18518_v47  ;;  %v6471_v14 = vadd.f32 %v6457_v39, %v6390_v22  ;;  %v6392_v33 = vpop.f32.mrb[70].mxu0  ;;  %13804 = vtanh.f32 %v18806_v59  ;;  %v21037_v40 = vld [vmem:[#allocation30_spill] sm:$0xff] }
 0xc0c   :  { %v6435_v60 = vpop.f32.mrb[70].mxu1  ;;  %v11737_v63 = vmul.f32 -1.442695, %v6470_v46  ;;  %v6474_v32 = vadd.f32 %v6453_v23, %v6392_v33  ;;  %v6394_v62 = vpop.f32.mrb[71].mxu0  ;;  %v6473_v37 = vadd.f32 %v6465_v5, %v6433_v26  ;;  %v21032_v23 = vld [vmem:[#allocation65_spill] sm:$0xff]  ;;  %v21038_v46 = vld [vmem:[#allocation71_spill] sm:$0xff] }
 0xc0d   :  { %v6437_v6 = vpop.f32.mrb[71].mxu1  ;;  %v18810_v49 = vadd.f32 %v6135_v1, %v6133_v2  ;;  %v11739_v8 = vmul.f32 -1.442695, %v6471_v14  ;;  %v6475_v12 = vadd.f32 %v6457_v39, %v6394_v62  ;;  %v13801_v55 = vpop.eup %13800  ;;  %v6476_v24 = vadd.f32 %v6461_v57, %v6435_v60  ;;  %v21039_v2 = vld [vmem:[#allocation72_spill] sm:$0xff]  ;;  %v21040_v14 = vld [vmem:[#allocation73_spill] sm:$0xff]  ;;  %v21045_v57 = vld [vmem:[#allocation15_spill] sm:$0xff] }
 0xc0e   :  { %13806 = vpow2.f32 %v11737_v63  ;;  %v11738_v4 = vmul.f32 -1.442695, %v6474_v32  ;;  %v13803_v9 = vpop.eup %13802  ;;  %v11741_v56 = vmul.f32 -1.442695, %v6473_v37  ;;  %v6477_v15 = vadd.f32 %v6465_v5, %v6437_v6  ;;  %v21046_v37 = vld [vmem:[#allocation16_spill] sm:$0xff] }
 0xc0f   :  { %13808 = vtanh.f32 %v18810_v49  ;;  %v11740_v47 = vmul.f32 -1.442695, %v6475_v12  ;;  %v21042_v12 = vld [vmem:[#allocation69_spill] sm:$0xff] }
 0xc10   :  { %13810 = vpow2.f32 %v11739_v8  ;;  %v11742_v61 = vmul.f32 -1.442695, %v6477_v15  ;;  %v21041_v8 = vld [vmem:[#allocation68_spill] sm:$0xff]  ;;  %v21052_v15 = vld [vmem:[#allocation22_spill] sm:$0xff] }
 0xc11   :  { %13812 = vpow2.f32 %v11738_v4  ;;  %v21043_v4 = vld [vmem:[#allocation70_spill] sm:$0xff] }
 0xc12   :  { %13814 = vpow2.f32 %v11740_v47 }
 0xc13   :  { %13816 = vtanh.f32 %v6472_v28  ;;  %v21048_v28 = vld [vmem:[#allocation18_spill] sm:$0xff] }
 0xc14   :  { %13818 = vpow2.f32 %v11741_v56  ;;  %v21051_v56 = vld [vmem:[#allocation21_spill] sm:$0xff] }
 0xc15   :  { %v13805_v38 = vpop.eup %13804 }
 0xc16   :  { %v6140_v45 = vmul.f32 %v13805_v38, %v13801_v55  ;;  %v21047_v55 = vld [vmem:[#allocation17_spill] sm:$0xff] }
 0xc18   :  { %v13807_v7 = vpop.eup %13806 }
 0xc19   :  { %v13809_v0 = vpop.eup %13808  ;;  %v6484_v29 = vadd.f32 1.0, %v13807_v7 }
 0xc1a   :  { %v13811_v25 = vpop.eup %13810  ;;  %v6141_v13 = vmul.f32 %v13809_v0, %v13803_v9  ;;  %v21050_v9 = vld [vmem:[#allocation20_spill] sm:$0xff]  ;;  %v21054_v0 = vld [vmem:[#allocation27_spill] sm:$0xff] }
 0xc1b   :  { %13820 = vrcp.f32 %v6484_v29  ;;  %v6496_v50 = vadd.f32 1.0, %v13811_v25  ;;  %v13813_v27 = vpop.eup %13812  ;;  %v18859_v29 = vld [vmem:[%s20224_s10 + $0x4] ss:$16 sps:$4 sm:$0xff]   ;;  %v18864_v25 = vld [vmem:[%s20224_s10 + $0xc] ss:$16 sps:$4 sm:$0xff]  }
 0xc1c   :  { %13822 = vtanh.f32 %v6476_v24  ;;  %v6142_v54 = vpack.c.bf16 %v6141_v13, %v6140_v45  ;;  %v6485_v3 = vadd.f32 1.0, %v13813_v27  ;;  %v13815_v51 = vpop.eup %13814  ;;  %v21053_v24 = vld [vmem:[#allocation23_spill] sm:$0xff]  ;;  %v18877_v27 = vld [vmem:[%s20224_s10 + $0x8] ss:$16 sps:$4 sm:$0xff]  }
 0xc1d   :  { %13824 = vrcp.f32 %v6496_v50  ;;  %v6497_v11 = vadd.f32 1.0, %v13815_v51  ;;  %v13817_v17 = vpop.eup %13816  ;;  %v18871_v50 = vld [vmem:[%s20224_s10] ss:$16 sps:$4 sm:$0xff]  }
 0xc1e   :  { %13826 = vpow2.f32 %v11742_v61  ;;  %12281 = vst [vmem:[%s20229_s15] sm:$0xff] %v6142_v54   ;;  %6784 = vmatmul.mubr.bf16.vlgmr.msra.gmra.mrb[92].mxu0 %v6142_v54  ;;  %6827 = vmatmul.mubr.bf16.vlgmr.msra.gmra.mrb[92].mxu1 %v6142_v54  ;;  %v13819_v39 = vpop.eup %13818  ;;  %v18899_v51 = vld [vmem:[%s20224_s10 + $0x20] ss:$16 sps:$4 sm:$0xff]  }
 0xc1f   :  { %13828 = vrcp.f32 %v6485_v3  ;;  %6998 = vmatpush1.bf16.msra.mxu0 %v18529_v41  ;;  %7041 = vmatpush1.bf16.msra.mxu1 %v21030_v43  ;;  %v21036_v41 = vld [vmem:[#allocation14_spill] sm:$0xff]  ;;  %v6510_v60 = vadd.f32 1.0, %v13819_v39  ;;  %v18911_v43 = vld [vmem:[%s20224_s10 + $0x44] ss:$16 sps:$4 sm:$0xff]   ;;  %v18949_v39 = vld [vmem:[%s20224_s10 + $0x60] ss:$16 sps:$4 sm:$0xff]  }
 0xc20   :  { %6999 = vmatprep.subr.bf16.mxu0 %v21031_v34  ;;  %7042 = vmatprep.subr.bf16.mxu1 %v21032_v23  ;;  %13830 = vrcp.f32 %v6497_v11  ;;  %v18890_v3 = vld [vmem:[%s20224_s10 + $0x2c] ss:$16 sps:$4 sm:$0xff]   ;;  %v18904_v11 = vld [vmem:[%s20224_s10 + $0x28] ss:$16 sps:$4 sm:$0xff]   ;;  %v18925_v23 = vld [vmem:[%s20224_s10 + $0x40] ss:$16 sps:$4 sm:$0xff]  }
 0xc21   :  { %7029 = vmatprep.mubr.bf16.mxu0 %v20604_v16  ;;  %7072 = vmatprep.mubr.bf16.mxu1 %v20604_v16  ;;  %13832 = vrcp.f32 %v6510_v60  ;;  %v18916_v34 = vld [vmem:[%s20224_s10 + $0x4c] ss:$16 sps:$4 sm:$0xff]   ;;  %v19033_v60 = vld [vmem:[%s20224_s10 + $0xe4] ss:$16 sps:$4 sm:$0xff]  }
 0xc23   :  { %7000 = vmatpush1.bf16.msra.mxu0 %v21033_v53  ;;  %7043 = vmatpush1.bf16.msra.mxu1 %v21034_v19  ;;  %v18937_v53 = vld [vmem:[%s20224_s10 + $0x64] ss:$16 sps:$4 sm:$0xff]   ;;  %v18942_v19 = vld [vmem:[%s20224_s10 + $0x6c] ss:$16 sps:$4 sm:$0xff]  }
 0xc24   :  { %7001 = vmatprep.subr.bf16.mxu0 %v21035_v21  ;;  %7044 = vmatprep.subr.bf16.mxu1 %v21036_v41  ;;  %v18954_v21 = vld [vmem:[%s20224_s10 + $0x68] ss:$16 sps:$4 sm:$0xff]   ;;  %v18961_v41 = vld [vmem:[%s20224_s10 + $0x84] ss:$16 sps:$4 sm:$0xff]  }
 0xc25   :  { %v13821_v44 = vpop.eup %13820 }
 0xc26   :  { %v13823_v1 = vpop.eup %13822  ;;  %v6518_v30 = vmul.f32 %v13821_v44, %v13817_v17  ;;  %v18930_v17 = vld [vmem:[%s20224_s10 + $0x48] ss:$16 sps:$4 sm:$0xff]   ;;  %v18966_v44 = vld [vmem:[%s20224_s10 + $0x8c] ss:$16 sps:$4 sm:$0xff]  }
 0xc27   :  { %v13825_v58 = vpop.eup %13824  ;;  %7002 = vmatpush1.bf16.msra.mxu0 %v21037_v40  ;;  %7045 = vmatpush1.bf16.msra.mxu1 %v21038_v46  ;;  %v18990_v40 = vld [vmem:[%s20224_s10 + $0xac] ss:$16 sps:$4 sm:$0xff]   ;;  %v18997_v46 = vld [vmem:[%s20224_s10 + $0xa0] ss:$16 sps:$4 sm:$0xff]  }
 0xc28   :  { %v13827_v22 = vpop.eup %13826  ;;  %v6516_v26 = vmul.f32 %v13825_v58, %v18718_v35  ;;  %7003 = vmatprep.subr.bf16.mxu0 %v21039_v2  ;;  %7046 = vmatprep.subr.bf16.mxu1 %v21040_v14  ;;  %v21044_v35 = vld [vmem:[#allocation29_spill] sm:$0xff]  ;;  %v19014_v2 = vld [vmem:[%s20224_s10 + $0xcc] ss:$16 sps:$4 sm:$0xff]  }
 0xc29   :  { %v13829_v33 = vpop.eup %13828  ;;  %v6511_v6 = vadd.f32 1.0, %v13827_v22  ;;  %v18985_v58 = vld [vmem:[%s20224_s10 + $0xa4] ss:$16 sps:$4 sm:$0xff]   ;;  %v19002_v22 = vld [vmem:[%s20224_s10 + $0xa8] ss:$16 sps:$4 sm:$0xff]  }
 0xc2a   :  { %v18833_v63 = vadd.f32 %v6518_v30, %v6516_v26  ;;  %v6519_v32 = vmul.f32 %v13829_v33, %v13823_v1  ;;  %v13831_v62 = vpop.eup %13830  ;;  %v18973_v1 = vld [vmem:[%s20224_s10 + $0x80] ss:$16 sps:$4 sm:$0xff]   ;;  %v18978_v30 = vld [vmem:[%s20224_s10 + $0x88] ss:$16 sps:$4 sm:$0xff]   ;;  %v19009_v26 = vld [vmem:[%s20224_s10 + $0xc4] ss:$16 sps:$4 sm:$0xff]  }
 0xc2b   :  { %7004 = vmatpush1.bf16.msra.mxu0 %v21041_v8  ;;  %7047 = vmatpush1.bf16.msra.mxu1 %v21042_v12  ;;  %v6517_v5 = vmul.f32 %v13831_v62, %v18722_v52  ;;  %v21049_v52 = vld [vmem:[#allocation19_spill] sm:$0xff]  ;;  %v13833_v38 = vpop.eup %13832  ;;  %v19026_v33 = vld [vmem:[%s20224_s10 + $0xc8] ss:$16 sps:$4 sm:$0xff]   ;;  %v19062_v12 = vld [vmem:[#allocation4 + $0xc] ss:$16 sps:$4 sm:$0xff]  }
 0xc2c   :  { %7005 = vmatprep.subr.bf16.mxu0 %v21043_v4  ;;  %7048 = vmatprep.subr.bf16.mxu1 %v21044_v35  ;;  %13834 = vtanh.f32 %v18833_v63  ;;  %v19021_v14 = vld [vmem:[%s20224_s10 + $0xc0] ss:$16 sps:$4 sm:$0xff]   ;;  %v19060_v8 = vld [vmem:[#allocation4 + $0x4] ss:$16 sps:$4 sm:$0xff]   ;;  %21058 = vst [vmem:[#allocation24_spill] sm:$0xff] %v19062_v12 }
 0xc2d   :  { %v18841_v47 = vadd.f32 %v6519_v32, %v6517_v5  ;;  %13836 = vrcp.f32 %v6511_v6  ;;  %v19038_v32 = vld [vmem:[%s20224_s10 + $0xec] ss:$16 sps:$4 sm:$0xff]   ;;  %v19045_v62 = vld [vmem:[%s20224_s10 + $0xe0] ss:$16 sps:$4 sm:$0xff]   ;;  %v19050_v6 = vld [vmem:[%s20224_s10 + $0xe8] ss:$16 sps:$4 sm:$0xff]  }
 0xc2e   :  { %21056 = vst [vmem:[#allocation31_spill] sm:$0xff] %v19050_v6  ;;  %21057 = vst [vmem:[#allocation32_spill] sm:$0xff] %v19060_v8  ;;  %v19064_v5 = vld [vmem:[#allocation4] ss:$16 sps:$4 sm:$0xff]   ;;  %v19066_v4 = vld [vmem:[#allocation4 + $0x8] ss:$16 sps:$4 sm:$0xff]  }
 0xc2f   :  { %7006 = vmatpush1.bf16.msra.mxu0 %v21045_v57  ;;  %7049 = vmatpush1.bf16.msra.mxu1 %v21046_v37  ;;  %13838 = vtanh.f32 %v18841_v47  ;;  %21059 = vst [vmem:[#allocation25_spill] sm:$0xff] %v19064_v5  ;;  %21060 = vst [vmem:[#allocation26_spill] sm:$0xff] %v19066_v4  ;;  %v19072_v35 = vld [vmem:[#allocation4 + $0x24] ss:$16 sps:$4 sm:$0xff]   ;;  %v19074_v57 = vld [vmem:[#allocation4 + $0x2c] ss:$16 sps:$4 sm:$0xff]  }
 0xc30   :  { %7007 = vmatprep.subr.bf16.mxu0 %v21047_v55  ;;  %7050 = vmatprep.subr.bf16.mxu1 %v21048_v28  ;;  %21061 = vst [vmem:[#allocation33_spill] sm:$0xff] %v19072_v35  ;;  %21062 = vst [vmem:[#allocation34_spill] sm:$0xff] %v19074_v57  ;;  %v19076_v37 = vld [vmem:[#allocation4 + $0x20] ss:$16 sps:$4 sm:$0xff]   ;;  %v19078_v55 = vld [vmem:[#allocation4 + $0x28] ss:$16 sps:$4 sm:$0xff]  }
 0xc31   :  { %21063 = vst [vmem:[#allocation35_spill] sm:$0xff] %v19076_v37  ;;  %21064 = vst [vmem:[#allocation36_spill] sm:$0xff] %v19078_v55  ;;  %v19084_v28 = vld [vmem:[#allocation4 + $0x44] ss:$16 sps:$4 sm:$0xff]  }
 0xc32   :  { %21065 = vst [vmem:[#allocation37_spill] sm:$0xff] %v19084_v28 }
 0xc33   :  { %7008 = vmatpush1.bf16.msra.mxu0 %v21049_v52  ;;  %7051 = vmatpush1.bf16.msra.mxu1 %v21050_v9  ;;  %v19086_v52 = vld [vmem:[#allocation4 + $0x4c] ss:$16 sps:$4 sm:$0xff]   ;;  %v19088_v9 = vld [vmem:[#allocation4 + $0x40] ss:$16 sps:$4 sm:$0xff]  }
 0xc34   :  { %7009 = vmatprep.subr.bf16.mxu0 %v21051_v56  ;;  %7052 = vmatprep.subr.bf16.mxu1 %v21052_v15  ;;  %21066 = vst [vmem:[#allocation38_spill] sm:$0xff] %v19086_v52  ;;  %21067 = vst [vmem:[#allocation39_spill] sm:$0xff] %v19088_v9  ;;  %v19090_v56 = vld [vmem:[#allocation4 + $0x48] ss:$16 sps:$4 sm:$0xff]   ;;  %v19096_v15 = vld [vmem:[#allocation4 + $0x64] ss:$16 sps:$4 sm:$0xff]  }
 0xc35   :  { %21068 = vst [vmem:[#allocation40_spill] sm:$0xff] %v19090_v56  ;;  %21069 = vst [vmem:[#allocation42_spill] sm:$0xff] %v19096_v15 }
 0xc36   :  { %v13835_v7 = vpop.eup %13834 }
 0xc37   :  { %7010 = vmatpush1.bf16.msra.mxu0 %v18678_v42  ;;  %7053 = vmatpush1.bf16.msra.mxu1 %v18683_v18  ;;  %v13837_v61 = vpop.eup %13836  ;;  %v21055_v18 = vld [vmem:[#allocation28_spill] sm:$0xff]  ;;  %v6524_v42 = vmul.f32 %v13835_v7, %v13833_v38  ;;  %v19100_v7 = vld [vmem:[#allocation4 + $0x60] ss:$16 sps:$4 sm:$0xff]  }
 0xc38   :  { %7011 = vmatprep.subr.bf16.mxu0 %v21053_v24  ;;  %7054 = vmatprep.subr.bf16.mxu1 %v21054_v0  ;;  %v19098_v38 = vld [vmem:[#allocation4 + $0x6c] ss:$16 sps:$4 sm:$0xff]   ;;  %21071 = vst [vmem:[#allocation41_spill] sm:$0xff] %v19100_v7  ;;  %v19102_v24 = vld [vmem:[#allocation4 + $0x68] ss:$16 sps:$4 sm:$0xff]  }
 0xc39   :  { %v13839_v45 = vpop.eup %13838  ;;  %21070 = vst [vmem:[#allocation44_spill] sm:$0xff] %v19098_v38  ;;  %21072 = vst [vmem:[#allocation43_spill] sm:$0xff] %v19102_v24  ;;  %v19108_v0 = vld [vmem:[#allocation4 + $0x84] ss:$16 sps:$4 sm:$0xff]  }
 0xc3a   :  { %v6525_v13 = vmul.f32 %v13839_v45, %v13837_v61  ;;  %21073 = vst [vmem:[#allocation45_spill] sm:$0xff] %v19108_v0  ;;  %v19110_v61 = vld [vmem:[#allocation4 + $0x8c] ss:$16 sps:$4 sm:$0xff]   ;;  %v19112_v45 = vld [vmem:[#allocation4 + $0x80] ss:$16 sps:$4 sm:$0xff]  }
 0xc3b   :  { %7012 = vmatpush1.bf16.msra.mxu0 %v18703_v48  ;;  %7055 = vmatpush1.bf16.msra.mxu1 %v21055_v18  ;;  %v18885_v48 = vld [vmem:[%s20224_s10 + $0x24] ss:$16 sps:$4 sm:$0xff]   ;;  %21074 = vst [vmem:[#allocation46_spill] sm:$0xff] %v19110_v61  ;;  %21075 = vst [vmem:[#allocation47_spill] sm:$0xff] %v19112_v45  ;;  %v19114_v18 = vld [vmem:[#allocation4 + $0x88] ss:$16 sps:$4 sm:$0xff]  }
 0xc3c   :  { %7374 = vmatprep.subr.bf16.mxu0 %v18859_v29  ;;  %7417 = vmatprep.subr.bf16.mxu1 %v18864_v25  ;;  %v18880_v54 = vpack.c.bf16 %v6525_v13, %v6524_v42  ;;  %21076 = vst [vmem:[#allocation48_spill] sm:$0xff] %v19114_v18  ;;  %v19120_v42 = vld [vmem:[#allocation4 + $0xa4] ss:$16 sps:$4 sm:$0xff]   ;;  %v19122_v13 = vld [vmem:[#allocation4 + $0xac] ss:$16 sps:$4 sm:$0xff]  }
 0xc3d   :  { %21077 = vst [vmem:[#allocation49_spill] sm:$0xff] %v19120_v42  ;;  %21078 = vst [vmem:[#allocation50_spill] sm:$0xff] %v19122_v13 }
 0xc3e   :  { %7030 = vmatmul.mubr.bf16.vlgmr.msra.gmra.mrb[92].mxu0 %v18880_v54  ;;  %7073 = vmatmul.mubr.bf16.vlgmr.msra.gmra.mrb[92].mxu1 %v18880_v54 }
 0xc3f   :  { %7375 = vmatpush1.bf16.msra.mxu0 %v18871_v50  ;;  %7418 = vmatpush1.bf16.msra.mxu1 %v18877_v27 }
 0xc40   :  { %7376 = vmatprep.subr.bf16.mxu0 %v18885_v48  ;;  %7419 = vmatprep.subr.bf16.mxu1 %v18890_v3 }
 0xc41   :  { %7406 = vmatprep.mubr.bf16.mxu0 %v20604_v16  ;;  %7449 = vmatprep.mubr.bf16.mxu1 %v20604_v16 }
 0xc43   :  { %7377 = vmatpush1.bf16.msra.mxu0 %v18899_v51  ;;  %7420 = vmatpush1.bf16.msra.mxu1 %v18904_v11 }
 0xc44   :  { %7378 = vmatprep.subr.bf16.mxu0 %v18911_v43  ;;  %7421 = vmatprep.subr.bf16.mxu1 %v18916_v34 }
 0xc47   :  { %7379 = vmatpush1.bf16.msra.mxu0 %v18925_v23  ;;  %7422 = vmatpush1.bf16.msra.mxu1 %v18930_v17 }
 0xc48   :  { %7380 = vmatprep.subr.bf16.mxu0 %v18937_v53  ;;  %7423 = vmatprep.subr.bf16.mxu1 %v18942_v19 }
 0xc4b   :  { %7381 = vmatpush1.bf16.msra.mxu0 %v18949_v39  ;;  %7424 = vmatpush1.bf16.msra.mxu1 %v18954_v21 }
 0xc4c   :  { %7382 = vmatprep.subr.bf16.mxu0 %v18961_v41  ;;  %7425 = vmatprep.subr.bf16.mxu1 %v18966_v44 }
 0xc4f   :  { %7383 = vmatpush1.bf16.msra.mxu0 %v18973_v1  ;;  %7426 = vmatpush1.bf16.msra.mxu1 %v18978_v30 }
 0xc50   :  { %7384 = vmatprep.subr.bf16.mxu0 %v18985_v58  ;;  %7427 = vmatprep.subr.bf16.mxu1 %v18990_v40 }
 0xc53   :  { %7385 = vmatpush1.bf16.msra.mxu0 %v18997_v46  ;;  %7428 = vmatpush1.bf16.msra.mxu1 %v19002_v22 }
 0xc54   :  { %7386 = vmatprep.subr.bf16.mxu0 %v19009_v26  ;;  %7429 = vmatprep.subr.bf16.mxu1 %v19014_v2 }
 0xc57   :  { %7387 = vmatpush1.bf16.msra.mxu0 %v19021_v14  ;;  %7430 = vmatpush1.bf16.msra.mxu1 %v19026_v33 }
 0xc58   :  { %7388 = vmatprep.subr.bf16.mxu0 %v19033_v60  ;;  %7431 = vmatprep.subr.bf16.mxu1 %v19038_v32 }
 0xc5b   :  { %7389 = vmatpush1.bf16.msra.mxu0 %v19045_v62  ;;  %7432 = vmatpush1.bf16.msra.mxu1 %v19050_v6 }
 0xc5c   :  { %7771 = vmatprep.subr.bf16.mxu0 %v19060_v8  ;;  %7814 = vmatprep.subr.bf16.mxu1 %v19062_v12 }
 0xc5e   :  { %7407 = vmatmul.mubr.bf16.vlgmr.msra.gmra.mrb[72].mxu0 %v18880_v54  ;;  %7450 = vmatmul.mubr.bf16.vlgmr.msra.gmra.mrb[72].mxu1 %v18880_v54  ;;  %v19124_v54 = vld [vmem:[#allocation4 + $0xa0] ss:$16 sps:$4 sm:$0xff]  }
 0xc5f   :  { %7803 = vmatprep.mubr.bf16.mxu0 %v20604_v16  ;;  %7846 = vmatprep.mubr.bf16.mxu1 %v20604_v16  ;;  %21079 = vst [vmem:[#allocation51_spill] sm:$0xff] %v19124_v54 }
 0xc60   :  { %7772 = vmatpush1.bf16.msra.mxu0 %v19064_v5  ;;  %7815 = vmatpush1.bf16.msra.mxu1 %v19066_v4 }
 0xc61   :  { %7773 = vmatprep.subr.bf16.mxu0 %v19072_v35  ;;  %7816 = vmatprep.subr.bf16.mxu1 %v19074_v57 }
 0xc64   :  { %7774 = vmatpush1.bf16.msra.mxu0 %v19076_v37  ;;  %7817 = vmatpush1.bf16.msra.mxu1 %v19078_v55 }
 0xc65   :  { %7775 = vmatprep.subr.bf16.mxu0 %v19084_v28  ;;  %7818 = vmatprep.subr.bf16.mxu1 %v19086_v52 }
 0xc68   :  { %7776 = vmatpush1.bf16.msra.mxu0 %v19088_v9  ;;  %7819 = vmatpush1.bf16.msra.mxu1 %v19090_v56 }
 0xc69   :  { %7777 = vmatprep.subr.bf16.mxu0 %v19096_v15  ;;  %7820 = vmatprep.subr.bf16.mxu1 %v19098_v38 }
 0xc6c   :  { %7778 = vmatpush1.bf16.msra.mxu0 %v19100_v7  ;;  %7821 = vmatpush1.bf16.msra.mxu1 %v19102_v24  ;;  %v19126_v24 = vld [vmem:[#allocation4 + $0xa8] ss:$16 sps:$4 sm:$0xff]  }
 0xc6d   :  { %7779 = vmatprep.subr.bf16.mxu0 %v19108_v0  ;;  %7822 = vmatprep.subr.bf16.mxu1 %v19110_v61  ;;  %21080 = vst [vmem:[#allocation52_spill] sm:$0xff] %v19126_v24  ;;  %v19132_v61 = vld [vmem:[#allocation4 + $0xc4] ss:$16 sps:$4 sm:$0xff]   ;;  %v19138_v0 = vld [vmem:[#allocation4 + $0xc8] ss:$16 sps:$4 sm:$0xff]  }
 0xc6e   :  { %21081 = vst [vmem:[#allocation53_spill] sm:$0xff] %v19132_v61  ;;  %21084 = vst [vmem:[#allocation56_spill] sm:$0xff] %v19138_v0 }
 0xc70   :  { %7780 = vmatpush1.bf16.msra.mxu0 %v19112_v45  ;;  %7823 = vmatpush1.bf16.msra.mxu1 %v19114_v18  ;;  %v19134_v45 = vld [vmem:[#allocation4 + $0xcc] ss:$16 sps:$4 sm:$0xff]   ;;  %v19136_v18 = vld [vmem:[#allocation4 + $0xc0] ss:$16 sps:$4 sm:$0xff]  }
 0xc71   :  { %7781 = vmatprep.subr.bf16.mxu0 %v19120_v42  ;;  %7824 = vmatprep.subr.bf16.mxu1 %v19122_v13  ;;  %21082 = vst [vmem:[#allocation54_spill] sm:$0xff] %v19134_v45  ;;  %21083 = vst [vmem:[#allocation55_spill] sm:$0xff] %v19136_v18  ;;  %v19144_v13 = vld [vmem:[#allocation4 + $0xe4] ss:$16 sps:$4 sm:$0xff]   ;;  %v19150_v42 = vld [vmem:[#allocation4 + $0xe8] ss:$16 sps:$4 sm:$0xff]  }
 0xc72   :  { %21085 = vst [vmem:[#allocation57_spill] sm:$0xff] %v19144_v13  ;;  %21088 = vst [vmem:[#allocation60_spill] sm:$0xff] %v19150_v42 }
 0xc74   :  { %7782 = vmatpush1.bf16.msra.mxu0 %v19124_v54  ;;  %7825 = vmatpush1.bf16.msra.mxu1 %v19126_v24  ;;  %v19146_v54 = vld [vmem:[#allocation4 + $0xec] ss:$16 sps:$4 sm:$0xff]   ;;  %v19148_v24 = vld [vmem:[#allocation4 + $0xe0] ss:$16 sps:$4 sm:$0xff]  }
 0xc75   :  { %7783 = vmatprep.subr.bf16.mxu0 %v19132_v61  ;;  %7826 = vmatprep.subr.bf16.mxu1 %v19134_v45  ;;  %21086 = vst [vmem:[#allocation58_spill] sm:$0xff] %v19146_v54  ;;  %21087 = vst [vmem:[#allocation59_spill] sm:$0xff] %v19148_v24 }
 0xc78   :  { %7784 = vmatpush1.bf16.msra.mxu0 %v19136_v18  ;;  %7827 = vmatpush1.bf16.msra.mxu1 %v19138_v0  ;;  %v19159_v0 = vld [vmem:[%s20226_s12 + $0x4] ss:$16 sps:$4 sm:$0xff]   ;;  %v19164_v18 = vld [vmem:[%s20226_s12 + $0xc] ss:$16 sps:$4 sm:$0xff]  }
 0xc79   :  { %7785 = vmatprep.subr.bf16.mxu0 %v19144_v13  ;;  %7828 = vmatprep.subr.bf16.mxu1 %v19146_v54  ;;  %21089 = vst [vmem:[#allocation61_spill] sm:$0xff] %v19159_v0  ;;  %21090 = vst [vmem:[#allocation62_spill] sm:$0xff] %v19164_v18 }
 0xc7c   :  { %7786 = vmatpush1.bf16.msra.mxu0 %v19148_v24  ;;  %7829 = vmatpush1.bf16.msra.mxu1 %v19150_v42  ;;  %v7083_v24 = vld [vmem:[%s20228_s14] sm:$0xf] }
 0xc7d   :  { %8017 = vmatprep.subr.bf16.mxu0 %v19159_v0  ;;  %8060 = vmatprep.subr.bf16.mxu1 %v19164_v18  ;;  %v7088_v42 = vrot.slane %v7083_v24, %v20988_v20  ;;  %v7092_v54 = vrot.slane %v7083_v24, %v20991_v10  ;;  %v7100_v37 = vrot.slane %v7083_v24, %v20994_v31 }
 0xc7e   :  { %v7096_v5 = vrot.slane %v7083_v24, %v20996_v36 }
 0xd11   :  { %v7031_v13 = vpop.f32.mrb[92].mxu0  ;;  %v7074_v45 = vpop.f32.mrb[92].mxu1 }
 0xd12   :  { %v7105_v61 = vadd.f32 %v7088_v42, %v7031_v13  ;;  %v7033_v7 = vpop.f32.mrb[93].mxu0  ;;  %v7076_v38 = vpop.f32.mrb[93].mxu1 }
 0xd13   :  { %v7106_v15 = vadd.f32 %v7092_v54, %v7033_v7  ;;  %v7035_v56 = vpop.f32.mrb[94].mxu0  ;;  %v7078_v9 = vpop.f32.mrb[94].mxu1  ;;  %v7108_v13 = vadd.f32 %v7100_v37, %v7076_v38  ;;  %v7107_v7 = vadd.f32 %v7096_v5, %v7074_v45 }
 0xd14   :  { %v11807_v52 = vmul.f32 -1.442695, %v7105_v61  ;;  %v7109_v0 = vadd.f32 %v7088_v42, %v7035_v56  ;;  %v7037_v28 = vpop.f32.mrb[95].mxu0  ;;  %v7080_v18 = vpop.f32.mrb[95].mxu1  ;;  %v7111_v6 = vadd.f32 %v7096_v5, %v7078_v9 }
 0xd15   :  { %v11809_v55 = vmul.f32 -1.442695, %v7106_v15  ;;  %v7110_v57 = vadd.f32 %v7092_v54, %v7037_v28  ;;  %v7112_v12 = vadd.f32 %v7100_v37, %v7080_v18  ;;  %v11811_v8 = vmul.f32 -1.442695, %v7108_v13 }
 0xd16   :  { %13840 = vpow2.f32 %v11807_v52  ;;  %v11808_v35 = vmul.f32 -1.442695, %v7109_v0 }
 0xd17   :  { %13842 = vpow2.f32 %v11809_v55  ;;  %v11810_v4 = vmul.f32 -1.442695, %v7110_v57  ;;  %v11812_v61 = vmul.f32 -1.442695, %v7112_v12  ;;  %v7468_v12 = vld [vmem:[%s20225_s11] sm:$0xf] }
 0xd18   :  { %13844 = vpow2.f32 %v11808_v35  ;;  %v7473_v24 = vrot.slane %v7468_v12, %v20988_v20 }
 0xd19   :  { %13846 = vpow2.f32 %v11810_v4 }
 0xd1a   :  { %13848 = vtanh.f32 %v7107_v7 }
 0xd1b   :  { %13850 = vpow2.f32 %v11811_v8 }
 0xd1c   :  { %13852 = vpow2.f32 %v11812_v61 }
 0xd20   :  { %v13841_v56 = vpop.eup %13840 }
 0xd21   :  { %v13843_v42 = vpop.eup %13842  ;;  %v7119_v15 = vadd.f32 1.0, %v13841_v56 }
 0xd22   :  { %v7131_v28 = vadd.f32 1.0, %v13843_v42  ;;  %v13845_v52 = vpop.eup %13844 }
 0xd23   :  { %13854 = vrcp.f32 %v7119_v15  ;;  %v7120_v57 = vadd.f32 1.0, %v13845_v52  ;;  %v13847_v55 = vpop.eup %13846 }
 0xd24   :  { %13856 = vrcp.f32 %v7131_v28  ;;  %v7132_v35 = vadd.f32 1.0, %v13847_v55  ;;  %v13849_v4 = vpop.eup %13848 }
 0xd25   :  { %13858 = vtanh.f32 %v7111_v6  ;;  %v13851_v37 = vpop.eup %13850  ;;  %v7477_v6 = vrot.slane %v7468_v12, %v20991_v10 }
 0xd26   :  { %13860 = vrcp.f32 %v7120_v57  ;;  %v13853_v38 = vpop.eup %13852  ;;  %v7145_v18 = vadd.f32 1.0, %v13851_v37 }
 0xd27   :  { %13862 = vrcp.f32 %v7132_v35  ;;  %v7146_v13 = vadd.f32 1.0, %v13853_v38 }
 0xd28   :  { %13864 = vrcp.f32 %v7145_v18 }
 0xd29   :  { %13866 = vrcp.f32 %v7146_v13  ;;  %v7481_v13 = vrot.slane %v7468_v12, %v20996_v36 }
 0xd2d   :  { %v13855_v8 = vpop.eup %13854 }
 0xd2e   :  { %v13857_v5 = vpop.eup %13856  ;;  %v7153_v9 = vmul.f32 %v13855_v8, %v13849_v4 }
 0xd2f   :  { %v13859_v0 = vpop.eup %13858  ;;  %v7151_v45 = vmul.f32 %v13857_v5, %v18806_v59 }
 0xd30   :  { %v13861_v54 = vpop.eup %13860 }
 0xd31   :  { %v19181_v7 = vadd.f32 %v7153_v9, %v7151_v45  ;;  %v7154_v61 = vmul.f32 %v13861_v54, %v13859_v0  ;;  %v7408_v56 = vpop.f32.mrb[72].mxu0  ;;  %v7451_v42 = vpop.f32.mrb[72].mxu1  ;;  %v7485_v54 = vrot.slane %v7468_v12, %v20994_v31 }
 0xd32   :  { %v13863_v15 = vpop.eup %13862  ;;  %v7490_v28 = vadd.f32 %v7473_v24, %v7408_v56  ;;  %v7410_v52 = vpop.f32.mrb[73].mxu0 }
 0xd33   :  { %v7453_v57 = vpop.f32.mrb[73].mxu1  ;;  %v7152_v55 = vmul.f32 %v13863_v15, %v18810_v49  ;;  %v7491_v35 = vadd.f32 %v7477_v6, %v7410_v52  ;;  %v7412_v4 = vpop.f32.mrb[74].mxu0  ;;  %13868 = vtanh.f32 %v19181_v7  ;;  %v7492_v15 = vadd.f32 %v7481_v13, %v7451_v42  ;;  %v19193_v42 = vld [vmem:[%s20226_s12] ss:$16 sps:$4 sm:$0xff]  }
 0xd34   :  { %v7455_v59 = vpop.f32.mrb[74].mxu1  ;;  %v11849_v37 = vmul.f32 -1.442695, %v7490_v28  ;;  %v7494_v8 = vadd.f32 %v7473_v24, %v7412_v4  ;;  %v7414_v5 = vpop.f32.mrb[75].mxu0  ;;  %v7493_v56 = vadd.f32 %v7485_v54, %v7453_v57  ;;  %v19198_v57 = vld [vmem:[%s20226_s12 + $0x8] ss:$16 sps:$4 sm:$0xff]  }
 0xd35   :  { %v7457_v38 = vpop.f32.mrb[75].mxu1  ;;  %v19185_v9 = vadd.f32 %v7154_v61, %v7152_v55  ;;  %v11851_v0 = vmul.f32 -1.442695, %v7491_v35  ;;  %v7495_v45 = vadd.f32 %v7477_v6, %v7414_v5  ;;  %v13865_v24 = vpop.eup %13864  ;;  %v7496_v35 = vadd.f32 %v7481_v13, %v7455_v59 }
 0xd36   :  { %13870 = vpow2.f32 %v11849_v37  ;;  %v11850_v18 = vmul.f32 -1.442695, %v7494_v8  ;;  %v13867_v28 = vpop.eup %13866  ;;  %v11853_v61 = vmul.f32 -1.442695, %v7493_v56  ;;  %v7497_v52 = vadd.f32 %v7485_v54, %v7457_v38  ;;  %v19203_v54 = vld [vmem:[%s20226_s12 + $0x24] ss:$16 sps:$4 sm:$0xff]  }
 0xd37   :  { %13872 = vtanh.f32 %v19185_v9  ;;  %v11852_v49 = vmul.f32 -1.442695, %v7495_v45 }
 0xd38   :  { %13874 = vpow2.f32 %v11851_v0  ;;  %v11854_v5 = vmul.f32 -1.442695, %v7497_v52 }
 0xd39   :  { %13876 = vpow2.f32 %v11850_v18  ;;  %v19208_v18 = vld [vmem:[%s20226_s12 + $0x2c] ss:$16 sps:$4 sm:$0xff]  }
 0xd3a   :  { %13878 = vpow2.f32 %v11852_v49 }
 0xd3b   :  { %13880 = vtanh.f32 %v7492_v15  ;;  %v19223_v15 = vld [vmem:[%s20226_s12 + $0x28] ss:$16 sps:$4 sm:$0xff]  }
 0xd3c   :  { %13882 = vpow2.f32 %v11853_v61  ;;  %v19235_v61 = vld [vmem:[%s20226_s12 + $0x4c] ss:$16 sps:$4 sm:$0xff]  }
 0xd3d   :  { %v13869_v55 = vpop.eup %13868 }
 0xd3e   :  { %v7159_v0 = vmul.f32 %v13869_v55, %v13865_v24  ;;  %v19218_v24 = vld [vmem:[%s20226_s12 + $0x20] ss:$16 sps:$4 sm:$0xff]  }
 0xd3f   :  { %v19244_v55 = vld [vmem:[%s20226_s12 + $0x40] ss:$16 sps:$4 sm:$0xff]  }
 0xd40   :  { %v13871_v6 = vpop.eup %13870  ;;  %21091 = vst [vmem:[#allocation63_spill] sm:$0xff] %v19244_v55 }
 0xd41   :  { %v13873_v4 = vpop.eup %13872  ;;  %v7504_v37 = vadd.f32 1.0, %v13871_v6  ;;  %v19249_v6 = vld [vmem:[%s20226_s12 + $0x48] ss:$16 sps:$4 sm:$0xff]  }
 0xd42   :  { %v13875_v8 = vpop.eup %13874  ;;  %v7160_v45 = vmul.f32 %v13873_v4, %v13867_v28  ;;  %v19230_v28 = vld [vmem:[%s20226_s12 + $0x44] ss:$16 sps:$4 sm:$0xff]   ;;  %21092 = vst [vmem:[#allocation64_spill] sm:$0xff] %v19249_v6 }
 0xd43   :  { %13884 = vrcp.f32 %v7504_v37  ;;  %v7516_v12 = vadd.f32 1.0, %v13875_v8  ;;  %v13877_v59 = vpop.eup %13876  ;;  %v19256_v4 = vld [vmem:[%s20226_s12 + $0x64] ss:$16 sps:$4 sm:$0xff]   ;;  %v19261_v37 = vld [vmem:[%s20226_s12 + $0x6c] ss:$16 sps:$4 sm:$0xff]  }
 0xd44   :  { %13886 = vtanh.f32 %v7496_v35  ;;  %v7161_v38 = vpack.c.bf16 %v7160_v45, %v7159_v0  ;;  %v7505_v49 = vadd.f32 1.0, %v13877_v59  ;;  %v13879_v13 = vpop.eup %13878  ;;  %21093 = vst [vmem:[#allocation65_spill] sm:$0xff] %v19256_v4  ;;  %21094 = vst [vmem:[#allocation66_spill] sm:$0xff] %v19261_v37  ;;  %v19273_v59 = vld [vmem:[%s20226_s12 + $0x68] ss:$16 sps:$4 sm:$0xff]  }
 0xd45   :  { %13888 = vrcp.f32 %v7516_v12  ;;  %v7517_v56 = vadd.f32 1.0, %v13879_v13  ;;  %v13881_v52 = vpop.eup %13880  ;;  %v19268_v12 = vld [vmem:[%s20226_s12 + $0x60] ss:$16 sps:$4 sm:$0xff]   ;;  %v19281_v13 = vld [vmem:[%s20226_s12 + $0x84] ss:$16 sps:$4 sm:$0xff]  }
 0xd46   :  { %13890 = vpow2.f32 %v11854_v5  ;;  %12307 = vst [vmem:[%s20229_s15 + $0x8] sm:$0xff] %v7161_v38   ;;  %7804 = vmatmul.mubr.bf16.vlgmr.msra.gmra.mrb[96].mxu0 %v7161_v38  ;;  %7847 = vmatmul.mubr.bf16.vlgmr.msra.gmra.mrb[96].mxu1 %v7161_v38  ;;  %v13883_v35 = vpop.eup %13882 }
 0xd47   :  { %13892 = vrcp.f32 %v7505_v49  ;;  %8018 = vmatpush1.bf16.msra.mxu0 %v19193_v42  ;;  %8061 = vmatpush1.bf16.msra.mxu1 %v19198_v57 }
 0xd48   :  { %8019 = vmatprep.subr.bf16.mxu0 %v19203_v54  ;;  %8062 = vmatprep.subr.bf16.mxu1 %v19208_v18  ;;  %13894 = vrcp.f32 %v7517_v56  ;;  %v19286_v56 = vld [vmem:[%s20226_s12 + $0x8c] ss:$16 sps:$4 sm:$0xff]  }
 0xd49   :  { %8049 = vmatprep.mubr.bf16.mxu0 %v20604_v16  ;;  %8092 = vmatprep.mubr.bf16.mxu1 %v20604_v16 }
 0xd4b   :  { %8020 = vmatpush1.bf16.msra.mxu0 %v19218_v24  ;;  %8063 = vmatpush1.bf16.msra.mxu1 %v19223_v15 }
 0xd4c   :  { %8021 = vmatprep.subr.bf16.mxu0 %v19230_v28  ;;  %8064 = vmatprep.subr.bf16.mxu1 %v19235_v61 }
 0xd4d   :  { %v13885_v8 = vpop.eup %13884 }
 0xd4e   :  { %v13887_v5 = vpop.eup %13886  ;;  %v7538_v0 = vmul.f32 %v13885_v8, %v13881_v52  ;;  %v7530_v8 = vadd.f32 1.0, %v13883_v35 }
 0xd4f   :  { %v13889_v45 = vpop.eup %13888  ;;  %8022 = vmatpush1.bf16.msra.mxu0 %v19244_v55  ;;  %8065 = vmatpush1.bf16.msra.mxu1 %v19249_v6 }
 0xd50   :  { %v13891_v38 = vpop.eup %13890  ;;  %v7536_v49 = vmul.f32 %v13889_v45, %v18833_v63  ;;  %8023 = vmatprep.subr.bf16.mxu0 %v19256_v4  ;;  %8066 = vmatprep.subr.bf16.mxu1 %v19261_v37  ;;  %v19295_v37 = vld [vmem:[%s20226_s12 + $0x80] ss:$16 sps:$4 sm:$0xff]   ;;  %v19300_v4 = vld [vmem:[%s20226_s12 + $0x88] ss:$16 sps:$4 sm:$0xff]   ;;  %13896 = vrcp.f32 %v7530_v8 }
 0xd51   :  { %v13893_v52 = vpop.eup %13892  ;;  %v7531_v45 = vadd.f32 1.0, %v13891_v38  ;;  %21095 = vst [vmem:[#allocation67_spill] sm:$0xff] %v19300_v4  ;;  %v19348_v8 = vld [vmem:[%s20226_s12 + $0xc0] ss:$16 sps:$4 sm:$0xff]  }
 0xd52   :  { %v19288_v6 = vadd.f32 %v7538_v0, %v7536_v49  ;;  %v7539_v55 = vmul.f32 %v13893_v52, %v13887_v5  ;;  %v13895_v63 = vpop.eup %13894  ;;  %v19308_v5 = vld [vmem:[%s20226_s12 + $0xa4] ss:$16 sps:$4 sm:$0xff]   ;;  %v19313_v0 = vld [vmem:[%s20226_s12 + $0xac] ss:$16 sps:$4 sm:$0xff]   ;;  %v19328_v49 = vld [vmem:[%s20226_s12 + $0xa8] ss:$16 sps:$4 sm:$0xff]  }
 0xd53   :  { %8024 = vmatpush1.bf16.msra.mxu0 %v19268_v12  ;;  %8067 = vmatpush1.bf16.msra.mxu1 %v19273_v59  ;;  %v7537_v35 = vmul.f32 %v13895_v63, %v18841_v47  ;;  %21096 = vst [vmem:[#allocation13_spill] sm:$0xff] %v19308_v5  ;;  %21097 = vst [vmem:[#allocation14_spill] sm:$0xff] %v19313_v0  ;;  %v19323_v47 = vld [vmem:[%s20226_s12 + $0xa0] ss:$16 sps:$4 sm:$0xff]   ;;  %v19341_v52 = vld [vmem:[%s20226_s12 + $0xcc] ss:$16 sps:$4 sm:$0xff]  }
 0xd54   :  { %8025 = vmatprep.subr.bf16.mxu0 %v19281_v13  ;;  %8068 = vmatprep.subr.bf16.mxu1 %v19286_v56  ;;  %13898 = vtanh.f32 %v19288_v6  ;;  %21098 = vst [vmem:[#allocation30_spill] sm:$0xff] %v19323_v47  ;;  %21099 = vst [vmem:[#allocation71_spill] sm:$0xff] %v19328_v49  ;;  %v19353_v63 = vld [vmem:[%s20226_s12 + $0xc8] ss:$16 sps:$4 sm:$0xff]  }
 0xd55   :  { %v19316_v38 = vadd.f32 %v7539_v55, %v7537_v35  ;;  %13900 = vrcp.f32 %v7531_v45  ;;  %v19336_v55 = vld [vmem:[%s20226_s12 + $0xc4] ss:$16 sps:$4 sm:$0xff]   ;;  %21101 = vst [vmem:[#allocation73_spill] sm:$0xff] %v19341_v52  ;;  %21102 = vst [vmem:[#allocation68_spill] sm:$0xff] %v19348_v8  ;;  %v19365_v35 = vld [vmem:[%s20226_s12 + $0xec] ss:$16 sps:$4 sm:$0xff]  }
 0xd56   :  { %21100 = vst [vmem:[#allocation72_spill] sm:$0xff] %v19336_v55  ;;  %21103 = vst [vmem:[#allocation69_spill] sm:$0xff] %v19353_v63  ;;  %v19360_v45 = vld [vmem:[%s20226_s12 + $0xe4] ss:$16 sps:$4 sm:$0xff]  }
 0xd57   :  { %8026 = vmatpush1.bf16.msra.mxu0 %v19295_v37  ;;  %8069 = vmatpush1.bf16.msra.mxu1 %v19300_v4  ;;  %13902 = vtanh.f32 %v19316_v38 }
 0xd58   :  { %8027 = vmatprep.subr.bf16.mxu0 %v19308_v5  ;;  %8070 = vmatprep.subr.bf16.mxu1 %v19313_v0 }
 0xd5b   :  { %8028 = vmatpush1.bf16.msra.mxu0 %v19323_v47  ;;  %8071 = vmatpush1.bf16.msra.mxu1 %v19328_v49  ;;  %v13897_v49 = vpop.eup %13896 }
 0xd5c   :  { %8029 = vmatprep.subr.bf16.mxu0 %v19336_v55  ;;  %8072 = vmatprep.subr.bf16.mxu1 %v19341_v52  ;;  %v19372_v55 = vld [vmem:[%s20226_s12 + $0xe0] ss:$16 sps:$4 sm:$0xff]   ;;  %v19377_v52 = vld [vmem:[%s20226_s12 + $0xe8] ss:$16 sps:$4 sm:$0xff]  }
 0xd5e   :  { %v13899_v47 = vpop.eup %13898 }
 0xd5f   :  { %8030 = vmatpush1.bf16.msra.mxu0 %v19348_v8  ;;  %8073 = vmatpush1.bf16.msra.mxu1 %v19353_v63  ;;  %v13901_v0 = vpop.eup %13900  ;;  %v7544_v63 = vmul.f32 %v13899_v47, %v13897_v49  ;;  %v21138_v47 = vld [vmem:[#allocation62_spill] sm:$0xff]  ;;  %v8103_v49 = vld [vmem:[%s20228_s14] sm:$0xf] }
 0xd60   :  { %8031 = vmatprep.subr.bf16.mxu0 %v19360_v45  ;;  %8074 = vmatprep.subr.bf16.mxu1 %v19365_v35 }
 0xd61   :  { %v13903_v5 = vpop.eup %13902 }
 0xd62   :  { %v7545_v8 = vmul.f32 %v13903_v5, %v13901_v0  ;;  %v21136_v5 = vld [vmem:[#allocation60_spill] sm:$0xff]  ;;  %v21137_v0 = vld [vmem:[#allocation61_spill] sm:$0xff] }
 0xd63   :  { %8032 = vmatpush1.bf16.msra.mxu0 %v19372_v55  ;;  %8075 = vmatpush1.bf16.msra.mxu1 %v19377_v52 }
 0xd64   :  { %8394 = vmatprep.subr.bf16.mxu0 %v18859_v29  ;;  %8437 = vmatprep.subr.bf16.mxu1 %v18864_v25  ;;  %v7546_v4 = vpack.c.bf16 %v7545_v8, %v7544_v63  ;;  %v21104_v29 = vld [vmem:[#allocation31_spill] sm:$0xff]  ;;  %v21105_v25 = vld [vmem:[#allocation32_spill] sm:$0xff]  ;;  %v8108_v8 = vrot.slane %v8103_v49, %v20988_v20  ;;  %v8112_v63 = vrot.slane %v8103_v49, %v20991_v10 }
 0xd66   :  { %8050 = vmatmul.mubr.bf16.vlgmr.msra.gmra.mrb[96].mxu0 %v7546_v4  ;;  %8093 = vmatmul.mubr.bf16.vlgmr.msra.gmra.mrb[96].mxu1 %v7546_v4 }
 0xd67   :  { %8395 = vmatpush1.bf16.msra.mxu0 %v18871_v50  ;;  %8438 = vmatpush1.bf16.msra.mxu1 %v18877_v27  ;;  %v21106_v50 = vld [vmem:[#allocation24_spill] sm:$0xff]  ;;  %v21107_v27 = vld [vmem:[#allocation25_spill] sm:$0xff] }
 0xd68   :  { %8396 = vmatprep.subr.bf16.mxu0 %v18885_v48  ;;  %8439 = vmatprep.subr.bf16.mxu1 %v18890_v3  ;;  %v21108_v48 = vld [vmem:[#allocation26_spill] sm:$0xff]  ;;  %v21109_v3 = vld [vmem:[#allocation33_spill] sm:$0xff] }
 0xd69   :  { %8426 = vmatprep.mubr.bf16.mxu0 %v20604_v16  ;;  %8469 = vmatprep.mubr.bf16.mxu1 %v20604_v16 }
 0xd6b   :  { %8397 = vmatpush1.bf16.msra.mxu0 %v18899_v51  ;;  %8440 = vmatpush1.bf16.msra.mxu1 %v18904_v11  ;;  %v21110_v51 = vld [vmem:[#allocation34_spill] sm:$0xff]  ;;  %v21111_v11 = vld [vmem:[#allocation35_spill] sm:$0xff] }
 0xd6c   :  { %8398 = vmatprep.subr.bf16.mxu0 %v18911_v43  ;;  %8441 = vmatprep.subr.bf16.mxu1 %v18916_v34  ;;  %v21112_v43 = vld [vmem:[#allocation36_spill] sm:$0xff]  ;;  %v21113_v34 = vld [vmem:[#allocation37_spill] sm:$0xff] }
 0xd6f   :  { %8399 = vmatpush1.bf16.msra.mxu0 %v18925_v23  ;;  %8442 = vmatpush1.bf16.msra.mxu1 %v18930_v17  ;;  %v21114_v23 = vld [vmem:[#allocation38_spill] sm:$0xff]  ;;  %v21115_v17 = vld [vmem:[#allocation39_spill] sm:$0xff] }
 0xd70   :  { %8400 = vmatprep.subr.bf16.mxu0 %v18937_v53  ;;  %8443 = vmatprep.subr.bf16.mxu1 %v18942_v19  ;;  %v21116_v53 = vld [vmem:[#allocation40_spill] sm:$0xff]  ;;  %v21117_v19 = vld [vmem:[#allocation42_spill] sm:$0xff] }
 0xd73   :  { %8401 = vmatpush1.bf16.msra.mxu0 %v18949_v39  ;;  %8444 = vmatpush1.bf16.msra.mxu1 %v18954_v21  ;;  %v21118_v39 = vld [vmem:[#allocation44_spill] sm:$0xff]  ;;  %v21119_v21 = vld [vmem:[#allocation41_spill] sm:$0xff] }
 0xd74   :  { %8402 = vmatprep.subr.bf16.mxu0 %v18961_v41  ;;  %8445 = vmatprep.subr.bf16.mxu1 %v18966_v44  ;;  %v21120_v41 = vld [vmem:[#allocation43_spill] sm:$0xff]  ;;  %v21121_v44 = vld [vmem:[#allocation45_spill] sm:$0xff] }
 0xd77   :  { %8403 = vmatpush1.bf16.msra.mxu0 %v18973_v1  ;;  %8446 = vmatpush1.bf16.msra.mxu1 %v18978_v30  ;;  %v21122_v1 = vld [vmem:[#allocation46_spill] sm:$0xff]  ;;  %v21123_v30 = vld [vmem:[#allocation47_spill] sm:$0xff] }
 0xd78   :  { %8404 = vmatprep.subr.bf16.mxu0 %v18985_v58  ;;  %8447 = vmatprep.subr.bf16.mxu1 %v18990_v40  ;;  %v21124_v58 = vld [vmem:[#allocation48_spill] sm:$0xff]  ;;  %v21125_v40 = vld [vmem:[#allocation49_spill] sm:$0xff] }
 0xd7b   :  { %8405 = vmatpush1.bf16.msra.mxu0 %v18997_v46  ;;  %8448 = vmatpush1.bf16.msra.mxu1 %v19002_v22  ;;  %v21126_v46 = vld [vmem:[#allocation50_spill] sm:$0xff]  ;;  %v21127_v22 = vld [vmem:[#allocation51_spill] sm:$0xff] }
 0xd7c   :  { %8406 = vmatprep.subr.bf16.mxu0 %v19009_v26  ;;  %8449 = vmatprep.subr.bf16.mxu1 %v19014_v2  ;;  %v21128_v26 = vld [vmem:[#allocation52_spill] sm:$0xff]  ;;  %v21129_v2 = vld [vmem:[#allocation53_spill] sm:$0xff] }
 0xd7f   :  { %8407 = vmatpush1.bf16.msra.mxu0 %v19021_v14  ;;  %8450 = vmatpush1.bf16.msra.mxu1 %v19026_v33  ;;  %v21130_v14 = vld [vmem:[#allocation54_spill] sm:$0xff]  ;;  %v21131_v33 = vld [vmem:[#allocation55_spill] sm:$0xff] }
 0xd80   :  { %8408 = vmatprep.subr.bf16.mxu0 %v19033_v60  ;;  %8451 = vmatprep.subr.bf16.mxu1 %v19038_v32  ;;  %v21132_v60 = vld [vmem:[#allocation56_spill] sm:$0xff]  ;;  %v21133_v32 = vld [vmem:[#allocation57_spill] sm:$0xff] }
 0xd83   :  { %8409 = vmatpush1.bf16.msra.mxu0 %v19045_v62  ;;  %8452 = vmatpush1.bf16.msra.mxu1 %v21104_v29  ;;  %v21134_v62 = vld [vmem:[#allocation58_spill] sm:$0xff] }
 0xd84   :  { %8791 = vmatprep.subr.bf16.mxu0 %v21105_v25  ;;  %8834 = vmatprep.subr.bf16.mxu1 %v21106_v50 }
 0xd86   :  { %8427 = vmatmul.mubr.bf16.vlgmr.msra.gmra.mrb[76].mxu0 %v7546_v4  ;;  %8470 = vmatmul.mubr.bf16.vlgmr.msra.gmra.mrb[76].mxu1 %v7546_v4  ;;  %v21135_v4 = vld [vmem:[#allocation59_spill] sm:$0xff] }
 0xd87   :  { %8792 = vmatpush1.bf16.msra.mxu0 %v21107_v27  ;;  %8835 = vmatpush1.bf16.msra.mxu1 %v21108_v48 }
 0xd88   :  { %8793 = vmatprep.subr.bf16.mxu0 %v21109_v3  ;;  %8836 = vmatprep.subr.bf16.mxu1 %v21110_v51 }
 0xd89   :  { %8823 = vmatprep.mubr.bf16.mxu0 %v20604_v16  ;;  %8866 = vmatprep.mubr.bf16.mxu1 %v20604_v16 }
 0xd8b   :  { %8794 = vmatpush1.bf16.msra.mxu0 %v21111_v11  ;;  %8837 = vmatpush1.bf16.msra.mxu1 %v21112_v43 }
 0xd8c   :  { %8795 = vmatprep.subr.bf16.mxu0 %v21113_v34  ;;  %8838 = vmatprep.subr.bf16.mxu1 %v21114_v23 }
 0xd8f   :  { %8796 = vmatpush1.bf16.msra.mxu0 %v21115_v17  ;;  %8839 = vmatpush1.bf16.msra.mxu1 %v21116_v53 }
 0xd90   :  { %8797 = vmatprep.subr.bf16.mxu0 %v21117_v19  ;;  %8840 = vmatprep.subr.bf16.mxu1 %v21118_v39  ;;  %v8120_v19 = vrot.slane %v8103_v49, %v20994_v31 }
 0xd93   :  { %8798 = vmatpush1.bf16.msra.mxu0 %v21119_v21  ;;  %8841 = vmatpush1.bf16.msra.mxu1 %v21120_v41 }
 0xd94   :  { %8799 = vmatprep.subr.bf16.mxu0 %v21121_v44  ;;  %8842 = vmatprep.subr.bf16.mxu1 %v21122_v1  ;;  %v8116_v44 = vrot.slane %v8103_v49, %v20996_v36 }
 0xd97   :  { %8800 = vmatpush1.bf16.msra.mxu0 %v21123_v30  ;;  %8843 = vmatpush1.bf16.msra.mxu1 %v21124_v58 }
 0xd98   :  { %8801 = vmatprep.subr.bf16.mxu0 %v21125_v40  ;;  %8844 = vmatprep.subr.bf16.mxu1 %v21126_v46 }
 0xd9b   :  { %8802 = vmatpush1.bf16.msra.mxu0 %v21127_v22  ;;  %8845 = vmatpush1.bf16.msra.mxu1 %v21128_v26 }
 0xd9c   :  { %8803 = vmatprep.subr.bf16.mxu0 %v21129_v2  ;;  %8846 = vmatprep.subr.bf16.mxu1 %v21130_v14 }
 0xd9f   :  { %8804 = vmatpush1.bf16.msra.mxu0 %v21131_v33  ;;  %8847 = vmatpush1.bf16.msra.mxu1 %v21132_v60 }
 0xda0   :  { %8805 = vmatprep.subr.bf16.mxu0 %v21133_v32  ;;  %8848 = vmatprep.subr.bf16.mxu1 %v21134_v62 }
 0xda3   :  { %8806 = vmatpush1.bf16.msra.mxu0 %v21135_v4  ;;  %8849 = vmatpush1.bf16.msra.mxu1 %v21136_v5 }
 0xda4   :  { %9037 = vmatprep.subr.bf16.mxu0 %v21137_v0  ;;  %9080 = vmatprep.subr.bf16.mxu1 %v21138_v47  ;;  %v8488_v47 = vld [vmem:[%s20225_s11] sm:$0xf] }
 0xe39   :  { %v8051_v29 = vpop.f32.mrb[96].mxu0  ;;  %v8094_v25 = vpop.f32.mrb[96].mxu1 }
 0xe3a   :  { %v8125_v50 = vadd.f32 %v8108_v8, %v8051_v29  ;;  %v8053_v27 = vpop.f32.mrb[97].mxu0  ;;  %v8096_v48 = vpop.f32.mrb[97].mxu1  ;;  %v8127_v58 = vadd.f32 %v8116_v44, %v8094_v25  ;;  %v8493_v25 = vrot.slane %v8488_v47, %v20988_v20 }
 0xe3b   :  { %v8126_v3 = vadd.f32 %v8112_v63, %v8053_v27  ;;  %v8055_v51 = vpop.f32.mrb[98].mxu0  ;;  %v8098_v11 = vpop.f32.mrb[98].mxu1  ;;  %v8128_v1 = vadd.f32 %v8120_v19, %v8096_v48 }
 0xe3c   :  { %v11919_v43 = vmul.f32 -1.442695, %v8125_v50  ;;  %v8129_v34 = vadd.f32 %v8108_v8, %v8055_v51  ;;  %v8057_v23 = vpop.f32.mrb[99].mxu0  ;;  %v8100_v17 = vpop.f32.mrb[99].mxu1  ;;  %v8131_v14 = vadd.f32 %v8116_v44, %v8098_v11 }
 0xe3d   :  { %v11921_v53 = vmul.f32 -1.442695, %v8126_v3  ;;  %v8130_v39 = vadd.f32 %v8112_v63, %v8057_v23  ;;  %v8132_v30 = vadd.f32 %v8120_v19, %v8100_v17  ;;  %v11923_v40 = vmul.f32 -1.442695, %v8128_v1 }
 0xe3e   :  { %13904 = vpow2.f32 %v11919_v43  ;;  %v11920_v21 = vmul.f32 -1.442695, %v8129_v34  ;;  %v8497_v3 = vrot.slane %v8488_v47, %v20991_v10 }
 0xe3f   :  { %13906 = vpow2.f32 %v11921_v53  ;;  %v11922_v41 = vmul.f32 -1.442695, %v8130_v39  ;;  %v11924_v46 = vmul.f32 -1.442695, %v8132_v30 }
 0xe40   :  { %13908 = vpow2.f32 %v11920_v21 }
 0xe41   :  { %13910 = vpow2.f32 %v11922_v41 }
 0xe42   :  { %13912 = vtanh.f32 %v8127_v58 }
 0xe43   :  { %13914 = vpow2.f32 %v11923_v40 }
 0xe44   :  { %13916 = vpow2.f32 %v11924_v46 }
 0xe48   :  { %v13905_v22 = vpop.eup %13904 }
 0xe49   :  { %v13907_v26 = vpop.eup %13906  ;;  %v8139_v2 = vadd.f32 1.0, %v13905_v22 }
 0xe4a   :  { %v8151_v33 = vadd.f32 1.0, %v13907_v26  ;;  %v13909_v60 = vpop.eup %13908 }
 0xe4b   :  { %13918 = vrcp.f32 %v8139_v2  ;;  %v8140_v32 = vadd.f32 1.0, %v13909_v60  ;;  %v13911_v62 = vpop.eup %13910  ;;  %v8501_v60 = vrot.slane %v8488_v47, %v20996_v36 }
 0xe4c   :  { %13920 = vrcp.f32 %v8151_v33  ;;  %v8152_v4 = vadd.f32 1.0, %v13911_v62  ;;  %v13913_v5 = vpop.eup %13912 }
 0xe4d   :  { %13922 = vtanh.f32 %v8131_v14  ;;  %v13915_v0 = vpop.eup %13914  ;;  %v8505_v14 = vrot.slane %v8488_v47, %v20994_v31 }
 0xe4e   :  { %13924 = vrcp.f32 %v8140_v32  ;;  %v13917_v49 = vpop.eup %13916  ;;  %v8165_v48 = vadd.f32 1.0, %v13915_v0 }
 0xe4f   :  { %13926 = vrcp.f32 %v8152_v4  ;;  %v8166_v11 = vadd.f32 1.0, %v13917_v49 }
 0xe50   :  { %13928 = vrcp.f32 %v8165_v48 }
 0xe51   :  { %13930 = vrcp.f32 %v8166_v11 }
 0xe55   :  { %v13919_v8 = vpop.eup %13918 }
 0xe56   :  { %v13921_v63 = vpop.eup %13920  ;;  %v8173_v29 = vmul.f32 %v13919_v8, %v13913_v5 }
 0xe57   :  { %v13923_v50 = vpop.eup %13922  ;;  %v8171_v27 = vmul.f32 %v13921_v63, %v19181_v7 }
 0xe58   :  { %v13925_v51 = vpop.eup %13924 }
 0xe59   :  { %v19466_v43 = vadd.f32 %v8173_v29, %v8171_v27  ;;  %v8174_v34 = vmul.f32 %v13925_v51, %v13923_v50  ;;  %v8428_v23 = vpop.f32.mrb[76].mxu0  ;;  %v8471_v17 = vpop.f32.mrb[76].mxu1 }
 0xe5a   :  { %v13927_v53 = vpop.eup %13926  ;;  %v8510_v19 = vadd.f32 %v8493_v25, %v8428_v23  ;;  %v8430_v39 = vpop.f32.mrb[77].mxu0  ;;  %v8512_v4 = vadd.f32 %v8501_v60, %v8471_v17 }
 0xe5b   :  { %v8473_v21 = vpop.f32.mrb[77].mxu1  ;;  %v8172_v41 = vmul.f32 %v13927_v53, %v19185_v9  ;;  %v8511_v44 = vadd.f32 %v8497_v3, %v8430_v39  ;;  %v8432_v1 = vpop.f32.mrb[78].mxu0  ;;  %13932 = vtanh.f32 %v19466_v43 }
 0xe5c   :  { %v8475_v7 = vpop.f32.mrb[78].mxu1  ;;  %v11961_v30 = vmul.f32 -1.442695, %v8510_v19  ;;  %v8514_v58 = vadd.f32 %v8493_v25, %v8432_v1  ;;  %v8434_v40 = vpop.f32.mrb[79].mxu0  ;;  %v8513_v32 = vadd.f32 %v8505_v14, %v8473_v21 }
 0xe5d   :  { %v8477_v46 = vpop.f32.mrb[79].mxu1  ;;  %v19470_v22 = vadd.f32 %v8174_v34, %v8172_v41  ;;  %v11963_v26 = vmul.f32 -1.442695, %v8511_v44  ;;  %v8515_v2 = vadd.f32 %v8497_v3, %v8434_v40  ;;  %v13929_v62 = vpop.eup %13928  ;;  %v8516_v29 = vadd.f32 %v8501_v60, %v8475_v7  ;;  %v21140_v41 = vld [vmem:[#allocation64_spill] sm:$0xff]  ;;  %v21141_v7 = vld [vmem:[#allocation65_spill] sm:$0xff] }
 0xe5e   :  { %13934 = vpow2.f32 %v11961_v30  ;;  %v11962_v33 = vmul.f32 -1.442695, %v8514_v58  ;;  %v13931_v5 = vpop.eup %13930  ;;  %v11965_v0 = vmul.f32 -1.442695, %v8513_v32  ;;  %v8517_v49 = vadd.f32 %v8505_v14, %v8477_v46  ;;  %v19519_v60 = vld [vmem:[%s20224_s10 + $0x4] ss:$16 sps:$4 sm:$0xff]  }
 0xe5f   :  { %13936 = vtanh.f32 %v19470_v22  ;;  %v11964_v9 = vmul.f32 -1.442695, %v8515_v2  ;;  %v21149_v2 = vld [vmem:[#allocation73_spill] sm:$0xff]  ;;  %v19524_v32 = vld [vmem:[%s20224_s10 + $0xc] ss:$16 sps:$4 sm:$0xff]  }
 0xe60   :  { %13938 = vpow2.f32 %v11963_v26  ;;  %v11966_v48 = vmul.f32 -1.442695, %v8517_v49  ;;  %v21143_v26 = vld [vmem:[#allocation67_spill] sm:$0xff] }
 0xe61   :  { %13940 = vpow2.f32 %v11962_v33  ;;  %v21150_v33 = vld [vmem:[#allocation68_spill] sm:$0xff] }
 0xe62   :  { %13942 = vpow2.f32 %v11964_v9 }
 0xe63   :  { %13944 = vtanh.f32 %v8512_v4 }
 0xe64   :  { %13946 = vpow2.f32 %v11965_v0  ;;  %v19537_v0 = vld [vmem:[%s20224_s10 + $0x8] ss:$16 sps:$4 sm:$0xff]  }
 0xe65   :  { %v13933_v8 = vpop.eup %13932 }
 0xe66   :  { %v8179_v3 = vmul.f32 %v13933_v8, %v13929_v62  ;;  %v19559_v8 = vld [vmem:[%s20224_s10 + $0x20] ss:$16 sps:$4 sm:$0xff]  }
 0xe68   :  { %v13935_v63 = vpop.eup %13934 }
 0xe69   :  { %v13937_v25 = vpop.eup %13936  ;;  %v8524_v50 = vadd.f32 1.0, %v13935_v63  ;;  %v19564_v63 = vld [vmem:[%s20224_s10 + $0x28] ss:$16 sps:$4 sm:$0xff]  }
 0xe6a   :  { %v13939_v27 = vpop.eup %13938  ;;  %v8180_v51 = vmul.f32 %v13937_v25, %v13931_v5  ;;  %v19576_v25 = vld [vmem:[%s20224_s10 + $0x4c] ss:$16 sps:$4 sm:$0xff]  }
 0xe6b   :  { %13948 = vrcp.f32 %v8524_v50  ;;  %v8536_v47 = vadd.f32 1.0, %v13939_v27  ;;  %v13941_v11 = vpop.eup %13940  ;;  %v19585_v50 = vld [vmem:[%s20224_s10 + $0x40] ss:$16 sps:$4 sm:$0xff]   ;;  %v19590_v27 = vld [vmem:[%s20224_s10 + $0x48] ss:$16 sps:$4 sm:$0xff]  }
 0xe6c   :  { %13950 = vtanh.f32 %v8516_v29  ;;  %v8181_v34 = vpack.c.bf16 %v8180_v51, %v8179_v3  ;;  %v8525_v23 = vadd.f32 1.0, %v13941_v11  ;;  %v13943_v17 = vpop.eup %13942  ;;  %v19571_v29 = vld [vmem:[%s20224_s10 + $0x44] ss:$16 sps:$4 sm:$0xff]   ;;  %v19602_v3 = vld [vmem:[%s20224_s10 + $0x6c] ss:$16 sps:$4 sm:$0xff]  }
 0xe6d   :  { %13952 = vrcp.f32 %v8536_v47  ;;  %v8537_v53 = vadd.f32 1.0, %v13943_v17  ;;  %v13945_v19 = vpop.eup %13944  ;;  %v19609_v51 = vld [vmem:[%s20224_s10 + $0x60] ss:$16 sps:$4 sm:$0xff]   ;;  %v19614_v47 = vld [vmem:[%s20224_s10 + $0x68] ss:$16 sps:$4 sm:$0xff]  }
 0xe6e   :  { %13954 = vpow2.f32 %v11966_v48  ;;  %12308 = vst [vmem:[%s20229_s15 + $0x10] sm:$0xff] %v8181_v34   ;;  %8824 = vmatmul.mubr.bf16.vlgmr.msra.gmra.mrb[100].mxu0 %v8181_v34  ;;  %8867 = vmatmul.mubr.bf16.vlgmr.msra.gmra.mrb[100].mxu1 %v8181_v34  ;;  %v13947_v39 = vpop.eup %13946  ;;  %v19597_v48 = vld [vmem:[%s20224_s10 + $0x64] ss:$16 sps:$4 sm:$0xff]   ;;  %v19626_v34 = vld [vmem:[%s20224_s10 + $0x8c] ss:$16 sps:$4 sm:$0xff]  }
 0xe6f   :  { %13956 = vrcp.f32 %v8525_v23  ;;  %9038 = vmatpush1.bf16.msra.mxu0 %v19193_v42  ;;  %9081 = vmatpush1.bf16.msra.mxu1 %v19198_v57  ;;  %v8550_v30 = vadd.f32 1.0, %v13947_v39  ;;  %v19621_v11 = vld [vmem:[%s20224_s10 + $0x84] ss:$16 sps:$4 sm:$0xff]   ;;  %v19633_v23 = vld [vmem:[%s20224_s10 + $0x80] ss:$16 sps:$4 sm:$0xff]  }
 0xe70   :  { %9039 = vmatprep.subr.bf16.mxu0 %v19203_v54  ;;  %9082 = vmatprep.subr.bf16.mxu1 %v19208_v18  ;;  %13958 = vrcp.f32 %v8537_v53  ;;  %v21139_v18 = vld [vmem:[#allocation63_spill] sm:$0xff]  ;;  %v19638_v17 = vld [vmem:[%s20224_s10 + $0x88] ss:$16 sps:$4 sm:$0xff]  }
 0xe71   :  { %9069 = vmatprep.mubr.bf16.mxu0 %v20604_v16  ;;  %9112 = vmatprep.mubr.bf16.mxu1 %v20604_v16  ;;  %13960 = vrcp.f32 %v8550_v30  ;;  %v19645_v53 = vld [vmem:[%s20224_s10 + $0xa4] ss:$16 sps:$4 sm:$0xff]   ;;  %v19657_v39 = vld [vmem:[%s20224_s10 + $0xa0] ss:$16 sps:$4 sm:$0xff]  }
 0xe72   :  { %v19724_v30 = vld [vmem:[#allocation4] ss:$16 sps:$4 sm:$0xff]  }
 0xe73   :  { %9040 = vmatpush1.bf16.msra.mxu0 %v19218_v24  ;;  %9083 = vmatpush1.bf16.msra.mxu1 %v19223_v15  ;;  %v21142_v24 = vld [vmem:[#allocation66_spill] sm:$0xff]  ;;  %21155 = vst [vmem:[#allocation16_spill] sm:$0xff] %v19724_v30 }
 0xe74   :  { %9041 = vmatprep.subr.bf16.mxu0 %v19230_v28  ;;  %9084 = vmatprep.subr.bf16.mxu1 %v19235_v61 }
 0xe75   :  { %v13949_v42 = vpop.eup %13948 }
 0xe76   :  { %v13951_v57 = vpop.eup %13950  ;;  %v8558_v54 = vmul.f32 %v13949_v42, %v13945_v19  ;;  %v19650_v19 = vld [vmem:[%s20224_s10 + $0xac] ss:$16 sps:$4 sm:$0xff]   ;;  %v19662_v42 = vld [vmem:[%s20224_s10 + $0xa8] ss:$16 sps:$4 sm:$0xff]  }
 0xe77   :  { %v13953_v21 = vpop.eup %13952  ;;  %9042 = vmatpush1.bf16.msra.mxu0 %v21139_v18  ;;  %9085 = vmatpush1.bf16.msra.mxu1 %v21140_v41  ;;  %v19686_v18 = vld [vmem:[%s20224_s10 + $0xc8] ss:$16 sps:$4 sm:$0xff]   ;;  %v19693_v41 = vld [vmem:[%s20224_s10 + $0xe4] ss:$16 sps:$4 sm:$0xff]  }
 0xe78   :  { %v13955_v44 = vpop.eup %13954  ;;  %v8556_v1 = vmul.f32 %v13953_v21, %v19288_v6  ;;  %9043 = vmatprep.subr.bf16.mxu0 %v21141_v7  ;;  %9086 = vmatprep.subr.bf16.mxu1 %v21142_v24  ;;  %v19681_v21 = vld [vmem:[%s20224_s10 + $0xc0] ss:$16 sps:$4 sm:$0xff]   ;;  %v19710_v7 = vld [vmem:[%s20224_s10 + $0xe8] ss:$16 sps:$4 sm:$0xff]   ;;  %v19720_v24 = vld [vmem:[#allocation4 + $0x4] ss:$16 sps:$4 sm:$0xff]  }
 0xe79   :  { %v13957_v15 = vpop.eup %13956  ;;  %v8551_v40 = vadd.f32 1.0, %v13955_v44  ;;  %v19698_v44 = vld [vmem:[%s20224_s10 + $0xec] ss:$16 sps:$4 sm:$0xff]   ;;  %21152 = vst [vmem:[#allocation70_spill] sm:$0xff] %v19710_v7  ;;  %21153 = vst [vmem:[#allocation29_spill] sm:$0xff] %v19720_v24 }
 0xe7a   :  { %v19493_v28 = vadd.f32 %v8558_v54, %v8556_v1  ;;  %v8559_v61 = vmul.f32 %v13957_v15, %v13951_v57  ;;  %v13959_v58 = vpop.eup %13958  ;;  %v19669_v57 = vld [vmem:[%s20224_s10 + $0xc4] ss:$16 sps:$4 sm:$0xff]   ;;  %v19674_v54 = vld [vmem:[%s20224_s10 + $0xcc] ss:$16 sps:$4 sm:$0xff]   ;;  %v19705_v1 = vld [vmem:[%s20224_s10 + $0xe0] ss:$16 sps:$4 sm:$0xff]  }
 0xe7b   :  { %9044 = vmatpush1.bf16.msra.mxu0 %v19268_v12  ;;  %9087 = vmatpush1.bf16.msra.mxu1 %v19273_v59  ;;  %v8557_v46 = vmul.f32 %v13959_v58, %v19316_v38  ;;  %v21144_v12 = vld [vmem:[#allocation13_spill] sm:$0xff]  ;;  %v21145_v59 = vld [vmem:[#allocation14_spill] sm:$0xff]  ;;  %v13961_v14 = vpop.eup %13960 }
 0xe7c   :  { %9045 = vmatprep.subr.bf16.mxu0 %v19281_v13  ;;  %9088 = vmatprep.subr.bf16.mxu1 %v19286_v56  ;;  %13962 = vtanh.f32 %v19493_v28  ;;  %v21146_v38 = vld [vmem:[#allocation30_spill] sm:$0xff]  ;;  %v21147_v13 = vld [vmem:[#allocation71_spill] sm:$0xff]  ;;  %v21148_v56 = vld [vmem:[#allocation72_spill] sm:$0xff] }
 0xe7d   :  { %v19501_v6 = vadd.f32 %v8559_v61, %v8557_v46  ;;  %13964 = vrcp.f32 %v8551_v40  ;;  %v19722_v15 = vld [vmem:[#allocation4 + $0xc] ss:$16 sps:$4 sm:$0xff]   ;;  %v19726_v61 = vld [vmem:[#allocation4 + $0x8] ss:$16 sps:$4 sm:$0xff]   ;;  %v19732_v58 = vld [vmem:[#allocation4 + $0x24] ss:$16 sps:$4 sm:$0xff]  }
 0xe7e   :  { %21154 = vst [vmem:[#allocation15_spill] sm:$0xff] %v19722_v15  ;;  %21156 = vst [vmem:[#allocation17_spill] sm:$0xff] %v19726_v61  ;;  %v19734_v40 = vld [vmem:[#allocation4 + $0x2c] ss:$16 sps:$4 sm:$0xff]   ;;  %v19736_v46 = vld [vmem:[#allocation4 + $0x20] ss:$16 sps:$4 sm:$0xff]  }
 0xe7f   :  { %9046 = vmatpush1.bf16.msra.mxu0 %v19295_v37  ;;  %9089 = vmatpush1.bf16.msra.mxu1 %v21143_v26  ;;  %13966 = vtanh.f32 %v19501_v6  ;;  %v21151_v37 = vld [vmem:[#allocation69_spill] sm:$0xff]  ;;  %21157 = vst [vmem:[#allocation18_spill] sm:$0xff] %v19732_v58  ;;  %21158 = vst [vmem:[#allocation19_spill] sm:$0xff] %v19734_v40  ;;  %v19738_v26 = vld [vmem:[#allocation4 + $0x28] ss:$16 sps:$4 sm:$0xff]  }
 0xe80   :  { %9047 = vmatprep.subr.bf16.mxu0 %v21144_v12  ;;  %9090 = vmatprep.subr.bf16.mxu1 %v21145_v59  ;;  %21159 = vst [vmem:[#allocation20_spill] sm:$0xff] %v19736_v46  ;;  %21160 = vst [vmem:[#allocation21_spill] sm:$0xff] %v19738_v26  ;;  %v19744_v12 = vld [vmem:[#allocation4 + $0x44] ss:$16 sps:$4 sm:$0xff]   ;;  %v19746_v59 = vld [vmem:[#allocation4 + $0x4c] ss:$16 sps:$4 sm:$0xff]  }
 0xe81   :  { %21161 = vst [vmem:[#allocation22_spill] sm:$0xff] %v19744_v12  ;;  %21162 = vst [vmem:[#allocation23_spill] sm:$0xff] %v19746_v59 }
 0xe83   :  { %9048 = vmatpush1.bf16.msra.mxu0 %v21146_v38  ;;  %9091 = vmatpush1.bf16.msra.mxu1 %v21147_v13  ;;  %v19748_v38 = vld [vmem:[#allocation4 + $0x40] ss:$16 sps:$4 sm:$0xff]   ;;  %v19750_v13 = vld [vmem:[#allocation4 + $0x48] ss:$16 sps:$4 sm:$0xff]  }
 0xe84   :  { %9049 = vmatprep.subr.bf16.mxu0 %v21148_v56  ;;  %9092 = vmatprep.subr.bf16.mxu1 %v21149_v2  ;;  %21163 = vst [vmem:[#allocation27_spill] sm:$0xff] %v19748_v38  ;;  %21164 = vst [vmem:[#allocation28_spill] sm:$0xff] %v19750_v13  ;;  %v19756_v56 = vld [vmem:[#allocation4 + $0x64] ss:$16 sps:$4 sm:$0xff]   ;;  %v19758_v2 = vld [vmem:[#allocation4 + $0x6c] ss:$16 sps:$4 sm:$0xff]  }
 0xe85   :  { %21165 = vst [vmem:[#allocation31_spill] sm:$0xff] %v19756_v56  ;;  %21166 = vst [vmem:[#allocation32_spill] sm:$0xff] %v19758_v2 }
 0xe86   :  { %v13963_v9 = vpop.eup %13962 }
 0xe87   :  { %9050 = vmatpush1.bf16.msra.mxu0 %v21150_v33  ;;  %9093 = vmatpush1.bf16.msra.mxu1 %v21151_v37  ;;  %v13965_v62 = vpop.eup %13964  ;;  %v8564_v5 = vmul.f32 %v13963_v9, %v13961_v14  ;;  %v19760_v14 = vld [vmem:[#allocation4 + $0x60] ss:$16 sps:$4 sm:$0xff]   ;;  %v19762_v33 = vld [vmem:[#allocation4 + $0x68] ss:$16 sps:$4 sm:$0xff]   ;;  %v19768_v37 = vld [vmem:[#allocation4 + $0x84] ss:$16 sps:$4 sm:$0xff]  }
 0xe88   :  { %9051 = vmatprep.subr.bf16.mxu0 %v19360_v45  ;;  %9094 = vmatprep.subr.bf16.mxu1 %v19365_v35  ;;  %v19531_v35 = vld [vmem:[%s20224_s10] ss:$16 sps:$4 sm:$0xff]   ;;  %21167 = vst [vmem:[#allocation24_spill] sm:$0xff] %v19760_v14  ;;  %21168 = vst [vmem:[#allocation25_spill] sm:$0xff] %v19762_v33  ;;  %v19770_v9 = vld [vmem:[#allocation4 + $0x8c] ss:$16 sps:$4 sm:$0xff]  }
 0xe89   :  { %v13967_v4 = vpop.eup %13966  ;;  %21169 = vst [vmem:[#allocation26_spill] sm:$0xff] %v19768_v37  ;;  %21170 = vst [vmem:[#allocation33_spill] sm:$0xff] %v19770_v9 }
 0xe8a   :  { %v8565_v45 = vmul.f32 %v13967_v4, %v13965_v62  ;;  %v19772_v62 = vld [vmem:[#allocation4 + $0x80] ss:$16 sps:$4 sm:$0xff]   ;;  %v19774_v4 = vld [vmem:[#allocation4 + $0x88] ss:$16 sps:$4 sm:$0xff]  }
 0xe8b   :  { %9052 = vmatpush1.bf16.msra.mxu0 %v19372_v55  ;;  %9095 = vmatpush1.bf16.msra.mxu1 %v19377_v52  ;;  %v19545_v55 = vld [vmem:[%s20224_s10 + $0x24] ss:$16 sps:$4 sm:$0xff]   ;;  %v19550_v52 = vld [vmem:[%s20224_s10 + $0x2c] ss:$16 sps:$4 sm:$0xff]   ;;  %21171 = vst [vmem:[#allocation34_spill] sm:$0xff] %v19772_v62  ;;  %21172 = vst [vmem:[#allocation35_spill] sm:$0xff] %v19774_v4 }
 0xe8c   :  { %9414 = vmatprep.subr.bf16.mxu0 %v19519_v60  ;;  %9457 = vmatprep.subr.bf16.mxu1 %v19524_v32  ;;  %v19540_v49 = vpack.c.bf16 %v8565_v45, %v8564_v5  ;;  %v19780_v5 = vld [vmem:[#allocation4 + $0xa4] ss:$16 sps:$4 sm:$0xff]   ;;  %v19782_v45 = vld [vmem:[#allocation4 + $0xac] ss:$16 sps:$4 sm:$0xff]  }
 0xe8d   :  { %21173 = vst [vmem:[#allocation36_spill] sm:$0xff] %v19780_v5  ;;  %21174 = vst [vmem:[#allocation37_spill] sm:$0xff] %v19782_v45 }
 0xe8e   :  { %9070 = vmatmul.mubr.bf16.vlgmr.msra.gmra.mrb[100].mxu0 %v19540_v49  ;;  %9113 = vmatmul.mubr.bf16.vlgmr.msra.gmra.mrb[100].mxu1 %v19540_v49 }
 0xe8f   :  { %9415 = vmatpush1.bf16.msra.mxu0 %v19531_v35  ;;  %9458 = vmatpush1.bf16.msra.mxu1 %v19537_v0 }
 0xe90   :  { %9416 = vmatprep.subr.bf16.mxu0 %v19545_v55  ;;  %9459 = vmatprep.subr.bf16.mxu1 %v19550_v52 }
 0xe91   :  { %9446 = vmatprep.mubr.bf16.mxu0 %v20604_v16  ;;  %9489 = vmatprep.mubr.bf16.mxu1 %v20604_v16 }
 0xe93   :  { %9417 = vmatpush1.bf16.msra.mxu0 %v19559_v8  ;;  %9460 = vmatpush1.bf16.msra.mxu1 %v19564_v63 }
 0xe94   :  { %9418 = vmatprep.subr.bf16.mxu0 %v19571_v29  ;;  %9461 = vmatprep.subr.bf16.mxu1 %v19576_v25 }
 0xe97   :  { %9419 = vmatpush1.bf16.msra.mxu0 %v19585_v50  ;;  %9462 = vmatpush1.bf16.msra.mxu1 %v19590_v27 }
 0xe98   :  { %9420 = vmatprep.subr.bf16.mxu0 %v19597_v48  ;;  %9463 = vmatprep.subr.bf16.mxu1 %v19602_v3 }
 0xe9b   :  { %9421 = vmatpush1.bf16.msra.mxu0 %v19609_v51  ;;  %9464 = vmatpush1.bf16.msra.mxu1 %v19614_v47 }
 0xe9c   :  { %9422 = vmatprep.subr.bf16.mxu0 %v19621_v11  ;;  %9465 = vmatprep.subr.bf16.mxu1 %v19626_v34 }
 0xe9f   :  { %9423 = vmatpush1.bf16.msra.mxu0 %v19633_v23  ;;  %9466 = vmatpush1.bf16.msra.mxu1 %v19638_v17 }
 0xea0   :  { %9424 = vmatprep.subr.bf16.mxu0 %v19645_v53  ;;  %9467 = vmatprep.subr.bf16.mxu1 %v19650_v19 }
 0xea3   :  { %9425 = vmatpush1.bf16.msra.mxu0 %v19657_v39  ;;  %9468 = vmatpush1.bf16.msra.mxu1 %v19662_v42 }
 0xea4   :  { %9426 = vmatprep.subr.bf16.mxu0 %v19669_v57  ;;  %9469 = vmatprep.subr.bf16.mxu1 %v19674_v54 }
 0xea7   :  { %9427 = vmatpush1.bf16.msra.mxu0 %v19681_v21  ;;  %9470 = vmatpush1.bf16.msra.mxu1 %v19686_v18 }
 0xea8   :  { %9428 = vmatprep.subr.bf16.mxu0 %v19693_v41  ;;  %9471 = vmatprep.subr.bf16.mxu1 %v19698_v44 }
 0xeab   :  { %9429 = vmatpush1.bf16.msra.mxu0 %v19705_v1  ;;  %9472 = vmatpush1.bf16.msra.mxu1 %v19710_v7 }
 0xeac   :  { %9811 = vmatprep.subr.bf16.mxu0 %v19720_v24  ;;  %9854 = vmatprep.subr.bf16.mxu1 %v19722_v15 }
 0xeae   :  { %9447 = vmatmul.mubr.bf16.vlgmr.msra.gmra.mrb[80].mxu0 %v19540_v49  ;;  %9490 = vmatmul.mubr.bf16.vlgmr.msra.gmra.mrb[80].mxu1 %v19540_v49  ;;  %v19784_v49 = vld [vmem:[#allocation4 + $0xa0] ss:$16 sps:$4 sm:$0xff]  }
 0xeaf   :  { %9843 = vmatprep.mubr.bf16.mxu0 %v20604_v16  ;;  %9886 = vmatprep.mubr.bf16.mxu1 %v20604_v16  ;;  %21175 = vst [vmem:[#allocation38_spill] sm:$0xff] %v19784_v49 }
 0xeb0   :  { %9812 = vmatpush1.bf16.msra.mxu0 %v19724_v30  ;;  %9855 = vmatpush1.bf16.msra.mxu1 %v19726_v61 }
 0xeb1   :  { %9813 = vmatprep.subr.bf16.mxu0 %v19732_v58  ;;  %9856 = vmatprep.subr.bf16.mxu1 %v19734_v40 }
 0xeb4   :  { %9814 = vmatpush1.bf16.msra.mxu0 %v19736_v46  ;;  %9857 = vmatpush1.bf16.msra.mxu1 %v19738_v26 }
 0xeb5   :  { %9815 = vmatprep.subr.bf16.mxu0 %v19744_v12  ;;  %9858 = vmatprep.subr.bf16.mxu1 %v19746_v59 }
 0xeb8   :  { %9816 = vmatpush1.bf16.msra.mxu0 %v19748_v38  ;;  %9859 = vmatpush1.bf16.msra.mxu1 %v19750_v13 }
 0xeb9   :  { %9817 = vmatprep.subr.bf16.mxu0 %v19756_v56  ;;  %9860 = vmatprep.subr.bf16.mxu1 %v19758_v2 }
 0xebc   :  { %9818 = vmatpush1.bf16.msra.mxu0 %v19760_v14  ;;  %9861 = vmatpush1.bf16.msra.mxu1 %v19762_v33  ;;  %v19786_v33 = vld [vmem:[#allocation4 + $0xa8] ss:$16 sps:$4 sm:$0xff]  }
 0xebd   :  { %9819 = vmatprep.subr.bf16.mxu0 %v19768_v37  ;;  %9862 = vmatprep.subr.bf16.mxu1 %v19770_v9  ;;  %21176 = vst [vmem:[#allocation39_spill] sm:$0xff] %v19786_v33  ;;  %v19792_v9 = vld [vmem:[#allocation4 + $0xc4] ss:$16 sps:$4 sm:$0xff]   ;;  %v19798_v37 = vld [vmem:[#allocation4 + $0xc8] ss:$16 sps:$4 sm:$0xff]  }
 0xebe   :  { %21177 = vst [vmem:[#allocation40_spill] sm:$0xff] %v19792_v9  ;;  %21180 = vst [vmem:[#allocation41_spill] sm:$0xff] %v19798_v37 }
 0xec0   :  { %9820 = vmatpush1.bf16.msra.mxu0 %v19772_v62  ;;  %9863 = vmatpush1.bf16.msra.mxu1 %v19774_v4  ;;  %v19794_v62 = vld [vmem:[#allocation4 + $0xcc] ss:$16 sps:$4 sm:$0xff]   ;;  %v19796_v4 = vld [vmem:[#allocation4 + $0xc0] ss:$16 sps:$4 sm:$0xff]  }
 0xec1   :  { %9821 = vmatprep.subr.bf16.mxu0 %v19780_v5  ;;  %9864 = vmatprep.subr.bf16.mxu1 %v19782_v45  ;;  %21178 = vst [vmem:[#allocation42_spill] sm:$0xff] %v19794_v62  ;;  %21179 = vst [vmem:[#allocation44_spill] sm:$0xff] %v19796_v4  ;;  %v19804_v45 = vld [vmem:[#allocation4 + $0xe4] ss:$16 sps:$4 sm:$0xff]   ;;  %v19810_v5 = vld [vmem:[#allocation4 + $0xe8] ss:$16 sps:$4 sm:$0xff]  }
 0xec2   :  { %21181 = vst [vmem:[#allocation43_spill] sm:$0xff] %v19804_v45  ;;  %21184 = vst [vmem:[#allocation47_spill] sm:$0xff] %v19810_v5 }
 0xec4   :  { %9822 = vmatpush1.bf16.msra.mxu0 %v19784_v49  ;;  %9865 = vmatpush1.bf16.msra.mxu1 %v19786_v33  ;;  %v19806_v49 = vld [vmem:[#allocation4 + $0xec] ss:$16 sps:$4 sm:$0xff]   ;;  %v19808_v33 = vld [vmem:[#allocation4 + $0xe0] ss:$16 sps:$4 sm:$0xff]  }
 0xec5   :  { %9823 = vmatprep.subr.bf16.mxu0 %v19792_v9  ;;  %9866 = vmatprep.subr.bf16.mxu1 %v19794_v62  ;;  %21182 = vst [vmem:[#allocation45_spill] sm:$0xff] %v19806_v49  ;;  %21183 = vst [vmem:[#allocation46_spill] sm:$0xff] %v19808_v33 }
 0xec8   :  { %9824 = vmatpush1.bf16.msra.mxu0 %v19796_v4  ;;  %9867 = vmatpush1.bf16.msra.mxu1 %v19798_v37  ;;  %v19819_v37 = vld [vmem:[%s20226_s12 + $0x4] ss:$16 sps:$4 sm:$0xff]   ;;  %v19824_v4 = vld [vmem:[%s20226_s12 + $0xc] ss:$16 sps:$4 sm:$0xff]  }
 0xec9   :  { %9825 = vmatprep.subr.bf16.mxu0 %v19804_v45  ;;  %9868 = vmatprep.subr.bf16.mxu1 %v19806_v49  ;;  %21185 = vst [vmem:[#allocation48_spill] sm:$0xff] %v19819_v37  ;;  %21186 = vst [vmem:[#allocation49_spill] sm:$0xff] %v19824_v4 }
 0xecc   :  { %9826 = vmatpush1.bf16.msra.mxu0 %v19808_v33  ;;  %9869 = vmatpush1.bf16.msra.mxu1 %v19810_v5  ;;  %v9123_v33 = vld [vmem:[%s20228_s14] sm:$0xf] }
 0xecd   :  { %10057 = vmatprep.subr.bf16.mxu0 %v19819_v37  ;;  %10100 = vmatprep.subr.bf16.mxu1 %v19824_v4  ;;  %v9128_v5 = vrot.slane %v9123_v33, %v20988_v20  ;;  %v9132_v49 = vrot.slane %v9123_v33, %v20991_v10  ;;  %v9140_v46 = vrot.slane %v9123_v33, %v20994_v31 }
 0xece   :  { %v9136_v30 = vrot.slane %v9123_v33, %v20996_v36 }
 0xf61   :  { %v9071_v45 = vpop.f32.mrb[100].mxu0  ;;  %v9114_v62 = vpop.f32.mrb[100].mxu1 }
 0xf62   :  { %v9145_v9 = vadd.f32 %v9128_v5, %v9071_v45  ;;  %v9073_v14 = vpop.f32.mrb[101].mxu0  ;;  %v9116_v2 = vpop.f32.mrb[101].mxu1 }
 0xf63   :  { %v9146_v56 = vadd.f32 %v9132_v49, %v9073_v14  ;;  %v9075_v13 = vpop.f32.mrb[102].mxu0  ;;  %v9118_v38 = vpop.f32.mrb[102].mxu1  ;;  %v9148_v45 = vadd.f32 %v9140_v46, %v9116_v2  ;;  %v9147_v14 = vadd.f32 %v9136_v30, %v9114_v62 }
 0xf64   :  { %v12031_v59 = vmul.f32 -1.442695, %v9145_v9  ;;  %v9149_v37 = vadd.f32 %v9128_v5, %v9075_v13  ;;  %v9077_v12 = vpop.f32.mrb[103].mxu0  ;;  %v9120_v4 = vpop.f32.mrb[103].mxu1  ;;  %v9151_v7 = vadd.f32 %v9136_v30, %v9118_v38 }
 0xf65   :  { %v12033_v26 = vmul.f32 -1.442695, %v9146_v56  ;;  %v9150_v40 = vadd.f32 %v9132_v49, %v9077_v12  ;;  %v9152_v15 = vadd.f32 %v9140_v46, %v9120_v4  ;;  %v12035_v24 = vmul.f32 -1.442695, %v9148_v45 }
 0xf66   :  { %13968 = vpow2.f32 %v12031_v59  ;;  %v12032_v58 = vmul.f32 -1.442695, %v9149_v37 }
 0xf67   :  { %13970 = vpow2.f32 %v12033_v26  ;;  %v12034_v61 = vmul.f32 -1.442695, %v9150_v40  ;;  %v12036_v9 = vmul.f32 -1.442695, %v9152_v15  ;;  %v9508_v15 = vld [vmem:[%s20225_s11] sm:$0xf] }
 0xf68   :  { %13972 = vpow2.f32 %v12032_v58  ;;  %v9513_v33 = vrot.slane %v9508_v15, %v20988_v20 }
 0xf69   :  { %13974 = vpow2.f32 %v12034_v61 }
 0xf6a   :  { %13976 = vtanh.f32 %v9147_v14 }
 0xf6b   :  { %13978 = vpow2.f32 %v12035_v24 }
 0xf6c   :  { %13980 = vpow2.f32 %v12036_v9 }
 0xf70   :  { %v13969_v13 = vpop.eup %13968 }
 0xf71   :  { %v13971_v5 = vpop.eup %13970  ;;  %v9159_v56 = vadd.f32 1.0, %v13969_v13 }
 0xf72   :  { %v9171_v12 = vadd.f32 1.0, %v13971_v5  ;;  %v13973_v59 = vpop.eup %13972 }
 0xf73   :  { %13982 = vrcp.f32 %v9159_v56  ;;  %v9160_v40 = vadd.f32 1.0, %v13973_v59  ;;  %v13975_v26 = vpop.eup %13974 }
 0xf74   :  { %13984 = vrcp.f32 %v9171_v12  ;;  %v9172_v58 = vadd.f32 1.0, %v13975_v26  ;;  %v13977_v61 = vpop.eup %13976 }
 0xf75   :  { %13986 = vtanh.f32 %v9151_v7  ;;  %v13979_v46 = vpop.eup %13978  ;;  %v9517_v7 = vrot.slane %v9508_v15, %v20991_v10 }
 0xf76   :  { %13988 = vrcp.f32 %v9160_v40  ;;  %v13981_v2 = vpop.eup %13980  ;;  %v9185_v4 = vadd.f32 1.0, %v13979_v46 }
 0xf77   :  { %13990 = vrcp.f32 %v9172_v58  ;;  %v9186_v45 = vadd.f32 1.0, %v13981_v2 }
 0xf78   :  { %13992 = vrcp.f32 %v9185_v4 }
 0xf79   :  { %13994 = vrcp.f32 %v9186_v45  ;;  %v9521_v45 = vrot.slane %v9508_v15, %v20996_v36 }
 0xf7d   :  { %v13983_v24 = vpop.eup %13982 }
 0xf7e   :  { %v13985_v30 = vpop.eup %13984  ;;  %v9193_v38 = vmul.f32 %v13983_v24, %v13977_v61 }
 0xf7f   :  { %v13987_v37 = vpop.eup %13986  ;;  %v9191_v62 = vmul.f32 %v13985_v30, %v19466_v43 }
 0xf80   :  { %v13989_v49 = vpop.eup %13988 }
 0xf81   :  { %v19841_v14 = vadd.f32 %v9193_v38, %v9191_v62  ;;  %v9194_v9 = vmul.f32 %v13989_v49, %v13987_v37  ;;  %v9448_v13 = vpop.f32.mrb[80].mxu0  ;;  %v9491_v5 = vpop.f32.mrb[80].mxu1  ;;  %v9525_v49 = vrot.slane %v9508_v15, %v20994_v31 }
 0xf82   :  { %v13991_v56 = vpop.eup %13990  ;;  %v9530_v12 = vadd.f32 %v9513_v33, %v9448_v13  ;;  %v9450_v59 = vpop.f32.mrb[81].mxu0 }
 0xf83   :  { %v9493_v40 = vpop.f32.mrb[81].mxu1  ;;  %v9192_v26 = vmul.f32 %v13991_v56, %v19470_v22  ;;  %v9531_v58 = vadd.f32 %v9517_v7, %v9450_v59  ;;  %v9452_v61 = vpop.f32.mrb[82].mxu0  ;;  %13996 = vtanh.f32 %v19841_v14  ;;  %v9532_v56 = vadd.f32 %v9521_v45, %v9491_v5  ;;  %v19853_v5 = vld [vmem:[%s20226_s12] ss:$16 sps:$4 sm:$0xff]  }
 0xf84   :  { %v9495_v43 = vpop.f32.mrb[82].mxu1  ;;  %v12073_v46 = vmul.f32 -1.442695, %v9530_v12  ;;  %v9534_v24 = vadd.f32 %v9513_v33, %v9452_v61  ;;  %v9454_v30 = vpop.f32.mrb[83].mxu0  ;;  %v9533_v13 = vadd.f32 %v9525_v49, %v9493_v40  ;;  %v19858_v40 = vld [vmem:[%s20226_s12 + $0x8] ss:$16 sps:$4 sm:$0xff]  }
 0xf85   :  { %v9497_v2 = vpop.f32.mrb[83].mxu1  ;;  %v19845_v38 = vadd.f32 %v9194_v9, %v9192_v26  ;;  %v12075_v37 = vmul.f32 -1.442695, %v9531_v58  ;;  %v9535_v62 = vadd.f32 %v9517_v7, %v9454_v30  ;;  %v13993_v33 = vpop.eup %13992  ;;  %v9536_v58 = vadd.f32 %v9521_v45, %v9495_v43 }
 0xf86   :  { %13998 = vpow2.f32 %v12073_v46  ;;  %v12074_v4 = vmul.f32 -1.442695, %v9534_v24  ;;  %v13995_v12 = vpop.eup %13994  ;;  %v12077_v9 = vmul.f32 -1.442695, %v9533_v13  ;;  %v9537_v59 = vadd.f32 %v9525_v49, %v9497_v2  ;;  %v19863_v49 = vld [vmem:[%s20226_s12 + $0x24] ss:$16 sps:$4 sm:$0xff]  }
 0xf87   :  { %14000 = vtanh.f32 %v19845_v38  ;;  %v12076_v22 = vmul.f32 -1.442695, %v9535_v62 }
 0xf88   :  { %14002 = vpow2.f32 %v12075_v37  ;;  %v12078_v30 = vmul.f32 -1.442695, %v9537_v59 }
 0xf89   :  { %14004 = vpow2.f32 %v12074_v4  ;;  %v19868_v4 = vld [vmem:[%s20226_s12 + $0x2c] ss:$16 sps:$4 sm:$0xff]  }
 0xf8a   :  { %14006 = vpow2.f32 %v12076_v22 }
 0xf8b   :  { %14008 = vtanh.f32 %v9532_v56  ;;  %v19883_v56 = vld [vmem:[%s20226_s12 + $0x28] ss:$16 sps:$4 sm:$0xff]  }
 0xf8c   :  { %14010 = vpow2.f32 %v12077_v9  ;;  %v19895_v9 = vld [vmem:[%s20226_s12 + $0x4c] ss:$16 sps:$4 sm:$0xff]  }
 0xf8d   :  { %v13997_v26 = vpop.eup %13996 }
 0xf8e   :  { %v9199_v37 = vmul.f32 %v13997_v26, %v13993_v33  ;;  %v19878_v33 = vld [vmem:[%s20226_s12 + $0x20] ss:$16 sps:$4 sm:$0xff]  }
 0xf8f   :  { %v19904_v26 = vld [vmem:[%s20226_s12 + $0x40] ss:$16 sps:$4 sm:$0xff]  }
 0xf90   :  { %v13999_v7 = vpop.eup %13998  ;;  %21187 = vst [vmem:[#allocation50_spill] sm:$0xff] %v19904_v26 }
 0xf91   :  { %v14001_v61 = vpop.eup %14000  ;;  %v9544_v46 = vadd.f32 1.0, %v13999_v7  ;;  %v19909_v7 = vld [vmem:[%s20226_s12 + $0x48] ss:$16 sps:$4 sm:$0xff]  }
 0xf92   :  { %v14003_v24 = vpop.eup %14002  ;;  %v9200_v62 = vmul.f32 %v14001_v61, %v13995_v12  ;;  %v19890_v12 = vld [vmem:[%s20226_s12 + $0x44] ss:$16 sps:$4 sm:$0xff]   ;;  %21188 = vst [vmem:[#allocation51_spill] sm:$0xff] %v19909_v7 }
 0xf93   :  { %14012 = vrcp.f32 %v9544_v46  ;;  %v9556_v15 = vadd.f32 1.0, %v14003_v24  ;;  %v14005_v43 = vpop.eup %14004  ;;  %v19916_v61 = vld [vmem:[%s20226_s12 + $0x64] ss:$16 sps:$4 sm:$0xff]   ;;  %v19921_v46 = vld [vmem:[%s20226_s12 + $0x6c] ss:$16 sps:$4 sm:$0xff]  }
 0xf94   :  { %14014 = vtanh.f32 %v9536_v58  ;;  %v9201_v2 = vpack.c.bf16 %v9200_v62, %v9199_v37  ;;  %v9545_v22 = vadd.f32 1.0, %v14005_v43  ;;  %v14007_v45 = vpop.eup %14006  ;;  %21189 = vst [vmem:[#allocation52_spill] sm:$0xff] %v19916_v61  ;;  %21190 = vst [vmem:[#allocation53_spill] sm:$0xff] %v19921_v46  ;;  %v19933_v43 = vld [vmem:[%s20226_s12 + $0x68] ss:$16 sps:$4 sm:$0xff]  }
 0xf95   :  { %14016 = vrcp.f32 %v9556_v15  ;;  %v9557_v13 = vadd.f32 1.0, %v14007_v45  ;;  %v14009_v59 = vpop.eup %14008  ;;  %v19928_v15 = vld [vmem:[%s20226_s12 + $0x60] ss:$16 sps:$4 sm:$0xff]   ;;  %v19941_v45 = vld [vmem:[%s20226_s12 + $0x84] ss:$16 sps:$4 sm:$0xff]  }
 0xf96   :  { %14018 = vpow2.f32 %v12078_v30  ;;  %12309 = vst [vmem:[%s20229_s15 + $0x18] sm:$0xff] %v9201_v2   ;;  %9844 = vmatmul.mubr.bf16.vlgmr.msra.gmra.mrb[104].mxu0 %v9201_v2  ;;  %9887 = vmatmul.mubr.bf16.vlgmr.msra.gmra.mrb[104].mxu1 %v9201_v2  ;;  %v14011_v58 = vpop.eup %14010 }
 0xf97   :  { %14020 = vrcp.f32 %v9545_v22  ;;  %10058 = vmatpush1.bf16.msra.mxu0 %v19853_v5  ;;  %10101 = vmatpush1.bf16.msra.mxu1 %v19858_v40 }
 0xf98   :  { %10059 = vmatprep.subr.bf16.mxu0 %v19863_v49  ;;  %10102 = vmatprep.subr.bf16.mxu1 %v19868_v4  ;;  %14022 = vrcp.f32 %v9557_v13  ;;  %v19946_v13 = vld [vmem:[%s20226_s12 + $0x8c] ss:$16 sps:$4 sm:$0xff]  }
 0xf99   :  { %10089 = vmatprep.mubr.bf16.mxu0 %v20604_v16  ;;  %10132 = vmatprep.mubr.bf16.mxu1 %v20604_v16 }
 0xf9b   :  { %10060 = vmatpush1.bf16.msra.mxu0 %v19878_v33  ;;  %10103 = vmatpush1.bf16.msra.mxu1 %v19883_v56 }
 0xf9c   :  { %10061 = vmatprep.subr.bf16.mxu0 %v19890_v12  ;;  %10104 = vmatprep.subr.bf16.mxu1 %v19895_v9 }
 0xf9d   :  { %v14013_v24 = vpop.eup %14012 }
 0xf9e   :  { %v14015_v30 = vpop.eup %14014  ;;  %v9578_v37 = vmul.f32 %v14013_v24, %v14009_v59  ;;  %v9570_v24 = vadd.f32 1.0, %v14011_v58 }
 0xf9f   :  { %v14017_v62 = vpop.eup %14016  ;;  %10062 = vmatpush1.bf16.msra.mxu0 %v19904_v26  ;;  %10105 = vmatpush1.bf16.msra.mxu1 %v19909_v7 }
 0xfa0   :  { %v14019_v2 = vpop.eup %14018  ;;  %v9576_v22 = vmul.f32 %v14017_v62, %v19493_v28  ;;  %10063 = vmatprep.subr.bf16.mxu0 %v19916_v61  ;;  %10106 = vmatprep.subr.bf16.mxu1 %v19921_v46  ;;  %v19955_v46 = vld [vmem:[%s20226_s12 + $0x80] ss:$16 sps:$4 sm:$0xff]   ;;  %v19960_v61 = vld [vmem:[%s20226_s12 + $0x88] ss:$16 sps:$4 sm:$0xff]   ;;  %14024 = vrcp.f32 %v9570_v24 }
 0xfa1   :  { %v14021_v59 = vpop.eup %14020  ;;  %v9571_v62 = vadd.f32 1.0, %v14019_v2  ;;  %21191 = vst [vmem:[#allocation54_spill] sm:$0xff] %v19960_v61  ;;  %v20008_v24 = vld [vmem:[%s20226_s12 + $0xc0] ss:$16 sps:$4 sm:$0xff]  }
 0xfa2   :  { %v19948_v7 = vadd.f32 %v9578_v37, %v9576_v22  ;;  %v9579_v26 = vmul.f32 %v14021_v59, %v14015_v30  ;;  %v14023_v28 = vpop.eup %14022  ;;  %v19968_v30 = vld [vmem:[%s20226_s12 + $0xa4] ss:$16 sps:$4 sm:$0xff]   ;;  %v19973_v37 = vld [vmem:[%s20226_s12 + $0xac] ss:$16 sps:$4 sm:$0xff]   ;;  %v19988_v22 = vld [vmem:[%s20226_s12 + $0xa8] ss:$16 sps:$4 sm:$0xff]  }
 0xfa3   :  { %10064 = vmatpush1.bf16.msra.mxu0 %v19928_v15  ;;  %10107 = vmatpush1.bf16.msra.mxu1 %v19933_v43  ;;  %v9577_v58 = vmul.f32 %v14023_v28, %v19501_v6  ;;  %21192 = vst [vmem:[#allocation55_spill] sm:$0xff] %v19968_v30  ;;  %21193 = vst [vmem:[#allocation56_spill] sm:$0xff] %v19973_v37  ;;  %v19983_v6 = vld [vmem:[%s20226_s12 + $0xa0] ss:$16 sps:$4 sm:$0xff]   ;;  %v20001_v59 = vld [vmem:[%s20226_s12 + $0xcc] ss:$16 sps:$4 sm:$0xff]  }
 0xfa4   :  { %10065 = vmatprep.subr.bf16.mxu0 %v19941_v45  ;;  %10108 = vmatprep.subr.bf16.mxu1 %v19946_v13  ;;  %14026 = vtanh.f32 %v19948_v7  ;;  %21194 = vst [vmem:[#allocation57_spill] sm:$0xff] %v19983_v6  ;;  %21195 = vst [vmem:[#allocation58_spill] sm:$0xff] %v19988_v22  ;;  %v20013_v28 = vld [vmem:[%s20226_s12 + $0xc8] ss:$16 sps:$4 sm:$0xff]  }
 0xfa5   :  { %v19976_v2 = vadd.f32 %v9579_v26, %v9577_v58  ;;  %14028 = vrcp.f32 %v9571_v62  ;;  %v19996_v26 = vld [vmem:[%s20226_s12 + $0xc4] ss:$16 sps:$4 sm:$0xff]   ;;  %21197 = vst [vmem:[#allocation60_spill] sm:$0xff] %v20001_v59  ;;  %21198 = vst [vmem:[#allocation61_spill] sm:$0xff] %v20008_v24  ;;  %v20025_v58 = vld [vmem:[%s20226_s12 + $0xec] ss:$16 sps:$4 sm:$0xff]  }
 0xfa6   :  { %21196 = vst [vmem:[#allocation59_spill] sm:$0xff] %v19996_v26  ;;  %21199 = vst [vmem:[#allocation62_spill] sm:$0xff] %v20013_v28  ;;  %v20020_v62 = vld [vmem:[%s20226_s12 + $0xe4] ss:$16 sps:$4 sm:$0xff]  }
 0xfa7   :  { %10066 = vmatpush1.bf16.msra.mxu0 %v19955_v46  ;;  %10109 = vmatpush1.bf16.msra.mxu1 %v19960_v61  ;;  %14030 = vtanh.f32 %v19976_v2 }
 0xfa8   :  { %10067 = vmatprep.subr.bf16.mxu0 %v19968_v30  ;;  %10110 = vmatprep.subr.bf16.mxu1 %v19973_v37 }
 0xfab   :  { %10068 = vmatpush1.bf16.msra.mxu0 %v19983_v6  ;;  %10111 = vmatpush1.bf16.msra.mxu1 %v19988_v22  ;;  %v14025_v22 = vpop.eup %14024 }
 0xfac   :  { %10069 = vmatprep.subr.bf16.mxu0 %v19996_v26  ;;  %10112 = vmatprep.subr.bf16.mxu1 %v20001_v59  ;;  %v20032_v26 = vld [vmem:[%s20226_s12 + $0xe0] ss:$16 sps:$4 sm:$0xff]   ;;  %v20037_v59 = vld [vmem:[%s20226_s12 + $0xe8] ss:$16 sps:$4 sm:$0xff]  }
 0xfae   :  { %v14027_v6 = vpop.eup %14026 }
 0xfaf   :  { %10070 = vmatpush1.bf16.msra.mxu0 %v20008_v24  ;;  %10113 = vmatpush1.bf16.msra.mxu1 %v20013_v28  ;;  %v14029_v37 = vpop.eup %14028  ;;  %v9584_v28 = vmul.f32 %v14027_v6, %v14025_v22  ;;  %v21234_v6 = vld [vmem:[#allocation49_spill] sm:$0xff] }
 0xfb0   :  { %10071 = vmatprep.subr.bf16.mxu0 %v20020_v62  ;;  %10114 = vmatprep.subr.bf16.mxu1 %v20025_v58  ;;  %v10143_v22 = vld [vmem:[%s20228_s14] sm:$0xf] }
 0xfb1   :  { %v14031_v30 = vpop.eup %14030 }
 0xfb2   :  { %v9585_v24 = vmul.f32 %v14031_v30, %v14029_v37  ;;  %v21232_v30 = vld [vmem:[#allocation47_spill] sm:$0xff]  ;;  %v21233_v37 = vld [vmem:[#allocation48_spill] sm:$0xff] }
 0xfb3   :  { %10072 = vmatpush1.bf16.msra.mxu0 %v20032_v26  ;;  %10115 = vmatpush1.bf16.msra.mxu1 %v20037_v59 }
 0xfb4   :  { %10434 = vmatprep.subr.bf16.mxu0 %v19519_v60  ;;  %10477 = vmatprep.subr.bf16.mxu1 %v19524_v32  ;;  %v9586_v61 = vpack.c.bf16 %v9585_v24, %v9584_v28  ;;  %v21200_v60 = vld [vmem:[#allocation70_spill] sm:$0xff]  ;;  %v21201_v32 = vld [vmem:[#allocation29_spill] sm:$0xff]  ;;  %v10148_v24 = vrot.slane %v10143_v22, %v20988_v20  ;;  %v10152_v28 = vrot.slane %v10143_v22, %v20991_v10 }
 0xfb6   :  { %10090 = vmatmul.mubr.bf16.vlgmr.msra.gmra.mrb[104].mxu0 %v9586_v61  ;;  %10133 = vmatmul.mubr.bf16.vlgmr.msra.gmra.mrb[104].mxu1 %v9586_v61 }
 0xfb7   :  { %10435 = vmatpush1.bf16.msra.mxu0 %v19531_v35  ;;  %10478 = vmatpush1.bf16.msra.mxu1 %v19537_v0  ;;  %v21202_v35 = vld [vmem:[#allocation15_spill] sm:$0xff]  ;;  %v21203_v0 = vld [vmem:[#allocation16_spill] sm:$0xff] }
 0xfb8   :  { %10436 = vmatprep.subr.bf16.mxu0 %v19545_v55  ;;  %10479 = vmatprep.subr.bf16.mxu1 %v19550_v52  ;;  %v21204_v55 = vld [vmem:[#allocation17_spill] sm:$0xff]  ;;  %v21205_v52 = vld [vmem:[#allocation18_spill] sm:$0xff] }
 0xfb9   :  { %10466 = vmatprep.mubr.bf16.mxu0 %v20604_v16  ;;  %10509 = vmatprep.mubr.bf16.mxu1 %v20604_v16 }
 0xfbb   :  { %10437 = vmatpush1.bf16.msra.mxu0 %v19559_v8  ;;  %10480 = vmatpush1.bf16.msra.mxu1 %v19564_v63  ;;  %v21206_v8 = vld [vmem:[#allocation19_spill] sm:$0xff]  ;;  %v21207_v63 = vld [vmem:[#allocation20_spill] sm:$0xff] }
 0xfbc   :  { %10438 = vmatprep.subr.bf16.mxu0 %v19571_v29  ;;  %10481 = vmatprep.subr.bf16.mxu1 %v19576_v25  ;;  %v21208_v29 = vld [vmem:[#allocation21_spill] sm:$0xff]  ;;  %v21209_v25 = vld [vmem:[#allocation22_spill] sm:$0xff] }
 0xfbf   :  { %10439 = vmatpush1.bf16.msra.mxu0 %v19585_v50  ;;  %10482 = vmatpush1.bf16.msra.mxu1 %v19590_v27  ;;  %v21210_v50 = vld [vmem:[#allocation23_spill] sm:$0xff] }
 0xfc0   :  { %10440 = vmatprep.subr.bf16.mxu0 %v19597_v48  ;;  %10483 = vmatprep.subr.bf16.mxu1 %v19602_v3  ;;  %v21211_v27 = vld [vmem:[#allocation27_spill] sm:$0xff]  ;;  %v21212_v48 = vld [vmem:[#allocation28_spill] sm:$0xff] }
 0xfc1   :  { %v21213_v3 = vld [vmem:[#allocation31_spill] sm:$0xff] }
 0xfc3   :  { %10441 = vmatpush1.bf16.msra.mxu0 %v19609_v51  ;;  %10484 = vmatpush1.bf16.msra.mxu1 %v19614_v47  ;;  %v21214_v51 = vld [vmem:[#allocation32_spill] sm:$0xff] }
 0xfc4   :  { %10442 = vmatprep.subr.bf16.mxu0 %v19621_v11  ;;  %10485 = vmatprep.subr.bf16.mxu1 %v19626_v34  ;;  %v21215_v47 = vld [vmem:[#allocation24_spill] sm:$0xff]  ;;  %v21216_v11 = vld [vmem:[#allocation25_spill] sm:$0xff]  ;;  %v21217_v34 = vld [vmem:[#allocation26_spill] sm:$0xff] }
 0xfc7   :  { %10443 = vmatpush1.bf16.msra.mxu0 %v19633_v23  ;;  %10486 = vmatpush1.bf16.msra.mxu1 %v19638_v17  ;;  %v21218_v23 = vld [vmem:[#allocation33_spill] sm:$0xff]  ;;  %v21219_v17 = vld [vmem:[#allocation34_spill] sm:$0xff] }
 0xfc8   :  { %10444 = vmatprep.subr.bf16.mxu0 %v19645_v53  ;;  %10487 = vmatprep.subr.bf16.mxu1 %v19650_v19  ;;  %v21220_v53 = vld [vmem:[#allocation35_spill] sm:$0xff]  ;;  %v21221_v19 = vld [vmem:[#allocation36_spill] sm:$0xff] }
 0xfcb   :  { %10445 = vmatpush1.bf16.msra.mxu0 %v19657_v39  ;;  %10488 = vmatpush1.bf16.msra.mxu1 %v19662_v42  ;;  %v21222_v39 = vld [vmem:[#allocation37_spill] sm:$0xff]  ;;  %v21223_v42 = vld [vmem:[#allocation38_spill] sm:$0xff] }
 0xfcc   :  { %10446 = vmatprep.subr.bf16.mxu0 %v19669_v57  ;;  %10489 = vmatprep.subr.bf16.mxu1 %v19674_v54  ;;  %v21224_v57 = vld [vmem:[#allocation39_spill] sm:$0xff]  ;;  %v21225_v54 = vld [vmem:[#allocation40_spill] sm:$0xff] }
 0xfcf   :  { %10447 = vmatpush1.bf16.msra.mxu0 %v19681_v21  ;;  %10490 = vmatpush1.bf16.msra.mxu1 %v19686_v18  ;;  %v21226_v21 = vld [vmem:[#allocation42_spill] sm:$0xff]  ;;  %v21227_v18 = vld [vmem:[#allocation44_spill] sm:$0xff] }
 0xfd0   :  { %10448 = vmatprep.subr.bf16.mxu0 %v19693_v41  ;;  %10491 = vmatprep.subr.bf16.mxu1 %v19698_v44  ;;  %v21228_v41 = vld [vmem:[#allocation41_spill] sm:$0xff]  ;;  %v21229_v44 = vld [vmem:[#allocation43_spill] sm:$0xff] }
 0xfd3   :  { %10449 = vmatpush1.bf16.msra.mxu0 %v19705_v1  ;;  %10492 = vmatpush1.bf16.msra.mxu1 %v21200_v60  ;;  %v21230_v1 = vld [vmem:[#allocation45_spill] sm:$0xff] }
 0xfd4   :  { %10831 = vmatprep.subr.bf16.mxu0 %v21201_v32  ;;  %10874 = vmatprep.subr.bf16.mxu1 %v21202_v35 }
 0xfd6   :  { %10467 = vmatmul.mubr.bf16.vlgmr.msra.gmra.mrb[84].mxu0 %v9586_v61  ;;  %10510 = vmatmul.mubr.bf16.vlgmr.msra.gmra.mrb[84].mxu1 %v9586_v61  ;;  %v21231_v61 = vld [vmem:[#allocation46_spill] sm:$0xff] }
 0xfd7   :  { %10832 = vmatpush1.bf16.msra.mxu0 %v21203_v0  ;;  %10875 = vmatpush1.bf16.msra.mxu1 %v21204_v55 }
 0xfd8   :  { %10833 = vmatprep.subr.bf16.mxu0 %v21205_v52  ;;  %10876 = vmatprep.subr.bf16.mxu1 %v21206_v8 }
 0xfd9   :  { %10863 = vmatprep.mubr.bf16.mxu0 %v20604_v16  ;;  %10906 = vmatprep.mubr.bf16.mxu1 %v20604_v16 }
 0xfdb   :  { %10834 = vmatpush1.bf16.msra.mxu0 %v21207_v63  ;;  %10877 = vmatpush1.bf16.msra.mxu1 %v21208_v29 }
 0xfdc   :  { %10835 = vmatprep.subr.bf16.mxu0 %v21209_v25  ;;  %10878 = vmatprep.subr.bf16.mxu1 %v21210_v50 }
 0xfdf   :  { %10836 = vmatpush1.bf16.msra.mxu0 %v21211_v27  ;;  %10879 = vmatpush1.bf16.msra.mxu1 %v21212_v48 }
 0xfe0   :  { %10837 = vmatprep.subr.bf16.mxu0 %v21213_v3  ;;  %10880 = vmatprep.subr.bf16.mxu1 %v21214_v51  ;;  %v10160_v3 = vrot.slane %v10143_v22, %v20994_v31 }
 0xfe3   :  { %10838 = vmatpush1.bf16.msra.mxu0 %v21215_v47  ;;  %10881 = vmatpush1.bf16.msra.mxu1 %v21216_v11 }
 0xfe4   :  { %10839 = vmatprep.subr.bf16.mxu0 %v21217_v34  ;;  %10882 = vmatprep.subr.bf16.mxu1 %v21218_v23  ;;  %v10156_v34 = vrot.slane %v10143_v22, %v20996_v36 }
 0xfe7   :  { %10840 = vmatpush1.bf16.msra.mxu0 %v21219_v17  ;;  %10883 = vmatpush1.bf16.msra.mxu1 %v21220_v53 }
 0xfe8   :  { %10841 = vmatprep.subr.bf16.mxu0 %v21221_v19  ;;  %10884 = vmatprep.subr.bf16.mxu1 %v21222_v39 }
 0xfeb   :  { %10842 = vmatpush1.bf16.msra.mxu0 %v21223_v42  ;;  %10885 = vmatpush1.bf16.msra.mxu1 %v21224_v57 }
 0xfec   :  { %10843 = vmatprep.subr.bf16.mxu0 %v21225_v54  ;;  %10886 = vmatprep.subr.bf16.mxu1 %v21226_v21 }
 0xfef   :  { %10844 = vmatpush1.bf16.msra.mxu0 %v21227_v18  ;;  %10887 = vmatpush1.bf16.msra.mxu1 %v21228_v41 }
 0xff0   :  { %10845 = vmatprep.subr.bf16.mxu0 %v21229_v44  ;;  %10888 = vmatprep.subr.bf16.mxu1 %v21230_v1 }
 0xff3   :  { %10846 = vmatpush1.bf16.msra.mxu0 %v21231_v61  ;;  %10889 = vmatpush1.bf16.msra.mxu1 %v21232_v30 }
 0xff4   :  { %11077 = vmatprep.subr.bf16.mxu0 %v21233_v37  ;;  %11120 = vmatprep.subr.bf16.mxu1 %v21234_v6  ;;  %v10528_v6 = vld [vmem:[%s20225_s11] sm:$0xf] }
0x1089   :  { %v10091_v60 = vpop.f32.mrb[104].mxu0  ;;  %v10134_v32 = vpop.f32.mrb[104].mxu1 }
0x108a   :  { %v10165_v35 = vadd.f32 %v10148_v24, %v10091_v60  ;;  %v10093_v0 = vpop.f32.mrb[105].mxu0  ;;  %v10136_v55 = vpop.f32.mrb[105].mxu1  ;;  %v10167_v53 = vadd.f32 %v10156_v34, %v10134_v32  ;;  %v10533_v32 = vrot.slane %v10528_v6, %v20988_v20 }
0x108b   :  { %v10166_v52 = vadd.f32 %v10152_v28, %v10093_v0  ;;  %v10095_v8 = vpop.f32.mrb[106].mxu0  ;;  %v10138_v63 = vpop.f32.mrb[106].mxu1  ;;  %v10168_v23 = vadd.f32 %v10160_v3, %v10136_v55 }
0x108c   :  { %v12143_v29 = vmul.f32 -1.442695, %v10165_v35  ;;  %v10169_v25 = vadd.f32 %v10148_v24, %v10095_v8  ;;  %v10097_v50 = vpop.f32.mrb[107].mxu0  ;;  %v10140_v27 = vpop.f32.mrb[107].mxu1  ;;  %v10171_v21 = vadd.f32 %v10156_v34, %v10138_v63 }
0x108d   :  { %v12145_v48 = vmul.f32 -1.442695, %v10166_v52  ;;  %v10170_v51 = vadd.f32 %v10152_v28, %v10097_v50  ;;  %v10172_v17 = vadd.f32 %v10160_v3, %v10140_v27  ;;  %v12147_v19 = vmul.f32 -1.442695, %v10168_v23 }
0x108e   :  { %14032 = vpow2.f32 %v12143_v29  ;;  %v12144_v47 = vmul.f32 -1.442695, %v10169_v25  ;;  %v10537_v52 = vrot.slane %v10528_v6, %v20991_v10 }
0x108f   :  { %14034 = vpow2.f32 %v12145_v48  ;;  %v12146_v11 = vmul.f32 -1.442695, %v10170_v51  ;;  %v12148_v39 = vmul.f32 -1.442695, %v10172_v17 }
0x1090   :  { %14036 = vpow2.f32 %v12144_v47 }
0x1091   :  { %14038 = vpow2.f32 %v12146_v11 }
0x1092   :  { %14040 = vtanh.f32 %v10167_v53 }
0x1093   :  { %14042 = vpow2.f32 %v12147_v19 }
0x1094   :  { %14044 = vpow2.f32 %v12148_v39 }
0x1098   :  { %v14033_v42 = vpop.eup %14032 }
0x1099   :  { %v14035_v57 = vpop.eup %14034  ;;  %v10179_v54 = vadd.f32 1.0, %v14033_v42 }
0x109a   :  { %v10191_v18 = vadd.f32 1.0, %v14035_v57  ;;  %v14037_v41 = vpop.eup %14036 }
0x109b   :  { %14046 = vrcp.f32 %v10179_v54  ;;  %v10180_v44 = vadd.f32 1.0, %v14037_v41  ;;  %v14039_v1 = vpop.eup %14038  ;;  %v10541_v41 = vrot.slane %v10528_v6, %v20996_v36 }
0x109c   :  { %14048 = vrcp.f32 %v10191_v18  ;;  %v10192_v61 = vadd.f32 1.0, %v14039_v1  ;;  %v14041_v30 = vpop.eup %14040 }
0x109d   :  { %14050 = vtanh.f32 %v10171_v21  ;;  %v14043_v37 = vpop.eup %14042  ;;  %v10545_v21 = vrot.slane %v10528_v6, %v20994_v31 }
0x109e   :  { %14052 = vrcp.f32 %v10180_v44  ;;  %v14045_v22 = vpop.eup %14044  ;;  %v10205_v55 = vadd.f32 1.0, %v14043_v37 }
0x109f   :  { %14054 = vrcp.f32 %v10192_v61  ;;  %v10206_v63 = vadd.f32 1.0, %v14045_v22 }
0x10a0   :  { %14056 = vrcp.f32 %v10205_v55 }
0x10a1   :  { %14058 = vrcp.f32 %v10206_v63 }
0x10a5   :  { %v14047_v24 = vpop.eup %14046 }
0x10a6   :  { %v14049_v28 = vpop.eup %14048  ;;  %v10213_v60 = vmul.f32 %v14047_v24, %v14041_v30 }
0x10a7   :  { %v14051_v35 = vpop.eup %14050  ;;  %v10211_v0 = vmul.f32 %v14049_v28, %v19841_v14 }
0x10a8   :  { %v14053_v8 = vpop.eup %14052 }
0x10a9   :  { %v20126_v29 = vadd.f32 %v10213_v60, %v10211_v0  ;;  %v10214_v25 = vmul.f32 %v14053_v8, %v14051_v35  ;;  %v10468_v50 = vpop.f32.mrb[84].mxu0  ;;  %v10511_v27 = vpop.f32.mrb[84].mxu1 }
0x10aa   :  { %v14055_v48 = vpop.eup %14054  ;;  %v10550_v3 = vadd.f32 %v10533_v32, %v10468_v50  ;;  %v10470_v51 = vpop.f32.mrb[85].mxu0  ;;  %v10552_v61 = vadd.f32 %v10541_v41, %v10511_v27 }
0x10ab   :  { %v10513_v47 = vpop.f32.mrb[85].mxu1  ;;  %v10212_v11 = vmul.f32 %v14055_v48, %v19845_v38  ;;  %v10551_v34 = vadd.f32 %v10537_v52, %v10470_v51  ;;  %v10472_v23 = vpop.f32.mrb[86].mxu0  ;;  %14060 = vtanh.f32 %v20126_v29 }
0x10ac   :  { %v10515_v14 = vpop.f32.mrb[86].mxu1  ;;  %v12185_v17 = vmul.f32 -1.442695, %v10550_v3  ;;  %v10554_v53 = vadd.f32 %v10533_v32, %v10472_v23  ;;  %v10474_v19 = vpop.f32.mrb[87].mxu0  ;;  %v10553_v44 = vadd.f32 %v10545_v21, %v10513_v47 }
0x10ad   :  { %v10517_v39 = vpop.f32.mrb[87].mxu1  ;;  %v20130_v42 = vadd.f32 %v10214_v25, %v10212_v11  ;;  %v12187_v57 = vmul.f32 -1.442695, %v10551_v34  ;;  %v10555_v54 = vadd.f32 %v10537_v52, %v10474_v19  ;;  %v14057_v1 = vpop.eup %14056  ;;  %v10556_v60 = vadd.f32 %v10541_v41, %v10515_v14  ;;  %v21235_v11 = vld [vmem:[#allocation50_spill] sm:$0xff]  ;;  %v21236_v34 = vld [vmem:[#allocation51_spill] sm:$0xff] }
0x10ae   :  { %14062 = vpow2.f32 %v12185_v17  ;;  %v12186_v18 = vmul.f32 -1.442695, %v10554_v53  ;;  %v14059_v30 = vpop.eup %14058  ;;  %v12189_v37 = vmul.f32 -1.442695, %v10553_v44  ;;  %v10557_v22 = vadd.f32 %v10545_v21, %v10517_v39  ;;  %v21239_v39 = vld [vmem:[#allocation54_spill] sm:$0xff] }
0x10af   :  { %14064 = vtanh.f32 %v20130_v42  ;;  %v12188_v38 = vmul.f32 -1.442695, %v10555_v54  ;;  %v21243_v54 = vld [vmem:[#allocation58_spill] sm:$0xff] }
0x10b0   :  { %14066 = vpow2.f32 %v12187_v57  ;;  %v12190_v55 = vmul.f32 -1.442695, %v10557_v22  ;;  %v21240_v57 = vld [vmem:[#allocation55_spill] sm:$0xff] }
0x10b1   :  { %14068 = vpow2.f32 %v12186_v18  ;;  %v21246_v18 = vld [vmem:[#allocation61_spill] sm:$0xff] }
0x10b2   :  { %14070 = vpow2.f32 %v12188_v38 }
0x10b3   :  { %14072 = vtanh.f32 %v10552_v61 }
0x10b4   :  { %14074 = vpow2.f32 %v12189_v37 }
0x10b5   :  { %v14061_v24 = vpop.eup %14060 }
0x10b6   :  { %v10219_v52 = vmul.f32 %v14061_v24, %v14057_v1 }
0x10b8   :  { %v14063_v28 = vpop.eup %14062 }
0x10b9   :  { %v14065_v32 = vpop.eup %14064  ;;  %v10564_v35 = vadd.f32 1.0, %v14063_v28 }
0x10ba   :  { %v14067_v0 = vpop.eup %14066  ;;  %v10220_v8 = vmul.f32 %v14065_v32, %v14059_v30  ;;  %v11163_v30 = vld [vmem:[%s20228_s14] sm:$0xf]  ;;  %s14540_s14 = smov [#allocation8]  }
0x10bb   :  { %14076 = vrcp.f32 %v10564_v35  ;;  %v10576_v6 = vadd.f32 1.0, %v14067_v0  ;;  %v14069_v63 = vpop.eup %14068  ;;  %s11281_s29 = sshll.u32 %s14540_s14, 4  ;;  %s11282_s29 = int_to_ptr.vmem [resolvable:$true] %s11281_s29 }
0x10bc   :  { %14078 = vtanh.f32 %v10556_v60  ;;  %v10221_v25 = vpack.c.bf16 %v10220_v8, %v10219_v52  ;;  %v10565_v50 = vadd.f32 1.0, %v14069_v63  ;;  %v14071_v27 = vpop.eup %14070  ;;  %s14486_s18 = scalar_lea.vmem %s11282_s29, 512  ;;  %p14491_p9 = scmp.lt.s32.totalorder %s11282_s29, %s11282_s29 }
0x10bd   :  { %14080 = vrcp.f32 %v10576_v6  ;;  %v10577_v48 = vadd.f32 1.0, %v14071_v27  ;;  %v14073_v3 = vpop.eup %14072  ;;  %v11180_v6 = vrot.slane %v11163_v30, %v20994_v31  ;;  %p14487_p8 = scmp.ne.s32.totalorder %s11282_s29, %s14486_s18  ;;  %p14492_p10 = scmp.lt.s32.totalorder %s14486_s18, %s14486_s18 }
0x10be   :  { %14082 = vpow2.f32 %v12190_v55  ;;  %12310 = vst [vmem:[%s20229_s15 + $0x20] sm:$0xff] %v10221_v25   ;;  %10864 = vmatmul.mubr.bf16.vlgmr.msra.gmra.mrb[108].mxu0 %v10221_v25  ;;  %10907 = vmatmul.mubr.bf16.vlgmr.msra.gmra.mrb[108].mxu1 %v10221_v25  ;;  %v14075_v51 = vpop.eup %14074  ;;  %v11176_v25 = vrot.slane %v11163_v30, %v20996_v36 }
0x10bf   :  { %14084 = vrcp.f32 %v10565_v50  ;;  %11078 = vmatpush1.bf16.msra.mxu0 %v19853_v5  ;;  %11121 = vmatpush1.bf16.msra.mxu1 %v19858_v40  ;;  %p14493_p11 = por %p14492_p10, %p14491_p9 }
0x10c0   :  { %11079 = vmatprep.subr.bf16.mxu0 %v19863_v49  ;;  %11122 = vmatprep.subr.bf16.mxu1 %v19868_v4  ;;  %14086 = vrcp.f32 %v10577_v48  ;;  %v10590_v4 = vadd.f32 1.0, %v14075_v51 }
0x10c1   :  { %11109 = vmatprep.mubr.bf16.mxu0 %v20604_v16  ;;  %11152 = vmatprep.mubr.bf16.mxu1 %v20604_v16  ;;  %p14494_p12 = pnand %p14493_p11, %p14487_p8 }
0x10c2   :  { %14088 = vrcp.f32 %v10590_v4 }
0x10c3   :  { %11080 = vmatpush1.bf16.msra.mxu0 %v19878_v33  ;;  %11123 = vmatpush1.bf16.msra.mxu1 %v19883_v56  ;;  %v21237_v33 = vld [vmem:[#allocation52_spill] sm:$0xff]  ;;  %v21238_v56 = vld [vmem:[#allocation53_spill] sm:$0xff] }
0x10c4   :  { %11081 = vmatprep.subr.bf16.mxu0 %v19890_v12  ;;  %11124 = vmatprep.subr.bf16.mxu1 %v19895_v9 }
0x10c5   :  { %v14077_v5 = vpop.eup %14076 }
0x10c6   :  { %v14079_v40 = vpop.eup %14078  ;;  %v10598_v49 = vmul.f32 %v14077_v5, %v14073_v3 }
0x10c7   :  { %v14081_v47 = vpop.eup %14080  ;;  %11082 = vmatpush1.bf16.msra.mxu0 %v21235_v11  ;;  %11125 = vmatpush1.bf16.msra.mxu1 %v21236_v34 }
0x10c8   :  { %v14083_v16 = vpop.eup %14082  ;;  %v10596_v23 = vmul.f32 %v14081_v47, %v19948_v7  ;;  %11083 = vmatprep.subr.bf16.mxu0 %v21237_v33  ;;  %11126 = vmatprep.subr.bf16.mxu1 %v21238_v56 }
0x10c9   :  { %v14085_v14 = vpop.eup %14084  ;;  %v10591_v53 = vadd.f32 1.0, %v14083_v16 }
0x10ca   :  { %v10600_v12 = vadd.f32 %v10598_v49, %v10596_v23  ;;  %v10599_v17 = vmul.f32 %v14085_v14, %v14079_v40  ;;  %v14087_v9 = vpop.eup %14086 }
0x10cb   :  { %11084 = vmatpush1.bf16.msra.mxu0 %v19928_v15  ;;  %11127 = vmatpush1.bf16.msra.mxu1 %v19933_v43  ;;  %v10597_v19 = vmul.f32 %v14087_v9, %v19976_v2  ;;  %v21241_v15 = vld [vmem:[#allocation56_spill] sm:$0xff]  ;;  %v21242_v43 = vld [vmem:[#allocation57_spill] sm:$0xff]  ;;  %v21244_v2 = vld [vmem:[#allocation59_spill] sm:$0xff] }
0x10cc   :  { %14090 = vtanh.f32 %v10600_v12  ;;  %11257 = vst [vmem:[#allocation8] sm:$0xff] %v10600_v12  ;;  %11085 = vmatprep.subr.bf16.mxu0 %v19941_v45  ;;  %11128 = vmatprep.subr.bf16.mxu1 %v19946_v13  ;;  %v21245_v45 = vld [vmem:[#allocation60_spill] sm:$0xff]  ;;  %v14089_v13 = vpop.eup %14088 }
0x10cd   :  { %v10601_v7 = vadd.f32 %v10599_v17, %v10597_v19  ;;  %14092 = vrcp.f32 %v10591_v53 }
0x10cf   :  { %11086 = vmatpush1.bf16.msra.mxu0 %v19955_v46  ;;  %11129 = vmatpush1.bf16.msra.mxu1 %v21239_v39  ;;  %14094 = vtanh.f32 %v10601_v7  ;;  %11258 = vst [vmem:[#allocation8 + $0x8] sm:$0xff] %v10601_v7  ;;  %v21247_v46 = vld [vmem:[#allocation62_spill] sm:$0xff] }
0x10d0   :  { %11087 = vmatprep.subr.bf16.mxu0 %v21240_v57  ;;  %11130 = vmatprep.subr.bf16.mxu1 %v21241_v15 }
0x10d3   :  { %11088 = vmatpush1.bf16.msra.mxu0 %v21242_v43  ;;  %11131 = vmatpush1.bf16.msra.mxu1 %v21243_v54 }
0x10d4   :  { %11089 = vmatprep.subr.bf16.mxu0 %v21244_v2  ;;  %11132 = vmatprep.subr.bf16.mxu1 %v21245_v45 }
0x10d6   :  { %v14091_v21 = vpop.eup %14090 }
0x10d7   :  { %11090 = vmatpush1.bf16.msra.mxu0 %v21246_v18  ;;  %11133 = vmatpush1.bf16.msra.mxu1 %v21247_v46  ;;  %v10604_v38 = vmul.f32 %v14091_v21, %v14089_v13  ;;  %v14093_v41 = vpop.eup %14092 }
0x10d8   :  { %11091 = vmatprep.subr.bf16.mxu0 %v20020_v62  ;;  %11134 = vmatprep.subr.bf16.mxu1 %v20025_v58  ;;  %v11168_v62 = vrot.slane %v11163_v30, %v20988_v20  ;;  %v11172_v58 = vrot.slane %v11163_v30, %v20991_v10 }
0x10d9   :  { %11252 = vst [vmem:[#allocation7] sm:$0xff] %v10604_v38  ;;  %v14095_v44 = vpop.eup %14094 }
0x10da   :  { %v10605_v1 = vmul.f32 %v14095_v44, %v14093_v41 }
0x10db   :  { %11092 = vmatpush1.bf16.msra.mxu0 %v20032_v26  ;;  %11135 = vmatpush1.bf16.msra.mxu1 %v20037_v59 }
0x10dc   :  { %v10606_v61 = vpack.c.bf16 %v10605_v1, %v10604_v38  ;;  %11253 = vst [vmem:[#allocation7 + $0x8] sm:$0xff] %v10605_v1 }
0x10de   :  { %11110 = vmatmul.mubr.bf16.vlgmr.msra.gmra.mrb[108].mxu0 %v10606_v61  ;;  %11153 = vmatmul.mubr.bf16.vlgmr.msra.gmra.mrb[108].mxu1 %v10606_v61 }
0x11b1   :  { %v11111_v37 = vpop.f32.mrb[108].mxu0  ;;  %v11154_v22 = vpop.f32.mrb[108].mxu1 }
0x11b2   :  { %v11185_v24 = vadd.f32 %v11168_v62, %v11111_v37  ;;  %v11113_v28 = vpop.f32.mrb[109].mxu0  ;;  %v11156_v26 = vpop.f32.mrb[109].mxu1  ;;  %v11187_v27 = vadd.f32 %v11176_v25, %v11154_v22 }
0x11b3   :  { %v11186_v60 = vadd.f32 %v11172_v58, %v11113_v28  ;;  %v11115_v59 = vpop.f32.mrb[110].mxu0  ;;  %v11158_v32 = vpop.f32.mrb[110].mxu1  ;;  %v11188_v50 = vadd.f32 %v11180_v6, %v11156_v26 }
0x11b4   :  { %v12255_v35 = vmul.f32 -1.442695, %v11185_v24  ;;  %v11189_v0 = vadd.f32 %v11168_v62, %v11115_v59  ;;  %v11117_v55 = vpop.f32.mrb[111].mxu0  ;;  %v11160_v52 = vpop.f32.mrb[111].mxu1  ;;  %v11191_v51 = vadd.f32 %v11176_v25, %v11158_v32 }
0x11b5   :  { %v12257_v8 = vmul.f32 -1.442695, %v11186_v60  ;;  %v11190_v63 = vadd.f32 %v11172_v58, %v11117_v55  ;;  %v12259_v48 = vmul.f32 -1.442695, %v11188_v50  ;;  %v11192_v3 = vadd.f32 %v11180_v6, %v11160_v52 }
0x11b6   :  { %14096 = vpow2.f32 %v12255_v35  ;;  %v12256_v20 = vmul.f32 -1.442695, %v11189_v0 }
0x11b7   :  { %14098 = vpow2.f32 %v12257_v8  ;;  %v12258_v10 = vmul.f32 -1.442695, %v11190_v63  ;;  %v12260_v31 = vmul.f32 -1.442695, %v11192_v3 }
0x11b8   :  { %14100 = vpow2.f32 %v12256_v20 }
0x11b9   :  { %14102 = vpow2.f32 %v12258_v10 }
0x11ba   :  { %14104 = vtanh.f32 %v11187_v27 }
0x11bb   :  { %14106 = vpow2.f32 %v12259_v48 }
0x11bc   :  { %14108 = vtanh.f32 %v11191_v51 }
0x11c0   :  { %v14097_v5 = vpop.eup %14096 }
0x11c1   :  { %v14099_v40 = vpop.eup %14098  ;;  %v11199_v49 = vadd.f32 1.0, %v14097_v5 }
0x11c2   :  { %v11211_v47 = vadd.f32 1.0, %v14099_v40  ;;  %v14101_v4 = vpop.eup %14100 }
0x11c3   :  { %14110 = vrcp.f32 %v11199_v49  ;;  %v11200_v11 = vadd.f32 1.0, %v14101_v4  ;;  %v14103_v36 = vpop.eup %14102 }
0x11c4   :  { %14112 = vrcp.f32 %v11211_v47  ;;  %v11212_v34 = vadd.f32 1.0, %v14103_v36  ;;  %v14105_v16 = vpop.eup %14104 }
0x11c5   :  { %14114 = vpow2.f32 %v12260_v31  ;;  %v14107_v23 = vpop.eup %14106 }
0x11c6   :  { %14116 = vrcp.f32 %v11200_v11  ;;  %v14109_v33 = vpop.eup %14108  ;;  %v11225_v17 = vadd.f32 1.0, %v14107_v23 }
0x11c7   :  { %14118 = vrcp.f32 %v11212_v34 }
0x11c8   :  { %14120 = vrcp.f32 %v11225_v17 }
0x11cd   :  { %v14111_v56 = vpop.eup %14110 }
0x11ce   :  { %v14113_v14 = vpop.eup %14112  ;;  %v11233_v12 = vmul.f32 %v14111_v56, %v14105_v16 }
0x11cf   :  { %v14115_v9 = vpop.eup %14114  ;;  %v11231_v53 = vmul.f32 %v14113_v14, %v20126_v29 }
0x11d0   :  { %v14117_v19 = vpop.eup %14116  ;;  %v11226_v15 = vadd.f32 1.0, %v14115_v9 }
0x11d1   :  { %v11235_v7 = vadd.f32 %v11233_v12, %v11231_v53  ;;  %v11234_v39 = vmul.f32 %v14117_v19, %v14109_v33  ;;  %v14119_v57 = vpop.eup %14118 }
0x11d2   :  { %v11232_v43 = vmul.f32 %v14119_v57, %v20130_v42 }
0x11d3   :  { %14122 = vtanh.f32 %v11235_v7  ;;  %11260 = vst [vmem:[#allocation8 + $0x10] sm:$0xff] %v11235_v7 }
0x11d4   :  { %v11236_v54 = vadd.f32 %v11234_v39, %v11232_v43  ;;  %14124 = vrcp.f32 %v11226_v15 }
0x11d6   :  { %14126 = vtanh.f32 %v11236_v54  ;;  %11261 = vst [vmem:[#allocation8 + $0x18] sm:$0xff] %v11236_v54 }
0x11d7   :  { %14497 = shalt.err (!%p14494_p12)
}
0x11d8   :  { %s14498_s8 = scalar_lea.hbm %s20231_s17, 512 }
0x11d9   :  { %p14499_p13 = scmp.ne.s32.totalorder %s20231_s17, %s14498_s8  ;;  %p14502_p0 = scmp.lt.u32.totalorder %s14498_s8, %s20231_s17 }
0x11db   :  { %p14504_p1 = pnand %p14502_p0, %p14499_p13 }
0x11dd   :  { %14507 = shalt.err (!%p14504_p1)
}
0x11de   :  { %s14541_s21 = smov 128   ;;  %s14542_s22 = smov 8   ;;  %v14121_v29 = vpop.eup %14120 }
0x11df   :  { %11287 = dma.vmem_to_hbm [thread:$0]  %s11282_s29, 512, %s20231_s17, [#allocation9], %s14541_s21, %s14541_s21, %s14542_s22   ;;  %v14123_v42 = vpop.eup %14122 }
0x11e0   :  { %v11239_v2 = vmul.f32 %v14123_v42, %v14121_v29  ;;  %s14543_s9 = smov [#allocation7]   ;;  %v14125_v45 = vpop.eup %14124 }
0x11e1   :  { %s11269_s24 = sshll.u32 %s14543_s9, 4  ;;  %v14127_v13 = vpop.eup %14126  ;;  %s11270_s24 = int_to_ptr.vmem [resolvable:$true] %s11269_s24 }
0x11e2   :  { %11255 = vst [vmem:[#allocation7 + $0x10] sm:$0xff] %v11239_v2  ;;  %v11240_v21 = vmul.f32 %v14127_v13, %v14125_v45  ;;  %s14508_s26 = scalar_lea.vmem %s11270_s24, 512  ;;  %p14513_p3 = scmp.lt.s32.totalorder %s11270_s24, %s11270_s24 }
0x11e3   :  { %p14509_p2 = scmp.ne.s32.totalorder %s11270_s24, %s14508_s26  ;;  %p14514_p4 = scmp.lt.s32.totalorder %s14508_s26, %s14508_s26 }
0x11e4   :  { %v12305_v18 = vpack.c.bf16 %v11240_v21, %v11239_v2  ;;  %11256 = vst [vmem:[#allocation7 + $0x18] sm:$0xff] %v11240_v21 }
0x11e5   :  { %p14515_p5 = por %p14514_p4, %p14513_p3 }
0x11e7   :  { %p14516_p6 = pnand %p14515_p5, %p14509_p2 }
0x11e9   :  { %14519 = shalt.err (!%p14516_p6)
}
0x11ea   :  { %s14520_s13 = scalar_lea.hbm %s20230_s16, 512 }
0x11eb   :  { %p14521_p7 = scmp.ne.s32.totalorder %s20230_s16, %s14520_s13  ;;  %p14524_p8 = scmp.lt.u32.totalorder %s14520_s13, %s20230_s16 }
0x11ed   :  { %p14526_p9 = pnand %p14524_p8, %p14521_p7 }
0x11ef   :  { %14529 = shalt.err (!%p14526_p9)
}
0x11f0   :  { %11275 = dma.vmem_to_hbm [thread:$0]  %s11270_s24, 512, %s20230_s16, [#allocation6], %s14541_s21, %s14541_s21, %s14542_s22  }
0x11f1   :  { %12311 = vst [vmem:[%s20229_s15 + $0x28] sm:$0xff] %v12305_v18  }
0x11f2   :  { %14532 = dma.done.wait [#allocation6], 512  }
0x11f3   :  { %14533 = vsyncadd [#allocation6], 4294966784 }
0x11f4   :  { %14534 = dma.done.wait [#allocation9], 512  }
0x11f5   :  { %14535 = vsyncadd [#allocation9], 4294966784 }
0x11f6   :  { %11296 = vsyncpa [#allocation5], 1 }
0x11f7   :  { %11297 = vsyncpa [#allocation6], 1 }
0x11f8   :  { %11298 = vsyncpa [#allocation9], 1 }

</bundles_post_ra>
